<compile_context>
chip_gen: v7x
topology: tpu7x:2x2x1
jax: 0.10.0
libtpu: 0.0.40
codegen_flags: <defaults>
</compile_context>

<pallas_src>
import math
import functools

import jax
import jax.numpy as jnp
from jax.experimental import pallas as pl
from jax.experimental.pallas import tpu as pltpu


# ----------------------------------------------------------------------------
# Tiling helpers
# ----------------------------------------------------------------------------
_TM = 256          # row (B*L) tile target
_TN = 256          # output-column tile target
_TK = 512          # reduction tile target
_TQ = 256          # attention query-row tile target
_TKV = 512         # attention kv-row tile target
_VMEM_LIMIT = 48 * 1024 * 1024   # scoped-VMEM budget (safe on v7x's 64 MiB)

_SQRT_2_OVER_PI = 0.7978845608028654


def _gelu_tanh(y):
    return 0.5 * y * (1.0 + jnp.tanh(_SQRT_2_OVER_PI * (y + 0.044715 * y * y * y)))


def _pick_tile(dim, target, quantum):
    """Largest tile <= target that divides `dim` and is a multiple of `quantum`.
    Falls back to the full dim when it is not quantum-aligned (BlockSpec allows
    block == full array dim)."""
    if dim % quantum != 0:
        return dim
    t = min(target, dim)
    t -= t % quantum
    t = max(t, quantum)
    while dim % t != 0:
        t -= quantum
    return t


def _pick_tile_common(dim, extra, target, quantum):
    """Like _pick_tile but the tile must also divide `extra` (column offsets /
    activation-column boundaries).  Returns None if impossible."""
    if dim % quantum != 0 or extra % quantum != 0:
        return None
    t = min(target, dim)
    t -= t % quantum
    while t >= quantum:
        if dim % t == 0 and extra % t == 0:
            return t
        t -= quantum
    return None


# ----------------------------------------------------------------------------
# Fused tiled linear kernel:  y = act_out( prologue(x) @ W + b ),
# optional epilogue y = res + gate * y.
# ----------------------------------------------------------------------------
def _linear_kernel(x_ref, w_ref, b_ref, *rest,
                   prologue, act_out, gelu_block_start, has_residual):
    idx = 0
    scale_ref = shift_ref = res_ref = gate_ref = None
    if prologue == "ln_mod":
        scale_ref, shift_ref = rest[0], rest[1]
        idx = 2
    if has_residual:
        res_ref, gate_ref = rest[idx], rest[idx + 1]
        idx += 2
    o_ref, acc_ref = rest[idx], rest[idx + 1]

    # --- grid indices hoisted out of pl.when bodies (interpret-safe) ---------
    k = pl.program_id(3)
    k_last = pl.num_programs(3) - 1
    j = pl.program_id(2) if act_out == "gelu_cols" else None

    @pl.when(k == 0)
    def _init():
        acc_ref[...] = jnp.zeros_like(acc_ref)

    x = x_ref[0]                                     # (tm, tk), storage dtype
    if prologue == "ln_mod":
        xf = x.astype(jnp.float32)
        mean = jnp.mean(xf, axis=-1, keepdims=True)
        var = jnp.mean(jnp.square(xf - mean), axis=-1, keepdims=True)
        xn = (xf - mean) * jax.lax.rsqrt(var + 1e-6)
        sc = scale_ref[0].astype(jnp.float32)        # (1, K)
        sh = shift_ref[0].astype(jnp.float32)        # (1, K)
        x = ((1.0 + sc) * xn + sh).astype(x_ref.dtype)
    elif prologue == "silu":
        xf = x.astype(jnp.float32)
        x = (xf * jax.nn.sigmoid(xf)).astype(x_ref.dtype)

    # bf16 x bf16 -> f32 accumulate on the MXU
    acc_ref[...] += jnp.dot(x, w_ref[...], preferred_element_type=jnp.float32)

    @pl.when(k == k_last)
    def _finalize():
        y = acc_ref[...] + b_ref[0].astype(jnp.float32)

        def _write(yv):
            if has_residual:
                res = res_ref[0].astype(jnp.float32)     # (tm, tn)
                g = gate_ref[0].astype(jnp.float32)      # (1, tn)
                yv = res + g * yv
            o_ref[0] = yv.astype(o_ref.dtype)

        if act_out == "silu":
            _write(y * jax.nn.sigmoid(y))
        elif act_out == "gelu_tanh":
            _write(_gelu_tanh(y))
        elif act_out == "gelu_cols":
            @pl.when(j >= gelu_block_start)
            def _mlp_cols():
                _write(_gelu_tanh(y))

            @pl.when(j < gelu_block_start)
            def _qkv_cols():
                _write(y)
        else:
            _write(y)


def linear(x, p, *, prologue="none", scale=None, shift=None, act_out="none",
           gelu_col_start=0, residual=None, gate=None, x_col_offset=0):
    """Fused linear.  x: (B, L, K) or (B, K).  Returns (B, L, N) or (B, N).

    prologue     : "none" | "silu" | "ln_mod" (LayerNorm + (1+scale)*x + shift,
                   scale/shift per batch, shape (B, K) or (B, 1, K)).
    act_out      : "none" | "silu" | "gelu_tanh" | "gelu_cols" (tanh-GELU only
                   on output columns >= gelu_col_start).
    residual/gate: fused epilogue  out = residual + gate * y.
    x_col_offset : read x's K input features starting at this column (lets the
                   caller feed a slice of a wider activation with no copy).
    """
    w, b = p["w"], p["b"]
    K, N = w.shape

    x_was_2d = x.ndim == 2
    if x_was_2d:
        assert prologue != "ln_mod" and residual is None and x_col_offset == 0
        x = x[None]                       # (1, B, K): batch rows share one grid step
    B, L, _ = x.shape

    # --- tile selection ------------------------------------------------------
    tm = _pick_tile(L, _TM, 8)
    if act_out == "gelu_cols":
        tn = _pick_tile_common(N, gelu_col_start, _TN, 128)
        if tn is None:
            raise ValueError("gelu_col_start must be 128-aligned")
    else:
        tn = _pick_tile(N, _TN, 128)

    if prologue == "ln_mod":
        tk = K                            # LayerNorm needs the full feature dim
        koff = 0
        assert x_col_offset == 0
    elif x_col_offset:
        tk = _pick_tile_common(K, x_col_offset, _TK, 128)
        if tk is None:                    # fall back to an XLA column slice
            x = jax.lax.slice_in_dim(x, x_col_offset, x_col_offset + K, axis=2)
            x_col_offset = 0
            tk = _pick_tile(K, _TK, 128)
        koff = x_col_offset // tk
    else:
        tk = _pick_tile(K, _TK, 128)
        koff = 0

    # --- inputs & BlockSpecs -------------------------------------------------
    inputs = [x, w, b.reshape(1, 1, N)]
    in_specs = [
        pl.BlockSpec((1, tm, tk), lambda bb, i, j, k, o=koff: (bb, i, k + o)),
        pl.BlockSpec((tk, tn), lambda bb, i, j, k: (k, j)),
        pl.BlockSpec((1, 1, tn), lambda bb, i, j, k: (0, 0, j)),
    ]
    if prologue == "ln_mod":
        if scale.ndim == 2:
            scale = scale.reshape(scale.shape[0], 1, K)
        if shift.ndim == 2:
            shift = shift.reshape(shift.shape[0], 1, K)
        mod_spec = pl.BlockSpec((1, 1, K), lambda bb, i, j, k: (bb, 0, 0))
        inputs += [scale, shift]
        in_specs += [mod_spec, mod_spec]
    has_residual = residual is not None
    if has_residual:
        if gate.ndim == 2:
            gate = gate.reshape(gate.shape[0], 1, N)
        inputs += [residual, gate]
        in_specs += [
            pl.BlockSpec((1, tm, tn), lambda bb, i, j, k: (bb, i, j)),
            pl.BlockSpec((1, 1, tn), lambda bb, i, j, k: (bb, 0, j)),
        ]

    kernel = functools.partial(
        _linear_kernel, prologue=prologue, act_out=act_out,
        gelu_block_start=(gelu_col_start // tn) if act_out == "gelu_cols" else 0,
        has_residual=has_residual)

    out = pl.pallas_call(
        kernel,
        out_shape=jax.ShapeDtypeStruct((B, L, N), x.dtype),
        grid=(B, L // tm, N // tn, K // tk),
        in_specs=in_specs,
        out_specs=pl.BlockSpec((1, tm, tn), lambda bb, i, j, k: (bb, i, j)),
        scratch_shapes=[pltpu.VMEM((tm, tn), jnp.float32)],
        compiler_params=pltpu.CompilerParams(
            dimension_semantics=("parallel", "parallel", "parallel", "arbitrary"),
            vmem_limit_bytes=_VMEM_LIMIT),
    )(*inputs)
    return out[0] if x_was_2d else out


# ----------------------------------------------------------------------------
# Flash-style multi-head attention with fused per-head QK-RMSNorm.
# q/k/v BlockSpecs index directly into the packed (B, L, 3*C[+mlp]) qkv buffer.
# Output is lane-dense (B, L, H*D)  (== rearrange 'B H L D -> B L (H D)').
# ----------------------------------------------------------------------------
def _mha_kernel(q_ref, k_ref, v_ref, qs_ref, ks_ref, o_ref,
                m_ref, l_ref, acc_ref, *, heads, head_dim, sm_scale):
    ki = pl.program_id(2)
    ki_last = pl.num_programs(2) - 1

    @pl.when(ki == 0)
    def _init():
        m_ref[...] = jnp.full_like(m_ref, -1e30)
        l_ref[...] = jnp.zeros_like(l_ref)
        acc_ref[...] = jnp.zeros_like(acc_ref)

    cdt = q_ref.dtype
    q = q_ref[0].astype(jnp.float32)      # (tq, C)
    k = k_ref[0].astype(jnp.float32)      # (tk, C)
    v = v_ref[0]                          # (tk, C) storage dtype (bf16 -> MXU)
    qs = qs_ref[...].astype(jnp.float32)  # (tq, D) per-row q scale
    ks = ks_ref[...].astype(jnp.float32)  # (tk, D) per-row k scale

    for h in range(heads):
        sl = slice(h * head_dim, (h + 1) * head_dim)
        q_h = q[:, sl]
        k_h = k[:, sl]
        # fused QK RMSNorm (f32 stats) + softmax scale folded into q
        q_h = (q_h * jax.lax.rsqrt(jnp.mean(q_h * q_h, axis=-1, keepdims=True) + 1e-6)
               * qs * sm_scale).astype(cdt)
        k_h = (k_h * jax.lax.rsqrt(jnp.mean(k_h * k_h, axis=-1, keepdims=True) + 1e-6)
               * ks).astype(cdt)
        s = jax.lax.dot_general(q_h, k_h, (((1,), (1,)), ((), ())),
                                preferred_element_type=jnp.float32)   # (tq, tk)
        # online softmax update
        m_prev = m_ref[h]                                             # (tq, 1)
        m_new = jnp.maximum(m_prev, jnp.max(s, axis=-1, keepdims=True))
        alpha = jnp.exp(m_prev - m_new)
        p = jnp.exp(s - m_new)
        l_ref[h] = alpha * l_ref[h] + jnp.sum(p, axis=-1, keepdims=True)
        acc_ref[h] = alpha * acc_ref[h] + jnp.dot(
            p.astype(v.dtype), v[:, sl], preferred_element_type=jnp.float32)
        m_ref[h] = m_new

    @pl.when(ki == ki_last)
    def _finalize():
        parts = []
        for h in range(heads):
            inv = 1.0 / l_ref[h]                                      # (tq, 1)
            parts.append(acc_ref[h] * inv)
        o_ref[0] = jnp.concatenate(parts, axis=-1).astype(o_ref.dtype)


def mha(qkv, q_scale_rows, k_scale_rows, heads, head_dim):
    """qkv: (B, L, >=3*H*D) packed as [q | k | v | ...] along the last dim.
    q_scale_rows / k_scale_rows: (L, D) per-row RMSNorm scales (lets the txt and
    img streams of a DoubleStreamBlock use different QKNorm parameters).
    Returns (B, L, H*D)."""
    B, L, _ = qkv.shape
    C = heads * head_dim
    tq = _pick_tile(L, _TQ, 8)
    tk = _pick_tile(L, _TKV, 8)
    kernel = functools.partial(_mha_kernel, heads=heads, head_dim=head_dim,
                               sm_scale=1.0 / math.sqrt(head_dim))
    return pl.pallas_call(
        kernel,
        out_shape=jax.ShapeDtypeStruct((B, L, C), qkv.dtype),
        grid=(B, L // tq, L // tk),
        in_specs=[
            pl.BlockSpec((1, tq, C), lambda b, qi, ki: (b, qi, 0)),   # q columns
            pl.BlockSpec((1, tk, C), lambda b, qi, ki: (b, ki, 1)),   # k columns
            pl.BlockSpec((1, tk, C), lambda b, qi, ki: (b, ki, 2)),   # v columns
            pl.BlockSpec((tq, head_dim), lambda b, qi, ki: (qi, 0)),
            pl.BlockSpec((tk, head_dim), lambda b, qi, ki: (ki, 0)),
        ],
        out_specs=pl.BlockSpec((1, tq, C), lambda b, qi, ki: (b, qi, 0)),
        scratch_shapes=[
            pltpu.VMEM((heads, tq, 1), jnp.float32),          # running max
            pltpu.VMEM((heads, tq, 1), jnp.float32),          # running sum
            pltpu.VMEM((heads, tq, head_dim), jnp.float32),   # output accumulator
        ],
        compiler_params=pltpu.CompilerParams(
            dimension_semantics=("parallel", "parallel", "arbitrary"),
            vmem_limit_bytes=_VMEM_LIMIT),
    )(qkv, qkv, qkv, q_scale_rows, k_scale_rows)


# ----------------------------------------------------------------------------
# Model glue (tiny reshapes / splits / sin-cos table in plain JAX)
# ----------------------------------------------------------------------------
def timestep_embedding(t, dim=256, max_period=10000, time_factor=1000.0):
    t = time_factor * t
    half = dim // 2
    freqs = jnp.exp(-math.log(max_period)
                    * jnp.arange(half, dtype=jnp.float32) / half)
    args = t[:, None].astype(jnp.float32) * freqs[None]
    return jnp.concatenate([jnp.cos(args), jnp.sin(args)], axis=-1)


def double_block(p, img, txt, vec, heads):
    B, Li, C = img.shape
    Lt = txt.shape[1]
    D = C // heads

    i_sh1, i_sc1, i_g1, i_sh2, i_sc2, i_g2 = jnp.split(
        linear(vec, p["img_mod"], prologue="silu"), 6, axis=-1)
    t_sh1, t_sc1, t_g1, t_sh2, t_sc2, t_g2 = jnp.split(
        linear(vec, p["txt_mod"], prologue="silu"), 6, axis=-1)

    # LayerNorm + modulation fused into the qkv projections
    img_qkv = linear(img, p["img_qkv"], prologue="ln_mod", scale=i_sc1, shift=i_sh1)
    txt_qkv = linear(txt, p["txt_qkv"], prologue="ln_mod", scale=t_sc1, shift=t_sh1)

    qkv = jnp.concatenate([txt_qkv, img_qkv], axis=1)          # (B, Lt+Li, 3C)
    q_rows = jnp.concatenate(
        [jnp.broadcast_to(p["txt_q_scale"], (Lt, D)),
         jnp.broadcast_to(p["img_q_scale"], (Li, D))], axis=0)
    k_rows = jnp.concatenate(
        [jnp.broadcast_to(p["txt_k_scale"], (Lt, D)),
         jnp.broadcast_to(p["img_k_scale"], (Li, D))], axis=0)

    attn = mha(qkv, q_rows, k_rows, heads, D)                  # (B, Lt+Li, C)
    txt_attn, img_attn = attn[:, :Lt], attn[:, Lt:]

    # projection / MLP with fused gated-residual epilogues
    img = linear(img_attn, p["img_proj"], residual=img, gate=i_g1)
    h = linear(img, p["img_mlp0"], prologue="ln_mod", scale=i_sc2, shift=i_sh2,
               act_out="gelu_tanh")
    img = linear(h, p["img_mlp1"], residual=img, gate=i_g2)

    txt = linear(txt_attn, p["txt_proj"], residual=txt, gate=t_g1)
    h = linear(txt, p["txt_mlp0"], prologue="ln_mod", scale=t_sc2, shift=t_sh2,
               act_out="gelu_tanh")
    txt = linear(h, p["txt_mlp1"], residual=txt, gate=t_g2)
    return img, txt


def single_block(p, x, vec, heads):
    B, L, C = x.shape
    D = C // heads

    shift, scale, gate = jnp.split(linear(vec, p["mod"], prologue="silu"), 3, axis=-1)

    # linear1 over its full width (3C + mlp) with LN+mod prologue and GELU only
    # on the MLP columns (predicated on the N-grid index).
    lin1 = linear(x, p["lin1"], prologue="ln_mod", scale=scale, shift=shift,
                  act_out="gelu_cols", gelu_col_start=3 * C)   # (B, L, 3C+mlp)

    q_rows = jnp.broadcast_to(p["q_scale"], (L, D))
    k_rows = jnp.broadcast_to(p["k_scale"], (L, D))
    attn = mha(lin1, q_rows, k_rows, heads, D)                 # (B, L, C)

    # linear2 split into its attn / mlp halves; the mlp half reads lin1's GELU'd
    # columns directly via a K-offset index_map (no concat / slice in HBM).
    out = linear(attn, p["lin2_attn"], residual=x, gate=gate)
    out = linear(lin1, p["lin2_mlp"], x_col_offset=3 * C, residual=out, gate=gate)
    return out


def hunyuan3d_dit_forward(params, x, t, context, cfg):
    # TODO(synk): positional encoding `pe` is None in the reference forward and
    # therefore unused here.
    heads = cfg["num_heads"]
    dtype = cfg.get("dtype", jnp.bfloat16)
    x = x.astype(dtype)
    context = context.astype(dtype)

    cond = linear(context, params["cond_in"])
    latent = linear(x, params["latent_in"])

    temb = timestep_embedding(t, 256, time_factor=cfg["time_factor"]).astype(dtype)
    vec = linear(linear(temb, params["time_in_0"], act_out="silu"),
                 params["time_in_1"])                          # (B, C)

    for blk in params["double"]:
        latent, cond = double_block(blk, latent, cond, vec, heads)

    combined = jnp.concatenate([cond, latent], axis=1)
    for blk in params["single"]:
        combined = single_block(blk, combined, vec, heads)

    x_out = combined[:, cond.shape[1]:]
    adaln = linear(vec, params["final_adaln"], prologue="silu")   # (B, 2C)
    shift, scale = jnp.split(adaln, 2, axis=-1)
    return linear(x_out, params["final_linear"], prologue="ln_mod",
                  scale=scale, shift=shift)


# ----------------------------------------------------------------------------
# Deterministic parameter initialization (shapes follow the PyTorch __init__).
# Weights stored in bf16 (MXU-native); norm scales kept in f32.
# ----------------------------------------------------------------------------
def init_params(seed, cfg):
    dtype = cfg.get("dtype", jnp.bfloat16)
    key = [jax.random.PRNGKey(seed)]

    def nk():
        key[0], sub = jax.random.split(key[0])
        return sub

    def lin(i, o):
        return {"w": (0.02 * jax.random.normal(nk(), (i, o), jnp.float32)).astype(dtype),
                "b": jnp.zeros((o,), dtype)}

    H = cfg["hidden_size"]
    D = H // cfg["num_heads"]
    mlp = int(H * cfg["mlp_ratio"])

    p = {
        "latent_in": lin(cfg["in_channels"], H),
        "cond_in": lin(cfg["context_in_dim"], H),
        "time_in_0": lin(256, H),
        "time_in_1": lin(H, H),
        "final_adaln": lin(H, 2 * H),
        "final_linear": lin(H, cfg["in_channels"]),
        "double": [],
        "single": [],
    }
    for _ in range(cfg["depth"]):
        blk = {}
        for s in ("img", "txt"):
            blk[f"{s}_mod"] = lin(H, 6 * H)
            blk[f"{s}_qkv"] = lin(H, 3 * H)        # qkv_bias=True
            blk[f"{s}_q_scale"] = jnp.ones((D,), jnp.float32)
            blk[f"{s}_k_scale"] = jnp.ones((D,), jnp.float32)
            blk[f"{s}_proj"] = lin(H, H)
            blk[f"{s}_mlp0"] = lin(H, mlp)
            blk[f"{s}_mlp1"] = lin(mlp, H)
        p["double"].append(blk)
    for _ in range(cfg["depth_single_blocks"]):
        w2 = 0.02 * jax.random.normal(nk(), (H + mlp, H), jnp.float32)
        p["single"].append({
            "mod": lin(H, 3 * H),
            "lin1": lin(H, 3 * H + mlp),
            "lin2_attn": {"w": w2[:H].astype(dtype), "b": jnp.zeros((H,), dtype)},
            "lin2_mlp": {"w": w2[H:].astype(dtype), "b": jnp.zeros((H,), dtype)},
            "q_scale": jnp.ones((D,), jnp.float32),
            "k_scale": jnp.ones((D,), jnp.float32),
        })
    return p


# ----------------------------------------------------------------------------
if __name__ == "__main__":
    cfg = dict(
        in_channels=16,
        context_in_dim=32,
        hidden_size=128,
        mlp_ratio=4.0,
        num_heads=4,          # head_dim = 32 (pe is None in the reference -> unused)
        depth=2,
        depth_single_blocks=2,
        time_factor=1000.0,
        dtype=jnp.bfloat16,   # bf16 storage; f32 accumulation / stats in-kernel
    )
    B, L_latent, L_ctx = 2, 8, 8

    key = jax.random.PRNGKey(0)
    kx, kt, kc = jax.random.split(key, 3)
    x = jax.random.normal(kx, (B, L_latent, cfg["in_channels"]), jnp.float32)
    t = jax.random.uniform(kt, (B,), jnp.float32)
    context = jax.random.normal(kc, (B, L_ctx, cfg["context_in_dim"]), jnp.float32)

    params = init_params(42, cfg)

    fwd = jax.jit(lambda p, x, t, c: hunyuan3d_dit_forward(p, x, t, c, cfg))
    out = jax.block_until_ready(fwd(params, x, t, context))

    assert out.shape == x.shape, (out.shape, x.shape)
    assert bool(jnp.all(jnp.isfinite(out.astype(jnp.float32))))
    print("KERNEL_OK")
</pallas_src>

<mosaic_0001>
module attributes {stable_mosaic.version = 11 : i64} {
  func.func @_linear_kernel(%arg0: i32, %arg1: i32, %arg2: i32, %arg3: i32, %arg4: memref<1x2x128xbf16, #tpu.memory_space<vmem>>, %arg5: memref<128x128xbf16, #tpu.memory_space<vmem>>, %arg6: memref<1x1x128xbf16, #tpu.memory_space<vmem>>, %arg7: memref<1x2x128xbf16, #tpu.memory_space<vmem>>, %arg8: memref<2x128xf32, #tpu.memory_space<vmem>>) attributes {dimension_semantics = [#tpu.dimension_semantics<parallel>, #tpu.dimension_semantics<parallel>, #tpu.dimension_semantics<parallel>, #tpu.dimension_semantics<arbitrary>], iteration_bounds = array<i64: 1, 1, 1, 1>, scalar_prefetch = 0 : i64, scratch_operands = 1 : i64, tpu.core_type = #tpu.core_type<tc>, window_params = [{transform_indices = @transform_0, window_bounds = array<i64: 1, 2, 128>}, {transform_indices = @transform_1, window_bounds = array<i64: 128, 128>}, {transform_indices = @transform_2, window_bounds = array<i64: 1, 1, 128>}, {transform_indices = @transform_3, window_bounds = array<i64: 1, 2, 128>}]} {
    %c0_i32 = arith.constant 0 : i32
    %0 = arith.cmpi eq, %arg3, %c0_i32 : i32
    %1 = arith.extui %0 : i1 to i32
    %c0_i32_0 = arith.constant 0 : i32
    %2 = arith.cmpi ne, %1, %c0_i32_0 : i32
    scf.if %2 {
      %cst_11 = arith.constant 0.000000e+00 : f32
      %13 = vector.broadcast %cst_11 : f32 to vector<2x128xf32>
      %c0_12 = arith.constant 0 : index
      %c0_13 = arith.constant 0 : index
      %14 = vector.load %arg8[%c0_12, %c0_13] : memref<2x128xf32, #tpu.memory_space<vmem>>, vector<2x128xf32>
      tpu.vector_store %arg8[%c0_12, %c0_13], %13 {strides = array<i32>} : memref<2x128xf32, #tpu.memory_space<vmem>>, vector<2x128xf32>,
    } else {
    }
    %c0 = arith.constant 0 : index
    %c0_1 = arith.constant 0 : index
    %c0_2 = arith.constant 0 : index
    %3 = vector.load %arg4[%c0, %c0_1, %c0_2] : memref<1x2x128xbf16, #tpu.memory_space<vmem>>, vector<1x2x128xbf16>
    %4 = vector.shape_cast %3 : vector<1x2x128xbf16> to vector<2x128xbf16>
    %c0_3 = arith.constant 0 : index
    %c0_4 = arith.constant 0 : index
    %5 = vector.load %arg8[%c0_3, %c0_4] : memref<2x128xf32, #tpu.memory_space<vmem>>, vector<2x128xf32>
    %c0_5 = arith.constant 0 : index
    %c0_6 = arith.constant 0 : index
    %6 = vector.load %arg5[%c0_5, %c0_6] : memref<128x128xbf16, #tpu.memory_space<vmem>>, vector<128x128xbf16>
    %cst = arith.constant dense<0.000000e+00> : vector<2x128xf32>
    %7 = tpu.matmul %4, %6, %cst {dimension_numbers = #tpu.dot_dimension_numbers<[1], [0], [0], [1], [0, 0, 1, 1], [], []>} : vector<2x128xbf16>, vector<128x128xbf16>, vector<2x128xf32> -> vector<2x128xf32>
    %8 = arith.addf %5, %7 : vector<2x128xf32>
    %c0_7 = arith.constant 0 : index
    %c0_8 = arith.constant 0 : index
    %9 = vector.load %arg8[%c0_7, %c0_8] : memref<2x128xf32, #tpu.memory_space<vmem>>, vector<2x128xf32>
    tpu.vector_store %arg8[%c0_7, %c0_8], %8 {strides = array<i32>} : memref<2x128xf32, #tpu.memory_space<vmem>>, vector<2x128xf32>,
    %c0_i32_9 = arith.constant 0 : i32
    %10 = arith.cmpi eq, %arg3, %c0_i32_9 : i32
    %11 = arith.extui %10 : i1 to i32
    %c0_i32_10 = arith.constant 0 : i32
    %12 = arith.cmpi ne, %11, %c0_i32_10 : i32
    scf.if %12 {
      %c0_11 = arith.constant 0 : index
      %c0_12 = arith.constant 0 : index
      %13 = vector.load %arg8[%c0_11, %c0_12] : memref<2x128xf32, #tpu.memory_space<vmem>>, vector<2x128xf32>
      %c0_13 = arith.constant 0 : index
      %c0_14 = arith.constant 0 : index
      %c0_15 = arith.constant 0 : index
      %14 = vector.load %arg6[%c0_13, %c0_14, %c0_15] : memref<1x1x128xbf16, #tpu.memory_space<vmem>>, vector<1x1x128xbf16>
      %15 = vector.shape_cast %14 : vector<1x1x128xbf16> to vector<1x128xbf16>
      %16 = arith.extf %15 : vector<1x128xbf16> to vector<1x128xf32>
      %17 = vector.broadcast %16 : vector<1x128xf32> to vector<2x128xf32>
      %18 = arith.addf %13, %17 : vector<2x128xf32>
      %19 = arith.truncf %18 : vector<2x128xf32> to vector<2x128xbf16>
      %c0_16 = arith.constant 0 : index
      %c0_17 = arith.constant 0 : index
      %c0_18 = arith.constant 0 : index
      %20 = vector.load %arg7[%c0_16, %c0_17, %c0_18] : memref<1x2x128xbf16, #tpu.memory_space<vmem>>, vector<1x2x128xbf16>
      %21 = vector.shape_cast %20 : vector<1x2x128xbf16> to vector<2x128xbf16>
      %22 = vector.shape_cast %19 : vector<2x128xbf16> to vector<1x2x128xbf16>
      tpu.vector_store %arg7[%c0_16, %c0_17, %c0_18], %22 {strides = array<i32>} : memref<1x2x128xbf16, #tpu.memory_space<vmem>>, vector<1x2x128xbf16>,
    } else {
    }
    return
  }
  func.func @transform_0(%arg0: i32, %arg1: i32, %arg2: i32, %arg3: i32) -> (i32, i32, i32) {
    %c0_i32 = arith.constant 0 : i32
    %0 = arith.addi %arg3, %c0_i32 : i32
    %c0_i32_0 = arith.constant 0 : i32
    return %arg0, %arg1, %0 : i32, i32, i32
  }
  func.func @transform_1(%arg0: i32, %arg1: i32, %arg2: i32, %arg3: i32) -> (i32, i32) {
    %c0_i32 = arith.constant 0 : i32
    return %arg3, %arg2 : i32, i32
  }
  func.func @transform_2(%arg0: i32, %arg1: i32, %arg2: i32, %arg3: i32) -> (i32, i32, i32) {
    %c0_i32 = arith.constant 0 : i32
    %c0_i32_0 = arith.constant 0 : i32
    %c0_i32_1 = arith.constant 0 : i32
    return %c0_i32, %c0_i32_0, %arg2 : i32, i32, i32
  }
  func.func @transform_3(%arg0: i32, %arg1: i32, %arg2: i32, %arg3: i32) -> (i32, i32, i32) {
    %c0_i32 = arith.constant 0 : i32
    return %arg0, %arg1, %arg2 : i32, i32, i32
  }
}

module attributes {stable_mosaic.version = 11 : i64} {
  func.func @_linear_kernel(%arg0: i32, %arg1: i32, %arg2: i32, %arg3: i32, %arg4: memref<1x2x128xbf16, #tpu.memory_space<vmem>>, %arg5: memref<128x256xbf16, #tpu.memory_space<vmem>>, %arg6: memref<1x1x256xbf16, #tpu.memory_space<vmem>>, %arg7: memref<1x2x256xbf16, #tpu.memory_space<vmem>>, %arg8: memref<2x256xf32, #tpu.memory_space<vmem>>) attributes {dimension_semantics = [#tpu.dimension_semantics<parallel>, #tpu.dimension_semantics<parallel>, #tpu.dimension_semantics<parallel>, #tpu.dimension_semantics<arbitrary>], iteration_bounds = array<i64: 1, 1, 3, 1>, scalar_prefetch = 0 : i64, scratch_operands = 1 : i64, tpu.core_type = #tpu.core_type<tc>, window_params = [{transform_indices = @transform_0, window_bounds = array<i64: 1, 2, 128>}, {transform_indices = @transform_1, window_bounds = array<i64: 128, 256>}, {transform_indices = @transform_2, window_bounds = array<i64: 1, 1, 256>}, {transform_indices = @transform_3, window_bounds = array<i64: 1, 2, 256>}]} {
    %c0_i32 = arith.constant 0 : i32
    %0 = arith.cmpi eq, %arg3, %c0_i32 : i32
    %1 = arith.extui %0 : i1 to i32
    %c0_i32_0 = arith.constant 0 : i32
    %2 = arith.cmpi ne, %1, %c0_i32_0 : i32
    scf.if %2 {
      %cst_12 = arith.constant 0.000000e+00 : f32
      %21 = vector.broadcast %cst_12 : f32 to vector<2x256xf32>
      %c0_13 = arith.constant 0 : index
      %c0_14 = arith.constant 0 : index
      %22 = vector.load %arg8[%c0_13, %c0_14] : memref<2x256xf32, #tpu.memory_space<vmem>>, vector<2x256xf32>
      tpu.vector_store %arg8[%c0_13, %c0_14], %21 {strides = array<i32>} : memref<2x256xf32, #tpu.memory_space<vmem>>, vector<2x256xf32>,
    } else {
    }
    %c0 = arith.constant 0 : index
    %c0_1 = arith.constant 0 : index
    %c0_2 = arith.constant 0 : index
    %3 = vector.load %arg4[%c0, %c0_1, %c0_2] : memref<1x2x128xbf16, #tpu.memory_space<vmem>>, vector<1x2x128xbf16>
    %4 = vector.shape_cast %3 : vector<1x2x128xbf16> to vector<2x128xbf16>
    %5 = arith.extf %4 : vector<2x128xbf16> to vector<2x128xf32>
    %6 = arith.negf %5 : vector<2x128xf32>
    %7 = math.exp %6 : vector<2x128xf32>
    %cst = arith.constant 1.000000e+00 : f32
    %8 = vector.broadcast %cst : f32 to vector<2x128xf32>
    %9 = arith.addf %8, %7 : vector<2x128xf32>
    %10 = arith.divf %8, %9 : vector<2x128xf32>
    %11 = arith.mulf %5, %10 : vector<2x128xf32>
    %12 = arith.truncf %11 : vector<2x128xf32> to vector<2x128xbf16>
    %c0_3 = arith.constant 0 : index
    %c0_4 = arith.constant 0 : index
    %13 = vector.load %arg8[%c0_3, %c0_4] : memref<2x256xf32, #tpu.memory_space<vmem>>, vector<2x256xf32>
    %c0_5 = arith.constant 0 : index
    %c0_6 = arith.constant 0 : index
    %14 = vector.load %arg5[%c0_5, %c0_6] : memref<128x256xbf16, #tpu.memory_space<vmem>>, vector<128x256xbf16>
    %cst_7 = arith.constant dense<0.000000e+00> : vector<2x256xf32>
    %15 = tpu.matmul %12, %14, %cst_7 {dimension_numbers = #tpu.dot_dimension_numbers<[1], [0], [0], [1], [0, 0, 1, 1], [], []>} : vector<2x128xbf16>, vector<128x256xbf16>, vector<2x256xf32> -> vector<2x256xf32>
    %16 = arith.addf %13, %15 : vector<2x256xf32>
    %c0_8 = arith.constant 0 : index
    %c0_9 = arith.constant 0 : index
    %17 = vector.load %arg8[%c0_8, %c0_9] : memref<2x256xf32, #tpu.memory_space<vmem>>, vector<2x256xf32>
    tpu.vector_store %arg8[%c0_8, %c0_9], %16 {strides = array<i32>} : memref<2x256xf32, #tpu.memory_space<vmem>>, vector<2x256xf32>,
    %c0_i32_10 = arith.constant 0 : i32
    %18 = arith.cmpi eq, %arg3, %c0_i32_10 : i32
    %19 = arith.extui %18 : i1 to i32
    %c0_i32_11 = arith.constant 0 : i32
    %20 = arith.cmpi ne, %19, %c0_i32_11 : i32
    scf.if %20 {
      %c0_12 = arith.constant 0 : index
      %c0_13 = arith.constant 0 : index
      %21 = vector.load %arg8[%c0_12, %c0_13] : memref<2x256xf32, #tpu.memory_space<vmem>>, vector<2x256xf32>
      %c0_14 = arith.constant 0 : index
      %c0_15 = arith.constant 0 : index
      %c0_16 = arith.constant 0 : index
      %22 = vector.load %arg6[%c0_14, %c0_15, %c0_16] : memref<1x1x256xbf16, #tpu.memory_space<vmem>>, vector<1x1x256xbf16>
      %23 = vector.shape_cast %22 : vector<1x1x256xbf16> to vector<1x256xbf16>
      %24 = arith.extf %23 : vector<1x256xbf16> to vector<1x256xf32>
      %25 = vector.broadcast %24 : vector<1x256xf32> to vector<2x256xf32>
      %26 = arith.addf %21, %25 : vector<2x256xf32>
      %27 = arith.truncf %26 : vector<2x256xf32> to vector<2x256xbf16>
      %c0_17 = arith.constant 0 : index
      %c0_18 = arith.constant 0 : index
      %c0_19 = arith.constant 0 : index
      %28 = vector.load %arg7[%c0_17, %c0_18, %c0_19] : memref<1x2x256xbf16, #tpu.memory_space<vmem>>, vector<1x2x256xbf16>
      %29 = vector.shape_cast %28 : vector<1x2x256xbf16> to vector<2x256xbf16>
      %30 = vector.shape_cast %27 : vector<2x256xbf16> to vector<1x2x256xbf16>
      tpu.vector_store %arg7[%c0_17, %c0_18, %c0_19], %30 {strides = array<i32>} : memref<1x2x256xbf16, #tpu.memory_space<vmem>>, vector<1x2x256xbf16>,
    } else {
    }
    return
  }
  func.func @transform_0(%arg0: i32, %arg1: i32, %arg2: i32, %arg3: i32) -> (i32, i32, i32) {
    %c0_i32 = arith.constant 0 : i32
    %0 = arith.addi %arg3, %c0_i32 : i32
    %c0_i32_0 = arith.constant 0 : i32
    return %arg0, %arg1, %0 : i32, i32, i32
  }
  func.func @transform_1(%arg0: i32, %arg1: i32, %arg2: i32, %arg3: i32) -> (i32, i32) {
    %c0_i32 = arith.constant 0 : i32
    return %arg3, %arg2 : i32, i32
  }
  func.func @transform_2(%arg0: i32, %arg1: i32, %arg2: i32, %arg3: i32) -> (i32, i32, i32) {
    %c0_i32 = arith.constant 0 : i32
    %c0_i32_0 = arith.constant 0 : i32
    %c0_i32_1 = arith.constant 0 : i32
    return %c0_i32, %c0_i32_0, %arg2 : i32, i32, i32
  }
  func.func @transform_3(%arg0: i32, %arg1: i32, %arg2: i32, %arg3: i32) -> (i32, i32, i32) {
    %c0_i32 = arith.constant 0 : i32
    return %arg0, %arg1, %arg2 : i32, i32, i32
  }
}

module attributes {stable_mosaic.version = 11 : i64} {
  func.func @_linear_kernel(%arg0: i32, %arg1: i32, %arg2: i32, %arg3: i32, %arg4: memref<1x2x256xbf16, #tpu.memory_space<vmem>>, %arg5: memref<256x128xbf16, #tpu.memory_space<vmem>>, %arg6: memref<1x1x128xbf16, #tpu.memory_space<vmem>>, %arg7: memref<1x2x128xbf16, #tpu.memory_space<vmem>>, %arg8: memref<2x128xf32, #tpu.memory_space<vmem>>) attributes {dimension_semantics = [#tpu.dimension_semantics<parallel>, #tpu.dimension_semantics<parallel>, #tpu.dimension_semantics<parallel>, #tpu.dimension_semantics<arbitrary>], iteration_bounds = array<i64: 1, 1, 1, 1>, scalar_prefetch = 0 : i64, scratch_operands = 1 : i64, tpu.core_type = #tpu.core_type<tc>, window_params = [{transform_indices = @transform_0, window_bounds = array<i64: 1, 2, 256>}, {transform_indices = @transform_1, window_bounds = array<i64: 256, 128>}, {transform_indices = @transform_2, window_bounds = array<i64: 1, 1, 128>}, {transform_indices = @transform_3, window_bounds = array<i64: 1, 2, 128>}]} {
    %c0_i32 = arith.constant 0 : i32
    %0 = arith.cmpi eq, %arg3, %c0_i32 : i32
    %1 = arith.extui %0 : i1 to i32
    %c0_i32_0 = arith.constant 0 : i32
    %2 = arith.cmpi ne, %1, %c0_i32_0 : i32
    scf.if %2 {
      %cst_11 = arith.constant 0.000000e+00 : f32
      %13 = vector.broadcast %cst_11 : f32 to vector<2x128xf32>
      %c0_12 = arith.constant 0 : index
      %c0_13 = arith.constant 0 : index
      %14 = vector.load %arg8[%c0_12, %c0_13] : memref<2x128xf32, #tpu.memory_space<vmem>>, vector<2x128xf32>
      tpu.vector_store %arg8[%c0_12, %c0_13], %13 {strides = array<i32>} : memref<2x128xf32, #tpu.memory_space<vmem>>, vector<2x128xf32>,
    } else {
    }
    %c0 = arith.constant 0 : index
    %c0_1 = arith.constant 0 : index
    %c0_2 = arith.constant 0 : index
    %3 = vector.load %arg4[%c0, %c0_1, %c0_2] : memref<1x2x256xbf16, #tpu.memory_space<vmem>>, vector<1x2x256xbf16>
    %4 = vector.shape_cast %3 : vector<1x2x256xbf16> to vector<2x256xbf16>
    %c0_3 = arith.constant 0 : index
    %c0_4 = arith.constant 0 : index
    %5 = vector.load %arg8[%c0_3, %c0_4] : memref<2x128xf32, #tpu.memory_space<vmem>>, vector<2x128xf32>
    %c0_5 = arith.constant 0 : index
    %c0_6 = arith.constant 0 : index
    %6 = vector.load %arg5[%c0_5, %c0_6] : memref<256x128xbf16, #tpu.memory_space<vmem>>, vector<256x128xbf16>
    %cst = arith.constant dense<0.000000e+00> : vector<2x128xf32>
    %7 = tpu.matmul %4, %6, %cst {dimension_numbers = #tpu.dot_dimension_numbers<[1], [0], [0], [1], [0, 0, 1, 1], [], []>} : vector<2x256xbf16>, vector<256x128xbf16>, vector<2x128xf32> -> vector<2x128xf32>
    %8 = arith.addf %5, %7 : vector<2x128xf32>
    %c0_7 = arith.constant 0 : index
    %c0_8 = arith.constant 0 : index
    %9 = vector.load %arg8[%c0_7, %c0_8] : memref<2x128xf32, #tpu.memory_space<vmem>>, vector<2x128xf32>
    tpu.vector_store %arg8[%c0_7, %c0_8], %8 {strides = array<i32>} : memref<2x128xf32, #tpu.memory_space<vmem>>, vector<2x128xf32>,
    %c0_i32_9 = arith.constant 0 : i32
    %10 = arith.cmpi eq, %arg3, %c0_i32_9 : i32
    %11 = arith.extui %10 : i1 to i32
    %c0_i32_10 = arith.constant 0 : i32
    %12 = arith.cmpi ne, %11, %c0_i32_10 : i32
    scf.if %12 {
      %c0_11 = arith.constant 0 : index
      %c0_12 = arith.constant 0 : index
      %13 = vector.load %arg8[%c0_11, %c0_12] : memref<2x128xf32, #tpu.memory_space<vmem>>, vector<2x128xf32>
      %c0_13 = arith.constant 0 : index
      %c0_14 = arith.constant 0 : index
      %c0_15 = arith.constant 0 : index
      %14 = vector.load %arg6[%c0_13, %c0_14, %c0_15] : memref<1x1x128xbf16, #tpu.memory_space<vmem>>, vector<1x1x128xbf16>
      %15 = vector.shape_cast %14 : vector<1x1x128xbf16> to vector<1x128xbf16>
      %16 = arith.extf %15 : vector<1x128xbf16> to vector<1x128xf32>
      %17 = vector.broadcast %16 : vector<1x128xf32> to vector<2x128xf32>
      %18 = arith.addf %13, %17 : vector<2x128xf32>
      %19 = arith.negf %18 : vector<2x128xf32>
      %20 = math.exp %19 : vector<2x128xf32>
      %cst_16 = arith.constant 1.000000e+00 : f32
      %21 = vector.broadcast %cst_16 : f32 to vector<2x128xf32>
      %22 = arith.addf %21, %20 : vector<2x128xf32>
      %23 = arith.divf %21, %22 : vector<2x128xf32>
      %24 = arith.mulf %18, %23 : vector<2x128xf32>
      %25 = arith.truncf %24 : vector<2x128xf32> to vector<2x128xbf16>
      %c0_17 = arith.constant 0 : index
      %c0_18 = arith.constant 0 : index
      %c0_19 = arith.constant 0 : index
      %26 = vector.load %arg7[%c0_17, %c0_18, %c0_19] : memref<1x2x128xbf16, #tpu.memory_space<vmem>>, vector<1x2x128xbf16>
      %27 = vector.shape_cast %26 : vector<1x2x128xbf16> to vector<2x128xbf16>
      %28 = vector.shape_cast %25 : vector<2x128xbf16> to vector<1x2x128xbf16>
      tpu.vector_store %arg7[%c0_17, %c0_18, %c0_19], %28 {strides = array<i32>} : memref<1x2x128xbf16, #tpu.memory_space<vmem>>, vector<1x2x128xbf16>,
    } else {
    }
    return
  }
  func.func @transform_0(%arg0: i32, %arg1: i32, %arg2: i32, %arg3: i32) -> (i32, i32, i32) {
    %c0_i32 = arith.constant 0 : i32
    %0 = arith.addi %arg3, %c0_i32 : i32
    %c0_i32_0 = arith.constant 0 : i32
    return %arg0, %arg1, %0 : i32, i32, i32
  }
  func.func @transform_1(%arg0: i32, %arg1: i32, %arg2: i32, %arg3: i32) -> (i32, i32) {
    %c0_i32 = arith.constant 0 : i32
    return %arg3, %arg2 : i32, i32
  }
  func.func @transform_2(%arg0: i32, %arg1: i32, %arg2: i32, %arg3: i32) -> (i32, i32, i32) {
    %c0_i32 = arith.constant 0 : i32
    %c0_i32_0 = arith.constant 0 : i32
    %c0_i32_1 = arith.constant 0 : i32
    return %c0_i32, %c0_i32_0, %arg2 : i32, i32, i32
  }
  func.func @transform_3(%arg0: i32, %arg1: i32, %arg2: i32, %arg3: i32) -> (i32, i32, i32) {
    %c0_i32 = arith.constant 0 : i32
    return %arg0, %arg1, %arg2 : i32, i32, i32
  }
}

module attributes {stable_mosaic.version = 11 : i64} {
  func.func @_linear_kernel(%arg0: i32, %arg1: i32, %arg2: i32, %arg3: i32, %arg4: memref<1x8x32xbf16, #tpu.memory_space<vmem>>, %arg5: memref<32x128xbf16, #tpu.memory_space<vmem>>, %arg6: memref<1x1x128xbf16, #tpu.memory_space<vmem>>, %arg7: memref<1x8x128xbf16, #tpu.memory_space<vmem>>, %arg8: memref<8x128xf32, #tpu.memory_space<vmem>>) attributes {dimension_semantics = [#tpu.dimension_semantics<parallel>, #tpu.dimension_semantics<parallel>, #tpu.dimension_semantics<parallel>, #tpu.dimension_semantics<arbitrary>], iteration_bounds = array<i64: 2, 1, 1, 1>, scalar_prefetch = 0 : i64, scratch_operands = 1 : i64, tpu.core_type = #tpu.core_type<tc>, window_params = [{transform_indices = @transform_0, window_bounds = array<i64: 1, 8, 32>}, {transform_indices = @transform_1, window_bounds = array<i64: 32, 128>}, {transform_indices = @transform_2, window_bounds = array<i64: 1, 1, 128>}, {transform_indices = @transform_3, window_bounds = array<i64: 1, 8, 128>}]} {
    %c0_i32 = arith.constant 0 : i32
    %0 = arith.cmpi eq, %arg3, %c0_i32 : i32
    %1 = arith.extui %0 : i1 to i32
    %c0_i32_0 = arith.constant 0 : i32
    %2 = arith.cmpi ne, %1, %c0_i32_0 : i32
    scf.if %2 {
      %cst_11 = arith.constant 0.000000e+00 : f32
      %13 = vector.broadcast %cst_11 : f32 to vector<8x128xf32>
      %c0_12 = arith.constant 0 : index
      %c0_13 = arith.constant 0 : index
      %14 = vector.load %arg8[%c0_12, %c0_13] : memref<8x128xf32, #tpu.memory_space<vmem>>, vector<8x128xf32>
      tpu.vector_store %arg8[%c0_12, %c0_13], %13 {strides = array<i32>} : memref<8x128xf32, #tpu.memory_space<vmem>>, vector<8x128xf32>,
    } else {
    }
    %c0 = arith.constant 0 : index
    %c0_1 = arith.constant 0 : index
    %c0_2 = arith.constant 0 : index
    %3 = vector.load %arg4[%c0, %c0_1, %c0_2] : memref<1x8x32xbf16, #tpu.memory_space<vmem>>, vector<1x8x32xbf16>
    %4 = vector.shape_cast %3 : vector<1x8x32xbf16> to vector<8x32xbf16>
    %c0_3 = arith.constant 0 : index
    %c0_4 = arith.constant 0 : index
    %5 = vector.load %arg8[%c0_3, %c0_4] : memref<8x128xf32, #tpu.memory_space<vmem>>, vector<8x128xf32>
    %c0_5 = arith.constant 0 : index
    %c0_6 = arith.constant 0 : index
    %6 = vector.load %arg5[%c0_5, %c0_6] : memref<32x128xbf16, #tpu.memory_space<vmem>>, vector<32x128xbf16>
    %cst = arith.constant dense<0.000000e+00> : vector<8x128xf32>
    %7 = tpu.matmul %4, %6, %cst {dimension_numbers = #tpu.dot_dimension_numbers<[1], [0], [0], [1], [0, 0, 1, 1], [], []>} : vector<8x32xbf16>, vector<32x128xbf16>, vector<8x128xf32> -> vector<8x128xf32>
    %8 = arith.addf %5, %7 : vector<8x128xf32>
    %c0_7 = arith.constant 0 : index
    %c0_8 = arith.constant 0 : index
    %9 = vector.load %arg8[%c0_7, %c0_8] : memref<8x128xf32, #tpu.memory_space<vmem>>, vector<8x128xf32>
    tpu.vector_store %arg8[%c0_7, %c0_8], %8 {strides = array<i32>} : memref<8x128xf32, #tpu.memory_space<vmem>>, vector<8x128xf32>,
    %c0_i32_9 = arith.constant 0 : i32
    %10 = arith.cmpi eq, %arg3, %c0_i32_9 : i32
    %11 = arith.extui %10 : i1 to i32
    %c0_i32_10 = arith.constant 0 : i32
    %12 = arith.cmpi ne, %11, %c0_i32_10 : i32
    scf.if %12 {
      %c0_11 = arith.constant 0 : index
      %c0_12 = arith.constant 0 : index
      %13 = vector.load %arg8[%c0_11, %c0_12] : memref<8x128xf32, #tpu.memory_space<vmem>>, vector<8x128xf32>
      %c0_13 = arith.constant 0 : index
      %c0_14 = arith.constant 0 : index
      %c0_15 = arith.constant 0 : index
      %14 = vector.load %arg6[%c0_13, %c0_14, %c0_15] : memref<1x1x128xbf16, #tpu.memory_space<vmem>>, vector<1x1x128xbf16>
      %15 = vector.shape_cast %14 : vector<1x1x128xbf16> to vector<1x128xbf16>
      %16 = arith.extf %15 : vector<1x128xbf16> to vector<1x128xf32>
      %17 = vector.broadcast %16 : vector<1x128xf32> to vector<8x128xf32>
      %18 = arith.addf %13, %17 : vector<8x128xf32>
      %19 = arith.truncf %18 : vector<8x128xf32> to vector<8x128xbf16>
      %c0_16 = arith.constant 0 : index
      %c0_17 = arith.constant 0 : index
      %c0_18 = arith.constant 0 : index
      %20 = vector.load %arg7[%c0_16, %c0_17, %c0_18] : memref<1x8x128xbf16, #tpu.memory_space<vmem>>, vector<1x8x128xbf16>
      %21 = vector.shape_cast %20 : vector<1x8x128xbf16> to vector<8x128xbf16>
      %22 = vector.shape_cast %19 : vector<8x128xbf16> to vector<1x8x128xbf16>
      tpu.vector_store %arg7[%c0_16, %c0_17, %c0_18], %22 {strides = array<i32>} : memref<1x8x128xbf16, #tpu.memory_space<vmem>>, vector<1x8x128xbf16>,
    } else {
    }
    return
  }
  func.func @transform_0(%arg0: i32, %arg1: i32, %arg2: i32, %arg3: i32) -> (i32, i32, i32) {
    %c0_i32 = arith.constant 0 : i32
    %0 = arith.addi %arg3, %c0_i32 : i32
    %c0_i32_0 = arith.constant 0 : i32
    return %arg0, %arg1, %0 : i32, i32, i32
  }
  func.func @transform_1(%arg0: i32, %arg1: i32, %arg2: i32, %arg3: i32) -> (i32, i32) {
    %c0_i32 = arith.constant 0 : i32
    return %arg3, %arg2 : i32, i32
  }
  func.func @transform_2(%arg0: i32, %arg1: i32, %arg2: i32, %arg3: i32) -> (i32, i32, i32) {
    %c0_i32 = arith.constant 0 : i32
    %c0_i32_0 = arith.constant 0 : i32
    %c0_i32_1 = arith.constant 0 : i32
    return %c0_i32, %c0_i32_0, %arg2 : i32, i32, i32
  }
  func.func @transform_3(%arg0: i32, %arg1: i32, %arg2: i32, %arg3: i32) -> (i32, i32, i32) {
    %c0_i32 = arith.constant 0 : i32
    return %arg0, %arg1, %arg2 : i32, i32, i32
  }
}

module attributes {stable_mosaic.version = 11 : i64} {
  func.func @_linear_kernel(%arg0: i32, %arg1: i32, %arg2: i32, %arg3: i32, %arg4: memref<1x8x128xbf16, #tpu.memory_space<vmem>>, %arg5: memref<128x128xbf16, #tpu.memory_space<vmem>>, %arg6: memref<1x1x128xbf16, #tpu.memory_space<vmem>>, %arg7: memref<1x1x128xbf16, #tpu.memory_space<vmem>>, %arg8: memref<1x1x128xbf16, #tpu.memory_space<vmem>>, %arg9: memref<1x8x128xbf16, #tpu.memory_space<vmem>>, %arg10: memref<8x128xf32, #tpu.memory_space<vmem>>) attributes {dimension_semantics = [#tpu.dimension_semantics<parallel>, #tpu.dimension_semantics<parallel>, #tpu.dimension_semantics<parallel>, #tpu.dimension_semantics<arbitrary>], iteration_bounds = array<i64: 2, 1, 3, 1>, scalar_prefetch = 0 : i64, scratch_operands = 1 : i64, tpu.core_type = #tpu.core_type<tc>, window_params = [{transform_indices = @transform_0, window_bounds = array<i64: 1, 8, 128>}, {transform_indices = @transform_1, window_bounds = array<i64: 128, 128>}, {transform_indices = @transform_2, window_bounds = array<i64: 1, 1, 128>}, {transform_indices = @transform_3, window_bounds = array<i64: 1, 1, 128>}, {transform_indices = @transform_4, window_bounds = array<i64: 1, 1, 128>}, {transform_indices = @transform_5, window_bounds = array<i64: 1, 8, 128>}]} {
    %c0_i32 = arith.constant 0 : i32
    %0 = arith.cmpi eq, %arg3, %c0_i32 : i32
    %1 = arith.extui %0 : i1 to i32
    %c0_i32_0 = arith.constant 0 : i32
    %2 = arith.cmpi ne, %1, %c0_i32_0 : i32
    scf.if %2 {
      %cst_23 = arith.constant 0.000000e+00 : f32
      %45 = vector.broadcast %cst_23 : f32 to vector<8x128xf32>
      %c0_24 = arith.constant 0 : index
      %c0_25 = arith.constant 0 : index
      %46 = vector.load %arg10[%c0_24, %c0_25] : memref<8x128xf32, #tpu.memory_space<vmem>>, vector<8x128xf32>
      tpu.vector_store %arg10[%c0_24, %c0_25], %45 {strides = array<i32>} : memref<8x128xf32, #tpu.memory_space<vmem>>, vector<8x128xf32>,
    } else {
    }
    %c0 = arith.constant 0 : index
    %c0_1 = arith.constant 0 : index
    %c0_2 = arith.constant 0 : index
    %3 = vector.load %arg4[%c0, %c0_1, %c0_2] : memref<1x8x128xbf16, #tpu.memory_space<vmem>>, vector<1x8x128xbf16>
    %4 = vector.shape_cast %3 : vector<1x8x128xbf16> to vector<8x128xbf16>
    %5 = arith.extf %4 : vector<8x128xbf16> to vector<8x128xf32>
    %cst = arith.constant dense<0.000000e+00> : vector<8xf32>
    %6 = vector.multi_reduction <add>, %5, %cst [1] : vector<8x128xf32> to vector<8xf32>
    %7 = vector.shape_cast %6 : vector<8xf32> to vector<8x1xf32>
    %cst_3 = arith.constant 1.280000e+02 : f32
    %8 = vector.broadcast %cst_3 : f32 to vector<8x1xf32>
    %9 = arith.divf %7, %8 : vector<8x1xf32>
    %10 = vector.broadcast %9 : vector<8x1xf32> to vector<8x128xf32>
    %11 = arith.subf %5, %10 : vector<8x128xf32>
    %12 = arith.mulf %11, %11 : vector<8x128xf32>
    %cst_4 = arith.constant dense<0.000000e+00> : vector<8xf32>
    %13 = vector.multi_reduction <add>, %12, %cst_4 [1] : vector<8x128xf32> to vector<8xf32>
    %14 = vector.shape_cast %13 : vector<8xf32> to vector<8x1xf32>
    %cst_5 = arith.constant 1.280000e+02 : f32
    %15 = vector.broadcast %cst_5 : f32 to vector<8x1xf32>
    %16 = arith.divf %14, %15 : vector<8x1xf32>
    %17 = vector.broadcast %9 : vector<8x1xf32> to vector<8x128xf32>
    %18 = arith.subf %5, %17 : vector<8x128xf32>
    %cst_6 = arith.constant 9.99999997E-7 : f32
    %19 = vector.broadcast %cst_6 : f32 to vector<8x1xf32>
    %20 = arith.addf %16, %19 : vector<8x1xf32>
    %21 = math.rsqrt %20 : vector<8x1xf32>
    %22 = vector.broadcast %21 : vector<8x1xf32> to vector<8x128xf32>
    %23 = arith.mulf %18, %22 : vector<8x128xf32>
    %c0_7 = arith.constant 0 : index
    %c0_8 = arith.constant 0 : index
    %c0_9 = arith.constant 0 : index
    %24 = vector.load %arg7[%c0_7, %c0_8, %c0_9] : memref<1x1x128xbf16, #tpu.memory_space<vmem>>, vector<1x1x128xbf16>
    %25 = vector.shape_cast %24 : vector<1x1x128xbf16> to vector<1x128xbf16>
    %26 = arith.extf %25 : vector<1x128xbf16> to vector<1x128xf32>
    %c0_10 = arith.constant 0 : index
    %c0_11 = arith.constant 0 : index
    %c0_12 = arith.constant 0 : index
    %27 = vector.load %arg8[%c0_10, %c0_11, %c0_12] : memref<1x1x128xbf16, #tpu.memory_space<vmem>>, vector<1x1x128xbf16>
    %28 = vector.shape_cast %27 : vector<1x1x128xbf16> to vector<1x128xbf16>
    %29 = arith.extf %28 : vector<1x128xbf16> to vector<1x128xf32>
    %cst_13 = arith.constant 1.000000e+00 : f32
    %30 = vector.broadcast %cst_13 : f32 to vector<1x128xf32>
    %31 = arith.addf %30, %26 : vector<1x128xf32>
    %32 = vector.broadcast %31 : vector<1x128xf32> to vector<8x128xf32>
    %33 = arith.mulf %32, %23 : vector<8x128xf32>
    %34 = vector.broadcast %29 : vector<1x128xf32> to vector<8x128xf32>
    %35 = arith.addf %33, %34 : vector<8x128xf32>
    %36 = arith.truncf %35 : vector<8x128xf32> to vector<8x128xbf16>
    %c0_14 = arith.constant 0 : index
    %c0_15 = arith.constant 0 : index
    %37 = vector.load %arg10[%c0_14, %c0_15] : memref<8x128xf32, #tpu.memory_space<vmem>>, vector<8x128xf32>
    %c0_16 = arith.constant 0 : index
    %c0_17 = arith.constant 0 : index
    %38 = vector.load %arg5[%c0_16, %c0_17] : memref<128x128xbf16, #tpu.memory_space<vmem>>, vector<128x128xbf16>
    %cst_18 = arith.constant dense<0.000000e+00> : vector<8x128xf32>
    %39 = tpu.matmul %36, %38, %cst_18 {dimension_numbers = #tpu.dot_dimension_numbers<[1], [0], [0], [1], [0, 0, 1, 1], [], []>} : vector<8x128xbf16>, vector<128x128xbf16>, vector<8x128xf32> -> vector<8x128xf32>
    %40 = arith.addf %37, %39 : vector<8x128xf32>
    %c0_19 = arith.constant 0 : index
    %c0_20 = arith.constant 0 : index
    %41 = vector.load %arg10[%c0_19, %c0_20] : memref<8x128xf32, #tpu.memory_space<vmem>>, vector<8x128xf32>
    tpu.vector_store %arg10[%c0_19, %c0_20], %40 {strides = array<i32>} : memref<8x128xf32, #tpu.memory_space<vmem>>, vector<8x128xf32>,
    %c0_i32_21 = arith.constant 0 : i32
    %42 = arith.cmpi eq, %arg3, %c0_i32_21 : i32
    %43 = arith.extui %42 : i1 to i32
    %c0_i32_22 = arith.constant 0 : i32
    %44 = arith.cmpi ne, %43, %c0_i32_22 : i32
    scf.if %44 {
      %c0_23 = arith.constant 0 : index
      %c0_24 = arith.constant 0 : index
      %45 = vector.load %arg10[%c0_23, %c0_24] : memref<8x128xf32, #tpu.memory_space<vmem>>, vector<8x128xf32>
      %c0_25 = arith.constant 0 : index
      %c0_26 = arith.constant 0 : index
      %c0_27 = arith.constant 0 : index
      %46 = vector.load %arg6[%c0_25, %c0_26, %c0_27] : memref<1x1x128xbf16, #tpu.memory_space<vmem>>, vector<1x1x128xbf16>
      %47 = vector.shape_cast %46 : vector<1x1x128xbf16> to vector<1x128xbf16>
      %48 = arith.extf %47 : vector<1x128xbf16> to vector<1x128xf32>
      %49 = vector.broadcast %48 : vector<1x128xf32> to vector<8x128xf32>
      %50 = arith.addf %45, %49 : vector<8x128xf32>
      %51 = arith.truncf %50 : vector<8x128xf32> to vector<8x128xbf16>
      %c0_28 = arith.constant 0 : index
      %c0_29 = arith.constant 0 : index
      %c0_30 = arith.constant 0 : index
      %52 = vector.load %arg9[%c0_28, %c0_29, %c0_30] : memref<1x8x128xbf16, #tpu.memory_space<vmem>>, vector<1x8x128xbf16>
      %53 = vector.shape_cast %52 : vector<1x8x128xbf16> to vector<8x128xbf16>
      %54 = vector.shape_cast %51 : vector<8x128xbf16> to vector<1x8x128xbf16>
      tpu.vector_store %arg9[%c0_28, %c0_29, %c0_30], %54 {strides = array<i32>} : memref<1x8x128xbf16, #tpu.memory_space<vmem>>, vector<1x8x128xbf16>,
    } else {
    }
    return
  }
  func.func @transform_0(%arg0: i32, %arg1: i32, %arg2: i32, %arg3: i32) -> (i32, i32, i32) {
    %c0_i32 = arith.constant 0 : i32
    %0 = arith.addi %arg3, %c0_i32 : i32
    %c0_i32_0 = arith.constant 0 : i32
    return %arg0, %arg1, %0 : i32, i32, i32
  }
  func.func @transform_1(%arg0: i32, %arg1: i32, %arg2: i32, %arg3: i32) -> (i32, i32) {
    %c0_i32 = arith.constant 0 : i32
    return %arg3, %arg2 : i32, i32
  }
  func.func @transform_2(%arg0: i32, %arg1: i32, %arg2: i32, %arg3: i32) -> (i32, i32, i32) {
    %c0_i32 = arith.constant 0 : i32
    %c0_i32_0 = arith.constant 0 : i32
    %c0_i32_1 = arith.constant 0 : i32
    return %c0_i32, %c0_i32_0, %arg2 : i32, i32, i32
  }
  func.func @transform_3(%arg0: i32, %arg1: i32, %arg2: i32, %arg3: i32) -> (i32, i32, i32) {
    %c0_i32 = arith.constant 0 : i32
    %c0_i32_0 = arith.constant 0 : i32
    %c0_i32_1 = arith.constant 0 : i32
    return %arg0, %c0_i32, %c0_i32_0 : i32, i32, i32
  }
  func.func @transform_4(%arg0: i32, %arg1: i32, %arg2: i32, %arg3: i32) -> (i32, i32, i32) {
    %c0_i32 = arith.constant 0 : i32
    %c0_i32_0 = arith.constant 0 : i32
    %c0_i32_1 = arith.constant 0 : i32
    return %arg0, %c0_i32, %c0_i32_0 : i32, i32, i32
  }
  func.func @transform_5(%arg0: i32, %arg1: i32, %arg2: i32, %arg3: i32) -> (i32, i32, i32) {
    %c0_i32 = arith.constant 0 : i32
    return %arg0, %arg1, %arg2 : i32, i32, i32
  }
}

module attributes {stable_mosaic.version = 11 : i64} {
  func.func @_linear_kernel(%arg0: i32, %arg1: i32, %arg2: i32, %arg3: i32, %arg4: memref<1x8x16xbf16, #tpu.memory_space<vmem>>, %arg5: memref<16x128xbf16, #tpu.memory_space<vmem>>, %arg6: memref<1x1x128xbf16, #tpu.memory_space<vmem>>, %arg7: memref<1x8x128xbf16, #tpu.memory_space<vmem>>, %arg8: memref<8x128xf32, #tpu.memory_space<vmem>>) attributes {dimension_semantics = [#tpu.dimension_semantics<parallel>, #tpu.dimension_semantics<parallel>, #tpu.dimension_semantics<parallel>, #tpu.dimension_semantics<arbitrary>], iteration_bounds = array<i64: 2, 1, 1, 1>, scalar_prefetch = 0 : i64, scratch_operands = 1 : i64, tpu.core_type = #tpu.core_type<tc>, window_params = [{transform_indices = @transform_0, window_bounds = array<i64: 1, 8, 16>}, {transform_indices = @transform_1, window_bounds = array<i64: 16, 128>}, {transform_indices = @transform_2, window_bounds = array<i64: 1, 1, 128>}, {transform_indices = @transform_3, window_bounds = array<i64: 1, 8, 128>}]} {
    %c0_i32 = arith.constant 0 : i32
    %0 = arith.cmpi eq, %arg3, %c0_i32 : i32
    %1 = arith.extui %0 : i1 to i32
    %c0_i32_0 = arith.constant 0 : i32
    %2 = arith.cmpi ne, %1, %c0_i32_0 : i32
    scf.if %2 {
      %cst_11 = arith.constant 0.000000e+00 : f32
      %13 = vector.broadcast %cst_11 : f32 to vector<8x128xf32>
      %c0_12 = arith.constant 0 : index
      %c0_13 = arith.constant 0 : index
      %14 = vector.load %arg8[%c0_12, %c0_13] : memref<8x128xf32, #tpu.memory_space<vmem>>, vector<8x128xf32>
      tpu.vector_store %arg8[%c0_12, %c0_13], %13 {strides = array<i32>} : memref<8x128xf32, #tpu.memory_space<vmem>>, vector<8x128xf32>,
    } else {
    }
    %c0 = arith.constant 0 : index
    %c0_1 = arith.constant 0 : index
    %c0_2 = arith.constant 0 : index
    %3 = vector.load %arg4[%c0, %c0_1, %c0_2] : memref<1x8x16xbf16, #tpu.memory_space<vmem>>, vector<1x8x16xbf16>
    %4 = vector.shape_cast %3 : vector<1x8x16xbf16> to vector<8x16xbf16>
    %c0_3 = arith.constant 0 : index
    %c0_4 = arith.constant 0 : index
    %5 = vector.load %arg8[%c0_3, %c0_4] : memref<8x128xf32, #tpu.memory_space<vmem>>, vector<8x128xf32>
    %c0_5 = arith.constant 0 : index
    %c0_6 = arith.constant 0 : index
    %6 = vector.load %arg5[%c0_5, %c0_6] : memref<16x128xbf16, #tpu.memory_space<vmem>>, vector<16x128xbf16>
    %cst = arith.constant dense<0.000000e+00> : vector<8x128xf32>
    %7 = tpu.matmul %4, %6, %cst {dimension_numbers = #tpu.dot_dimension_numbers<[1], [0], [0], [1], [0, 0, 1, 1], [], []>} : vector<8x16xbf16>, vector<16x128xbf16>, vector<8x128xf32> -> vector<8x128xf32>
    %8 = arith.addf %5, %7 : vector<8x128xf32>
    %c0_7 = arith.constant 0 : index
    %c0_8 = arith.constant 0 : index
    %9 = vector.load %arg8[%c0_7, %c0_8] : memref<8x128xf32, #tpu.memory_space<vmem>>, vector<8x128xf32>
    tpu.vector_store %arg8[%c0_7, %c0_8], %8 {strides = array<i32>} : memref<8x128xf32, #tpu.memory_space<vmem>>, vector<8x128xf32>,
    %c0_i32_9 = arith.constant 0 : i32
    %10 = arith.cmpi eq, %arg3, %c0_i32_9 : i32
    %11 = arith.extui %10 : i1 to i32
    %c0_i32_10 = arith.constant 0 : i32
    %12 = arith.cmpi ne, %11, %c0_i32_10 : i32
    scf.if %12 {
      %c0_11 = arith.constant 0 : index
      %c0_12 = arith.constant 0 : index
      %13 = vector.load %arg8[%c0_11, %c0_12] : memref<8x128xf32, #tpu.memory_space<vmem>>, vector<8x128xf32>
      %c0_13 = arith.constant 0 : index
      %c0_14 = arith.constant 0 : index
      %c0_15 = arith.constant 0 : index
      %14 = vector.load %arg6[%c0_13, %c0_14, %c0_15] : memref<1x1x128xbf16, #tpu.memory_space<vmem>>, vector<1x1x128xbf16>
      %15 = vector.shape_cast %14 : vector<1x1x128xbf16> to vector<1x128xbf16>
      %16 = arith.extf %15 : vector<1x128xbf16> to vector<1x128xf32>
      %17 = vector.broadcast %16 : vector<1x128xf32> to vector<8x128xf32>
      %18 = arith.addf %13, %17 : vector<8x128xf32>
      %19 = arith.truncf %18 : vector<8x128xf32> to vector<8x128xbf16>
      %c0_16 = arith.constant 0 : index
      %c0_17 = arith.constant 0 : index
      %c0_18 = arith.constant 0 : index
      %20 = vector.load %arg7[%c0_16, %c0_17, %c0_18] : memref<1x8x128xbf16, #tpu.memory_space<vmem>>, vector<1x8x128xbf16>
      %21 = vector.shape_cast %20 : vector<1x8x128xbf16> to vector<8x128xbf16>
      %22 = vector.shape_cast %19 : vector<8x128xbf16> to vector<1x8x128xbf16>
      tpu.vector_store %arg7[%c0_16, %c0_17, %c0_18], %22 {strides = array<i32>} : memref<1x8x128xbf16, #tpu.memory_space<vmem>>, vector<1x8x128xbf16>,
    } else {
    }
    return
  }
  func.func @transform_0(%arg0: i32, %arg1: i32, %arg2: i32, %arg3: i32) -> (i32, i32, i32) {
    %c0_i32 = arith.constant 0 : i32
    %0 = arith.addi %arg3, %c0_i32 : i32
    %c0_i32_0 = arith.constant 0 : i32
    return %arg0, %arg1, %0 : i32, i32, i32
  }
  func.func @transform_1(%arg0: i32, %arg1: i32, %arg2: i32, %arg3: i32) -> (i32, i32) {
    %c0_i32 = arith.constant 0 : i32
    return %arg3, %arg2 : i32, i32
  }
  func.func @transform_2(%arg0: i32, %arg1: i32, %arg2: i32, %arg3: i32) -> (i32, i32, i32) {
    %c0_i32 = arith.constant 0 : i32
    %c0_i32_0 = arith.constant 0 : i32
    %c0_i32_1 = arith.constant 0 : i32
    return %c0_i32, %c0_i32_0, %arg2 : i32, i32, i32
  }
  func.func @transform_3(%arg0: i32, %arg1: i32, %arg2: i32, %arg3: i32) -> (i32, i32, i32) {
    %c0_i32 = arith.constant 0 : i32
    return %arg0, %arg1, %arg2 : i32, i32, i32
  }
}

module attributes {stable_mosaic.version = 11 : i64} {
  func.func @_linear_kernel(%arg0: i32, %arg1: i32, %arg2: i32, %arg3: i32, %arg4: memref<1x8x128xbf16, #tpu.memory_space<vmem>>, %arg5: memref<128x128xbf16, #tpu.memory_space<vmem>>, %arg6: memref<1x1x128xbf16, #tpu.memory_space<vmem>>, %arg7: memref<1x8x128xbf16, #tpu.memory_space<vmem>>, %arg8: memref<1x1x128xbf16, #tpu.memory_space<vmem>>, %arg9: memref<1x8x128xbf16, #tpu.memory_space<vmem>>, %arg10: memref<8x128xf32, #tpu.memory_space<vmem>>) attributes {dimension_semantics = [#tpu.dimension_semantics<parallel>, #tpu.dimension_semantics<parallel>, #tpu.dimension_semantics<parallel>, #tpu.dimension_semantics<arbitrary>], iteration_bounds = array<i64: 2, 1, 1, 1>, scalar_prefetch = 0 : i64, scratch_operands = 1 : i64, tpu.core_type = #tpu.core_type<tc>, window_params = [{transform_indices = @transform_0, window_bounds = array<i64: 1, 8, 128>}, {transform_indices = @transform_1, window_bounds = array<i64: 128, 128>}, {transform_indices = @transform_2, window_bounds = array<i64: 1, 1, 128>}, {transform_indices = @transform_3, window_bounds = array<i64: 1, 8, 128>}, {transform_indices = @transform_4, window_bounds = array<i64: 1, 1, 128>}, {transform_indices = @transform_5, window_bounds = array<i64: 1, 8, 128>}]} {
    %c0_i32 = arith.constant 0 : i32
    %0 = arith.cmpi eq, %arg3, %c0_i32 : i32
    %1 = arith.extui %0 : i1 to i32
    %c0_i32_0 = arith.constant 0 : i32
    %2 = arith.cmpi ne, %1, %c0_i32_0 : i32
    scf.if %2 {
      %cst_11 = arith.constant 0.000000e+00 : f32
      %13 = vector.broadcast %cst_11 : f32 to vector<8x128xf32>
      %c0_12 = arith.constant 0 : index
      %c0_13 = arith.constant 0 : index
      %14 = vector.load %arg10[%c0_12, %c0_13] : memref<8x128xf32, #tpu.memory_space<vmem>>, vector<8x128xf32>
      tpu.vector_store %arg10[%c0_12, %c0_13], %13 {strides = array<i32>} : memref<8x128xf32, #tpu.memory_space<vmem>>, vector<8x128xf32>,
    } else {
    }
    %c0 = arith.constant 0 : index
    %c0_1 = arith.constant 0 : index
    %c0_2 = arith.constant 0 : index
    %3 = vector.load %arg4[%c0, %c0_1, %c0_2] : memref<1x8x128xbf16, #tpu.memory_space<vmem>>, vector<1x8x128xbf16>
    %4 = vector.shape_cast %3 : vector<1x8x128xbf16> to vector<8x128xbf16>
    %c0_3 = arith.constant 0 : index
    %c0_4 = arith.constant 0 : index
    %5 = vector.load %arg10[%c0_3, %c0_4] : memref<8x128xf32, #tpu.memory_space<vmem>>, vector<8x128xf32>
    %c0_5 = arith.constant 0 : index
    %c0_6 = arith.constant 0 : index
    %6 = vector.load %arg5[%c0_5, %c0_6] : memref<128x128xbf16, #tpu.memory_space<vmem>>, vector<128x128xbf16>
    %cst = arith.constant dense<0.000000e+00> : vector<8x128xf32>
    %7 = tpu.matmul %4, %6, %cst {dimension_numbers = #tpu.dot_dimension_numbers<[1], [0], [0], [1], [0, 0, 1, 1], [], []>} : vector<8x128xbf16>, vector<128x128xbf16>, vector<8x128xf32> -> vector<8x128xf32>
    %8 = arith.addf %5, %7 : vector<8x128xf32>
    %c0_7 = arith.constant 0 : index
    %c0_8 = arith.constant 0 : index
    %9 = vector.load %arg10[%c0_7, %c0_8] : memref<8x128xf32, #tpu.memory_space<vmem>>, vector<8x128xf32>
    tpu.vector_store %arg10[%c0_7, %c0_8], %8 {strides = array<i32>} : memref<8x128xf32, #tpu.memory_space<vmem>>, vector<8x128xf32>,
    %c0_i32_9 = arith.constant 0 : i32
    %10 = arith.cmpi eq, %arg3, %c0_i32_9 : i32
    %11 = arith.extui %10 : i1 to i32
    %c0_i32_10 = arith.constant 0 : i32
    %12 = arith.cmpi ne, %11, %c0_i32_10 : i32
    scf.if %12 {
      %c0_11 = arith.constant 0 : index
      %c0_12 = arith.constant 0 : index
      %13 = vector.load %arg10[%c0_11, %c0_12] : memref<8x128xf32, #tpu.memory_space<vmem>>, vector<8x128xf32>
      %c0_13 = arith.constant 0 : index
      %c0_14 = arith.constant 0 : index
      %c0_15 = arith.constant 0 : index
      %14 = vector.load %arg6[%c0_13, %c0_14, %c0_15] : memref<1x1x128xbf16, #tpu.memory_space<vmem>>, vector<1x1x128xbf16>
      %15 = vector.shape_cast %14 : vector<1x1x128xbf16> to vector<1x128xbf16>
      %16 = arith.extf %15 : vector<1x128xbf16> to vector<1x128xf32>
      %17 = vector.broadcast %16 : vector<1x128xf32> to vector<8x128xf32>
      %18 = arith.addf %13, %17 : vector<8x128xf32>
      %c0_16 = arith.constant 0 : index
      %c0_17 = arith.constant 0 : index
      %c0_18 = arith.constant 0 : index
      %19 = vector.load %arg7[%c0_16, %c0_17, %c0_18] : memref<1x8x128xbf16, #tpu.memory_space<vmem>>, vector<1x8x128xbf16>
      %20 = vector.shape_cast %19 : vector<1x8x128xbf16> to vector<8x128xbf16>
      %21 = arith.extf %20 : vector<8x128xbf16> to vector<8x128xf32>
      %c0_19 = arith.constant 0 : index
      %c0_20 = arith.constant 0 : index
      %c0_21 = arith.constant 0 : index
      %22 = vector.load %arg8[%c0_19, %c0_20, %c0_21] : memref<1x1x128xbf16, #tpu.memory_space<vmem>>, vector<1x1x128xbf16>
      %23 = vector.shape_cast %22 : vector<1x1x128xbf16> to vector<1x128xbf16>
      %24 = arith.extf %23 : vector<1x128xbf16> to vector<1x128xf32>
      %25 = vector.broadcast %24 : vector<1x128xf32> to vector<8x128xf32>
      %26 = arith.mulf %25, %18 : vector<8x128xf32>
      %27 = arith.addf %21, %26 : vector<8x128xf32>
      %28 = arith.truncf %27 : vector<8x128xf32> to vector<8x128xbf16>
      %c0_22 = arith.constant 0 : index
      %c0_23 = arith.constant 0 : index
      %c0_24 = arith.constant 0 : index
      %29 = vector.load %arg9[%c0_22, %c0_23, %c0_24] : memref<1x8x128xbf16, #tpu.memory_space<vmem>>, vector<1x8x128xbf16>
      %30 = vector.shape_cast %29 : vector<1x8x128xbf16> to vector<8x128xbf16>
      %31 = vector.shape_cast %28 : vector<8x128xbf16> to vector<1x8x128xbf16>
      tpu.vector_store %arg9[%c0_22, %c0_23, %c0_24], %31 {strides = array<i32>} : memref<1x8x128xbf16, #tpu.memory_space<vmem>>, vector<1x8x128xbf16>,
    } else {
    }
    return
  }
  func.func @transform_0(%arg0: i32, %arg1: i32, %arg2: i32, %arg3: i32) -> (i32, i32, i32) {
    %c0_i32 = arith.constant 0 : i32
    %0 = arith.addi %arg3, %c0_i32 : i32
    %c0_i32_0 = arith.constant 0 : i32
    return %arg0, %arg1, %0 : i32, i32, i32
  }
  func.func @transform_1(%arg0: i32, %arg1: i32, %arg2: i32, %arg3: i32) -> (i32, i32) {
    %c0_i32 = arith.constant 0 : i32
    return %arg3, %arg2 : i32, i32
  }
  func.func @transform_2(%arg0: i32, %arg1: i32, %arg2: i32, %arg3: i32) -> (i32, i32, i32) {
    %c0_i32 = arith.constant 0 : i32
    %c0_i32_0 = arith.constant 0 : i32
    %c0_i32_1 = arith.constant 0 : i32
    return %c0_i32, %c0_i32_0, %arg2 : i32, i32, i32
  }
  func.func @transform_3(%arg0: i32, %arg1: i32, %arg2: i32, %arg3: i32) -> (i32, i32, i32) {
    %c0_i32 = arith.constant 0 : i32
    return %arg0, %arg1, %arg2 : i32, i32, i32
  }
  func.func @transform_4(%arg0: i32, %arg1: i32, %arg2: i32, %arg3: i32) -> (i32, i32, i32) {
    %c0_i32 = arith.constant 0 : i32
    %c0_i32_0 = arith.constant 0 : i32
    return %arg0, %c0_i32, %arg2 : i32, i32, i32
  }
  func.func @transform_5(%arg0: i32, %arg1: i32, %arg2: i32, %arg3: i32) -> (i32, i32, i32) {
    %c0_i32 = arith.constant 0 : i32
    return %arg0, %arg1, %arg2 : i32, i32, i32
  }
}

module attributes {stable_mosaic.version = 11 : i64} {
  func.func @_mha_kernel(%arg0: i32, %arg1: i32, %arg2: i32, %arg3: memref<1x16x128xbf16, #tpu.memory_space<vmem>>, %arg4: memref<1x16x128xbf16, #tpu.memory_space<vmem>>, %arg5: memref<1x16x128xbf16, #tpu.memory_space<vmem>>, %arg6: memref<16x32xf32, #tpu.memory_space<vmem>>, %arg7: memref<16x32xf32, #tpu.memory_space<vmem>>, %arg8: memref<1x16x128xbf16, #tpu.memory_space<vmem>>, %arg9: memref<4x16x1xf32, #tpu.memory_space<vmem>>, %arg10: memref<4x16x1xf32, #tpu.memory_space<vmem>>, %arg11: memref<4x16x32xf32, #tpu.memory_space<vmem>>) attributes {dimension_semantics = [#tpu.dimension_semantics<parallel>, #tpu.dimension_semantics<parallel>, #tpu.dimension_semantics<arbitrary>], iteration_bounds = array<i64: 2, 1, 1>, scalar_prefetch = 0 : i64, scratch_operands = 3 : i64, tpu.core_type = #tpu.core_type<tc>, window_params = [{transform_indices = @transform_0, window_bounds = array<i64: 1, 16, 128>}, {transform_indices = @transform_1, window_bounds = array<i64: 1, 16, 128>}, {transform_indices = @transform_2, window_bounds = array<i64: 1, 16, 128>}, {transform_indices = @transform_3, window_bounds = array<i64: 16, 32>}, {transform_indices = @transform_4, window_bounds = array<i64: 16, 32>}, {transform_indices = @transform_5, window_bounds = array<i64: 1, 16, 128>}]} {
    %c0_i32 = arith.constant 0 : i32
    %0 = arith.cmpi eq, %arg2, %c0_i32 : i32
    %1 = arith.extui %0 : i1 to i32
    %c0_i32_0 = arith.constant 0 : i32
    %2 = arith.cmpi ne, %1, %c0_i32_0 : i32
    scf.if %2 {
      %cst_127 = arith.constant -1.000000e+30 : f32
      %264 = vector.broadcast %cst_127 : f32 to vector<4x16x1xf32>
      %c0_128 = arith.constant 0 : index
      %c0_129 = arith.constant 0 : index
      %c0_130 = arith.constant 0 : index
      %265 = vector.load %arg9[%c0_128, %c0_129, %c0_130] : memref<4x16x1xf32, #tpu.memory_space<vmem>>, vector<4x16x1xf32>
      tpu.vector_store %arg9[%c0_128, %c0_129, %c0_130], %264 {strides = array<i32>} : memref<4x16x1xf32, #tpu.memory_space<vmem>>, vector<4x16x1xf32>,
      %cst_131 = arith.constant 0.000000e+00 : f32
      %266 = vector.broadcast %cst_131 : f32 to vector<4x16x1xf32>
      %c0_132 = arith.constant 0 : index
      %c0_133 = arith.constant 0 : index
      %c0_134 = arith.constant 0 : index
      %267 = vector.load %arg10[%c0_132, %c0_133, %c0_134] : memref<4x16x1xf32, #tpu.memory_space<vmem>>, vector<4x16x1xf32>
      tpu.vector_store %arg10[%c0_132, %c0_133, %c0_134], %266 {strides = array<i32>} : memref<4x16x1xf32, #tpu.memory_space<vmem>>, vector<4x16x1xf32>,
      %cst_135 = arith.constant 0.000000e+00 : f32
      %268 = vector.broadcast %cst_135 : f32 to vector<4x16x32xf32>
      %c0_136 = arith.constant 0 : index
      %c0_137 = arith.constant 0 : index
      %c0_138 = arith.constant 0 : index
      %269 = vector.load %arg11[%c0_136, %c0_137, %c0_138] : memref<4x16x32xf32, #tpu.memory_space<vmem>>, vector<4x16x32xf32>
      tpu.vector_store %arg11[%c0_136, %c0_137, %c0_138], %268 {strides = array<i32>} : memref<4x16x32xf32, #tpu.memory_space<vmem>>, vector<4x16x32xf32>,
    } else {
    }
    %c0 = arith.constant 0 : index
    %c0_1 = arith.constant 0 : index
    %c0_2 = arith.constant 0 : index
    %3 = vector.load %arg3[%c0, %c0_1, %c0_2] : memref<1x16x128xbf16, #tpu.memory_space<vmem>>, vector<1x16x128xbf16>
    %4 = vector.shape_cast %3 : vector<1x16x128xbf16> to vector<16x128xbf16>
    %5 = arith.extf %4 : vector<16x128xbf16> to vector<16x128xf32>
    %c0_3 = arith.constant 0 : index
    %c0_4 = arith.constant 0 : index
    %c0_5 = arith.constant 0 : index
    %6 = vector.load %arg4[%c0_3, %c0_4, %c0_5] : memref<1x16x128xbf16, #tpu.memory_space<vmem>>, vector<1x16x128xbf16>
    %7 = vector.shape_cast %6 : vector<1x16x128xbf16> to vector<16x128xbf16>
    %8 = arith.extf %7 : vector<16x128xbf16> to vector<16x128xf32>
    %c0_6 = arith.constant 0 : index
    %c0_7 = arith.constant 0 : index
    %c0_8 = arith.constant 0 : index
    %9 = vector.load %arg5[%c0_6, %c0_7, %c0_8] : memref<1x16x128xbf16, #tpu.memory_space<vmem>>, vector<1x16x128xbf16>
    %10 = vector.shape_cast %9 : vector<1x16x128xbf16> to vector<16x128xbf16>
    %c0_9 = arith.constant 0 : index
    %c0_10 = arith.constant 0 : index
    %11 = vector.load %arg6[%c0_9, %c0_10] : memref<16x32xf32, #tpu.memory_space<vmem>>, vector<16x32xf32>
    %c0_11 = arith.constant 0 : index
    %c0_12 = arith.constant 0 : index
    %12 = vector.load %arg7[%c0_11, %c0_12] : memref<16x32xf32, #tpu.memory_space<vmem>>, vector<16x32xf32>
    %13 = vector.extract_strided_slice %5 {offsets = [0, 0], sizes = [16, 32], strides = [1, 1]} : vector<16x128xf32> to vector<16x32xf32>
    %14 = vector.extract_strided_slice %8 {offsets = [0, 0], sizes = [16, 32], strides = [1, 1]} : vector<16x128xf32> to vector<16x32xf32>
    %15 = arith.mulf %13, %13 : vector<16x32xf32>
    %cst = arith.constant dense<0.000000e+00> : vector<16xf32>
    %16 = vector.multi_reduction <add>, %15, %cst [1] : vector<16x32xf32> to vector<16xf32>
    %17 = vector.shape_cast %16 : vector<16xf32> to vector<16x1xf32>
    %cst_13 = arith.constant 3.200000e+01 : f32
    %18 = vector.broadcast %cst_13 : f32 to vector<16x1xf32>
    %19 = arith.divf %17, %18 : vector<16x1xf32>
    %cst_14 = arith.constant 9.99999997E-7 : f32
    %20 = vector.broadcast %cst_14 : f32 to vector<16x1xf32>
    %21 = arith.addf %19, %20 : vector<16x1xf32>
    %22 = math.rsqrt %21 : vector<16x1xf32>
    %23 = vector.broadcast %22 : vector<16x1xf32> to vector<16x32xf32>
    %24 = arith.mulf %13, %23 : vector<16x32xf32>
    %25 = arith.mulf %24, %11 : vector<16x32xf32>
    %cst_15 = arith.constant 0.176776692 : f32
    %26 = vector.broadcast %cst_15 : f32 to vector<16x32xf32>
    %27 = arith.mulf %25, %26 : vector<16x32xf32>
    %28 = arith.truncf %27 : vector<16x32xf32> to vector<16x32xbf16>
    %29 = arith.mulf %14, %14 : vector<16x32xf32>
    %cst_16 = arith.constant dense<0.000000e+00> : vector<16xf32>
    %30 = vector.multi_reduction <add>, %29, %cst_16 [1] : vector<16x32xf32> to vector<16xf32>
    %31 = vector.shape_cast %30 : vector<16xf32> to vector<16x1xf32>
    %cst_17 = arith.constant 3.200000e+01 : f32
    %32 = vector.broadcast %cst_17 : f32 to vector<16x1xf32>
    %33 = arith.divf %31, %32 : vector<16x1xf32>
    %cst_18 = arith.constant 9.99999997E-7 : f32
    %34 = vector.broadcast %cst_18 : f32 to vector<16x1xf32>
    %35 = arith.addf %33, %34 : vector<16x1xf32>
    %36 = math.rsqrt %35 : vector<16x1xf32>
    %37 = vector.broadcast %36 : vector<16x1xf32> to vector<16x32xf32>
    %38 = arith.mulf %14, %37 : vector<16x32xf32>
    %39 = arith.mulf %38, %12 : vector<16x32xf32>
    %40 = arith.truncf %39 : vector<16x32xf32> to vector<16x32xbf16>
    %cst_19 = arith.constant dense<0.000000e+00> : vector<16x16xf32>
    %41 = tpu.matmul %28, %40, %cst_19 {dimension_numbers = #tpu.dot_dimension_numbers<[1], [1], [0], [0], [0, 0, 1, 0], [], []>} : vector<16x32xbf16>, vector<16x32xbf16>, vector<16x16xf32> -> vector<16x16xf32>
    %c0_20 = arith.constant 0 : index
    %c0_21 = arith.constant 0 : index
    %c0_22 = arith.constant 0 : index
    %42 = vector.load %arg9[%c0_20, %c0_21, %c0_22] : memref<4x16x1xf32, #tpu.memory_space<vmem>>, vector<1x16x1xf32>
    %43 = vector.shape_cast %42 : vector<1x16x1xf32> to vector<16x1xf32>
    %cst_23 = arith.constant dense<0xFF800000> : vector<16xf32>
    %44 = vector.multi_reduction <maximumf>, %41, %cst_23 [1] : vector<16x16xf32> to vector<16xf32>
    %45 = vector.shape_cast %44 : vector<16xf32> to vector<16x1xf32>
    %46 = arith.maximumf %43, %45 : vector<16x1xf32>
    %47 = arith.subf %43, %46 : vector<16x1xf32>
    %48 = math.exp %47 : vector<16x1xf32>
    %49 = vector.broadcast %46 : vector<16x1xf32> to vector<16x16xf32>
    %50 = arith.subf %41, %49 : vector<16x16xf32>
    %51 = math.exp %50 : vector<16x16xf32>
    %c0_24 = arith.constant 0 : index
    %c0_25 = arith.constant 0 : index
    %c0_26 = arith.constant 0 : index
    %52 = vector.load %arg10[%c0_24, %c0_25, %c0_26] : memref<4x16x1xf32, #tpu.memory_space<vmem>>, vector<1x16x1xf32>
    %53 = vector.shape_cast %52 : vector<1x16x1xf32> to vector<16x1xf32>
    %54 = arith.mulf %48, %53 : vector<16x1xf32>
    %cst_27 = arith.constant dense<0.000000e+00> : vector<16xf32>
    %55 = vector.multi_reduction <add>, %51, %cst_27 [1] : vector<16x16xf32> to vector<16xf32>
    %56 = vector.shape_cast %55 : vector<16xf32> to vector<16x1xf32>
    %57 = arith.addf %54, %56 : vector<16x1xf32>
    %c0_28 = arith.constant 0 : index
    %c0_29 = arith.constant 0 : index
    %c0_30 = arith.constant 0 : index
    %58 = vector.load %arg10[%c0_28, %c0_29, %c0_30] : memref<4x16x1xf32, #tpu.memory_space<vmem>>, vector<1x16x1xf32>
    %59 = vector.shape_cast %58 : vector<1x16x1xf32> to vector<16x1xf32>
    %60 = vector.shape_cast %57 : vector<16x1xf32> to vector<1x16x1xf32>
    tpu.vector_store %arg10[%c0_28, %c0_29, %c0_30], %60 {strides = array<i32>} : memref<4x16x1xf32, #tpu.memory_space<vmem>>, vector<1x16x1xf32>,
    %c0_31 = arith.constant 0 : index
    %c0_32 = arith.constant 0 : index
    %c0_33 = arith.constant 0 : index
    %61 = vector.load %arg11[%c0_31, %c0_32, %c0_33] : memref<4x16x32xf32, #tpu.memory_space<vmem>>, vector<1x16x32xf32>
    %62 = vector.shape_cast %61 : vector<1x16x32xf32> to vector<16x32xf32>
    %63 = vector.broadcast %48 : vector<16x1xf32> to vector<16x32xf32>
    %64 = arith.mulf %63, %62 : vector<16x32xf32>
    %65 = arith.truncf %51 : vector<16x16xf32> to vector<16x16xbf16>
    %66 = vector.extract_strided_slice %10 {offsets = [0, 0], sizes = [16, 32], strides = [1, 1]} : vector<16x128xbf16> to vector<16x32xbf16>
    %cst_34 = arith.constant dense<0.000000e+00> : vector<16x32xf32>
    %67 = tpu.matmul %65, %66, %cst_34 {dimension_numbers = #tpu.dot_dimension_numbers<[1], [0], [0], [1], [0, 0, 1, 1], [], []>} : vector<16x16xbf16>, vector<16x32xbf16>, vector<16x32xf32> -> vector<16x32xf32>
    %68 = arith.addf %64, %67 : vector<16x32xf32>
    %c0_35 = arith.constant 0 : index
    %c0_36 = arith.constant 0 : index
    %c0_37 = arith.constant 0 : index
    %69 = vector.load %arg11[%c0_35, %c0_36, %c0_37] : memref<4x16x32xf32, #tpu.memory_space<vmem>>, vector<1x16x32xf32>
    %70 = vector.shape_cast %69 : vector<1x16x32xf32> to vector<16x32xf32>
    %71 = vector.shape_cast %68 : vector<16x32xf32> to vector<1x16x32xf32>
    tpu.vector_store %arg11[%c0_35, %c0_36, %c0_37], %71 {strides = array<i32>} : memref<4x16x32xf32, #tpu.memory_space<vmem>>, vector<1x16x32xf32>,
    %c0_38 = arith.constant 0 : index
    %c0_39 = arith.constant 0 : index
    %c0_40 = arith.constant 0 : index
    %72 = vector.load %arg9[%c0_38, %c0_39, %c0_40] : memref<4x16x1xf32, #tpu.memory_space<vmem>>, vector<1x16x1xf32>
    %73 = vector.shape_cast %72 : vector<1x16x1xf32> to vector<16x1xf32>
    %74 = vector.shape_cast %46 : vector<16x1xf32> to vector<1x16x1xf32>
    tpu.vector_store %arg9[%c0_38, %c0_39, %c0_40], %74 {strides = array<i32>} : memref<4x16x1xf32, #tpu.memory_space<vmem>>, vector<1x16x1xf32>,
    %75 = vector.extract_strided_slice %5 {offsets = [0, 32], sizes = [16, 32], strides = [1, 1]} : vector<16x128xf32> to vector<16x32xf32>
    %76 = vector.extract_strided_slice %8 {offsets = [0, 32], sizes = [16, 32], strides = [1, 1]} : vector<16x128xf32> to vector<16x32xf32>
    %77 = arith.mulf %75, %75 : vector<16x32xf32>
    %cst_41 = arith.constant dense<0.000000e+00> : vector<16xf32>
    %78 = vector.multi_reduction <add>, %77, %cst_41 [1] : vector<16x32xf32> to vector<16xf32>
    %79 = vector.shape_cast %78 : vector<16xf32> to vector<16x1xf32>
    %cst_42 = arith.constant 3.200000e+01 : f32
    %80 = vector.broadcast %cst_42 : f32 to vector<16x1xf32>
    %81 = arith.divf %79, %80 : vector<16x1xf32>
    %cst_43 = arith.constant 9.99999997E-7 : f32
    %82 = vector.broadcast %cst_43 : f32 to vector<16x1xf32>
    %83 = arith.addf %81, %82 : vector<16x1xf32>
    %84 = math.rsqrt %83 : vector<16x1xf32>
    %85 = vector.broadcast %84 : vector<16x1xf32> to vector<16x32xf32>
    %86 = arith.mulf %75, %85 : vector<16x32xf32>
    %87 = arith.mulf %86, %11 : vector<16x32xf32>
    %cst_44 = arith.constant 0.176776692 : f32
    %88 = vector.broadcast %cst_44 : f32 to vector<16x32xf32>
    %89 = arith.mulf %87, %88 : vector<16x32xf32>
    %90 = arith.truncf %89 : vector<16x32xf32> to vector<16x32xbf16>
    %91 = arith.mulf %76, %76 : vector<16x32xf32>
    %cst_45 = arith.constant dense<0.000000e+00> : vector<16xf32>
    %92 = vector.multi_reduction <add>, %91, %cst_45 [1] : vector<16x32xf32> to vector<16xf32>
    %93 = vector.shape_cast %92 : vector<16xf32> to vector<16x1xf32>
    %cst_46 = arith.constant 3.200000e+01 : f32
    %94 = vector.broadcast %cst_46 : f32 to vector<16x1xf32>
    %95 = arith.divf %93, %94 : vector<16x1xf32>
    %cst_47 = arith.constant 9.99999997E-7 : f32
    %96 = vector.broadcast %cst_47 : f32 to vector<16x1xf32>
    %97 = arith.addf %95, %96 : vector<16x1xf32>
    %98 = math.rsqrt %97 : vector<16x1xf32>
    %99 = vector.broadcast %98 : vector<16x1xf32> to vector<16x32xf32>
    %100 = arith.mulf %76, %99 : vector<16x32xf32>
    %101 = arith.mulf %100, %12 : vector<16x32xf32>
    %102 = arith.truncf %101 : vector<16x32xf32> to vector<16x32xbf16>
    %cst_48 = arith.constant dense<0.000000e+00> : vector<16x16xf32>
    %103 = tpu.matmul %90, %102, %cst_48 {dimension_numbers = #tpu.dot_dimension_numbers<[1], [1], [0], [0], [0, 0, 1, 0], [], []>} : vector<16x32xbf16>, vector<16x32xbf16>, vector<16x16xf32> -> vector<16x16xf32>
    %c1 = arith.constant 1 : index
    %c0_49 = arith.constant 0 : index
    %c0_50 = arith.constant 0 : index
    %104 = vector.load %arg9[%c1, %c0_49, %c0_50] : memref<4x16x1xf32, #tpu.memory_space<vmem>>, vector<1x16x1xf32>
    %105 = vector.shape_cast %104 : vector<1x16x1xf32> to vector<16x1xf32>
    %cst_51 = arith.constant dense<0xFF800000> : vector<16xf32>
    %106 = vector.multi_reduction <maximumf>, %103, %cst_51 [1] : vector<16x16xf32> to vector<16xf32>
    %107 = vector.shape_cast %106 : vector<16xf32> to vector<16x1xf32>
    %108 = arith.maximumf %105, %107 : vector<16x1xf32>
    %109 = arith.subf %105, %108 : vector<16x1xf32>
    %110 = math.exp %109 : vector<16x1xf32>
    %111 = vector.broadcast %108 : vector<16x1xf32> to vector<16x16xf32>
    %112 = arith.subf %103, %111 : vector<16x16xf32>
    %113 = math.exp %112 : vector<16x16xf32>
    %c1_52 = arith.constant 1 : index
    %c0_53 = arith.constant 0 : index
    %c0_54 = arith.constant 0 : index
    %114 = vector.load %arg10[%c1_52, %c0_53, %c0_54] : memref<4x16x1xf32, #tpu.memory_space<vmem>>, vector<1x16x1xf32>
    %115 = vector.shape_cast %114 : vector<1x16x1xf32> to vector<16x1xf32>
    %116 = arith.mulf %110, %115 : vector<16x1xf32>
    %cst_55 = arith.constant dense<0.000000e+00> : vector<16xf32>
    %117 = vector.multi_reduction <add>, %113, %cst_55 [1] : vector<16x16xf32> to vector<16xf32>
    %118 = vector.shape_cast %117 : vector<16xf32> to vector<16x1xf32>
    %119 = arith.addf %116, %118 : vector<16x1xf32>
    %c1_56 = arith.constant 1 : index
    %c0_57 = arith.constant 0 : index
    %c0_58 = arith.constant 0 : index
    %120 = vector.load %arg10[%c1_56, %c0_57, %c0_58] : memref<4x16x1xf32, #tpu.memory_space<vmem>>, vector<1x16x1xf32>
    %121 = vector.shape_cast %120 : vector<1x16x1xf32> to vector<16x1xf32>
    %122 = vector.shape_cast %119 : vector<16x1xf32> to vector<1x16x1xf32>
    tpu.vector_store %arg10[%c1_56, %c0_57, %c0_58], %122 {strides = array<i32>} : memref<4x16x1xf32, #tpu.memory_space<vmem>>, vector<1x16x1xf32>,
    %c1_59 = arith.constant 1 : index
    %c0_60 = arith.constant 0 : index
    %c0_61 = arith.constant 0 : index
    %123 = vector.load %arg11[%c1_59, %c0_60, %c0_61] : memref<4x16x32xf32, #tpu.memory_space<vmem>>, vector<1x16x32xf32>
    %124 = vector.shape_cast %123 : vector<1x16x32xf32> to vector<16x32xf32>
    %125 = vector.broadcast %110 : vector<16x1xf32> to vector<16x32xf32>
    %126 = arith.mulf %125, %124 : vector<16x32xf32>
    %127 = arith.truncf %113 : vector<16x16xf32> to vector<16x16xbf16>
    %128 = vector.extract_strided_slice %10 {offsets = [0, 32], sizes = [16, 32], strides = [1, 1]} : vector<16x128xbf16> to vector<16x32xbf16>
    %cst_62 = arith.constant dense<0.000000e+00> : vector<16x32xf32>
    %129 = tpu.matmul %127, %128, %cst_62 {dimension_numbers = #tpu.dot_dimension_numbers<[1], [0], [0], [1], [0, 0, 1, 1], [], []>} : vector<16x16xbf16>, vector<16x32xbf16>, vector<16x32xf32> -> vector<16x32xf32>
    %130 = arith.addf %126, %129 : vector<16x32xf32>
    %c1_63 = arith.constant 1 : index
    %c0_64 = arith.constant 0 : index
    %c0_65 = arith.constant 0 : index
    %131 = vector.load %arg11[%c1_63, %c0_64, %c0_65] : memref<4x16x32xf32, #tpu.memory_space<vmem>>, vector<1x16x32xf32>
    %132 = vector.shape_cast %131 : vector<1x16x32xf32> to vector<16x32xf32>
    %133 = vector.shape_cast %130 : vector<16x32xf32> to vector<1x16x32xf32>
    tpu.vector_store %arg11[%c1_63, %c0_64, %c0_65], %133 {strides = array<i32>} : memref<4x16x32xf32, #tpu.memory_space<vmem>>, vector<1x16x32xf32>,
    %c1_66 = arith.constant 1 : index
    %c0_67 = arith.constant 0 : index
    %c0_68 = arith.constant 0 : index
    %134 = vector.load %arg9[%c1_66, %c0_67, %c0_68] : memref<4x16x1xf32, #tpu.memory_space<vmem>>, vector<1x16x1xf32>
    %135 = vector.shape_cast %134 : vector<1x16x1xf32> to vector<16x1xf32>
    %136 = vector.shape_cast %108 : vector<16x1xf32> to vector<1x16x1xf32>
    tpu.vector_store %arg9[%c1_66, %c0_67, %c0_68], %136 {strides = array<i32>} : memref<4x16x1xf32, #tpu.memory_space<vmem>>, vector<1x16x1xf32>,
    %137 = vector.extract_strided_slice %5 {offsets = [0, 64], sizes = [16, 32], strides = [1, 1]} : vector<16x128xf32> to vector<16x32xf32>
    %138 = vector.extract_strided_slice %8 {offsets = [0, 64], sizes = [16, 32], strides = [1, 1]} : vector<16x128xf32> to vector<16x32xf32>
    %139 = arith.mulf %137, %137 : vector<16x32xf32>
    %cst_69 = arith.constant dense<0.000000e+00> : vector<16xf32>
    %140 = vector.multi_reduction <add>, %139, %cst_69 [1] : vector<16x32xf32> to vector<16xf32>
    %141 = vector.shape_cast %140 : vector<16xf32> to vector<16x1xf32>
    %cst_70 = arith.constant 3.200000e+01 : f32
    %142 = vector.broadcast %cst_70 : f32 to vector<16x1xf32>
    %143 = arith.divf %141, %142 : vector<16x1xf32>
    %cst_71 = arith.constant 9.99999997E-7 : f32
    %144 = vector.broadcast %cst_71 : f32 to vector<16x1xf32>
    %145 = arith.addf %143, %144 : vector<16x1xf32>
    %146 = math.rsqrt %145 : vector<16x1xf32>
    %147 = vector.broadcast %146 : vector<16x1xf32> to vector<16x32xf32>
    %148 = arith.mulf %137, %147 : vector<16x32xf32>
    %149 = arith.mulf %148, %11 : vector<16x32xf32>
    %cst_72 = arith.constant 0.176776692 : f32
    %150 = vector.broadcast %cst_72 : f32 to vector<16x32xf32>
    %151 = arith.mulf %149, %150 : vector<16x32xf32>
    %152 = arith.truncf %151 : vector<16x32xf32> to vector<16x32xbf16>
    %153 = arith.mulf %138, %138 : vector<16x32xf32>
    %cst_73 = arith.constant dense<0.000000e+00> : vector<16xf32>
    %154 = vector.multi_reduction <add>, %153, %cst_73 [1] : vector<16x32xf32> to vector<16xf32>
    %155 = vector.shape_cast %154 : vector<16xf32> to vector<16x1xf32>
    %cst_74 = arith.constant 3.200000e+01 : f32
    %156 = vector.broadcast %cst_74 : f32 to vector<16x1xf32>
    %157 = arith.divf %155, %156 : vector<16x1xf32>
    %cst_75 = arith.constant 9.99999997E-7 : f32
    %158 = vector.broadcast %cst_75 : f32 to vector<16x1xf32>
    %159 = arith.addf %157, %158 : vector<16x1xf32>
    %160 = math.rsqrt %159 : vector<16x1xf32>
    %161 = vector.broadcast %160 : vector<16x1xf32> to vector<16x32xf32>
    %162 = arith.mulf %138, %161 : vector<16x32xf32>
    %163 = arith.mulf %162, %12 : vector<16x32xf32>
    %164 = arith.truncf %163 : vector<16x32xf32> to vector<16x32xbf16>
    %cst_76 = arith.constant dense<0.000000e+00> : vector<16x16xf32>
    %165 = tpu.matmul %152, %164, %cst_76 {dimension_numbers = #tpu.dot_dimension_numbers<[1], [1], [0], [0], [0, 0, 1, 0], [], []>} : vector<16x32xbf16>, vector<16x32xbf16>, vector<16x16xf32> -> vector<16x16xf32>
    %c2 = arith.constant 2 : index
    %c0_77 = arith.constant 0 : index
    %c0_78 = arith.constant 0 : index
    %166 = vector.load %arg9[%c2, %c0_77, %c0_78] : memref<4x16x1xf32, #tpu.memory_space<vmem>>, vector<1x16x1xf32>
    %167 = vector.shape_cast %166 : vector<1x16x1xf32> to vector<16x1xf32>
    %cst_79 = arith.constant dense<0xFF800000> : vector<16xf32>
    %168 = vector.multi_reduction <maximumf>, %165, %cst_79 [1] : vector<16x16xf32> to vector<16xf32>
    %169 = vector.shape_cast %168 : vector<16xf32> to vector<16x1xf32>
    %170 = arith.maximumf %167, %169 : vector<16x1xf32>
    %171 = arith.subf %167, %170 : vector<16x1xf32>
    %172 = math.exp %171 : vector<16x1xf32>
    %173 = vector.broadcast %170 : vector<16x1xf32> to vector<16x16xf32>
    %174 = arith.subf %165, %173 : vector<16x16xf32>
    %175 = math.exp %174 : vector<16x16xf32>
    %c2_80 = arith.constant 2 : index
    %c0_81 = arith.constant 0 : index
    %c0_82 = arith.constant 0 : index
    %176 = vector.load %arg10[%c2_80, %c0_81, %c0_82] : memref<4x16x1xf32, #tpu.memory_space<vmem>>, vector<1x16x1xf32>
    %177 = vector.shape_cast %176 : vector<1x16x1xf32> to vector<16x1xf32>
    %178 = arith.mulf %172, %177 : vector<16x1xf32>
    %cst_83 = arith.constant dense<0.000000e+00> : vector<16xf32>
    %179 = vector.multi_reduction <add>, %175, %cst_83 [1] : vector<16x16xf32> to vector<16xf32>
    %180 = vector.shape_cast %179 : vector<16xf32> to vector<16x1xf32>
    %181 = arith.addf %178, %180 : vector<16x1xf32>
    %c2_84 = arith.constant 2 : index
    %c0_85 = arith.constant 0 : index
    %c0_86 = arith.constant 0 : index
    %182 = vector.load %arg10[%c2_84, %c0_85, %c0_86] : memref<4x16x1xf32, #tpu.memory_space<vmem>>, vector<1x16x1xf32>
    %183 = vector.shape_cast %182 : vector<1x16x1xf32> to vector<16x1xf32>
    %184 = vector.shape_cast %181 : vector<16x1xf32> to vector<1x16x1xf32>
    tpu.vector_store %arg10[%c2_84, %c0_85, %c0_86], %184 {strides = array<i32>} : memref<4x16x1xf32, #tpu.memory_space<vmem>>, vector<1x16x1xf32>,
    %c2_87 = arith.constant 2 : index
    %c0_88 = arith.constant 0 : index
    %c0_89 = arith.constant 0 : index
    %185 = vector.load %arg11[%c2_87, %c0_88, %c0_89] : memref<4x16x32xf32, #tpu.memory_space<vmem>>, vector<1x16x32xf32>
    %186 = vector.shape_cast %185 : vector<1x16x32xf32> to vector<16x32xf32>
    %187 = vector.broadcast %172 : vector<16x1xf32> to vector<16x32xf32>
    %188 = arith.mulf %187, %186 : vector<16x32xf32>
    %189 = arith.truncf %175 : vector<16x16xf32> to vector<16x16xbf16>
    %190 = vector.extract_strided_slice %10 {offsets = [0, 64], sizes = [16, 32], strides = [1, 1]} : vector<16x128xbf16> to vector<16x32xbf16>
    %cst_90 = arith.constant dense<0.000000e+00> : vector<16x32xf32>
    %191 = tpu.matmul %189, %190, %cst_90 {dimension_numbers = #tpu.dot_dimension_numbers<[1], [0], [0], [1], [0, 0, 1, 1], [], []>} : vector<16x16xbf16>, vector<16x32xbf16>, vector<16x32xf32> -> vector<16x32xf32>
    %192 = arith.addf %188, %191 : vector<16x32xf32>
    %c2_91 = arith.constant 2 : index
    %c0_92 = arith.constant 0 : index
    %c0_93 = arith.constant 0 : index
    %193 = vector.load %arg11[%c2_91, %c0_92, %c0_93] : memref<4x16x32xf32, #tpu.memory_space<vmem>>, vector<1x16x32xf32>
    %194 = vector.shape_cast %193 : vector<1x16x32xf32> to vector<16x32xf32>
    %195 = vector.shape_cast %192 : vector<16x32xf32> to vector<1x16x32xf32>
    tpu.vector_store %arg11[%c2_91, %c0_92, %c0_93], %195 {strides = array<i32>} : memref<4x16x32xf32, #tpu.memory_space<vmem>>, vector<1x16x32xf32>,
    %c2_94 = arith.constant 2 : index
    %c0_95 = arith.constant 0 : index
    %c0_96 = arith.constant 0 : index
    %196 = vector.load %arg9[%c2_94, %c0_95, %c0_96] : memref<4x16x1xf32, #tpu.memory_space<vmem>>, vector<1x16x1xf32>
    %197 = vector.shape_cast %196 : vector<1x16x1xf32> to vector<16x1xf32>
    %198 = vector.shape_cast %170 : vector<16x1xf32> to vector<1x16x1xf32>
    tpu.vector_store %arg9[%c2_94, %c0_95, %c0_96], %198 {strides = array<i32>} : memref<4x16x1xf32, #tpu.memory_space<vmem>>, vector<1x16x1xf32>,
    %199 = vector.extract_strided_slice %5 {offsets = [0, 96], sizes = [16, 32], strides = [1, 1]} : vector<16x128xf32> to vector<16x32xf32>
    %200 = vector.extract_strided_slice %8 {offsets = [0, 96], sizes = [16, 32], strides = [1, 1]} : vector<16x128xf32> to vector<16x32xf32>
    %201 = arith.mulf %199, %199 : vector<16x32xf32>
    %cst_97 = arith.constant dense<0.000000e+00> : vector<16xf32>
    %202 = vector.multi_reduction <add>, %201, %cst_97 [1] : vector<16x32xf32> to vector<16xf32>
    %203 = vector.shape_cast %202 : vector<16xf32> to vector<16x1xf32>
    %cst_98 = arith.constant 3.200000e+01 : f32
    %204 = vector.broadcast %cst_98 : f32 to vector<16x1xf32>
    %205 = arith.divf %203, %204 : vector<16x1xf32>
    %cst_99 = arith.constant 9.99999997E-7 : f32
    %206 = vector.broadcast %cst_99 : f32 to vector<16x1xf32>
    %207 = arith.addf %205, %206 : vector<16x1xf32>
    %208 = math.rsqrt %207 : vector<16x1xf32>
    %209 = vector.broadcast %208 : vector<16x1xf32> to vector<16x32xf32>
    %210 = arith.mulf %199, %209 : vector<16x32xf32>
    %211 = arith.mulf %210, %11 : vector<16x32xf32>
    %cst_100 = arith.constant 0.176776692 : f32
    %212 = vector.broadcast %cst_100 : f32 to vector<16x32xf32>
    %213 = arith.mulf %211, %212 : vector<16x32xf32>
    %214 = arith.truncf %213 : vector<16x32xf32> to vector<16x32xbf16>
    %215 = arith.mulf %200, %200 : vector<16x32xf32>
    %cst_101 = arith.constant dense<0.000000e+00> : vector<16xf32>
    %216 = vector.multi_reduction <add>, %215, %cst_101 [1] : vector<16x32xf32> to vector<16xf32>
    %217 = vector.shape_cast %216 : vector<16xf32> to vector<16x1xf32>
    %cst_102 = arith.constant 3.200000e+01 : f32
    %218 = vector.broadcast %cst_102 : f32 to vector<16x1xf32>
    %219 = arith.divf %217, %218 : vector<16x1xf32>
    %cst_103 = arith.constant 9.99999997E-7 : f32
    %220 = vector.broadcast %cst_103 : f32 to vector<16x1xf32>
    %221 = arith.addf %219, %220 : vector<16x1xf32>
    %222 = math.rsqrt %221 : vector<16x1xf32>
    %223 = vector.broadcast %222 : vector<16x1xf32> to vector<16x32xf32>
    %224 = arith.mulf %200, %223 : vector<16x32xf32>
    %225 = arith.mulf %224, %12 : vector<16x32xf32>
    %226 = arith.truncf %225 : vector<16x32xf32> to vector<16x32xbf16>
    %cst_104 = arith.constant dense<0.000000e+00> : vector<16x16xf32>
    %227 = tpu.matmul %214, %226, %cst_104 {dimension_numbers = #tpu.dot_dimension_numbers<[1], [1], [0], [0], [0, 0, 1, 0], [], []>} : vector<16x32xbf16>, vector<16x32xbf16>, vector<16x16xf32> -> vector<16x16xf32>
    %c3 = arith.constant 3 : index
    %c0_105 = arith.constant 0 : index
    %c0_106 = arith.constant 0 : index
    %228 = vector.load %arg9[%c3, %c0_105, %c0_106] : memref<4x16x1xf32, #tpu.memory_space<vmem>>, vector<1x16x1xf32>
    %229 = vector.shape_cast %228 : vector<1x16x1xf32> to vector<16x1xf32>
    %cst_107 = arith.constant dense<0xFF800000> : vector<16xf32>
    %230 = vector.multi_reduction <maximumf>, %227, %cst_107 [1] : vector<16x16xf32> to vector<16xf32>
    %231 = vector.shape_cast %230 : vector<16xf32> to vector<16x1xf32>
    %232 = arith.maximumf %229, %231 : vector<16x1xf32>
    %233 = arith.subf %229, %232 : vector<16x1xf32>
    %234 = math.exp %233 : vector<16x1xf32>
    %235 = vector.broadcast %232 : vector<16x1xf32> to vector<16x16xf32>
    %236 = arith.subf %227, %235 : vector<16x16xf32>
    %237 = math.exp %236 : vector<16x16xf32>
    %c3_108 = arith.constant 3 : index
    %c0_109 = arith.constant 0 : index
    %c0_110 = arith.constant 0 : index
    %238 = vector.load %arg10[%c3_108, %c0_109, %c0_110] : memref<4x16x1xf32, #tpu.memory_space<vmem>>, vector<1x16x1xf32>
    %239 = vector.shape_cast %238 : vector<1x16x1xf32> to vector<16x1xf32>
    %240 = arith.mulf %234, %239 : vector<16x1xf32>
    %cst_111 = arith.constant dense<0.000000e+00> : vector<16xf32>
    %241 = vector.multi_reduction <add>, %237, %cst_111 [1] : vector<16x16xf32> to vector<16xf32>
    %242 = vector.shape_cast %241 : vector<16xf32> to vector<16x1xf32>
    %243 = arith.addf %240, %242 : vector<16x1xf32>
    %c3_112 = arith.constant 3 : index
    %c0_113 = arith.constant 0 : index
    %c0_114 = arith.constant 0 : index
    %244 = vector.load %arg10[%c3_112, %c0_113, %c0_114] : memref<4x16x1xf32, #tpu.memory_space<vmem>>, vector<1x16x1xf32>
    %245 = vector.shape_cast %244 : vector<1x16x1xf32> to vector<16x1xf32>
    %246 = vector.shape_cast %243 : vector<16x1xf32> to vector<1x16x1xf32>
    tpu.vector_store %arg10[%c3_112, %c0_113, %c0_114], %246 {strides = array<i32>} : memref<4x16x1xf32, #tpu.memory_space<vmem>>, vector<1x16x1xf32>,
    %c3_115 = arith.constant 3 : index
    %c0_116 = arith.constant 0 : index
    %c0_117 = arith.constant 0 : index
    %247 = vector.load %arg11[%c3_115, %c0_116, %c0_117] : memref<4x16x32xf32, #tpu.memory_space<vmem>>, vector<1x16x32xf32>
    %248 = vector.shape_cast %247 : vector<1x16x32xf32> to vector<16x32xf32>
    %249 = vector.broadcast %234 : vector<16x1xf32> to vector<16x32xf32>
    %250 = arith.mulf %249, %248 : vector<16x32xf32>
    %251 = arith.truncf %237 : vector<16x16xf32> to vector<16x16xbf16>
    %252 = vector.extract_strided_slice %10 {offsets = [0, 96], sizes = [16, 32], strides = [1, 1]} : vector<16x128xbf16> to vector<16x32xbf16>
    %cst_118 = arith.constant dense<0.000000e+00> : vector<16x32xf32>
    %253 = tpu.matmul %251, %252, %cst_118 {dimension_numbers = #tpu.dot_dimension_numbers<[1], [0], [0], [1], [0, 0, 1, 1], [], []>} : vector<16x16xbf16>, vector<16x32xbf16>, vector<16x32xf32> -> vector<16x32xf32>
    %254 = arith.addf %250, %253 : vector<16x32xf32>
    %c3_119 = arith.constant 3 : index
    %c0_120 = arith.constant 0 : index
    %c0_121 = arith.constant 0 : index
    %255 = vector.load %arg11[%c3_119, %c0_120, %c0_121] : memref<4x16x32xf32, #tpu.memory_space<vmem>>, vector<1x16x32xf32>
    %256 = vector.shape_cast %255 : vector<1x16x32xf32> to vector<16x32xf32>
    %257 = vector.shape_cast %254 : vector<16x32xf32> to vector<1x16x32xf32>
    tpu.vector_store %arg11[%c3_119, %c0_120, %c0_121], %257 {strides = array<i32>} : memref<4x16x32xf32, #tpu.memory_space<vmem>>, vector<1x16x32xf32>,
    %c3_122 = arith.constant 3 : index
    %c0_123 = arith.constant 0 : index
    %c0_124 = arith.constant 0 : index
    %258 = vector.load %arg9[%c3_122, %c0_123, %c0_124] : memref<4x16x1xf32, #tpu.memory_space<vmem>>, vector<1x16x1xf32>
    %259 = vector.shape_cast %258 : vector<1x16x1xf32> to vector<16x1xf32>
    %260 = vector.shape_cast %232 : vector<16x1xf32> to vector<1x16x1xf32>
    tpu.vector_store %arg9[%c3_122, %c0_123, %c0_124], %260 {strides = array<i32>} : memref<4x16x1xf32, #tpu.memory_space<vmem>>, vector<1x16x1xf32>,
    %c0_i32_125 = arith.constant 0 : i32
    %261 = arith.cmpi eq, %arg2, %c0_i32_125 : i32
    %262 = arith.extui %261 : i1 to i32
    %c0_i32_126 = arith.constant 0 : i32
    %263 = arith.cmpi ne, %262, %c0_i32_126 : i32
    scf.if %263 {
      %c0_127 = arith.constant 0 : index
      %c0_128 = arith.constant 0 : index
      %c0_129 = arith.constant 0 : index
      %264 = vector.load %arg10[%c0_127, %c0_128, %c0_129] : memref<4x16x1xf32, #tpu.memory_space<vmem>>, vector<1x16x1xf32>
      %265 = vector.shape_cast %264 : vector<1x16x1xf32> to vector<16x1xf32>
      %cst_130 = arith.constant 1.000000e+00 : f32
      %266 = vector.broadcast %cst_130 : f32 to vector<16x1xf32>
      %267 = arith.divf %266, %265 : vector<16x1xf32>
      %c0_131 = arith.constant 0 : index
      %c0_132 = arith.constant 0 : index
      %c0_133 = arith.constant 0 : index
      %268 = vector.load %arg11[%c0_131, %c0_132, %c0_133] : memref<4x16x32xf32, #tpu.memory_space<vmem>>, vector<1x16x32xf32>
      %269 = vector.shape_cast %268 : vector<1x16x32xf32> to vector<16x32xf32>
      %270 = vector.broadcast %267 : vector<16x1xf32> to vector<16x32xf32>
      %271 = arith.mulf %269, %270 : vector<16x32xf32>
      %c1_134 = arith.constant 1 : index
      %c0_135 = arith.constant 0 : index
      %c0_136 = arith.constant 0 : index
      %272 = vector.load %arg10[%c1_134, %c0_135, %c0_136] : memref<4x16x1xf32, #tpu.memory_space<vmem>>, vector<1x16x1xf32>
      %273 = vector.shape_cast %272 : vector<1x16x1xf32> to vector<16x1xf32>
      %cst_137 = arith.constant 1.000000e+00 : f32
      %274 = vector.broadcast %cst_137 : f32 to vector<16x1xf32>
      %275 = arith.divf %274, %273 : vector<16x1xf32>
      %c1_138 = arith.constant 1 : index
      %c0_139 = arith.constant 0 : index
      %c0_140 = arith.constant 0 : index
      %276 = vector.load %arg11[%c1_138, %c0_139, %c0_140] : memref<4x16x32xf32, #tpu.memory_space<vmem>>, vector<1x16x32xf32>
      %277 = vector.shape_cast %276 : vector<1x16x32xf32> to vector<16x32xf32>
      %278 = vector.broadcast %275 : vector<16x1xf32> to vector<16x32xf32>
      %279 = arith.mulf %277, %278 : vector<16x32xf32>
      %c2_141 = arith.constant 2 : index
      %c0_142 = arith.constant 0 : index
      %c0_143 = arith.constant 0 : index
      %280 = vector.load %arg10[%c2_141, %c0_142, %c0_143] : memref<4x16x1xf32, #tpu.memory_space<vmem>>, vector<1x16x1xf32>
      %281 = vector.shape_cast %280 : vector<1x16x1xf32> to vector<16x1xf32>
      %cst_144 = arith.constant 1.000000e+00 : f32
      %282 = vector.broadcast %cst_144 : f32 to vector<16x1xf32>
      %283 = arith.divf %282, %281 : vector<16x1xf32>
      %c2_145 = arith.constant 2 : index
      %c0_146 = arith.constant 0 : index
      %c0_147 = arith.constant 0 : index
      %284 = vector.load %arg11[%c2_145, %c0_146, %c0_147] : memref<4x16x32xf32, #tpu.memory_space<vmem>>, vector<1x16x32xf32>
      %285 = vector.shape_cast %284 : vector<1x16x32xf32> to vector<16x32xf32>
      %286 = vector.broadcast %283 : vector<16x1xf32> to vector<16x32xf32>
      %287 = arith.mulf %285, %286 : vector<16x32xf32>
      %c3_148 = arith.constant 3 : index
      %c0_149 = arith.constant 0 : index
      %c0_150 = arith.constant 0 : index
      %288 = vector.load %arg10[%c3_148, %c0_149, %c0_150] : memref<4x16x1xf32, #tpu.memory_space<vmem>>, vector<1x16x1xf32>
      %289 = vector.shape_cast %288 : vector<1x16x1xf32> to vector<16x1xf32>
      %cst_151 = arith.constant 1.000000e+00 : f32
      %290 = vector.broadcast %cst_151 : f32 to vector<16x1xf32>
      %291 = arith.divf %290, %289 : vector<16x1xf32>
      %c3_152 = arith.constant 3 : index
      %c0_153 = arith.constant 0 : index
      %c0_154 = arith.constant 0 : index
      %292 = vector.load %arg11[%c3_152, %c0_153, %c0_154] : memref<4x16x32xf32, #tpu.memory_space<vmem>>, vector<1x16x32xf32>
      %293 = vector.shape_cast %292 : vector<1x16x32xf32> to vector<16x32xf32>
      %294 = vector.broadcast %291 : vector<16x1xf32> to vector<16x32xf32>
      %295 = arith.mulf %293, %294 : vector<16x32xf32>
      %296 = tpu.concatenate %271, %279, %287, %295 in 1 : vector<16x32xf32>, vector<16x32xf32>, vector<16x32xf32>, vector<16x32xf32> -> vector<16x128xf32>
      %297 = arith.truncf %296 : vector<16x128xf32> to vector<16x128xbf16>
      %c0_155 = arith.constant 0 : index
      %c0_156 = arith.constant 0 : index
      %c0_157 = arith.constant 0 : index
      %298 = vector.load %arg8[%c0_155, %c0_156, %c0_157] : memref<1x16x128xbf16, #tpu.memory_space<vmem>>, vector<1x16x128xbf16>
      %299 = vector.shape_cast %298 : vector<1x16x128xbf16> to vector<16x128xbf16>
      %300 = vector.shape_cast %297 : vector<16x128xbf16> to vector<1x16x128xbf16>
      tpu.vector_store %arg8[%c0_155, %c0_156, %c0_157], %300 {strides = array<i32>} : memref<1x16x128xbf16, #tpu.memory_space<vmem>>, vector<1x16x128xbf16>,
    } else {
    }
    return
  }
  func.func @transform_0(%arg0: i32, %arg1: i32, %arg2: i32) -> (i32, i32, i32) {
    %c0_i32 = arith.constant 0 : i32
    %c0_i32_0 = arith.constant 0 : i32
    return %arg0, %arg1, %c0_i32 : i32, i32, i32
  }
  func.func @transform_1(%arg0: i32, %arg1: i32, %arg2: i32) -> (i32, i32, i32) {
    %c1_i32 = arith.constant 1 : i32
    %c0_i32 = arith.constant 0 : i32
    return %arg0, %arg2, %c1_i32 : i32, i32, i32
  }
  func.func @transform_2(%arg0: i32, %arg1: i32, %arg2: i32) -> (i32, i32, i32) {
    %c2_i32 = arith.constant 2 : i32
    %c0_i32 = arith.constant 0 : i32
    return %arg0, %arg2, %c2_i32 : i32, i32, i32
  }
  func.func @transform_3(%arg0: i32, %arg1: i32, %arg2: i32) -> (i32, i32) {
    %c0_i32 = arith.constant 0 : i32
    %c0_i32_0 = arith.constant 0 : i32
    return %arg1, %c0_i32 : i32, i32
  }
  func.func @transform_4(%arg0: i32, %arg1: i32, %arg2: i32) -> (i32, i32) {
    %c0_i32 = arith.constant 0 : i32
    %c0_i32_0 = arith.constant 0 : i32
    return %arg2, %c0_i32 : i32, i32
  }
  func.func @transform_5(%arg0: i32, %arg1: i32, %arg2: i32) -> (i32, i32, i32) {
    %c0_i32 = arith.constant 0 : i32
    %c0_i32_0 = arith.constant 0 : i32
    return %arg0, %arg1, %c0_i32 : i32, i32, i32
  }
}

module attributes {stable_mosaic.version = 11 : i64} {
  func.func @_linear_kernel(%arg0: i32, %arg1: i32, %arg2: i32, %arg3: i32, %arg4: memref<1x8x512xbf16, #tpu.memory_space<vmem>>, %arg5: memref<512x128xbf16, #tpu.memory_space<vmem>>, %arg6: memref<1x1x128xbf16, #tpu.memory_space<vmem>>, %arg7: memref<1x8x128xbf16, #tpu.memory_space<vmem>>, %arg8: memref<1x1x128xbf16, #tpu.memory_space<vmem>>, %arg9: memref<1x8x128xbf16, #tpu.memory_space<vmem>>, %arg10: memref<8x128xf32, #tpu.memory_space<vmem>>) attributes {dimension_semantics = [#tpu.dimension_semantics<parallel>, #tpu.dimension_semantics<parallel>, #tpu.dimension_semantics<parallel>, #tpu.dimension_semantics<arbitrary>], iteration_bounds = array<i64: 2, 1, 1, 1>, scalar_prefetch = 0 : i64, scratch_operands = 1 : i64, tpu.core_type = #tpu.core_type<tc>, window_params = [{transform_indices = @transform_0, window_bounds = array<i64: 1, 8, 512>}, {transform_indices = @transform_1, window_bounds = array<i64: 512, 128>}, {transform_indices = @transform_2, window_bounds = array<i64: 1, 1, 128>}, {transform_indices = @transform_3, window_bounds = array<i64: 1, 8, 128>}, {transform_indices = @transform_4, window_bounds = array<i64: 1, 1, 128>}, {transform_indices = @transform_5, window_bounds = array<i64: 1, 8, 128>}]} {
    %c0_i32 = arith.constant 0 : i32
    %0 = arith.cmpi eq, %arg3, %c0_i32 : i32
    %1 = arith.extui %0 : i1 to i32
    %c0_i32_0 = arith.constant 0 : i32
    %2 = arith.cmpi ne, %1, %c0_i32_0 : i32
    scf.if %2 {
      %cst_11 = arith.constant 0.000000e+00 : f32
      %13 = vector.broadcast %cst_11 : f32 to vector<8x128xf32>
      %c0_12 = arith.constant 0 : index
      %c0_13 = arith.constant 0 : index
      %14 = vector.load %arg10[%c0_12, %c0_13] : memref<8x128xf32, #tpu.memory_space<vmem>>, vector<8x128xf32>
      tpu.vector_store %arg10[%c0_12, %c0_13], %13 {strides = array<i32>} : memref<8x128xf32, #tpu.memory_space<vmem>>, vector<8x128xf32>,
    } else {
    }
    %c0 = arith.constant 0 : index
    %c0_1 = arith.constant 0 : index
    %c0_2 = arith.constant 0 : index
    %3 = vector.load %arg4[%c0, %c0_1, %c0_2] : memref<1x8x512xbf16, #tpu.memory_space<vmem>>, vector<1x8x512xbf16>
    %4 = vector.shape_cast %3 : vector<1x8x512xbf16> to vector<8x512xbf16>
    %c0_3 = arith.constant 0 : index
    %c0_4 = arith.constant 0 : index
    %5 = vector.load %arg10[%c0_3, %c0_4] : memref<8x128xf32, #tpu.memory_space<vmem>>, vector<8x128xf32>
    %c0_5 = arith.constant 0 : index
    %c0_6 = arith.constant 0 : index
    %6 = vector.load %arg5[%c0_5, %c0_6] : memref<512x128xbf16, #tpu.memory_space<vmem>>, vector<512x128xbf16>
    %cst = arith.constant dense<0.000000e+00> : vector<8x128xf32>
    %7 = tpu.matmul %4, %6, %cst {dimension_numbers = #tpu.dot_dimension_numbers<[1], [0], [0], [1], [0, 0, 1, 1], [], []>} : vector<8x512xbf16>, vector<512x128xbf16>, vector<8x128xf32> -> vector<8x128xf32>
    %8 = arith.addf %5, %7 : vector<8x128xf32>
    %c0_7 = arith.constant 0 : index
    %c0_8 = arith.constant 0 : index
    %9 = vector.load %arg10[%c0_7, %c0_8] : memref<8x128xf32, #tpu.memory_space<vmem>>, vector<8x128xf32>
    tpu.vector_store %arg10[%c0_7, %c0_8], %8 {strides = array<i32>} : memref<8x128xf32, #tpu.memory_space<vmem>>, vector<8x128xf32>,
    %c0_i32_9 = arith.constant 0 : i32
    %10 = arith.cmpi eq, %arg3, %c0_i32_9 : i32
    %11 = arith.extui %10 : i1 to i32
    %c0_i32_10 = arith.constant 0 : i32
    %12 = arith.cmpi ne, %11, %c0_i32_10 : i32
    scf.if %12 {
      %c0_11 = arith.constant 0 : index
      %c0_12 = arith.constant 0 : index
      %13 = vector.load %arg10[%c0_11, %c0_12] : memref<8x128xf32, #tpu.memory_space<vmem>>, vector<8x128xf32>
      %c0_13 = arith.constant 0 : index
      %c0_14 = arith.constant 0 : index
      %c0_15 = arith.constant 0 : index
      %14 = vector.load %arg6[%c0_13, %c0_14, %c0_15] : memref<1x1x128xbf16, #tpu.memory_space<vmem>>, vector<1x1x128xbf16>
      %15 = vector.shape_cast %14 : vector<1x1x128xbf16> to vector<1x128xbf16>
      %16 = arith.extf %15 : vector<1x128xbf16> to vector<1x128xf32>
      %17 = vector.broadcast %16 : vector<1x128xf32> to vector<8x128xf32>
      %18 = arith.addf %13, %17 : vector<8x128xf32>
      %c0_16 = arith.constant 0 : index
      %c0_17 = arith.constant 0 : index
      %c0_18 = arith.constant 0 : index
      %19 = vector.load %arg7[%c0_16, %c0_17, %c0_18] : memref<1x8x128xbf16, #tpu.memory_space<vmem>>, vector<1x8x128xbf16>
      %20 = vector.shape_cast %19 : vector<1x8x128xbf16> to vector<8x128xbf16>
      %21 = arith.extf %20 : vector<8x128xbf16> to vector<8x128xf32>
      %c0_19 = arith.constant 0 : index
      %c0_20 = arith.constant 0 : index
      %c0_21 = arith.constant 0 : index
      %22 = vector.load %arg8[%c0_19, %c0_20, %c0_21] : memref<1x1x128xbf16, #tpu.memory_space<vmem>>, vector<1x1x128xbf16>
      %23 = vector.shape_cast %22 : vector<1x1x128xbf16> to vector<1x128xbf16>
      %24 = arith.extf %23 : vector<1x128xbf16> to vector<1x128xf32>
      %25 = vector.broadcast %24 : vector<1x128xf32> to vector<8x128xf32>
      %26 = arith.mulf %25, %18 : vector<8x128xf32>
      %27 = arith.addf %21, %26 : vector<8x128xf32>
      %28 = arith.truncf %27 : vector<8x128xf32> to vector<8x128xbf16>
      %c0_22 = arith.constant 0 : index
      %c0_23 = arith.constant 0 : index
      %c0_24 = arith.constant 0 : index
      %29 = vector.load %arg9[%c0_22, %c0_23, %c0_24] : memref<1x8x128xbf16, #tpu.memory_space<vmem>>, vector<1x8x128xbf16>
      %30 = vector.shape_cast %29 : vector<1x8x128xbf16> to vector<8x128xbf16>
      %31 = vector.shape_cast %28 : vector<8x128xbf16> to vector<1x8x128xbf16>
      tpu.vector_store %arg9[%c0_22, %c0_23, %c0_24], %31 {strides = array<i32>} : memref<1x8x128xbf16, #tpu.memory_space<vmem>>, vector<1x8x128xbf16>,
    } else {
    }
    return
  }
  func.func @transform_0(%arg0: i32, %arg1: i32, %arg2: i32, %arg3: i32) -> (i32, i32, i32) {
    %c0_i32 = arith.constant 0 : i32
    %0 = arith.addi %arg3, %c0_i32 : i32
    %c0_i32_0 = arith.constant 0 : i32
    return %arg0, %arg1, %0 : i32, i32, i32
  }
  func.func @transform_1(%arg0: i32, %arg1: i32, %arg2: i32, %arg3: i32) -> (i32, i32) {
    %c0_i32 = arith.constant 0 : i32
    return %arg3, %arg2 : i32, i32
  }
  func.func @transform_2(%arg0: i32, %arg1: i32, %arg2: i32, %arg3: i32) -> (i32, i32, i32) {
    %c0_i32 = arith.constant 0 : i32
    %c0_i32_0 = arith.constant 0 : i32
    %c0_i32_1 = arith.constant 0 : i32
    return %c0_i32, %c0_i32_0, %arg2 : i32, i32, i32
  }
  func.func @transform_3(%arg0: i32, %arg1: i32, %arg2: i32, %arg3: i32) -> (i32, i32, i32) {
    %c0_i32 = arith.constant 0 : i32
    return %arg0, %arg1, %arg2 : i32, i32, i32
  }
  func.func @transform_4(%arg0: i32, %arg1: i32, %arg2: i32, %arg3: i32) -> (i32, i32, i32) {
    %c0_i32 = arith.constant 0 : i32
    %c0_i32_0 = arith.constant 0 : i32
    return %arg0, %c0_i32, %arg2 : i32, i32, i32
  }
  func.func @transform_5(%arg0: i32, %arg1: i32, %arg2: i32, %arg3: i32) -> (i32, i32, i32) {
    %c0_i32 = arith.constant 0 : i32
    return %arg0, %arg1, %arg2 : i32, i32, i32
  }
}

module attributes {stable_mosaic.version = 11 : i64} {
  func.func @_linear_kernel(%arg0: i32, %arg1: i32, %arg2: i32, %arg3: i32, %arg4: memref<1x8x128xbf16, #tpu.memory_space<vmem>>, %arg5: memref<128x256xbf16, #tpu.memory_space<vmem>>, %arg6: memref<1x1x256xbf16, #tpu.memory_space<vmem>>, %arg7: memref<1x1x128xbf16, #tpu.memory_space<vmem>>, %arg8: memref<1x1x128xbf16, #tpu.memory_space<vmem>>, %arg9: memref<1x8x256xbf16, #tpu.memory_space<vmem>>, %arg10: memref<8x256xf32, #tpu.memory_space<vmem>>) attributes {dimension_semantics = [#tpu.dimension_semantics<parallel>, #tpu.dimension_semantics<parallel>, #tpu.dimension_semantics<parallel>, #tpu.dimension_semantics<arbitrary>], iteration_bounds = array<i64: 2, 1, 2, 1>, scalar_prefetch = 0 : i64, scratch_operands = 1 : i64, tpu.core_type = #tpu.core_type<tc>, window_params = [{transform_indices = @transform_0, window_bounds = array<i64: 1, 8, 128>}, {transform_indices = @transform_1, window_bounds = array<i64: 128, 256>}, {transform_indices = @transform_2, window_bounds = array<i64: 1, 1, 256>}, {transform_indices = @transform_3, window_bounds = array<i64: 1, 1, 128>}, {transform_indices = @transform_4, window_bounds = array<i64: 1, 1, 128>}, {transform_indices = @transform_5, window_bounds = array<i64: 1, 8, 256>}]} {
    %c0_i32 = arith.constant 0 : i32
    %0 = arith.cmpi eq, %arg3, %c0_i32 : i32
    %1 = arith.extui %0 : i1 to i32
    %c0_i32_0 = arith.constant 0 : i32
    %2 = arith.cmpi ne, %1, %c0_i32_0 : i32
    scf.if %2 {
      %cst_23 = arith.constant 0.000000e+00 : f32
      %45 = vector.broadcast %cst_23 : f32 to vector<8x256xf32>
      %c0_24 = arith.constant 0 : index
      %c0_25 = arith.constant 0 : index
      %46 = vector.load %arg10[%c0_24, %c0_25] : memref<8x256xf32, #tpu.memory_space<vmem>>, vector<8x256xf32>
      tpu.vector_store %arg10[%c0_24, %c0_25], %45 {strides = array<i32>} : memref<8x256xf32, #tpu.memory_space<vmem>>, vector<8x256xf32>,
    } else {
    }
    %c0 = arith.constant 0 : index
    %c0_1 = arith.constant 0 : index
    %c0_2 = arith.constant 0 : index
    %3 = vector.load %arg4[%c0, %c0_1, %c0_2] : memref<1x8x128xbf16, #tpu.memory_space<vmem>>, vector<1x8x128xbf16>
    %4 = vector.shape_cast %3 : vector<1x8x128xbf16> to vector<8x128xbf16>
    %5 = arith.extf %4 : vector<8x128xbf16> to vector<8x128xf32>
    %cst = arith.constant dense<0.000000e+00> : vector<8xf32>
    %6 = vector.multi_reduction <add>, %5, %cst [1] : vector<8x128xf32> to vector<8xf32>
    %7 = vector.shape_cast %6 : vector<8xf32> to vector<8x1xf32>
    %cst_3 = arith.constant 1.280000e+02 : f32
    %8 = vector.broadcast %cst_3 : f32 to vector<8x1xf32>
    %9 = arith.divf %7, %8 : vector<8x1xf32>
    %10 = vector.broadcast %9 : vector<8x1xf32> to vector<8x128xf32>
    %11 = arith.subf %5, %10 : vector<8x128xf32>
    %12 = arith.mulf %11, %11 : vector<8x128xf32>
    %cst_4 = arith.constant dense<0.000000e+00> : vector<8xf32>
    %13 = vector.multi_reduction <add>, %12, %cst_4 [1] : vector<8x128xf32> to vector<8xf32>
    %14 = vector.shape_cast %13 : vector<8xf32> to vector<8x1xf32>
    %cst_5 = arith.constant 1.280000e+02 : f32
    %15 = vector.broadcast %cst_5 : f32 to vector<8x1xf32>
    %16 = arith.divf %14, %15 : vector<8x1xf32>
    %17 = vector.broadcast %9 : vector<8x1xf32> to vector<8x128xf32>
    %18 = arith.subf %5, %17 : vector<8x128xf32>
    %cst_6 = arith.constant 9.99999997E-7 : f32
    %19 = vector.broadcast %cst_6 : f32 to vector<8x1xf32>
    %20 = arith.addf %16, %19 : vector<8x1xf32>
    %21 = math.rsqrt %20 : vector<8x1xf32>
    %22 = vector.broadcast %21 : vector<8x1xf32> to vector<8x128xf32>
    %23 = arith.mulf %18, %22 : vector<8x128xf32>
    %c0_7 = arith.constant 0 : index
    %c0_8 = arith.constant 0 : index
    %c0_9 = arith.constant 0 : index
    %24 = vector.load %arg7[%c0_7, %c0_8, %c0_9] : memref<1x1x128xbf16, #tpu.memory_space<vmem>>, vector<1x1x128xbf16>
    %25 = vector.shape_cast %24 : vector<1x1x128xbf16> to vector<1x128xbf16>
    %26 = arith.extf %25 : vector<1x128xbf16> to vector<1x128xf32>
    %c0_10 = arith.constant 0 : index
    %c0_11 = arith.constant 0 : index
    %c0_12 = arith.constant 0 : index
    %27 = vector.load %arg8[%c0_10, %c0_11, %c0_12] : memref<1x1x128xbf16, #tpu.memory_space<vmem>>, vector<1x1x128xbf16>
    %28 = vector.shape_cast %27 : vector<1x1x128xbf16> to vector<1x128xbf16>
    %29 = arith.extf %28 : vector<1x128xbf16> to vector<1x128xf32>
    %cst_13 = arith.constant 1.000000e+00 : f32
    %30 = vector.broadcast %cst_13 : f32 to vector<1x128xf32>
    %31 = arith.addf %30, %26 : vector<1x128xf32>
    %32 = vector.broadcast %31 : vector<1x128xf32> to vector<8x128xf32>
    %33 = arith.mulf %32, %23 : vector<8x128xf32>
    %34 = vector.broadcast %29 : vector<1x128xf32> to vector<8x128xf32>
    %35 = arith.addf %33, %34 : vector<8x128xf32>
    %36 = arith.truncf %35 : vector<8x128xf32> to vector<8x128xbf16>
    %c0_14 = arith.constant 0 : index
    %c0_15 = arith.constant 0 : index
    %37 = vector.load %arg10[%c0_14, %c0_15] : memref<8x256xf32, #tpu.memory_space<vmem>>, vector<8x256xf32>
    %c0_16 = arith.constant 0 : index
    %c0_17 = arith.constant 0 : index
    %38 = vector.load %arg5[%c0_16, %c0_17] : memref<128x256xbf16, #tpu.memory_space<vmem>>, vector<128x256xbf16>
    %cst_18 = arith.constant dense<0.000000e+00> : vector<8x256xf32>
    %39 = tpu.matmul %36, %38, %cst_18 {dimension_numbers = #tpu.dot_dimension_numbers<[1], [0], [0], [1], [0, 0, 1, 1], [], []>} : vector<8x128xbf16>, vector<128x256xbf16>, vector<8x256xf32> -> vector<8x256xf32>
    %40 = arith.addf %37, %39 : vector<8x256xf32>
    %c0_19 = arith.constant 0 : index
    %c0_20 = arith.constant 0 : index
    %41 = vector.load %arg10[%c0_19, %c0_20] : memref<8x256xf32, #tpu.memory_space<vmem>>, vector<8x256xf32>
    tpu.vector_store %arg10[%c0_19, %c0_20], %40 {strides = array<i32>} : memref<8x256xf32, #tpu.memory_space<vmem>>, vector<8x256xf32>,
    %c0_i32_21 = arith.constant 0 : i32
    %42 = arith.cmpi eq, %arg3, %c0_i32_21 : i32
    %43 = arith.extui %42 : i1 to i32
    %c0_i32_22 = arith.constant 0 : i32
    %44 = arith.cmpi ne, %43, %c0_i32_22 : i32
    scf.if %44 {
      %c0_23 = arith.constant 0 : index
      %c0_24 = arith.constant 0 : index
      %45 = vector.load %arg10[%c0_23, %c0_24] : memref<8x256xf32, #tpu.memory_space<vmem>>, vector<8x256xf32>
      %c0_25 = arith.constant 0 : index
      %c0_26 = arith.constant 0 : index
      %c0_27 = arith.constant 0 : index
      %46 = vector.load %arg6[%c0_25, %c0_26, %c0_27] : memref<1x1x256xbf16, #tpu.memory_space<vmem>>, vector<1x1x256xbf16>
      %47 = vector.shape_cast %46 : vector<1x1x256xbf16> to vector<1x256xbf16>
      %48 = arith.extf %47 : vector<1x256xbf16> to vector<1x256xf32>
      %49 = vector.broadcast %48 : vector<1x256xf32> to vector<8x256xf32>
      %50 = arith.addf %45, %49 : vector<8x256xf32>
      %cst_28 = arith.constant 5.000000e-01 : f32
      %51 = vector.broadcast %cst_28 : f32 to vector<8x256xf32>
      %52 = arith.mulf %51, %50 : vector<8x256xf32>
      %cst_29 = arith.constant 4.471500e-02 : f32
      %53 = vector.broadcast %cst_29 : f32 to vector<8x256xf32>
      %54 = arith.mulf %53, %50 : vector<8x256xf32>
      %55 = arith.mulf %54, %50 : vector<8x256xf32>
      %56 = arith.mulf %55, %50 : vector<8x256xf32>
      %57 = arith.addf %50, %56 : vector<8x256xf32>
      %cst_30 = arith.constant 0.797884583 : f32
      %58 = vector.broadcast %cst_30 : f32 to vector<8x256xf32>
      %59 = arith.mulf %58, %57 : vector<8x256xf32>
      %60 = math.tanh %59 : vector<8x256xf32>
      %cst_31 = arith.constant 1.000000e+00 : f32
      %61 = vector.broadcast %cst_31 : f32 to vector<8x256xf32>
      %62 = arith.addf %61, %60 : vector<8x256xf32>
      %63 = arith.mulf %52, %62 : vector<8x256xf32>
      %64 = arith.truncf %63 : vector<8x256xf32> to vector<8x256xbf16>
      %c0_32 = arith.constant 0 : index
      %c0_33 = arith.constant 0 : index
      %c0_34 = arith.constant 0 : index
      %65 = vector.load %arg9[%c0_32, %c0_33, %c0_34] : memref<1x8x256xbf16, #tpu.memory_space<vmem>>, vector<1x8x256xbf16>
      %66 = vector.shape_cast %65 : vector<1x8x256xbf16> to vector<8x256xbf16>
      %67 = vector.shape_cast %64 : vector<8x256xbf16> to vector<1x8x256xbf16>
      tpu.vector_store %arg9[%c0_32, %c0_33, %c0_34], %67 {strides = array<i32>} : memref<1x8x256xbf16, #tpu.memory_space<vmem>>, vector<1x8x256xbf16>,
    } else {
    }
    return
  }
  func.func @transform_0(%arg0: i32, %arg1: i32, %arg2: i32, %arg3: i32) -> (i32, i32, i32) {
    %c0_i32 = arith.constant 0 : i32
    %0 = arith.addi %arg3, %c0_i32 : i32
    %c0_i32_0 = arith.constant 0 : i32
    return %arg0, %arg1, %0 : i32, i32, i32
  }
  func.func @transform_1(%arg0: i32, %arg1: i32, %arg2: i32, %arg3: i32) -> (i32, i32) {
    %c0_i32 = arith.constant 0 : i32
    return %arg3, %arg2 : i32, i32
  }
  func.func @transform_2(%arg0: i32, %arg1: i32, %arg2: i32, %arg3: i32) -> (i32, i32, i32) {
    %c0_i32 = arith.constant 0 : i32
    %c0_i32_0 = arith.constant 0 : i32
    %c0_i32_1 = arith.constant 0 : i32
    return %c0_i32, %c0_i32_0, %arg2 : i32, i32, i32
  }
  func.func @transform_3(%arg0: i32, %arg1: i32, %arg2: i32, %arg3: i32) -> (i32, i32, i32) {
    %c0_i32 = arith.constant 0 : i32
    %c0_i32_0 = arith.constant 0 : i32
    %c0_i32_1 = arith.constant 0 : i32
    return %arg0, %c0_i32, %c0_i32_0 : i32, i32, i32
  }
  func.func @transform_4(%arg0: i32, %arg1: i32, %arg2: i32, %arg3: i32) -> (i32, i32, i32) {
    %c0_i32 = arith.constant 0 : i32
    %c0_i32_0 = arith.constant 0 : i32
    %c0_i32_1 = arith.constant 0 : i32
    return %arg0, %c0_i32, %c0_i32_0 : i32, i32, i32
  }
  func.func @transform_5(%arg0: i32, %arg1: i32, %arg2: i32, %arg3: i32) -> (i32, i32, i32) {
    %c0_i32 = arith.constant 0 : i32
    return %arg0, %arg1, %arg2 : i32, i32, i32
  }
}

module attributes {stable_mosaic.version = 11 : i64} {
  func.func @_linear_kernel(%arg0: i32, %arg1: i32, %arg2: i32, %arg3: i32, %arg4: memref<1x2x128xbf16, #tpu.memory_space<vmem>>, %arg5: memref<128x128xbf16, #tpu.memory_space<vmem>>, %arg6: memref<1x1x128xbf16, #tpu.memory_space<vmem>>, %arg7: memref<1x2x128xbf16, #tpu.memory_space<vmem>>, %arg8: memref<2x128xf32, #tpu.memory_space<vmem>>) attributes {dimension_semantics = [#tpu.dimension_semantics<parallel>, #tpu.dimension_semantics<parallel>, #tpu.dimension_semantics<parallel>, #tpu.dimension_semantics<arbitrary>], iteration_bounds = array<i64: 1, 1, 3, 1>, scalar_prefetch = 0 : i64, scratch_operands = 1 : i64, tpu.core_type = #tpu.core_type<tc>, window_params = [{transform_indices = @transform_0, window_bounds = array<i64: 1, 2, 128>}, {transform_indices = @transform_1, window_bounds = array<i64: 128, 128>}, {transform_indices = @transform_2, window_bounds = array<i64: 1, 1, 128>}, {transform_indices = @transform_3, window_bounds = array<i64: 1, 2, 128>}]} {
    %c0_i32 = arith.constant 0 : i32
    %0 = arith.cmpi eq, %arg3, %c0_i32 : i32
    %1 = arith.extui %0 : i1 to i32
    %c0_i32_0 = arith.constant 0 : i32
    %2 = arith.cmpi ne, %1, %c0_i32_0 : i32
    scf.if %2 {
      %cst_12 = arith.constant 0.000000e+00 : f32
      %21 = vector.broadcast %cst_12 : f32 to vector<2x128xf32>
      %c0_13 = arith.constant 0 : index
      %c0_14 = arith.constant 0 : index
      %22 = vector.load %arg8[%c0_13, %c0_14] : memref<2x128xf32, #tpu.memory_space<vmem>>, vector<2x128xf32>
      tpu.vector_store %arg8[%c0_13, %c0_14], %21 {strides = array<i32>} : memref<2x128xf32, #tpu.memory_space<vmem>>, vector<2x128xf32>,
    } else {
    }
    %c0 = arith.constant 0 : index
    %c0_1 = arith.constant 0 : index
    %c0_2 = arith.constant 0 : index
    %3 = vector.load %arg4[%c0, %c0_1, %c0_2] : memref<1x2x128xbf16, #tpu.memory_space<vmem>>, vector<1x2x128xbf16>
    %4 = vector.shape_cast %3 : vector<1x2x128xbf16> to vector<2x128xbf16>
    %5 = arith.extf %4 : vector<2x128xbf16> to vector<2x128xf32>
    %6 = arith.negf %5 : vector<2x128xf32>
    %7 = math.exp %6 : vector<2x128xf32>
    %cst = arith.constant 1.000000e+00 : f32
    %8 = vector.broadcast %cst : f32 to vector<2x128xf32>
    %9 = arith.addf %8, %7 : vector<2x128xf32>
    %10 = arith.divf %8, %9 : vector<2x128xf32>
    %11 = arith.mulf %5, %10 : vector<2x128xf32>
    %12 = arith.truncf %11 : vector<2x128xf32> to vector<2x128xbf16>
    %c0_3 = arith.constant 0 : index
    %c0_4 = arith.constant 0 : index
    %13 = vector.load %arg8[%c0_3, %c0_4] : memref<2x128xf32, #tpu.memory_space<vmem>>, vector<2x128xf32>
    %c0_5 = arith.constant 0 : index
    %c0_6 = arith.constant 0 : index
    %14 = vector.load %arg5[%c0_5, %c0_6] : memref<128x128xbf16, #tpu.memory_space<vmem>>, vector<128x128xbf16>
    %cst_7 = arith.constant dense<0.000000e+00> : vector<2x128xf32>
    %15 = tpu.matmul %12, %14, %cst_7 {dimension_numbers = #tpu.dot_dimension_numbers<[1], [0], [0], [1], [0, 0, 1, 1], [], []>} : vector<2x128xbf16>, vector<128x128xbf16>, vector<2x128xf32> -> vector<2x128xf32>
    %16 = arith.addf %13, %15 : vector<2x128xf32>
    %c0_8 = arith.constant 0 : index
    %c0_9 = arith.constant 0 : index
    %17 = vector.load %arg8[%c0_8, %c0_9] : memref<2x128xf32, #tpu.memory_space<vmem>>, vector<2x128xf32>
    tpu.vector_store %arg8[%c0_8, %c0_9], %16 {strides = array<i32>} : memref<2x128xf32, #tpu.memory_space<vmem>>, vector<2x128xf32>,
    %c0_i32_10 = arith.constant 0 : i32
    %18 = arith.cmpi eq, %arg3, %c0_i32_10 : i32
    %19 = arith.extui %18 : i1 to i32
    %c0_i32_11 = arith.constant 0 : i32
    %20 = arith.cmpi ne, %19, %c0_i32_11 : i32
    scf.if %20 {
      %c0_12 = arith.constant 0 : index
      %c0_13 = arith.constant 0 : index
      %21 = vector.load %arg8[%c0_12, %c0_13] : memref<2x128xf32, #tpu.memory_space<vmem>>, vector<2x128xf32>
      %c0_14 = arith.constant 0 : index
      %c0_15 = arith.constant 0 : index
      %c0_16 = arith.constant 0 : index
      %22 = vector.load %arg6[%c0_14, %c0_15, %c0_16] : memref<1x1x128xbf16, #tpu.memory_space<vmem>>, vector<1x1x128xbf16>
      %23 = vector.shape_cast %22 : vector<1x1x128xbf16> to vector<1x128xbf16>
      %24 = arith.extf %23 : vector<1x128xbf16> to vector<1x128xf32>
      %25 = vector.broadcast %24 : vector<1x128xf32> to vector<2x128xf32>
      %26 = arith.addf %21, %25 : vector<2x128xf32>
      %27 = arith.truncf %26 : vector<2x128xf32> to vector<2x128xbf16>
      %c0_17 = arith.constant 0 : index
      %c0_18 = arith.constant 0 : index
      %c0_19 = arith.constant 0 : index
      %28 = vector.load %arg7[%c0_17, %c0_18, %c0_19] : memref<1x2x128xbf16, #tpu.memory_space<vmem>>, vector<1x2x128xbf16>
      %29 = vector.shape_cast %28 : vector<1x2x128xbf16> to vector<2x128xbf16>
      %30 = vector.shape_cast %27 : vector<2x128xbf16> to vector<1x2x128xbf16>
      tpu.vector_store %arg7[%c0_17, %c0_18, %c0_19], %30 {strides = array<i32>} : memref<1x2x128xbf16, #tpu.memory_space<vmem>>, vector<1x2x128xbf16>,
    } else {
    }
    return
  }
  func.func @transform_0(%arg0: i32, %arg1: i32, %arg2: i32, %arg3: i32) -> (i32, i32, i32) {
    %c0_i32 = arith.constant 0 : i32
    %0 = arith.addi %arg3, %c0_i32 : i32
    %c0_i32_0 = arith.constant 0 : i32
    return %arg0, %arg1, %0 : i32, i32, i32
  }
  func.func @transform_1(%arg0: i32, %arg1: i32, %arg2: i32, %arg3: i32) -> (i32, i32) {
    %c0_i32 = arith.constant 0 : i32
    return %arg3, %arg2 : i32, i32
  }
  func.func @transform_2(%arg0: i32, %arg1: i32, %arg2: i32, %arg3: i32) -> (i32, i32, i32) {
    %c0_i32 = arith.constant 0 : i32
    %c0_i32_0 = arith.constant 0 : i32
    %c0_i32_1 = arith.constant 0 : i32
    return %c0_i32, %c0_i32_0, %arg2 : i32, i32, i32
  }
  func.func @transform_3(%arg0: i32, %arg1: i32, %arg2: i32, %arg3: i32) -> (i32, i32, i32) {
    %c0_i32 = arith.constant 0 : i32
    return %arg0, %arg1, %arg2 : i32, i32, i32
  }
}

module attributes {stable_mosaic.version = 11 : i64} {
  func.func @_linear_kernel(%arg0: i32, %arg1: i32, %arg2: i32, %arg3: i32, %arg4: memref<1x16x128xbf16, #tpu.memory_space<vmem>>, %arg5: memref<128x128xbf16, #tpu.memory_space<vmem>>, %arg6: memref<1x1x128xbf16, #tpu.memory_space<vmem>>, %arg7: memref<1x1x128xbf16, #tpu.memory_space<vmem>>, %arg8: memref<1x1x128xbf16, #tpu.memory_space<vmem>>, %arg9: memref<1x16x128xbf16, #tpu.memory_space<vmem>>, %arg10: memref<16x128xf32, #tpu.memory_space<vmem>>) attributes {dimension_semantics = [#tpu.dimension_semantics<parallel>, #tpu.dimension_semantics<parallel>, #tpu.dimension_semantics<parallel>, #tpu.dimension_semantics<arbitrary>], iteration_bounds = array<i64: 2, 1, 7, 1>, scalar_prefetch = 0 : i64, scratch_operands = 1 : i64, tpu.core_type = #tpu.core_type<tc>, window_params = [{transform_indices = @transform_0, window_bounds = array<i64: 1, 16, 128>}, {transform_indices = @transform_1, window_bounds = array<i64: 128, 128>}, {transform_indices = @transform_2, window_bounds = array<i64: 1, 1, 128>}, {transform_indices = @transform_3, window_bounds = array<i64: 1, 1, 128>}, {transform_indices = @transform_4, window_bounds = array<i64: 1, 1, 128>}, {transform_indices = @transform_5, window_bounds = array<i64: 1, 16, 128>}]} {
    %c0_i32 = arith.constant 0 : i32
    %0 = arith.cmpi eq, %arg3, %c0_i32 : i32
    %1 = arith.extui %0 : i1 to i32
    %c0_i32_0 = arith.constant 0 : i32
    %2 = arith.cmpi ne, %1, %c0_i32_0 : i32
    scf.if %2 {
      %cst_23 = arith.constant 0.000000e+00 : f32
      %45 = vector.broadcast %cst_23 : f32 to vector<16x128xf32>
      %c0_24 = arith.constant 0 : index
      %c0_25 = arith.constant 0 : index
      %46 = vector.load %arg10[%c0_24, %c0_25] : memref<16x128xf32, #tpu.memory_space<vmem>>, vector<16x128xf32>
      tpu.vector_store %arg10[%c0_24, %c0_25], %45 {strides = array<i32>} : memref<16x128xf32, #tpu.memory_space<vmem>>, vector<16x128xf32>,
    } else {
    }
    %c0 = arith.constant 0 : index
    %c0_1 = arith.constant 0 : index
    %c0_2 = arith.constant 0 : index
    %3 = vector.load %arg4[%c0, %c0_1, %c0_2] : memref<1x16x128xbf16, #tpu.memory_space<vmem>>, vector<1x16x128xbf16>
    %4 = vector.shape_cast %3 : vector<1x16x128xbf16> to vector<16x128xbf16>
    %5 = arith.extf %4 : vector<16x128xbf16> to vector<16x128xf32>
    %cst = arith.constant dense<0.000000e+00> : vector<16xf32>
    %6 = vector.multi_reduction <add>, %5, %cst [1] : vector<16x128xf32> to vector<16xf32>
    %7 = vector.shape_cast %6 : vector<16xf32> to vector<16x1xf32>
    %cst_3 = arith.constant 1.280000e+02 : f32
    %8 = vector.broadcast %cst_3 : f32 to vector<16x1xf32>
    %9 = arith.divf %7, %8 : vector<16x1xf32>
    %10 = vector.broadcast %9 : vector<16x1xf32> to vector<16x128xf32>
    %11 = arith.subf %5, %10 : vector<16x128xf32>
    %12 = arith.mulf %11, %11 : vector<16x128xf32>
    %cst_4 = arith.constant dense<0.000000e+00> : vector<16xf32>
    %13 = vector.multi_reduction <add>, %12, %cst_4 [1] : vector<16x128xf32> to vector<16xf32>
    %14 = vector.shape_cast %13 : vector<16xf32> to vector<16x1xf32>
    %cst_5 = arith.constant 1.280000e+02 : f32
    %15 = vector.broadcast %cst_5 : f32 to vector<16x1xf32>
    %16 = arith.divf %14, %15 : vector<16x1xf32>
    %17 = vector.broadcast %9 : vector<16x1xf32> to vector<16x128xf32>
    %18 = arith.subf %5, %17 : vector<16x128xf32>
    %cst_6 = arith.constant 9.99999997E-7 : f32
    %19 = vector.broadcast %cst_6 : f32 to vector<16x1xf32>
    %20 = arith.addf %16, %19 : vector<16x1xf32>
    %21 = math.rsqrt %20 : vector<16x1xf32>
    %22 = vector.broadcast %21 : vector<16x1xf32> to vector<16x128xf32>
    %23 = arith.mulf %18, %22 : vector<16x128xf32>
    %c0_7 = arith.constant 0 : index
    %c0_8 = arith.constant 0 : index
    %c0_9 = arith.constant 0 : index
    %24 = vector.load %arg7[%c0_7, %c0_8, %c0_9] : memref<1x1x128xbf16, #tpu.memory_space<vmem>>, vector<1x1x128xbf16>
    %25 = vector.shape_cast %24 : vector<1x1x128xbf16> to vector<1x128xbf16>
    %26 = arith.extf %25 : vector<1x128xbf16> to vector<1x128xf32>
    %c0_10 = arith.constant 0 : index
    %c0_11 = arith.constant 0 : index
    %c0_12 = arith.constant 0 : index
    %27 = vector.load %arg8[%c0_10, %c0_11, %c0_12] : memref<1x1x128xbf16, #tpu.memory_space<vmem>>, vector<1x1x128xbf16>
    %28 = vector.shape_cast %27 : vector<1x1x128xbf16> to vector<1x128xbf16>
    %29 = arith.extf %28 : vector<1x128xbf16> to vector<1x128xf32>
    %cst_13 = arith.constant 1.000000e+00 : f32
    %30 = vector.broadcast %cst_13 : f32 to vector<1x128xf32>
    %31 = arith.addf %30, %26 : vector<1x128xf32>
    %32 = vector.broadcast %31 : vector<1x128xf32> to vector<16x128xf32>
    %33 = arith.mulf %32, %23 : vector<16x128xf32>
    %34 = vector.broadcast %29 : vector<1x128xf32> to vector<16x128xf32>
    %35 = arith.addf %33, %34 : vector<16x128xf32>
    %36 = arith.truncf %35 : vector<16x128xf32> to vector<16x128xbf16>
    %c0_14 = arith.constant 0 : index
    %c0_15 = arith.constant 0 : index
    %37 = vector.load %arg10[%c0_14, %c0_15] : memref<16x128xf32, #tpu.memory_space<vmem>>, vector<16x128xf32>
    %c0_16 = arith.constant 0 : index
    %c0_17 = arith.constant 0 : index
    %38 = vector.load %arg5[%c0_16, %c0_17] : memref<128x128xbf16, #tpu.memory_space<vmem>>, vector<128x128xbf16>
    %cst_18 = arith.constant dense<0.000000e+00> : vector<16x128xf32>
    %39 = tpu.matmul %36, %38, %cst_18 {dimension_numbers = #tpu.dot_dimension_numbers<[1], [0], [0], [1], [0, 0, 1, 1], [], []>} : vector<16x128xbf16>, vector<128x128xbf16>, vector<16x128xf32> -> vector<16x128xf32>
    %40 = arith.addf %37, %39 : vector<16x128xf32>
    %c0_19 = arith.constant 0 : index
    %c0_20 = arith.constant 0 : index
    %41 = vector.load %arg10[%c0_19, %c0_20] : memref<16x128xf32, #tpu.memory_space<vmem>>, vector<16x128xf32>
    tpu.vector_store %arg10[%c0_19, %c0_20], %40 {strides = array<i32>} : memref<16x128xf32, #tpu.memory_space<vmem>>, vector<16x128xf32>,
    %c0_i32_21 = arith.constant 0 : i32
    %42 = arith.cmpi eq, %arg3, %c0_i32_21 : i32
    %43 = arith.extui %42 : i1 to i32
    %c0_i32_22 = arith.constant 0 : i32
    %44 = arith.cmpi ne, %43, %c0_i32_22 : i32
    scf.if %44 {
      %c0_23 = arith.constant 0 : index
      %c0_24 = arith.constant 0 : index
      %45 = vector.load %arg10[%c0_23, %c0_24] : memref<16x128xf32, #tpu.memory_space<vmem>>, vector<16x128xf32>
      %c0_25 = arith.constant 0 : index
      %c0_26 = arith.constant 0 : index
      %c0_27 = arith.constant 0 : index
      %46 = vector.load %arg6[%c0_25, %c0_26, %c0_27] : memref<1x1x128xbf16, #tpu.memory_space<vmem>>, vector<1x1x128xbf16>
      %47 = vector.shape_cast %46 : vector<1x1x128xbf16> to vector<1x128xbf16>
      %48 = arith.extf %47 : vector<1x128xbf16> to vector<1x128xf32>
      %49 = vector.broadcast %48 : vector<1x128xf32> to vector<16x128xf32>
      %50 = arith.addf %45, %49 : vector<16x128xf32>
      %c3_i32 = arith.constant 3 : i32
      %51 = arith.cmpi sge, %arg2, %c3_i32 : i32
      %52 = arith.extui %51 : i1 to i32
      %c0_i32_28 = arith.constant 0 : i32
      %53 = arith.cmpi ne, %52, %c0_i32_28 : i32
      scf.if %53 {
        %cst_31 = arith.constant 5.000000e-01 : f32
        %57 = vector.broadcast %cst_31 : f32 to vector<16x128xf32>
        %58 = arith.mulf %57, %50 : vector<16x128xf32>
        %cst_32 = arith.constant 4.471500e-02 : f32
        %59 = vector.broadcast %cst_32 : f32 to vector<16x128xf32>
        %60 = arith.mulf %59, %50 : vector<16x128xf32>
        %61 = arith.mulf %60, %50 : vector<16x128xf32>
        %62 = arith.mulf %61, %50 : vector<16x128xf32>
        %63 = arith.addf %50, %62 : vector<16x128xf32>
        %cst_33 = arith.constant 0.797884583 : f32
        %64 = vector.broadcast %cst_33 : f32 to vector<16x128xf32>
        %65 = arith.mulf %64, %63 : vector<16x128xf32>
        %66 = math.tanh %65 : vector<16x128xf32>
        %cst_34 = arith.constant 1.000000e+00 : f32
        %67 = vector.broadcast %cst_34 : f32 to vector<16x128xf32>
        %68 = arith.addf %67, %66 : vector<16x128xf32>
        %69 = arith.mulf %58, %68 : vector<16x128xf32>
        %70 = arith.truncf %69 : vector<16x128xf32> to vector<16x128xbf16>
        %c0_35 = arith.constant 0 : index
        %c0_36 = arith.constant 0 : index
        %c0_37 = arith.constant 0 : index
        %71 = vector.load %arg9[%c0_35, %c0_36, %c0_37] : memref<1x16x128xbf16, #tpu.memory_space<vmem>>, vector<1x16x128xbf16>
        %72 = vector.shape_cast %71 : vector<1x16x128xbf16> to vector<16x128xbf16>
        %73 = vector.shape_cast %70 : vector<16x128xbf16> to vector<1x16x128xbf16>
        tpu.vector_store %arg9[%c0_35, %c0_36, %c0_37], %73 {strides = array<i32>} : memref<1x16x128xbf16, #tpu.memory_space<vmem>>, vector<1x16x128xbf16>,
      } else {
      }
      %c3_i32_29 = arith.constant 3 : i32
      %54 = arith.cmpi slt, %arg2, %c3_i32_29 : i32
      %55 = arith.extui %54 : i1 to i32
      %c0_i32_30 = arith.constant 0 : i32
      %56 = arith.cmpi ne, %55, %c0_i32_30 : i32
      scf.if %56 {
        %57 = arith.truncf %50 : vector<16x128xf32> to vector<16x128xbf16>
        %c0_31 = arith.constant 0 : index
        %c0_32 = arith.constant 0 : index
        %c0_33 = arith.constant 0 : index
        %58 = vector.load %arg9[%c0_31, %c0_32, %c0_33] : memref<1x16x128xbf16, #tpu.memory_space<vmem>>, vector<1x16x128xbf16>
        %59 = vector.shape_cast %58 : vector<1x16x128xbf16> to vector<16x128xbf16>
        %60 = vector.shape_cast %57 : vector<16x128xbf16> to vector<1x16x128xbf16>
        tpu.vector_store %arg9[%c0_31, %c0_32, %c0_33], %60 {strides = array<i32>} : memref<1x16x128xbf16, #tpu.memory_space<vmem>>, vector<1x16x128xbf16>,
      } else {
      }
    } else {
    }
    return
  }
  func.func @transform_0(%arg0: i32, %arg1: i32, %arg2: i32, %arg3: i32) -> (i32, i32, i32) {
    %c0_i32 = arith.constant 0 : i32
    %0 = arith.addi %arg3, %c0_i32 : i32
    %c0_i32_0 = arith.constant 0 : i32
    return %arg0, %arg1, %0 : i32, i32, i32
  }
  func.func @transform_1(%arg0: i32, %arg1: i32, %arg2: i32, %arg3: i32) -> (i32, i32) {
    %c0_i32 = arith.constant 0 : i32
    return %arg3, %arg2 : i32, i32
  }
  func.func @transform_2(%arg0: i32, %arg1: i32, %arg2: i32, %arg3: i32) -> (i32, i32, i32) {
    %c0_i32 = arith.constant 0 : i32
    %c0_i32_0 = arith.constant 0 : i32
    %c0_i32_1 = arith.constant 0 : i32
    return %c0_i32, %c0_i32_0, %arg2 : i32, i32, i32
  }
  func.func @transform_3(%arg0: i32, %arg1: i32, %arg2: i32, %arg3: i32) -> (i32, i32, i32) {
    %c0_i32 = arith.constant 0 : i32
    %c0_i32_0 = arith.constant 0 : i32
    %c0_i32_1 = arith.constant 0 : i32
    return %arg0, %c0_i32, %c0_i32_0 : i32, i32, i32
  }
  func.func @transform_4(%arg0: i32, %arg1: i32, %arg2: i32, %arg3: i32) -> (i32, i32, i32) {
    %c0_i32 = arith.constant 0 : i32
    %c0_i32_0 = arith.constant 0 : i32
    %c0_i32_1 = arith.constant 0 : i32
    return %arg0, %c0_i32, %c0_i32_0 : i32, i32, i32
  }
  func.func @transform_5(%arg0: i32, %arg1: i32, %arg2: i32, %arg3: i32) -> (i32, i32, i32) {
    %c0_i32 = arith.constant 0 : i32
    return %arg0, %arg1, %arg2 : i32, i32, i32
  }
}

module attributes {stable_mosaic.version = 11 : i64} {
  func.func @_mha_kernel(%arg0: i32, %arg1: i32, %arg2: i32, %arg3: memref<1x16x128xbf16, #tpu.memory_space<vmem>>, %arg4: memref<1x16x128xbf16, #tpu.memory_space<vmem>>, %arg5: memref<1x16x128xbf16, #tpu.memory_space<vmem>>, %arg6: memref<16x32xf32, #tpu.memory_space<vmem>>, %arg7: memref<16x32xf32, #tpu.memory_space<vmem>>, %arg8: memref<1x16x128xbf16, #tpu.memory_space<vmem>>, %arg9: memref<4x16x1xf32, #tpu.memory_space<vmem>>, %arg10: memref<4x16x1xf32, #tpu.memory_space<vmem>>, %arg11: memref<4x16x32xf32, #tpu.memory_space<vmem>>) attributes {dimension_semantics = [#tpu.dimension_semantics<parallel>, #tpu.dimension_semantics<parallel>, #tpu.dimension_semantics<arbitrary>], iteration_bounds = array<i64: 2, 1, 1>, scalar_prefetch = 0 : i64, scratch_operands = 3 : i64, tpu.core_type = #tpu.core_type<tc>, window_params = [{transform_indices = @transform_0, window_bounds = array<i64: 1, 16, 128>}, {transform_indices = @transform_1, window_bounds = array<i64: 1, 16, 128>}, {transform_indices = @transform_2, window_bounds = array<i64: 1, 16, 128>}, {transform_indices = @transform_3, window_bounds = array<i64: 16, 32>}, {transform_indices = @transform_4, window_bounds = array<i64: 16, 32>}, {transform_indices = @transform_5, window_bounds = array<i64: 1, 16, 128>}]} {
    %c0_i32 = arith.constant 0 : i32
    %0 = arith.cmpi eq, %arg2, %c0_i32 : i32
    %1 = arith.extui %0 : i1 to i32
    %c0_i32_0 = arith.constant 0 : i32
    %2 = arith.cmpi ne, %1, %c0_i32_0 : i32
    scf.if %2 {
      %cst_127 = arith.constant -1.000000e+30 : f32
      %264 = vector.broadcast %cst_127 : f32 to vector<4x16x1xf32>
      %c0_128 = arith.constant 0 : index
      %c0_129 = arith.constant 0 : index
      %c0_130 = arith.constant 0 : index
      %265 = vector.load %arg9[%c0_128, %c0_129, %c0_130] : memref<4x16x1xf32, #tpu.memory_space<vmem>>, vector<4x16x1xf32>
      tpu.vector_store %arg9[%c0_128, %c0_129, %c0_130], %264 {strides = array<i32>} : memref<4x16x1xf32, #tpu.memory_space<vmem>>, vector<4x16x1xf32>,
      %cst_131 = arith.constant 0.000000e+00 : f32
      %266 = vector.broadcast %cst_131 : f32 to vector<4x16x1xf32>
      %c0_132 = arith.constant 0 : index
      %c0_133 = arith.constant 0 : index
      %c0_134 = arith.constant 0 : index
      %267 = vector.load %arg10[%c0_132, %c0_133, %c0_134] : memref<4x16x1xf32, #tpu.memory_space<vmem>>, vector<4x16x1xf32>
      tpu.vector_store %arg10[%c0_132, %c0_133, %c0_134], %266 {strides = array<i32>} : memref<4x16x1xf32, #tpu.memory_space<vmem>>, vector<4x16x1xf32>,
      %cst_135 = arith.constant 0.000000e+00 : f32
      %268 = vector.broadcast %cst_135 : f32 to vector<4x16x32xf32>
      %c0_136 = arith.constant 0 : index
      %c0_137 = arith.constant 0 : index
      %c0_138 = arith.constant 0 : index
      %269 = vector.load %arg11[%c0_136, %c0_137, %c0_138] : memref<4x16x32xf32, #tpu.memory_space<vmem>>, vector<4x16x32xf32>
      tpu.vector_store %arg11[%c0_136, %c0_137, %c0_138], %268 {strides = array<i32>} : memref<4x16x32xf32, #tpu.memory_space<vmem>>, vector<4x16x32xf32>,
    } else {
    }
    %c0 = arith.constant 0 : index
    %c0_1 = arith.constant 0 : index
    %c0_2 = arith.constant 0 : index
    %3 = vector.load %arg3[%c0, %c0_1, %c0_2] : memref<1x16x128xbf16, #tpu.memory_space<vmem>>, vector<1x16x128xbf16>
    %4 = vector.shape_cast %3 : vector<1x16x128xbf16> to vector<16x128xbf16>
    %5 = arith.extf %4 : vector<16x128xbf16> to vector<16x128xf32>
    %c0_3 = arith.constant 0 : index
    %c0_4 = arith.constant 0 : index
    %c0_5 = arith.constant 0 : index
    %6 = vector.load %arg4[%c0_3, %c0_4, %c0_5] : memref<1x16x128xbf16, #tpu.memory_space<vmem>>, vector<1x16x128xbf16>
    %7 = vector.shape_cast %6 : vector<1x16x128xbf16> to vector<16x128xbf16>
    %8 = arith.extf %7 : vector<16x128xbf16> to vector<16x128xf32>
    %c0_6 = arith.constant 0 : index
    %c0_7 = arith.constant 0 : index
    %c0_8 = arith.constant 0 : index
    %9 = vector.load %arg5[%c0_6, %c0_7, %c0_8] : memref<1x16x128xbf16, #tpu.memory_space<vmem>>, vector<1x16x128xbf16>
    %10 = vector.shape_cast %9 : vector<1x16x128xbf16> to vector<16x128xbf16>
    %c0_9 = arith.constant 0 : index
    %c0_10 = arith.constant 0 : index
    %11 = vector.load %arg6[%c0_9, %c0_10] : memref<16x32xf32, #tpu.memory_space<vmem>>, vector<16x32xf32>
    %c0_11 = arith.constant 0 : index
    %c0_12 = arith.constant 0 : index
    %12 = vector.load %arg7[%c0_11, %c0_12] : memref<16x32xf32, #tpu.memory_space<vmem>>, vector<16x32xf32>
    %13 = vector.extract_strided_slice %5 {offsets = [0, 0], sizes = [16, 32], strides = [1, 1]} : vector<16x128xf32> to vector<16x32xf32>
    %14 = vector.extract_strided_slice %8 {offsets = [0, 0], sizes = [16, 32], strides = [1, 1]} : vector<16x128xf32> to vector<16x32xf32>
    %15 = arith.mulf %13, %13 : vector<16x32xf32>
    %cst = arith.constant dense<0.000000e+00> : vector<16xf32>
    %16 = vector.multi_reduction <add>, %15, %cst [1] : vector<16x32xf32> to vector<16xf32>
    %17 = vector.shape_cast %16 : vector<16xf32> to vector<16x1xf32>
    %cst_13 = arith.constant 3.200000e+01 : f32
    %18 = vector.broadcast %cst_13 : f32 to vector<16x1xf32>
    %19 = arith.divf %17, %18 : vector<16x1xf32>
    %cst_14 = arith.constant 9.99999997E-7 : f32
    %20 = vector.broadcast %cst_14 : f32 to vector<16x1xf32>
    %21 = arith.addf %19, %20 : vector<16x1xf32>
    %22 = math.rsqrt %21 : vector<16x1xf32>
    %23 = vector.broadcast %22 : vector<16x1xf32> to vector<16x32xf32>
    %24 = arith.mulf %13, %23 : vector<16x32xf32>
    %25 = arith.mulf %24, %11 : vector<16x32xf32>
    %cst_15 = arith.constant 0.176776692 : f32
    %26 = vector.broadcast %cst_15 : f32 to vector<16x32xf32>
    %27 = arith.mulf %25, %26 : vector<16x32xf32>
    %28 = arith.truncf %27 : vector<16x32xf32> to vector<16x32xbf16>
    %29 = arith.mulf %14, %14 : vector<16x32xf32>
    %cst_16 = arith.constant dense<0.000000e+00> : vector<16xf32>
    %30 = vector.multi_reduction <add>, %29, %cst_16 [1] : vector<16x32xf32> to vector<16xf32>
    %31 = vector.shape_cast %30 : vector<16xf32> to vector<16x1xf32>
    %cst_17 = arith.constant 3.200000e+01 : f32
    %32 = vector.broadcast %cst_17 : f32 to vector<16x1xf32>
    %33 = arith.divf %31, %32 : vector<16x1xf32>
    %cst_18 = arith.constant 9.99999997E-7 : f32
    %34 = vector.broadcast %cst_18 : f32 to vector<16x1xf32>
    %35 = arith.addf %33, %34 : vector<16x1xf32>
    %36 = math.rsqrt %35 : vector<16x1xf32>
    %37 = vector.broadcast %36 : vector<16x1xf32> to vector<16x32xf32>
    %38 = arith.mulf %14, %37 : vector<16x32xf32>
    %39 = arith.mulf %38, %12 : vector<16x32xf32>
    %40 = arith.truncf %39 : vector<16x32xf32> to vector<16x32xbf16>
    %cst_19 = arith.constant dense<0.000000e+00> : vector<16x16xf32>
    %41 = tpu.matmul %28, %40, %cst_19 {dimension_numbers = #tpu.dot_dimension_numbers<[1], [1], [0], [0], [0, 0, 1, 0], [], []>} : vector<16x32xbf16>, vector<16x32xbf16>, vector<16x16xf32> -> vector<16x16xf32>
    %c0_20 = arith.constant 0 : index
    %c0_21 = arith.constant 0 : index
    %c0_22 = arith.constant 0 : index
    %42 = vector.load %arg9[%c0_20, %c0_21, %c0_22] : memref<4x16x1xf32, #tpu.memory_space<vmem>>, vector<1x16x1xf32>
    %43 = vector.shape_cast %42 : vector<1x16x1xf32> to vector<16x1xf32>
    %cst_23 = arith.constant dense<0xFF800000> : vector<16xf32>
    %44 = vector.multi_reduction <maximumf>, %41, %cst_23 [1] : vector<16x16xf32> to vector<16xf32>
    %45 = vector.shape_cast %44 : vector<16xf32> to vector<16x1xf32>
    %46 = arith.maximumf %43, %45 : vector<16x1xf32>
    %47 = arith.subf %43, %46 : vector<16x1xf32>
    %48 = math.exp %47 : vector<16x1xf32>
    %49 = vector.broadcast %46 : vector<16x1xf32> to vector<16x16xf32>
    %50 = arith.subf %41, %49 : vector<16x16xf32>
    %51 = math.exp %50 : vector<16x16xf32>
    %c0_24 = arith.constant 0 : index
    %c0_25 = arith.constant 0 : index
    %c0_26 = arith.constant 0 : index
    %52 = vector.load %arg10[%c0_24, %c0_25, %c0_26] : memref<4x16x1xf32, #tpu.memory_space<vmem>>, vector<1x16x1xf32>
    %53 = vector.shape_cast %52 : vector<1x16x1xf32> to vector<16x1xf32>
    %54 = arith.mulf %48, %53 : vector<16x1xf32>
    %cst_27 = arith.constant dense<0.000000e+00> : vector<16xf32>
    %55 = vector.multi_reduction <add>, %51, %cst_27 [1] : vector<16x16xf32> to vector<16xf32>
    %56 = vector.shape_cast %55 : vector<16xf32> to vector<16x1xf32>
    %57 = arith.addf %54, %56 : vector<16x1xf32>
    %c0_28 = arith.constant 0 : index
    %c0_29 = arith.constant 0 : index
    %c0_30 = arith.constant 0 : index
    %58 = vector.load %arg10[%c0_28, %c0_29, %c0_30] : memref<4x16x1xf32, #tpu.memory_space<vmem>>, vector<1x16x1xf32>
    %59 = vector.shape_cast %58 : vector<1x16x1xf32> to vector<16x1xf32>
    %60 = vector.shape_cast %57 : vector<16x1xf32> to vector<1x16x1xf32>
    tpu.vector_store %arg10[%c0_28, %c0_29, %c0_30], %60 {strides = array<i32>} : memref<4x16x1xf32, #tpu.memory_space<vmem>>, vector<1x16x1xf32>,
    %c0_31 = arith.constant 0 : index
    %c0_32 = arith.constant 0 : index
    %c0_33 = arith.constant 0 : index
    %61 = vector.load %arg11[%c0_31, %c0_32, %c0_33] : memref<4x16x32xf32, #tpu.memory_space<vmem>>, vector<1x16x32xf32>
    %62 = vector.shape_cast %61 : vector<1x16x32xf32> to vector<16x32xf32>
    %63 = vector.broadcast %48 : vector<16x1xf32> to vector<16x32xf32>
    %64 = arith.mulf %63, %62 : vector<16x32xf32>
    %65 = arith.truncf %51 : vector<16x16xf32> to vector<16x16xbf16>
    %66 = vector.extract_strided_slice %10 {offsets = [0, 0], sizes = [16, 32], strides = [1, 1]} : vector<16x128xbf16> to vector<16x32xbf16>
    %cst_34 = arith.constant dense<0.000000e+00> : vector<16x32xf32>
    %67 = tpu.matmul %65, %66, %cst_34 {dimension_numbers = #tpu.dot_dimension_numbers<[1], [0], [0], [1], [0, 0, 1, 1], [], []>} : vector<16x16xbf16>, vector<16x32xbf16>, vector<16x32xf32> -> vector<16x32xf32>
    %68 = arith.addf %64, %67 : vector<16x32xf32>
    %c0_35 = arith.constant 0 : index
    %c0_36 = arith.constant 0 : index
    %c0_37 = arith.constant 0 : index
    %69 = vector.load %arg11[%c0_35, %c0_36, %c0_37] : memref<4x16x32xf32, #tpu.memory_space<vmem>>, vector<1x16x32xf32>
    %70 = vector.shape_cast %69 : vector<1x16x32xf32> to vector<16x32xf32>
    %71 = vector.shape_cast %68 : vector<16x32xf32> to vector<1x16x32xf32>
    tpu.vector_store %arg11[%c0_35, %c0_36, %c0_37], %71 {strides = array<i32>} : memref<4x16x32xf32, #tpu.memory_space<vmem>>, vector<1x16x32xf32>,
    %c0_38 = arith.constant 0 : index
    %c0_39 = arith.constant 0 : index
    %c0_40 = arith.constant 0 : index
    %72 = vector.load %arg9[%c0_38, %c0_39, %c0_40] : memref<4x16x1xf32, #tpu.memory_space<vmem>>, vector<1x16x1xf32>
    %73 = vector.shape_cast %72 : vector<1x16x1xf32> to vector<16x1xf32>
    %74 = vector.shape_cast %46 : vector<16x1xf32> to vector<1x16x1xf32>
    tpu.vector_store %arg9[%c0_38, %c0_39, %c0_40], %74 {strides = array<i32>} : memref<4x16x1xf32, #tpu.memory_space<vmem>>, vector<1x16x1xf32>,
    %75 = vector.extract_strided_slice %5 {offsets = [0, 32], sizes = [16, 32], strides = [1, 1]} : vector<16x128xf32> to vector<16x32xf32>
    %76 = vector.extract_strided_slice %8 {offsets = [0, 32], sizes = [16, 32], strides = [1, 1]} : vector<16x128xf32> to vector<16x32xf32>
    %77 = arith.mulf %75, %75 : vector<16x32xf32>
    %cst_41 = arith.constant dense<0.000000e+00> : vector<16xf32>
    %78 = vector.multi_reduction <add>, %77, %cst_41 [1] : vector<16x32xf32> to vector<16xf32>
    %79 = vector.shape_cast %78 : vector<16xf32> to vector<16x1xf32>
    %cst_42 = arith.constant 3.200000e+01 : f32
    %80 = vector.broadcast %cst_42 : f32 to vector<16x1xf32>
    %81 = arith.divf %79, %80 : vector<16x1xf32>
    %cst_43 = arith.constant 9.99999997E-7 : f32
    %82 = vector.broadcast %cst_43 : f32 to vector<16x1xf32>
    %83 = arith.addf %81, %82 : vector<16x1xf32>
    %84 = math.rsqrt %83 : vector<16x1xf32>
    %85 = vector.broadcast %84 : vector<16x1xf32> to vector<16x32xf32>
    %86 = arith.mulf %75, %85 : vector<16x32xf32>
    %87 = arith.mulf %86, %11 : vector<16x32xf32>
    %cst_44 = arith.constant 0.176776692 : f32
    %88 = vector.broadcast %cst_44 : f32 to vector<16x32xf32>
    %89 = arith.mulf %87, %88 : vector<16x32xf32>
    %90 = arith.truncf %89 : vector<16x32xf32> to vector<16x32xbf16>
    %91 = arith.mulf %76, %76 : vector<16x32xf32>
    %cst_45 = arith.constant dense<0.000000e+00> : vector<16xf32>
    %92 = vector.multi_reduction <add>, %91, %cst_45 [1] : vector<16x32xf32> to vector<16xf32>
    %93 = vector.shape_cast %92 : vector<16xf32> to vector<16x1xf32>
    %cst_46 = arith.constant 3.200000e+01 : f32
    %94 = vector.broadcast %cst_46 : f32 to vector<16x1xf32>
    %95 = arith.divf %93, %94 : vector<16x1xf32>
    %cst_47 = arith.constant 9.99999997E-7 : f32
    %96 = vector.broadcast %cst_47 : f32 to vector<16x1xf32>
    %97 = arith.addf %95, %96 : vector<16x1xf32>
    %98 = math.rsqrt %97 : vector<16x1xf32>
    %99 = vector.broadcast %98 : vector<16x1xf32> to vector<16x32xf32>
    %100 = arith.mulf %76, %99 : vector<16x32xf32>
    %101 = arith.mulf %100, %12 : vector<16x32xf32>
    %102 = arith.truncf %101 : vector<16x32xf32> to vector<16x32xbf16>
    %cst_48 = arith.constant dense<0.000000e+00> : vector<16x16xf32>
    %103 = tpu.matmul %90, %102, %cst_48 {dimension_numbers = #tpu.dot_dimension_numbers<[1], [1], [0], [0], [0, 0, 1, 0], [], []>} : vector<16x32xbf16>, vector<16x32xbf16>, vector<16x16xf32> -> vector<16x16xf32>
    %c1 = arith.constant 1 : index
    %c0_49 = arith.constant 0 : index
    %c0_50 = arith.constant 0 : index
    %104 = vector.load %arg9[%c1, %c0_49, %c0_50] : memref<4x16x1xf32, #tpu.memory_space<vmem>>, vector<1x16x1xf32>
    %105 = vector.shape_cast %104 : vector<1x16x1xf32> to vector<16x1xf32>
    %cst_51 = arith.constant dense<0xFF800000> : vector<16xf32>
    %106 = vector.multi_reduction <maximumf>, %103, %cst_51 [1] : vector<16x16xf32> to vector<16xf32>
    %107 = vector.shape_cast %106 : vector<16xf32> to vector<16x1xf32>
    %108 = arith.maximumf %105, %107 : vector<16x1xf32>
    %109 = arith.subf %105, %108 : vector<16x1xf32>
    %110 = math.exp %109 : vector<16x1xf32>
    %111 = vector.broadcast %108 : vector<16x1xf32> to vector<16x16xf32>
    %112 = arith.subf %103, %111 : vector<16x16xf32>
    %113 = math.exp %112 : vector<16x16xf32>
    %c1_52 = arith.constant 1 : index
    %c0_53 = arith.constant 0 : index
    %c0_54 = arith.constant 0 : index
    %114 = vector.load %arg10[%c1_52, %c0_53, %c0_54] : memref<4x16x1xf32, #tpu.memory_space<vmem>>, vector<1x16x1xf32>
    %115 = vector.shape_cast %114 : vector<1x16x1xf32> to vector<16x1xf32>
    %116 = arith.mulf %110, %115 : vector<16x1xf32>
    %cst_55 = arith.constant dense<0.000000e+00> : vector<16xf32>
    %117 = vector.multi_reduction <add>, %113, %cst_55 [1] : vector<16x16xf32> to vector<16xf32>
    %118 = vector.shape_cast %117 : vector<16xf32> to vector<16x1xf32>
    %119 = arith.addf %116, %118 : vector<16x1xf32>
    %c1_56 = arith.constant 1 : index
    %c0_57 = arith.constant 0 : index
    %c0_58 = arith.constant 0 : index
    %120 = vector.load %arg10[%c1_56, %c0_57, %c0_58] : memref<4x16x1xf32, #tpu.memory_space<vmem>>, vector<1x16x1xf32>
    %121 = vector.shape_cast %120 : vector<1x16x1xf32> to vector<16x1xf32>
    %122 = vector.shape_cast %119 : vector<16x1xf32> to vector<1x16x1xf32>
    tpu.vector_store %arg10[%c1_56, %c0_57, %c0_58], %122 {strides = array<i32>} : memref<4x16x1xf32, #tpu.memory_space<vmem>>, vector<1x16x1xf32>,
    %c1_59 = arith.constant 1 : index
    %c0_60 = arith.constant 0 : index
    %c0_61 = arith.constant 0 : index
    %123 = vector.load %arg11[%c1_59, %c0_60, %c0_61] : memref<4x16x32xf32, #tpu.memory_space<vmem>>, vector<1x16x32xf32>
    %124 = vector.shape_cast %123 : vector<1x16x32xf32> to vector<16x32xf32>
    %125 = vector.broadcast %110 : vector<16x1xf32> to vector<16x32xf32>
    %126 = arith.mulf %125, %124 : vector<16x32xf32>
    %127 = arith.truncf %113 : vector<16x16xf32> to vector<16x16xbf16>
    %128 = vector.extract_strided_slice %10 {offsets = [0, 32], sizes = [16, 32], strides = [1, 1]} : vector<16x128xbf16> to vector<16x32xbf16>
    %cst_62 = arith.constant dense<0.000000e+00> : vector<16x32xf32>
    %129 = tpu.matmul %127, %128, %cst_62 {dimension_numbers = #tpu.dot_dimension_numbers<[1], [0], [0], [1], [0, 0, 1, 1], [], []>} : vector<16x16xbf16>, vector<16x32xbf16>, vector<16x32xf32> -> vector<16x32xf32>
    %130 = arith.addf %126, %129 : vector<16x32xf32>
    %c1_63 = arith.constant 1 : index
    %c0_64 = arith.constant 0 : index
    %c0_65 = arith.constant 0 : index
    %131 = vector.load %arg11[%c1_63, %c0_64, %c0_65] : memref<4x16x32xf32, #tpu.memory_space<vmem>>, vector<1x16x32xf32>
    %132 = vector.shape_cast %131 : vector<1x16x32xf32> to vector<16x32xf32>
    %133 = vector.shape_cast %130 : vector<16x32xf32> to vector<1x16x32xf32>
    tpu.vector_store %arg11[%c1_63, %c0_64, %c0_65], %133 {strides = array<i32>} : memref<4x16x32xf32, #tpu.memory_space<vmem>>, vector<1x16x32xf32>,
    %c1_66 = arith.constant 1 : index
    %c0_67 = arith.constant 0 : index
    %c0_68 = arith.constant 0 : index
    %134 = vector.load %arg9[%c1_66, %c0_67, %c0_68] : memref<4x16x1xf32, #tpu.memory_space<vmem>>, vector<1x16x1xf32>
    %135 = vector.shape_cast %134 : vector<1x16x1xf32> to vector<16x1xf32>
    %136 = vector.shape_cast %108 : vector<16x1xf32> to vector<1x16x1xf32>
    tpu.vector_store %arg9[%c1_66, %c0_67, %c0_68], %136 {strides = array<i32>} : memref<4x16x1xf32, #tpu.memory_space<vmem>>, vector<1x16x1xf32>,
    %137 = vector.extract_strided_slice %5 {offsets = [0, 64], sizes = [16, 32], strides = [1, 1]} : vector<16x128xf32> to vector<16x32xf32>
    %138 = vector.extract_strided_slice %8 {offsets = [0, 64], sizes = [16, 32], strides = [1, 1]} : vector<16x128xf32> to vector<16x32xf32>
    %139 = arith.mulf %137, %137 : vector<16x32xf32>
    %cst_69 = arith.constant dense<0.000000e+00> : vector<16xf32>
    %140 = vector.multi_reduction <add>, %139, %cst_69 [1] : vector<16x32xf32> to vector<16xf32>
    %141 = vector.shape_cast %140 : vector<16xf32> to vector<16x1xf32>
    %cst_70 = arith.constant 3.200000e+01 : f32
    %142 = vector.broadcast %cst_70 : f32 to vector<16x1xf32>
    %143 = arith.divf %141, %142 : vector<16x1xf32>
    %cst_71 = arith.constant 9.99999997E-7 : f32
    %144 = vector.broadcast %cst_71 : f32 to vector<16x1xf32>
    %145 = arith.addf %143, %144 : vector<16x1xf32>
    %146 = math.rsqrt %145 : vector<16x1xf32>
    %147 = vector.broadcast %146 : vector<16x1xf32> to vector<16x32xf32>
    %148 = arith.mulf %137, %147 : vector<16x32xf32>
    %149 = arith.mulf %148, %11 : vector<16x32xf32>
    %cst_72 = arith.constant 0.176776692 : f32
    %150 = vector.broadcast %cst_72 : f32 to vector<16x32xf32>
    %151 = arith.mulf %149, %150 : vector<16x32xf32>
    %152 = arith.truncf %151 : vector<16x32xf32> to vector<16x32xbf16>
    %153 = arith.mulf %138, %138 : vector<16x32xf32>
    %cst_73 = arith.constant dense<0.000000e+00> : vector<16xf32>
    %154 = vector.multi_reduction <add>, %153, %cst_73 [1] : vector<16x32xf32> to vector<16xf32>
    %155 = vector.shape_cast %154 : vector<16xf32> to vector<16x1xf32>
    %cst_74 = arith.constant 3.200000e+01 : f32
    %156 = vector.broadcast %cst_74 : f32 to vector<16x1xf32>
    %157 = arith.divf %155, %156 : vector<16x1xf32>
    %cst_75 = arith.constant 9.99999997E-7 : f32
    %158 = vector.broadcast %cst_75 : f32 to vector<16x1xf32>
    %159 = arith.addf %157, %158 : vector<16x1xf32>
    %160 = math.rsqrt %159 : vector<16x1xf32>
    %161 = vector.broadcast %160 : vector<16x1xf32> to vector<16x32xf32>
    %162 = arith.mulf %138, %161 : vector<16x32xf32>
    %163 = arith.mulf %162, %12 : vector<16x32xf32>
    %164 = arith.truncf %163 : vector<16x32xf32> to vector<16x32xbf16>
    %cst_76 = arith.constant dense<0.000000e+00> : vector<16x16xf32>
    %165 = tpu.matmul %152, %164, %cst_76 {dimension_numbers = #tpu.dot_dimension_numbers<[1], [1], [0], [0], [0, 0, 1, 0], [], []>} : vector<16x32xbf16>, vector<16x32xbf16>, vector<16x16xf32> -> vector<16x16xf32>
    %c2 = arith.constant 2 : index
    %c0_77 = arith.constant 0 : index
    %c0_78 = arith.constant 0 : index
    %166 = vector.load %arg9[%c2, %c0_77, %c0_78] : memref<4x16x1xf32, #tpu.memory_space<vmem>>, vector<1x16x1xf32>
    %167 = vector.shape_cast %166 : vector<1x16x1xf32> to vector<16x1xf32>
    %cst_79 = arith.constant dense<0xFF800000> : vector<16xf32>
    %168 = vector.multi_reduction <maximumf>, %165, %cst_79 [1] : vector<16x16xf32> to vector<16xf32>
    %169 = vector.shape_cast %168 : vector<16xf32> to vector<16x1xf32>
    %170 = arith.maximumf %167, %169 : vector<16x1xf32>
    %171 = arith.subf %167, %170 : vector<16x1xf32>
    %172 = math.exp %171 : vector<16x1xf32>
    %173 = vector.broadcast %170 : vector<16x1xf32> to vector<16x16xf32>
    %174 = arith.subf %165, %173 : vector<16x16xf32>
    %175 = math.exp %174 : vector<16x16xf32>
    %c2_80 = arith.constant 2 : index
    %c0_81 = arith.constant 0 : index
    %c0_82 = arith.constant 0 : index
    %176 = vector.load %arg10[%c2_80, %c0_81, %c0_82] : memref<4x16x1xf32, #tpu.memory_space<vmem>>, vector<1x16x1xf32>
    %177 = vector.shape_cast %176 : vector<1x16x1xf32> to vector<16x1xf32>
    %178 = arith.mulf %172, %177 : vector<16x1xf32>
    %cst_83 = arith.constant dense<0.000000e+00> : vector<16xf32>
    %179 = vector.multi_reduction <add>, %175, %cst_83 [1] : vector<16x16xf32> to vector<16xf32>
    %180 = vector.shape_cast %179 : vector<16xf32> to vector<16x1xf32>
    %181 = arith.addf %178, %180 : vector<16x1xf32>
    %c2_84 = arith.constant 2 : index
    %c0_85 = arith.constant 0 : index
    %c0_86 = arith.constant 0 : index
    %182 = vector.load %arg10[%c2_84, %c0_85, %c0_86] : memref<4x16x1xf32, #tpu.memory_space<vmem>>, vector<1x16x1xf32>
    %183 = vector.shape_cast %182 : vector<1x16x1xf32> to vector<16x1xf32>
    %184 = vector.shape_cast %181 : vector<16x1xf32> to vector<1x16x1xf32>
    tpu.vector_store %arg10[%c2_84, %c0_85, %c0_86], %184 {strides = array<i32>} : memref<4x16x1xf32, #tpu.memory_space<vmem>>, vector<1x16x1xf32>,
    %c2_87 = arith.constant 2 : index
    %c0_88 = arith.constant 0 : index
    %c0_89 = arith.constant 0 : index
    %185 = vector.load %arg11[%c2_87, %c0_88, %c0_89] : memref<4x16x32xf32, #tpu.memory_space<vmem>>, vector<1x16x32xf32>
    %186 = vector.shape_cast %185 : vector<1x16x32xf32> to vector<16x32xf32>
    %187 = vector.broadcast %172 : vector<16x1xf32> to vector<16x32xf32>
    %188 = arith.mulf %187, %186 : vector<16x32xf32>
    %189 = arith.truncf %175 : vector<16x16xf32> to vector<16x16xbf16>
    %190 = vector.extract_strided_slice %10 {offsets = [0, 64], sizes = [16, 32], strides = [1, 1]} : vector<16x128xbf16> to vector<16x32xbf16>
    %cst_90 = arith.constant dense<0.000000e+00> : vector<16x32xf32>
    %191 = tpu.matmul %189, %190, %cst_90 {dimension_numbers = #tpu.dot_dimension_numbers<[1], [0], [0], [1], [0, 0, 1, 1], [], []>} : vector<16x16xbf16>, vector<16x32xbf16>, vector<16x32xf32> -> vector<16x32xf32>
    %192 = arith.addf %188, %191 : vector<16x32xf32>
    %c2_91 = arith.constant 2 : index
    %c0_92 = arith.constant 0 : index
    %c0_93 = arith.constant 0 : index
    %193 = vector.load %arg11[%c2_91, %c0_92, %c0_93] : memref<4x16x32xf32, #tpu.memory_space<vmem>>, vector<1x16x32xf32>
    %194 = vector.shape_cast %193 : vector<1x16x32xf32> to vector<16x32xf32>
    %195 = vector.shape_cast %192 : vector<16x32xf32> to vector<1x16x32xf32>
    tpu.vector_store %arg11[%c2_91, %c0_92, %c0_93], %195 {strides = array<i32>} : memref<4x16x32xf32, #tpu.memory_space<vmem>>, vector<1x16x32xf32>,
    %c2_94 = arith.constant 2 : index
    %c0_95 = arith.constant 0 : index
    %c0_96 = arith.constant 0 : index
    %196 = vector.load %arg9[%c2_94, %c0_95, %c0_96] : memref<4x16x1xf32, #tpu.memory_space<vmem>>, vector<1x16x1xf32>
    %197 = vector.shape_cast %196 : vector<1x16x1xf32> to vector<16x1xf32>
    %198 = vector.shape_cast %170 : vector<16x1xf32> to vector<1x16x1xf32>
    tpu.vector_store %arg9[%c2_94, %c0_95, %c0_96], %198 {strides = array<i32>} : memref<4x16x1xf32, #tpu.memory_space<vmem>>, vector<1x16x1xf32>,
    %199 = vector.extract_strided_slice %5 {offsets = [0, 96], sizes = [16, 32], strides = [1, 1]} : vector<16x128xf32> to vector<16x32xf32>
    %200 = vector.extract_strided_slice %8 {offsets = [0, 96], sizes = [16, 32], strides = [1, 1]} : vector<16x128xf32> to vector<16x32xf32>
    %201 = arith.mulf %199, %199 : vector<16x32xf32>
    %cst_97 = arith.constant dense<0.000000e+00> : vector<16xf32>
    %202 = vector.multi_reduction <add>, %201, %cst_97 [1] : vector<16x32xf32> to vector<16xf32>
    %203 = vector.shape_cast %202 : vector<16xf32> to vector<16x1xf32>
    %cst_98 = arith.constant 3.200000e+01 : f32
    %204 = vector.broadcast %cst_98 : f32 to vector<16x1xf32>
    %205 = arith.divf %203, %204 : vector<16x1xf32>
    %cst_99 = arith.constant 9.99999997E-7 : f32
    %206 = vector.broadcast %cst_99 : f32 to vector<16x1xf32>
    %207 = arith.addf %205, %206 : vector<16x1xf32>
    %208 = math.rsqrt %207 : vector<16x1xf32>
    %209 = vector.broadcast %208 : vector<16x1xf32> to vector<16x32xf32>
    %210 = arith.mulf %199, %209 : vector<16x32xf32>
    %211 = arith.mulf %210, %11 : vector<16x32xf32>
    %cst_100 = arith.constant 0.176776692 : f32
    %212 = vector.broadcast %cst_100 : f32 to vector<16x32xf32>
    %213 = arith.mulf %211, %212 : vector<16x32xf32>
    %214 = arith.truncf %213 : vector<16x32xf32> to vector<16x32xbf16>
    %215 = arith.mulf %200, %200 : vector<16x32xf32>
    %cst_101 = arith.constant dense<0.000000e+00> : vector<16xf32>
    %216 = vector.multi_reduction <add>, %215, %cst_101 [1] : vector<16x32xf32> to vector<16xf32>
    %217 = vector.shape_cast %216 : vector<16xf32> to vector<16x1xf32>
    %cst_102 = arith.constant 3.200000e+01 : f32
    %218 = vector.broadcast %cst_102 : f32 to vector<16x1xf32>
    %219 = arith.divf %217, %218 : vector<16x1xf32>
    %cst_103 = arith.constant 9.99999997E-7 : f32
    %220 = vector.broadcast %cst_103 : f32 to vector<16x1xf32>
    %221 = arith.addf %219, %220 : vector<16x1xf32>
    %222 = math.rsqrt %221 : vector<16x1xf32>
    %223 = vector.broadcast %222 : vector<16x1xf32> to vector<16x32xf32>
    %224 = arith.mulf %200, %223 : vector<16x32xf32>
    %225 = arith.mulf %224, %12 : vector<16x32xf32>
    %226 = arith.truncf %225 : vector<16x32xf32> to vector<16x32xbf16>
    %cst_104 = arith.constant dense<0.000000e+00> : vector<16x16xf32>
    %227 = tpu.matmul %214, %226, %cst_104 {dimension_numbers = #tpu.dot_dimension_numbers<[1], [1], [0], [0], [0, 0, 1, 0], [], []>} : vector<16x32xbf16>, vector<16x32xbf16>, vector<16x16xf32> -> vector<16x16xf32>
    %c3 = arith.constant 3 : index
    %c0_105 = arith.constant 0 : index
    %c0_106 = arith.constant 0 : index
    %228 = vector.load %arg9[%c3, %c0_105, %c0_106] : memref<4x16x1xf32, #tpu.memory_space<vmem>>, vector<1x16x1xf32>
    %229 = vector.shape_cast %228 : vector<1x16x1xf32> to vector<16x1xf32>
    %cst_107 = arith.constant dense<0xFF800000> : vector<16xf32>
    %230 = vector.multi_reduction <maximumf>, %227, %cst_107 [1] : vector<16x16xf32> to vector<16xf32>
    %231 = vector.shape_cast %230 : vector<16xf32> to vector<16x1xf32>
    %232 = arith.maximumf %229, %231 : vector<16x1xf32>
    %233 = arith.subf %229, %232 : vector<16x1xf32>
    %234 = math.exp %233 : vector<16x1xf32>
    %235 = vector.broadcast %232 : vector<16x1xf32> to vector<16x16xf32>
    %236 = arith.subf %227, %235 : vector<16x16xf32>
    %237 = math.exp %236 : vector<16x16xf32>
    %c3_108 = arith.constant 3 : index
    %c0_109 = arith.constant 0 : index
    %c0_110 = arith.constant 0 : index
    %238 = vector.load %arg10[%c3_108, %c0_109, %c0_110] : memref<4x16x1xf32, #tpu.memory_space<vmem>>, vector<1x16x1xf32>
    %239 = vector.shape_cast %238 : vector<1x16x1xf32> to vector<16x1xf32>
    %240 = arith.mulf %234, %239 : vector<16x1xf32>
    %cst_111 = arith.constant dense<0.000000e+00> : vector<16xf32>
    %241 = vector.multi_reduction <add>, %237, %cst_111 [1] : vector<16x16xf32> to vector<16xf32>
    %242 = vector.shape_cast %241 : vector<16xf32> to vector<16x1xf32>
    %243 = arith.addf %240, %242 : vector<16x1xf32>
    %c3_112 = arith.constant 3 : index
    %c0_113 = arith.constant 0 : index
    %c0_114 = arith.constant 0 : index
    %244 = vector.load %arg10[%c3_112, %c0_113, %c0_114] : memref<4x16x1xf32, #tpu.memory_space<vmem>>, vector<1x16x1xf32>
    %245 = vector.shape_cast %244 : vector<1x16x1xf32> to vector<16x1xf32>
    %246 = vector.shape_cast %243 : vector<16x1xf32> to vector<1x16x1xf32>
    tpu.vector_store %arg10[%c3_112, %c0_113, %c0_114], %246 {strides = array<i32>} : memref<4x16x1xf32, #tpu.memory_space<vmem>>, vector<1x16x1xf32>,
    %c3_115 = arith.constant 3 : index
    %c0_116 = arith.constant 0 : index
    %c0_117 = arith.constant 0 : index
    %247 = vector.load %arg11[%c3_115, %c0_116, %c0_117] : memref<4x16x32xf32, #tpu.memory_space<vmem>>, vector<1x16x32xf32>
    %248 = vector.shape_cast %247 : vector<1x16x32xf32> to vector<16x32xf32>
    %249 = vector.broadcast %234 : vector<16x1xf32> to vector<16x32xf32>
    %250 = arith.mulf %249, %248 : vector<16x32xf32>
    %251 = arith.truncf %237 : vector<16x16xf32> to vector<16x16xbf16>
    %252 = vector.extract_strided_slice %10 {offsets = [0, 96], sizes = [16, 32], strides = [1, 1]} : vector<16x128xbf16> to vector<16x32xbf16>
    %cst_118 = arith.constant dense<0.000000e+00> : vector<16x32xf32>
    %253 = tpu.matmul %251, %252, %cst_118 {dimension_numbers = #tpu.dot_dimension_numbers<[1], [0], [0], [1], [0, 0, 1, 1], [], []>} : vector<16x16xbf16>, vector<16x32xbf16>, vector<16x32xf32> -> vector<16x32xf32>
    %254 = arith.addf %250, %253 : vector<16x32xf32>
    %c3_119 = arith.constant 3 : index
    %c0_120 = arith.constant 0 : index
    %c0_121 = arith.constant 0 : index
    %255 = vector.load %arg11[%c3_119, %c0_120, %c0_121] : memref<4x16x32xf32, #tpu.memory_space<vmem>>, vector<1x16x32xf32>
    %256 = vector.shape_cast %255 : vector<1x16x32xf32> to vector<16x32xf32>
    %257 = vector.shape_cast %254 : vector<16x32xf32> to vector<1x16x32xf32>
    tpu.vector_store %arg11[%c3_119, %c0_120, %c0_121], %257 {strides = array<i32>} : memref<4x16x32xf32, #tpu.memory_space<vmem>>, vector<1x16x32xf32>,
    %c3_122 = arith.constant 3 : index
    %c0_123 = arith.constant 0 : index
    %c0_124 = arith.constant 0 : index
    %258 = vector.load %arg9[%c3_122, %c0_123, %c0_124] : memref<4x16x1xf32, #tpu.memory_space<vmem>>, vector<1x16x1xf32>
    %259 = vector.shape_cast %258 : vector<1x16x1xf32> to vector<16x1xf32>
    %260 = vector.shape_cast %232 : vector<16x1xf32> to vector<1x16x1xf32>
    tpu.vector_store %arg9[%c3_122, %c0_123, %c0_124], %260 {strides = array<i32>} : memref<4x16x1xf32, #tpu.memory_space<vmem>>, vector<1x16x1xf32>,
    %c0_i32_125 = arith.constant 0 : i32
    %261 = arith.cmpi eq, %arg2, %c0_i32_125 : i32
    %262 = arith.extui %261 : i1 to i32
    %c0_i32_126 = arith.constant 0 : i32
    %263 = arith.cmpi ne, %262, %c0_i32_126 : i32
    scf.if %263 {
      %c0_127 = arith.constant 0 : index
      %c0_128 = arith.constant 0 : index
      %c0_129 = arith.constant 0 : index
      %264 = vector.load %arg10[%c0_127, %c0_128, %c0_129] : memref<4x16x1xf32, #tpu.memory_space<vmem>>, vector<1x16x1xf32>
      %265 = vector.shape_cast %264 : vector<1x16x1xf32> to vector<16x1xf32>
      %cst_130 = arith.constant 1.000000e+00 : f32
      %266 = vector.broadcast %cst_130 : f32 to vector<16x1xf32>
      %267 = arith.divf %266, %265 : vector<16x1xf32>
      %c0_131 = arith.constant 0 : index
      %c0_132 = arith.constant 0 : index
      %c0_133 = arith.constant 0 : index
      %268 = vector.load %arg11[%c0_131, %c0_132, %c0_133] : memref<4x16x32xf32, #tpu.memory_space<vmem>>, vector<1x16x32xf32>
      %269 = vector.shape_cast %268 : vector<1x16x32xf32> to vector<16x32xf32>
      %270 = vector.broadcast %267 : vector<16x1xf32> to vector<16x32xf32>
      %271 = arith.mulf %269, %270 : vector<16x32xf32>
      %c1_134 = arith.constant 1 : index
      %c0_135 = arith.constant 0 : index
      %c0_136 = arith.constant 0 : index
      %272 = vector.load %arg10[%c1_134, %c0_135, %c0_136] : memref<4x16x1xf32, #tpu.memory_space<vmem>>, vector<1x16x1xf32>
      %273 = vector.shape_cast %272 : vector<1x16x1xf32> to vector<16x1xf32>
      %cst_137 = arith.constant 1.000000e+00 : f32
      %274 = vector.broadcast %cst_137 : f32 to vector<16x1xf32>
      %275 = arith.divf %274, %273 : vector<16x1xf32>
      %c1_138 = arith.constant 1 : index
      %c0_139 = arith.constant 0 : index
      %c0_140 = arith.constant 0 : index
      %276 = vector.load %arg11[%c1_138, %c0_139, %c0_140] : memref<4x16x32xf32, #tpu.memory_space<vmem>>, vector<1x16x32xf32>
      %277 = vector.shape_cast %276 : vector<1x16x32xf32> to vector<16x32xf32>
      %278 = vector.broadcast %275 : vector<16x1xf32> to vector<16x32xf32>
      %279 = arith.mulf %277, %278 : vector<16x32xf32>
      %c2_141 = arith.constant 2 : index
      %c0_142 = arith.constant 0 : index
      %c0_143 = arith.constant 0 : index
      %280 = vector.load %arg10[%c2_141, %c0_142, %c0_143] : memref<4x16x1xf32, #tpu.memory_space<vmem>>, vector<1x16x1xf32>
      %281 = vector.shape_cast %280 : vector<1x16x1xf32> to vector<16x1xf32>
      %cst_144 = arith.constant 1.000000e+00 : f32
      %282 = vector.broadcast %cst_144 : f32 to vector<16x1xf32>
      %283 = arith.divf %282, %281 : vector<16x1xf32>
      %c2_145 = arith.constant 2 : index
      %c0_146 = arith.constant 0 : index
      %c0_147 = arith.constant 0 : index
      %284 = vector.load %arg11[%c2_145, %c0_146, %c0_147] : memref<4x16x32xf32, #tpu.memory_space<vmem>>, vector<1x16x32xf32>
      %285 = vector.shape_cast %284 : vector<1x16x32xf32> to vector<16x32xf32>
      %286 = vector.broadcast %283 : vector<16x1xf32> to vector<16x32xf32>
      %287 = arith.mulf %285, %286 : vector<16x32xf32>
      %c3_148 = arith.constant 3 : index
      %c0_149 = arith.constant 0 : index
      %c0_150 = arith.constant 0 : index
      %288 = vector.load %arg10[%c3_148, %c0_149, %c0_150] : memref<4x16x1xf32, #tpu.memory_space<vmem>>, vector<1x16x1xf32>
      %289 = vector.shape_cast %288 : vector<1x16x1xf32> to vector<16x1xf32>
      %cst_151 = arith.constant 1.000000e+00 : f32
      %290 = vector.broadcast %cst_151 : f32 to vector<16x1xf32>
      %291 = arith.divf %290, %289 : vector<16x1xf32>
      %c3_152 = arith.constant 3 : index
      %c0_153 = arith.constant 0 : index
      %c0_154 = arith.constant 0 : index
      %292 = vector.load %arg11[%c3_152, %c0_153, %c0_154] : memref<4x16x32xf32, #tpu.memory_space<vmem>>, vector<1x16x32xf32>
      %293 = vector.shape_cast %292 : vector<1x16x32xf32> to vector<16x32xf32>
      %294 = vector.broadcast %291 : vector<16x1xf32> to vector<16x32xf32>
      %295 = arith.mulf %293, %294 : vector<16x32xf32>
      %296 = tpu.concatenate %271, %279, %287, %295 in 1 : vector<16x32xf32>, vector<16x32xf32>, vector<16x32xf32>, vector<16x32xf32> -> vector<16x128xf32>
      %297 = arith.truncf %296 : vector<16x128xf32> to vector<16x128xbf16>
      %c0_155 = arith.constant 0 : index
      %c0_156 = arith.constant 0 : index
      %c0_157 = arith.constant 0 : index
      %298 = vector.load %arg8[%c0_155, %c0_156, %c0_157] : memref<1x16x128xbf16, #tpu.memory_space<vmem>>, vector<1x16x128xbf16>
      %299 = vector.shape_cast %298 : vector<1x16x128xbf16> to vector<16x128xbf16>
      %300 = vector.shape_cast %297 : vector<16x128xbf16> to vector<1x16x128xbf16>
      tpu.vector_store %arg8[%c0_155, %c0_156, %c0_157], %300 {strides = array<i32>} : memref<1x16x128xbf16, #tpu.memory_space<vmem>>, vector<1x16x128xbf16>,
    } else {
    }
    return
  }
  func.func @transform_0(%arg0: i32, %arg1: i32, %arg2: i32) -> (i32, i32, i32) {
    %c0_i32 = arith.constant 0 : i32
    %c0_i32_0 = arith.constant 0 : i32
    return %arg0, %arg1, %c0_i32 : i32, i32, i32
  }
  func.func @transform_1(%arg0: i32, %arg1: i32, %arg2: i32) -> (i32, i32, i32) {
    %c1_i32 = arith.constant 1 : i32
    %c0_i32 = arith.constant 0 : i32
    return %arg0, %arg2, %c1_i32 : i32, i32, i32
  }
  func.func @transform_2(%arg0: i32, %arg1: i32, %arg2: i32) -> (i32, i32, i32) {
    %c2_i32 = arith.constant 2 : i32
    %c0_i32 = arith.constant 0 : i32
    return %arg0, %arg2, %c2_i32 : i32, i32, i32
  }
  func.func @transform_3(%arg0: i32, %arg1: i32, %arg2: i32) -> (i32, i32) {
    %c0_i32 = arith.constant 0 : i32
    %c0_i32_0 = arith.constant 0 : i32
    return %arg1, %c0_i32 : i32, i32
  }
  func.func @transform_4(%arg0: i32, %arg1: i32, %arg2: i32) -> (i32, i32) {
    %c0_i32 = arith.constant 0 : i32
    %c0_i32_0 = arith.constant 0 : i32
    return %arg2, %c0_i32 : i32, i32
  }
  func.func @transform_5(%arg0: i32, %arg1: i32, %arg2: i32) -> (i32, i32, i32) {
    %c0_i32 = arith.constant 0 : i32
    %c0_i32_0 = arith.constant 0 : i32
    return %arg0, %arg1, %c0_i32 : i32, i32, i32
  }
}

module attributes {stable_mosaic.version = 11 : i64} {
  func.func @_linear_kernel(%arg0: i32, %arg1: i32, %arg2: i32, %arg3: i32, %arg4: memref<1x16x128xbf16, #tpu.memory_space<vmem>>, %arg5: memref<128x128xbf16, #tpu.memory_space<vmem>>, %arg6: memref<1x1x128xbf16, #tpu.memory_space<vmem>>, %arg7: memref<1x16x128xbf16, #tpu.memory_space<vmem>>, %arg8: memref<1x1x128xbf16, #tpu.memory_space<vmem>>, %arg9: memref<1x16x128xbf16, #tpu.memory_space<vmem>>, %arg10: memref<16x128xf32, #tpu.memory_space<vmem>>) attributes {dimension_semantics = [#tpu.dimension_semantics<parallel>, #tpu.dimension_semantics<parallel>, #tpu.dimension_semantics<parallel>, #tpu.dimension_semantics<arbitrary>], iteration_bounds = array<i64: 2, 1, 1, 1>, scalar_prefetch = 0 : i64, scratch_operands = 1 : i64, tpu.core_type = #tpu.core_type<tc>, window_params = [{transform_indices = @transform_0, window_bounds = array<i64: 1, 16, 128>}, {transform_indices = @transform_1, window_bounds = array<i64: 128, 128>}, {transform_indices = @transform_2, window_bounds = array<i64: 1, 1, 128>}, {transform_indices = @transform_3, window_bounds = array<i64: 1, 16, 128>}, {transform_indices = @transform_4, window_bounds = array<i64: 1, 1, 128>}, {transform_indices = @transform_5, window_bounds = array<i64: 1, 16, 128>}]} {
    %c0_i32 = arith.constant 0 : i32
    %0 = arith.cmpi eq, %arg3, %c0_i32 : i32
    %1 = arith.extui %0 : i1 to i32
    %c0_i32_0 = arith.constant 0 : i32
    %2 = arith.cmpi ne, %1, %c0_i32_0 : i32
    scf.if %2 {
      %cst_11 = arith.constant 0.000000e+00 : f32
      %13 = vector.broadcast %cst_11 : f32 to vector<16x128xf32>
      %c0_12 = arith.constant 0 : index
      %c0_13 = arith.constant 0 : index
      %14 = vector.load %arg10[%c0_12, %c0_13] : memref<16x128xf32, #tpu.memory_space<vmem>>, vector<16x128xf32>
      tpu.vector_store %arg10[%c0_12, %c0_13], %13 {strides = array<i32>} : memref<16x128xf32, #tpu.memory_space<vmem>>, vector<16x128xf32>,
    } else {
    }
    %c0 = arith.constant 0 : index
    %c0_1 = arith.constant 0 : index
    %c0_2 = arith.constant 0 : index
    %3 = vector.load %arg4[%c0, %c0_1, %c0_2] : memref<1x16x128xbf16, #tpu.memory_space<vmem>>, vector<1x16x128xbf16>
    %4 = vector.shape_cast %3 : vector<1x16x128xbf16> to vector<16x128xbf16>
    %c0_3 = arith.constant 0 : index
    %c0_4 = arith.constant 0 : index
    %5 = vector.load %arg10[%c0_3, %c0_4] : memref<16x128xf32, #tpu.memory_space<vmem>>, vector<16x128xf32>
    %c0_5 = arith.constant 0 : index
    %c0_6 = arith.constant 0 : index
    %6 = vector.load %arg5[%c0_5, %c0_6] : memref<128x128xbf16, #tpu.memory_space<vmem>>, vector<128x128xbf16>
    %cst = arith.constant dense<0.000000e+00> : vector<16x128xf32>
    %7 = tpu.matmul %4, %6, %cst {dimension_numbers = #tpu.dot_dimension_numbers<[1], [0], [0], [1], [0, 0, 1, 1], [], []>} : vector<16x128xbf16>, vector<128x128xbf16>, vector<16x128xf32> -> vector<16x128xf32>
    %8 = arith.addf %5, %7 : vector<16x128xf32>
    %c0_7 = arith.constant 0 : index
    %c0_8 = arith.constant 0 : index
    %9 = vector.load %arg10[%c0_7, %c0_8] : memref<16x128xf32, #tpu.memory_space<vmem>>, vector<16x128xf32>
    tpu.vector_store %arg10[%c0_7, %c0_8], %8 {strides = array<i32>} : memref<16x128xf32, #tpu.memory_space<vmem>>, vector<16x128xf32>,
    %c0_i32_9 = arith.constant 0 : i32
    %10 = arith.cmpi eq, %arg3, %c0_i32_9 : i32
    %11 = arith.extui %10 : i1 to i32
    %c0_i32_10 = arith.constant 0 : i32
    %12 = arith.cmpi ne, %11, %c0_i32_10 : i32
    scf.if %12 {
      %c0_11 = arith.constant 0 : index
      %c0_12 = arith.constant 0 : index
      %13 = vector.load %arg10[%c0_11, %c0_12] : memref<16x128xf32, #tpu.memory_space<vmem>>, vector<16x128xf32>
      %c0_13 = arith.constant 0 : index
      %c0_14 = arith.constant 0 : index
      %c0_15 = arith.constant 0 : index
      %14 = vector.load %arg6[%c0_13, %c0_14, %c0_15] : memref<1x1x128xbf16, #tpu.memory_space<vmem>>, vector<1x1x128xbf16>
      %15 = vector.shape_cast %14 : vector<1x1x128xbf16> to vector<1x128xbf16>
      %16 = arith.extf %15 : vector<1x128xbf16> to vector<1x128xf32>
      %17 = vector.broadcast %16 : vector<1x128xf32> to vector<16x128xf32>
      %18 = arith.addf %13, %17 : vector<16x128xf32>
      %c0_16 = arith.constant 0 : index
      %c0_17 = arith.constant 0 : index
      %c0_18 = arith.constant 0 : index
      %19 = vector.load %arg7[%c0_16, %c0_17, %c0_18] : memref<1x16x128xbf16, #tpu.memory_space<vmem>>, vector<1x16x128xbf16>
      %20 = vector.shape_cast %19 : vector<1x16x128xbf16> to vector<16x128xbf16>
      %21 = arith.extf %20 : vector<16x128xbf16> to vector<16x128xf32>
      %c0_19 = arith.constant 0 : index
      %c0_20 = arith.constant 0 : index
      %c0_21 = arith.constant 0 : index
      %22 = vector.load %arg8[%c0_19, %c0_20, %c0_21] : memref<1x1x128xbf16, #tpu.memory_space<vmem>>, vector<1x1x128xbf16>
      %23 = vector.shape_cast %22 : vector<1x1x128xbf16> to vector<1x128xbf16>
      %24 = arith.extf %23 : vector<1x128xbf16> to vector<1x128xf32>
      %25 = vector.broadcast %24 : vector<1x128xf32> to vector<16x128xf32>
      %26 = arith.mulf %25, %18 : vector<16x128xf32>
      %27 = arith.addf %21, %26 : vector<16x128xf32>
      %28 = arith.truncf %27 : vector<16x128xf32> to vector<16x128xbf16>
      %c0_22 = arith.constant 0 : index
      %c0_23 = arith.constant 0 : index
      %c0_24 = arith.constant 0 : index
      %29 = vector.load %arg9[%c0_22, %c0_23, %c0_24] : memref<1x16x128xbf16, #tpu.memory_space<vmem>>, vector<1x16x128xbf16>
      %30 = vector.shape_cast %29 : vector<1x16x128xbf16> to vector<16x128xbf16>
      %31 = vector.shape_cast %28 : vector<16x128xbf16> to vector<1x16x128xbf16>
      tpu.vector_store %arg9[%c0_22, %c0_23, %c0_24], %31 {strides = array<i32>} : memref<1x16x128xbf16, #tpu.memory_space<vmem>>, vector<1x16x128xbf16>,
    } else {
    }
    return
  }
  func.func @transform_0(%arg0: i32, %arg1: i32, %arg2: i32, %arg3: i32) -> (i32, i32, i32) {
    %c0_i32 = arith.constant 0 : i32
    %0 = arith.addi %arg3, %c0_i32 : i32
    %c0_i32_0 = arith.constant 0 : i32
    return %arg0, %arg1, %0 : i32, i32, i32
  }
  func.func @transform_1(%arg0: i32, %arg1: i32, %arg2: i32, %arg3: i32) -> (i32, i32) {
    %c0_i32 = arith.constant 0 : i32
    return %arg3, %arg2 : i32, i32
  }
  func.func @transform_2(%arg0: i32, %arg1: i32, %arg2: i32, %arg3: i32) -> (i32, i32, i32) {
    %c0_i32 = arith.constant 0 : i32
    %c0_i32_0 = arith.constant 0 : i32
    %c0_i32_1 = arith.constant 0 : i32
    return %c0_i32, %c0_i32_0, %arg2 : i32, i32, i32
  }
  func.func @transform_3(%arg0: i32, %arg1: i32, %arg2: i32, %arg3: i32) -> (i32, i32, i32) {
    %c0_i32 = arith.constant 0 : i32
    return %arg0, %arg1, %arg2 : i32, i32, i32
  }
  func.func @transform_4(%arg0: i32, %arg1: i32, %arg2: i32, %arg3: i32) -> (i32, i32, i32) {
    %c0_i32 = arith.constant 0 : i32
    %c0_i32_0 = arith.constant 0 : i32
    return %arg0, %c0_i32, %arg2 : i32, i32, i32
  }
  func.func @transform_5(%arg0: i32, %arg1: i32, %arg2: i32, %arg3: i32) -> (i32, i32, i32) {
    %c0_i32 = arith.constant 0 : i32
    return %arg0, %arg1, %arg2 : i32, i32, i32
  }
}

module attributes {stable_mosaic.version = 11 : i64} {
  func.func @_linear_kernel(%arg0: i32, %arg1: i32, %arg2: i32, %arg3: i32, %arg4: memref<1x16x128xbf16, #tpu.memory_space<vmem>>, %arg5: memref<128x128xbf16, #tpu.memory_space<vmem>>, %arg6: memref<1x1x128xbf16, #tpu.memory_space<vmem>>, %arg7: memref<1x16x128xbf16, #tpu.memory_space<vmem>>, %arg8: memref<1x1x128xbf16, #tpu.memory_space<vmem>>, %arg9: memref<1x16x128xbf16, #tpu.memory_space<vmem>>, %arg10: memref<16x128xf32, #tpu.memory_space<vmem>>) attributes {dimension_semantics = [#tpu.dimension_semantics<parallel>, #tpu.dimension_semantics<parallel>, #tpu.dimension_semantics<parallel>, #tpu.dimension_semantics<arbitrary>], iteration_bounds = array<i64: 2, 1, 1, 4>, scalar_prefetch = 0 : i64, scratch_operands = 1 : i64, tpu.core_type = #tpu.core_type<tc>, window_params = [{transform_indices = @transform_0, window_bounds = array<i64: 1, 16, 128>}, {transform_indices = @transform_1, window_bounds = array<i64: 128, 128>}, {transform_indices = @transform_2, window_bounds = array<i64: 1, 1, 128>}, {transform_indices = @transform_3, window_bounds = array<i64: 1, 16, 128>}, {transform_indices = @transform_4, window_bounds = array<i64: 1, 1, 128>}, {transform_indices = @transform_5, window_bounds = array<i64: 1, 16, 128>}]} {
    %c0_i32 = arith.constant 0 : i32
    %0 = arith.cmpi eq, %arg3, %c0_i32 : i32
    %1 = arith.extui %0 : i1 to i32
    %c0_i32_0 = arith.constant 0 : i32
    %2 = arith.cmpi ne, %1, %c0_i32_0 : i32
    scf.if %2 {
      %cst_10 = arith.constant 0.000000e+00 : f32
      %13 = vector.broadcast %cst_10 : f32 to vector<16x128xf32>
      %c0_11 = arith.constant 0 : index
      %c0_12 = arith.constant 0 : index
      %14 = vector.load %arg10[%c0_11, %c0_12] : memref<16x128xf32, #tpu.memory_space<vmem>>, vector<16x128xf32>
      tpu.vector_store %arg10[%c0_11, %c0_12], %13 {strides = array<i32>} : memref<16x128xf32, #tpu.memory_space<vmem>>, vector<16x128xf32>,
    } else {
    }
    %c0 = arith.constant 0 : index
    %c0_1 = arith.constant 0 : index
    %c0_2 = arith.constant 0 : index
    %3 = vector.load %arg4[%c0, %c0_1, %c0_2] : memref<1x16x128xbf16, #tpu.memory_space<vmem>>, vector<1x16x128xbf16>
    %4 = vector.shape_cast %3 : vector<1x16x128xbf16> to vector<16x128xbf16>
    %c0_3 = arith.constant 0 : index
    %c0_4 = arith.constant 0 : index
    %5 = vector.load %arg10[%c0_3, %c0_4] : memref<16x128xf32, #tpu.memory_space<vmem>>, vector<16x128xf32>
    %c0_5 = arith.constant 0 : index
    %c0_6 = arith.constant 0 : index
    %6 = vector.load %arg5[%c0_5, %c0_6] : memref<128x128xbf16, #tpu.memory_space<vmem>>, vector<128x128xbf16>
    %cst = arith.constant dense<0.000000e+00> : vector<16x128xf32>
    %7 = tpu.matmul %4, %6, %cst {dimension_numbers = #tpu.dot_dimension_numbers<[1], [0], [0], [1], [0, 0, 1, 1], [], []>} : vector<16x128xbf16>, vector<128x128xbf16>, vector<16x128xf32> -> vector<16x128xf32>
    %8 = arith.addf %5, %7 : vector<16x128xf32>
    %c0_7 = arith.constant 0 : index
    %c0_8 = arith.constant 0 : index
    %9 = vector.load %arg10[%c0_7, %c0_8] : memref<16x128xf32, #tpu.memory_space<vmem>>, vector<16x128xf32>
    tpu.vector_store %arg10[%c0_7, %c0_8], %8 {strides = array<i32>} : memref<16x128xf32, #tpu.memory_space<vmem>>, vector<16x128xf32>,
    %c3_i32 = arith.constant 3 : i32
    %10 = arith.cmpi eq, %arg3, %c3_i32 : i32
    %11 = arith.extui %10 : i1 to i32
    %c0_i32_9 = arith.constant 0 : i32
    %12 = arith.cmpi ne, %11, %c0_i32_9 : i32
    scf.if %12 {
      %c0_10 = arith.constant 0 : index
      %c0_11 = arith.constant 0 : index
      %13 = vector.load %arg10[%c0_10, %c0_11] : memref<16x128xf32, #tpu.memory_space<vmem>>, vector<16x128xf32>
      %c0_12 = arith.constant 0 : index
      %c0_13 = arith.constant 0 : index
      %c0_14 = arith.constant 0 : index
      %14 = vector.load %arg6[%c0_12, %c0_13, %c0_14] : memref<1x1x128xbf16, #tpu.memory_space<vmem>>, vector<1x1x128xbf16>
      %15 = vector.shape_cast %14 : vector<1x1x128xbf16> to vector<1x128xbf16>
      %16 = arith.extf %15 : vector<1x128xbf16> to vector<1x128xf32>
      %17 = vector.broadcast %16 : vector<1x128xf32> to vector<16x128xf32>
      %18 = arith.addf %13, %17 : vector<16x128xf32>
      %c0_15 = arith.constant 0 : index
      %c0_16 = arith.constant 0 : index
      %c0_17 = arith.constant 0 : index
      %19 = vector.load %arg7[%c0_15, %c0_16, %c0_17] : memref<1x16x128xbf16, #tpu.memory_space<vmem>>, vector<1x16x128xbf16>
      %20 = vector.shape_cast %19 : vector<1x16x128xbf16> to vector<16x128xbf16>
      %21 = arith.extf %20 : vector<16x128xbf16> to vector<16x128xf32>
      %c0_18 = arith.constant 0 : index
      %c0_19 = arith.constant 0 : index
      %c0_20 = arith.constant 0 : index
      %22 = vector.load %arg8[%c0_18, %c0_19, %c0_20] : memref<1x1x128xbf16, #tpu.memory_space<vmem>>, vector<1x1x128xbf16>
      %23 = vector.shape_cast %22 : vector<1x1x128xbf16> to vector<1x128xbf16>
      %24 = arith.extf %23 : vector<1x128xbf16> to vector<1x128xf32>
      %25 = vector.broadcast %24 : vector<1x128xf32> to vector<16x128xf32>
      %26 = arith.mulf %25, %18 : vector<16x128xf32>
      %27 = arith.addf %21, %26 : vector<16x128xf32>
      %28 = arith.truncf %27 : vector<16x128xf32> to vector<16x128xbf16>
      %c0_21 = arith.constant 0 : index
      %c0_22 = arith.constant 0 : index
      %c0_23 = arith.constant 0 : index
      %29 = vector.load %arg9[%c0_21, %c0_22, %c0_23] : memref<1x16x128xbf16, #tpu.memory_space<vmem>>, vector<1x16x128xbf16>
      %30 = vector.shape_cast %29 : vector<1x16x128xbf16> to vector<16x128xbf16>
      %31 = vector.shape_cast %28 : vector<16x128xbf16> to vector<1x16x128xbf16>
      tpu.vector_store %arg9[%c0_21, %c0_22, %c0_23], %31 {strides = array<i32>} : memref<1x16x128xbf16, #tpu.memory_space<vmem>>, vector<1x16x128xbf16>,
    } else {
    }
    return
  }
  func.func @transform_0(%arg0: i32, %arg1: i32, %arg2: i32, %arg3: i32) -> (i32, i32, i32) {
    %c3_i32 = arith.constant 3 : i32
    %0 = arith.addi %arg3, %c3_i32 : i32
    %c0_i32 = arith.constant 0 : i32
    return %arg0, %arg1, %0 : i32, i32, i32
  }
  func.func @transform_1(%arg0: i32, %arg1: i32, %arg2: i32, %arg3: i32) -> (i32, i32) {
    %c0_i32 = arith.constant 0 : i32
    return %arg3, %arg2 : i32, i32
  }
  func.func @transform_2(%arg0: i32, %arg1: i32, %arg2: i32, %arg3: i32) -> (i32, i32, i32) {
    %c0_i32 = arith.constant 0 : i32
    %c0_i32_0 = arith.constant 0 : i32
    %c0_i32_1 = arith.constant 0 : i32
    return %c0_i32, %c0_i32_0, %arg2 : i32, i32, i32
  }
  func.func @transform_3(%arg0: i32, %arg1: i32, %arg2: i32, %arg3: i32) -> (i32, i32, i32) {
    %c0_i32 = arith.constant 0 : i32
    return %arg0, %arg1, %arg2 : i32, i32, i32
  }
  func.func @transform_4(%arg0: i32, %arg1: i32, %arg2: i32, %arg3: i32) -> (i32, i32, i32) {
    %c0_i32 = arith.constant 0 : i32
    %c0_i32_0 = arith.constant 0 : i32
    return %arg0, %c0_i32, %arg2 : i32, i32, i32
  }
  func.func @transform_5(%arg0: i32, %arg1: i32, %arg2: i32, %arg3: i32) -> (i32, i32, i32) {
    %c0_i32 = arith.constant 0 : i32
    return %arg0, %arg1, %arg2 : i32, i32, i32
  }
}

module attributes {stable_mosaic.version = 11 : i64} {
  func.func @_linear_kernel(%arg0: i32, %arg1: i32, %arg2: i32, %arg3: i32, %arg4: memref<1x2x128xbf16, #tpu.memory_space<vmem>>, %arg5: memref<128x256xbf16, #tpu.memory_space<vmem>>, %arg6: memref<1x1x256xbf16, #tpu.memory_space<vmem>>, %arg7: memref<1x2x256xbf16, #tpu.memory_space<vmem>>, %arg8: memref<2x256xf32, #tpu.memory_space<vmem>>) attributes {dimension_semantics = [#tpu.dimension_semantics<parallel>, #tpu.dimension_semantics<parallel>, #tpu.dimension_semantics<parallel>, #tpu.dimension_semantics<arbitrary>], iteration_bounds = array<i64: 1, 1, 1, 1>, scalar_prefetch = 0 : i64, scratch_operands = 1 : i64, tpu.core_type = #tpu.core_type<tc>, window_params = [{transform_indices = @transform_0, window_bounds = array<i64: 1, 2, 128>}, {transform_indices = @transform_1, window_bounds = array<i64: 128, 256>}, {transform_indices = @transform_2, window_bounds = array<i64: 1, 1, 256>}, {transform_indices = @transform_3, window_bounds = array<i64: 1, 2, 256>}]} {
    %c0_i32 = arith.constant 0 : i32
    %0 = arith.cmpi eq, %arg3, %c0_i32 : i32
    %1 = arith.extui %0 : i1 to i32
    %c0_i32_0 = arith.constant 0 : i32
    %2 = arith.cmpi ne, %1, %c0_i32_0 : i32
    scf.if %2 {
      %cst_12 = arith.constant 0.000000e+00 : f32
      %21 = vector.broadcast %cst_12 : f32 to vector<2x256xf32>
      %c0_13 = arith.constant 0 : index
      %c0_14 = arith.constant 0 : index
      %22 = vector.load %arg8[%c0_13, %c0_14] : memref<2x256xf32, #tpu.memory_space<vmem>>, vector<2x256xf32>
      tpu.vector_store %arg8[%c0_13, %c0_14], %21 {strides = array<i32>} : memref<2x256xf32, #tpu.memory_space<vmem>>, vector<2x256xf32>,
    } else {
    }
    %c0 = arith.constant 0 : index
    %c0_1 = arith.constant 0 : index
    %c0_2 = arith.constant 0 : index
    %3 = vector.load %arg4[%c0, %c0_1, %c0_2] : memref<1x2x128xbf16, #tpu.memory_space<vmem>>, vector<1x2x128xbf16>
    %4 = vector.shape_cast %3 : vector<1x2x128xbf16> to vector<2x128xbf16>
    %5 = arith.extf %4 : vector<2x128xbf16> to vector<2x128xf32>
    %6 = arith.negf %5 : vector<2x128xf32>
    %7 = math.exp %6 : vector<2x128xf32>
    %cst = arith.constant 1.000000e+00 : f32
    %8 = vector.broadcast %cst : f32 to vector<2x128xf32>
    %9 = arith.addf %8, %7 : vector<2x128xf32>
    %10 = arith.divf %8, %9 : vector<2x128xf32>
    %11 = arith.mulf %5, %10 : vector<2x128xf32>
    %12 = arith.truncf %11 : vector<2x128xf32> to vector<2x128xbf16>
    %c0_3 = arith.constant 0 : index
    %c0_4 = arith.constant 0 : index
    %13 = vector.load %arg8[%c0_3, %c0_4] : memref<2x256xf32, #tpu.memory_space<vmem>>, vector<2x256xf32>
    %c0_5 = arith.constant 0 : index
    %c0_6 = arith.constant 0 : index
    %14 = vector.load %arg5[%c0_5, %c0_6] : memref<128x256xbf16, #tpu.memory_space<vmem>>, vector<128x256xbf16>
    %cst_7 = arith.constant dense<0.000000e+00> : vector<2x256xf32>
    %15 = tpu.matmul %12, %14, %cst_7 {dimension_numbers = #tpu.dot_dimension_numbers<[1], [0], [0], [1], [0, 0, 1, 1], [], []>} : vector<2x128xbf16>, vector<128x256xbf16>, vector<2x256xf32> -> vector<2x256xf32>
    %16 = arith.addf %13, %15 : vector<2x256xf32>
    %c0_8 = arith.constant 0 : index
    %c0_9 = arith.constant 0 : index
    %17 = vector.load %arg8[%c0_8, %c0_9] : memref<2x256xf32, #tpu.memory_space<vmem>>, vector<2x256xf32>
    tpu.vector_store %arg8[%c0_8, %c0_9], %16 {strides = array<i32>} : memref<2x256xf32, #tpu.memory_space<vmem>>, vector<2x256xf32>,
    %c0_i32_10 = arith.constant 0 : i32
    %18 = arith.cmpi eq, %arg3, %c0_i32_10 : i32
    %19 = arith.extui %18 : i1 to i32
    %c0_i32_11 = arith.constant 0 : i32
    %20 = arith.cmpi ne, %19, %c0_i32_11 : i32
    scf.if %20 {
      %c0_12 = arith.constant 0 : index
      %c0_13 = arith.constant 0 : index
      %21 = vector.load %arg8[%c0_12, %c0_13] : memref<2x256xf32, #tpu.memory_space<vmem>>, vector<2x256xf32>
      %c0_14 = arith.constant 0 : index
      %c0_15 = arith.constant 0 : index
      %c0_16 = arith.constant 0 : index
      %22 = vector.load %arg6[%c0_14, %c0_15, %c0_16] : memref<1x1x256xbf16, #tpu.memory_space<vmem>>, vector<1x1x256xbf16>
      %23 = vector.shape_cast %22 : vector<1x1x256xbf16> to vector<1x256xbf16>
      %24 = arith.extf %23 : vector<1x256xbf16> to vector<1x256xf32>
      %25 = vector.broadcast %24 : vector<1x256xf32> to vector<2x256xf32>
      %26 = arith.addf %21, %25 : vector<2x256xf32>
      %27 = arith.truncf %26 : vector<2x256xf32> to vector<2x256xbf16>
      %c0_17 = arith.constant 0 : index
      %c0_18 = arith.constant 0 : index
      %c0_19 = arith.constant 0 : index
      %28 = vector.load %arg7[%c0_17, %c0_18, %c0_19] : memref<1x2x256xbf16, #tpu.memory_space<vmem>>, vector<1x2x256xbf16>
      %29 = vector.shape_cast %28 : vector<1x2x256xbf16> to vector<2x256xbf16>
      %30 = vector.shape_cast %27 : vector<2x256xbf16> to vector<1x2x256xbf16>
      tpu.vector_store %arg7[%c0_17, %c0_18, %c0_19], %30 {strides = array<i32>} : memref<1x2x256xbf16, #tpu.memory_space<vmem>>, vector<1x2x256xbf16>,
    } else {
    }
    return
  }
  func.func @transform_0(%arg0: i32, %arg1: i32, %arg2: i32, %arg3: i32) -> (i32, i32, i32) {
    %c0_i32 = arith.constant 0 : i32
    %0 = arith.addi %arg3, %c0_i32 : i32
    %c0_i32_0 = arith.constant 0 : i32
    return %arg0, %arg1, %0 : i32, i32, i32
  }
  func.func @transform_1(%arg0: i32, %arg1: i32, %arg2: i32, %arg3: i32) -> (i32, i32) {
    %c0_i32 = arith.constant 0 : i32
    return %arg3, %arg2 : i32, i32
  }
  func.func @transform_2(%arg0: i32, %arg1: i32, %arg2: i32, %arg3: i32) -> (i32, i32, i32) {
    %c0_i32 = arith.constant 0 : i32
    %c0_i32_0 = arith.constant 0 : i32
    %c0_i32_1 = arith.constant 0 : i32
    return %c0_i32, %c0_i32_0, %arg2 : i32, i32, i32
  }
  func.func @transform_3(%arg0: i32, %arg1: i32, %arg2: i32, %arg3: i32) -> (i32, i32, i32) {
    %c0_i32 = arith.constant 0 : i32
    return %arg0, %arg1, %arg2 : i32, i32, i32
  }
}

module attributes {stable_mosaic.version = 11 : i64} {
  func.func @_linear_kernel(%arg0: i32, %arg1: i32, %arg2: i32, %arg3: i32, %arg4: memref<1x8x128xbf16, #tpu.memory_space<vmem>>, %arg5: memref<128x16xbf16, #tpu.memory_space<vmem>>, %arg6: memref<1x1x16xbf16, #tpu.memory_space<vmem>>, %arg7: memref<1x1x128xbf16, #tpu.memory_space<vmem>>, %arg8: memref<1x1x128xbf16, #tpu.memory_space<vmem>>, %arg9: memref<1x8x16xbf16, #tpu.memory_space<vmem>>, %arg10: memref<8x16xf32, #tpu.memory_space<vmem>>) attributes {dimension_semantics = [#tpu.dimension_semantics<parallel>, #tpu.dimension_semantics<parallel>, #tpu.dimension_semantics<parallel>, #tpu.dimension_semantics<arbitrary>], iteration_bounds = array<i64: 2, 1, 1, 1>, scalar_prefetch = 0 : i64, scratch_operands = 1 : i64, tpu.core_type = #tpu.core_type<tc>, window_params = [{transform_indices = @transform_0, window_bounds = array<i64: 1, 8, 128>}, {transform_indices = @transform_1, window_bounds = array<i64: 128, 16>}, {transform_indices = @transform_2, window_bounds = array<i64: 1, 1, 16>}, {transform_indices = @transform_3, window_bounds = array<i64: 1, 1, 128>}, {transform_indices = @transform_4, window_bounds = array<i64: 1, 1, 128>}, {transform_indices = @transform_5, window_bounds = array<i64: 1, 8, 16>}]} {
    %c0_i32 = arith.constant 0 : i32
    %0 = arith.cmpi eq, %arg3, %c0_i32 : i32
    %1 = arith.extui %0 : i1 to i32
    %c0_i32_0 = arith.constant 0 : i32
    %2 = arith.cmpi ne, %1, %c0_i32_0 : i32
    scf.if %2 {
      %cst_23 = arith.constant 0.000000e+00 : f32
      %45 = vector.broadcast %cst_23 : f32 to vector<8x16xf32>
      %c0_24 = arith.constant 0 : index
      %c0_25 = arith.constant 0 : index
      %46 = vector.load %arg10[%c0_24, %c0_25] : memref<8x16xf32, #tpu.memory_space<vmem>>, vector<8x16xf32>
      tpu.vector_store %arg10[%c0_24, %c0_25], %45 {strides = array<i32>} : memref<8x16xf32, #tpu.memory_space<vmem>>, vector<8x16xf32>,
    } else {
    }
    %c0 = arith.constant 0 : index
    %c0_1 = arith.constant 0 : index
    %c0_2 = arith.constant 0 : index
    %3 = vector.load %arg4[%c0, %c0_1, %c0_2] : memref<1x8x128xbf16, #tpu.memory_space<vmem>>, vector<1x8x128xbf16>
    %4 = vector.shape_cast %3 : vector<1x8x128xbf16> to vector<8x128xbf16>
    %5 = arith.extf %4 : vector<8x128xbf16> to vector<8x128xf32>
    %cst = arith.constant dense<0.000000e+00> : vector<8xf32>
    %6 = vector.multi_reduction <add>, %5, %cst [1] : vector<8x128xf32> to vector<8xf32>
    %7 = vector.shape_cast %6 : vector<8xf32> to vector<8x1xf32>
    %cst_3 = arith.constant 1.280000e+02 : f32
    %8 = vector.broadcast %cst_3 : f32 to vector<8x1xf32>
    %9 = arith.divf %7, %8 : vector<8x1xf32>
    %10 = vector.broadcast %9 : vector<8x1xf32> to vector<8x128xf32>
    %11 = arith.subf %5, %10 : vector<8x128xf32>
    %12 = arith.mulf %11, %11 : vector<8x128xf32>
    %cst_4 = arith.constant dense<0.000000e+00> : vector<8xf32>
    %13 = vector.multi_reduction <add>, %12, %cst_4 [1] : vector<8x128xf32> to vector<8xf32>
    %14 = vector.shape_cast %13 : vector<8xf32> to vector<8x1xf32>
    %cst_5 = arith.constant 1.280000e+02 : f32
    %15 = vector.broadcast %cst_5 : f32 to vector<8x1xf32>
    %16 = arith.divf %14, %15 : vector<8x1xf32>
    %17 = vector.broadcast %9 : vector<8x1xf32> to vector<8x128xf32>
    %18 = arith.subf %5, %17 : vector<8x128xf32>
    %cst_6 = arith.constant 9.99999997E-7 : f32
    %19 = vector.broadcast %cst_6 : f32 to vector<8x1xf32>
    %20 = arith.addf %16, %19 : vector<8x1xf32>
    %21 = math.rsqrt %20 : vector<8x1xf32>
    %22 = vector.broadcast %21 : vector<8x1xf32> to vector<8x128xf32>
    %23 = arith.mulf %18, %22 : vector<8x128xf32>
    %c0_7 = arith.constant 0 : index
    %c0_8 = arith.constant 0 : index
    %c0_9 = arith.constant 0 : index
    %24 = vector.load %arg7[%c0_7, %c0_8, %c0_9] : memref<1x1x128xbf16, #tpu.memory_space<vmem>>, vector<1x1x128xbf16>
    %25 = vector.shape_cast %24 : vector<1x1x128xbf16> to vector<1x128xbf16>
    %26 = arith.extf %25 : vector<1x128xbf16> to vector<1x128xf32>
    %c0_10 = arith.constant 0 : index
    %c0_11 = arith.constant 0 : index
    %c0_12 = arith.constant 0 : index
    %27 = vector.load %arg8[%c0_10, %c0_11, %c0_12] : memref<1x1x128xbf16, #tpu.memory_space<vmem>>, vector<1x1x128xbf16>
    %28 = vector.shape_cast %27 : vector<1x1x128xbf16> to vector<1x128xbf16>
    %29 = arith.extf %28 : vector<1x128xbf16> to vector<1x128xf32>
    %cst_13 = arith.constant 1.000000e+00 : f32
    %30 = vector.broadcast %cst_13 : f32 to vector<1x128xf32>
    %31 = arith.addf %30, %26 : vector<1x128xf32>
    %32 = vector.broadcast %31 : vector<1x128xf32> to vector<8x128xf32>
    %33 = arith.mulf %32, %23 : vector<8x128xf32>
    %34 = vector.broadcast %29 : vector<1x128xf32> to vector<8x128xf32>
    %35 = arith.addf %33, %34 : vector<8x128xf32>
    %36 = arith.truncf %35 : vector<8x128xf32> to vector<8x128xbf16>
    %c0_14 = arith.constant 0 : index
    %c0_15 = arith.constant 0 : index
    %37 = vector.load %arg10[%c0_14, %c0_15] : memref<8x16xf32, #tpu.memory_space<vmem>>, vector<8x16xf32>
    %c0_16 = arith.constant 0 : index
    %c0_17 = arith.constant 0 : index
    %38 = vector.load %arg5[%c0_16, %c0_17] : memref<128x16xbf16, #tpu.memory_space<vmem>>, vector<128x16xbf16>
    %cst_18 = arith.constant dense<0.000000e+00> : vector<8x16xf32>
    %39 = tpu.matmul %36, %38, %cst_18 {dimension_numbers = #tpu.dot_dimension_numbers<[1], [0], [0], [1], [0, 0, 1, 1], [], []>} : vector<8x128xbf16>, vector<128x16xbf16>, vector<8x16xf32> -> vector<8x16xf32>
    %40 = arith.addf %37, %39 : vector<8x16xf32>
    %c0_19 = arith.constant 0 : index
    %c0_20 = arith.constant 0 : index
    %41 = vector.load %arg10[%c0_19, %c0_20] : memref<8x16xf32, #tpu.memory_space<vmem>>, vector<8x16xf32>
    tpu.vector_store %arg10[%c0_19, %c0_20], %40 {strides = array<i32>} : memref<8x16xf32, #tpu.memory_space<vmem>>, vector<8x16xf32>,
    %c0_i32_21 = arith.constant 0 : i32
    %42 = arith.cmpi eq, %arg3, %c0_i32_21 : i32
    %43 = arith.extui %42 : i1 to i32
    %c0_i32_22 = arith.constant 0 : i32
    %44 = arith.cmpi ne, %43, %c0_i32_22 : i32
    scf.if %44 {
      %c0_23 = arith.constant 0 : index
      %c0_24 = arith.constant 0 : index
      %45 = vector.load %arg10[%c0_23, %c0_24] : memref<8x16xf32, #tpu.memory_space<vmem>>, vector<8x16xf32>
      %c0_25 = arith.constant 0 : index
      %c0_26 = arith.constant 0 : index
      %c0_27 = arith.constant 0 : index
      %46 = vector.load %arg6[%c0_25, %c0_26, %c0_27] : memref<1x1x16xbf16, #tpu.memory_space<vmem>>, vector<1x1x16xbf16>
      %47 = vector.shape_cast %46 : vector<1x1x16xbf16> to vector<1x16xbf16>
      %48 = arith.extf %47 : vector<1x16xbf16> to vector<1x16xf32>
      %49 = vector.broadcast %48 : vector<1x16xf32> to vector<8x16xf32>
      %50 = arith.addf %45, %49 : vector<8x16xf32>
      %51 = arith.truncf %50 : vector<8x16xf32> to vector<8x16xbf16>
      %c0_28 = arith.constant 0 : index
      %c0_29 = arith.constant 0 : index
      %c0_30 = arith.constant 0 : index
      %52 = vector.load %arg9[%c0_28, %c0_29, %c0_30] : memref<1x8x16xbf16, #tpu.memory_space<vmem>>, vector<1x8x16xbf16>
      %53 = vector.shape_cast %52 : vector<1x8x16xbf16> to vector<8x16xbf16>
      %54 = vector.shape_cast %51 : vector<8x16xbf16> to vector<1x8x16xbf16>
      tpu.vector_store %arg9[%c0_28, %c0_29, %c0_30], %54 {strides = array<i32>} : memref<1x8x16xbf16, #tpu.memory_space<vmem>>, vector<1x8x16xbf16>,
    } else {
    }
    return
  }
  func.func @transform_0(%arg0: i32, %arg1: i32, %arg2: i32, %arg3: i32) -> (i32, i32, i32) {
    %c0_i32 = arith.constant 0 : i32
    %0 = arith.addi %arg3, %c0_i32 : i32
    %c0_i32_0 = arith.constant 0 : i32
    return %arg0, %arg1, %0 : i32, i32, i32
  }
  func.func @transform_1(%arg0: i32, %arg1: i32, %arg2: i32, %arg3: i32) -> (i32, i32) {
    %c0_i32 = arith.constant 0 : i32
    return %arg3, %arg2 : i32, i32
  }
  func.func @transform_2(%arg0: i32, %arg1: i32, %arg2: i32, %arg3: i32) -> (i32, i32, i32) {
    %c0_i32 = arith.constant 0 : i32
    %c0_i32_0 = arith.constant 0 : i32
    %c0_i32_1 = arith.constant 0 : i32
    return %c0_i32, %c0_i32_0, %arg2 : i32, i32, i32
  }
  func.func @transform_3(%arg0: i32, %arg1: i32, %arg2: i32, %arg3: i32) -> (i32, i32, i32) {
    %c0_i32 = arith.constant 0 : i32
    %c0_i32_0 = arith.constant 0 : i32
    %c0_i32_1 = arith.constant 0 : i32
    return %arg0, %c0_i32, %c0_i32_0 : i32, i32, i32
  }
  func.func @transform_4(%arg0: i32, %arg1: i32, %arg2: i32, %arg3: i32) -> (i32, i32, i32) {
    %c0_i32 = arith.constant 0 : i32
    %c0_i32_0 = arith.constant 0 : i32
    %c0_i32_1 = arith.constant 0 : i32
    return %arg0, %c0_i32, %c0_i32_0 : i32, i32, i32
  }
  func.func @transform_5(%arg0: i32, %arg1: i32, %arg2: i32, %arg3: i32) -> (i32, i32, i32) {
    %c0_i32 = arith.constant 0 : i32
    return %arg0, %arg1, %arg2 : i32, i32, i32
  }
}

</mosaic_0001>

<bundles_post_ra>
// kernel: _lambda_.41
= control target key start
LH: loop header
LB: loop body
LE: loop exit
PB: predicated region body
PF: predicated region fallthrough
CT: control target
= control target key end

     0   :  { %8 = vsyncpa [#allocation4], 0  ;;  %s234_s12 = smov [#allocation3]   ;;  %s280_s0 = inlined_call_operand.vmem [shape: bf16[1,2,128], index: 0, kind: input, shape index: {}]   ;;  %s281_s1 = inlined_call_operand.hbm [shape: bf16[128,128], index: 1, kind: input, shape index: {}]   ;;  %s282_s2 = inlined_call_operand.vmem [shape: bf16[1,1,128], index: 2, kind: input, shape index: {}]   ;;  %s283_s3 = inlined_call_operand.vmem [shape: bf16[1,2,128], index: 3, kind: output, shape index: {}]  }
   0x1   :  { %s16_s13 = sshll.u32 %s234_s12, 4  ;;  %s210_s16 = scalar_lea.hbm %s281_s1, 1024  ;;  %s17_s13 = int_to_ptr.vmem [resolvable:$true] %s16_s13 }
   0x2   :  { %p211_p0 = scmp.ne.s32.totalorder %s281_s1, %s210_s16  ;;  %p214_p1 = scmp.lt.u32.totalorder %s210_s16, %s281_s1 }
   0x4   :  { %p216_p2 = pnand %p214_p1, %p211_p0 }
   0x6   :  { %219 = shalt.err (!%p216_p2)
}
   0x7   :  { %s220_s21 = scalar_lea.vmem %s17_s13, 1024  ;;  %p225_p4 = scmp.lt.s32.totalorder %s17_s13, %s17_s13 }
   0x8   :  { %p221_p3 = scmp.ne.s32.totalorder %s17_s13, %s220_s21  ;;  %p226_p5 = scmp.lt.s32.totalorder %s220_s21, %s220_s21 }
   0xa   :  { %p227_p6 = por %p226_p5, %p225_p4 }
   0xc   :  { %p228_p7 = pnand %p227_p6, %p221_p3 }
   0xe   :  { %231 = shalt.err (!%p228_p7)
}
   0xf   :  { %s235_s22 = smov 64   ;;  %s236_s23 = smov 4  }
  0x10   :  { %22 = dma.hbm_to_vmem [thread:$0]  %s281_s1, 1024, %s17_s13, [#allocation4], %s235_s22, %s235_s22, %s236_s23  }
  0x11   :  { %232 = dma.done.wait [#allocation4], 1024  }
  0x12   :  { %233 = vsyncadd [#allocation4], 4294966272  ;;  %v237_v0 = vmov 0.0   ;;  %vm238_vm0 = vmmov 0   ;;  %v202_v1 = vld [vmem:[#allocation3] sm:$0xff]   ;;  %v203_v2 = vld [vmem:[#allocation3 + $0x8] sm:$0xff]   ;;  %v148_v10 = vlaneseq }
  0x13   :  { %177 = vmatprep.subr.bf16.mxu0 %v237_v0  ;;  %33 = vst [vmem:[#allocation2] sm:$0x3] %v237_v0  ;;  %193 = vmatprep.mubr.msk.bf16.mxu0 %vm238_vm0, %v237_v0  ;;  %v204_v3 = vld [vmem:[#allocation3 + $0x10] sm:$0xff]   ;;  %v205_v4 = vld [vmem:[#allocation3 + $0x18] sm:$0xff]   ;;  %v206_v5 = vld [vmem:[#allocation3 + $0x20] sm:$0xff]  }
  0x14   :  { %178 = vmatpush3.bf16.msra.mxu0 %v202_v1  ;;  %v207_v6 = vld [vmem:[#allocation3 + $0x28] sm:$0xff]   ;;  %v208_v7 = vld [vmem:[#allocation3 + $0x30] sm:$0xff]   ;;  %v209_v8 = vld [vmem:[#allocation3 + $0x38] sm:$0xff]   ;;  %v149_v12 = vshrl.u32 %v148_v10, 7 }
  0x15   :  { %179 = vmatprep.subr.bf16.mxu0 %v237_v0  ;;  %v34_v9 = vld [vmem:[%s280_s0] sm:$0x1] }
  0x16   :  { %v146_v14 = vld [vmem:[%s282_s2] sm:$0x1]  ;;  %v150_v19 = vsub.s32 0, %v149_v12 }
  0x17   :  { %v147_v18 = vunpack.c.l.bf16 %v146_v14 }
  0x18   :  { %180 = vmatpush3.bf16.msra.mxu0 %v203_v2 }
  0x19   :  { %181 = vmatprep.subr.bf16.mxu0 %v237_v0  ;;  %v151_v21 = vrot.slane %v147_v18, %v150_v19 }
  0x1a   :  { %v35_v11 = vld [vmem:[#allocation2] sm:$0x3] }
  0x1c   :  { %182 = vmatpush3.bf16.msra.mxu0 %v204_v3 }
  0x1d   :  { %183 = vmatprep.subr.bf16.mxu0 %v237_v0 }
  0x20   :  { %184 = vmatpush3.bf16.msra.mxu0 %v205_v4 }
  0x21   :  { %185 = vmatprep.subr.bf16.mxu0 %v237_v0 }
  0x24   :  { %186 = vmatpush3.bf16.msra.mxu0 %v206_v5 }
  0x25   :  { %187 = vmatprep.subr.bf16.mxu0 %v237_v0 }
  0x28   :  { %188 = vmatpush3.bf16.msra.mxu0 %v207_v6 }
  0x29   :  { %189 = vmatprep.subr.bf16.mxu0 %v237_v0 }
  0x2c   :  { %190 = vmatpush3.bf16.msra.mxu0 %v208_v7 }
  0x2d   :  { %191 = vmatprep.subr.bf16.mxu0 %v237_v0 }
  0x30   :  { %192 = vmatpush3.bf16.msra.mxu0 %v209_v8 }
  0x33   :  { %194 = vmatmul.mubr.bf16.vlgmr.msra.gmra.mrb[0].mxu0 %v34_v9 }
 0x106   :  { %v134_v13 = vpop.f32.mrb[0].mxu0 }
 0x107   :  { %v140_v15 = vadd.f32 %v134_v13, %v35_v11  ;;  %v195_v16 = vpop.f32.mrb[1].mxu0 }
 0x108   :  { %v137_v17 = vpop.f32.mrb[2].mxu0 }
 0x109   :  { %141 = vst [vmem:[#allocation2] sm:$0x3] %v140_v15  ;;  %v196_v20 = vpop.f32.mrb[3].mxu0 }
 0x110   :  { %v145_v22 = vld [vmem:[#allocation2] sm:$0x3] }
 0x111   :  { %v152_v23 = vadd.f32 %v151_v21, %v145_v22 }
 0x113   :  { %v153_v24 = vpack.c.bf16 %v152_v23, %v152_v23 }
 0x115   :  { %154 = vst [vmem:[%s283_s3] sm:$0x1] %v153_v24 }
 0x116   :  { %159 = vsyncpa [#allocation4], 1 }

// kernel: _lambda_.43
= control target key start
LH: loop header
LB: loop body
LE: loop exit
PB: predicated region body
PF: predicated region fallthrough
CT: control target
= control target key end

     0   :  { %s912_s12 = smov 0   ;;  %s914_s13 = smov 0   ;;  %s1023_s0 = inlined_call_operand.vmem [shape: bf16[1,2,128], index: 0, kind: input, shape index: {}]   ;;  %s1024_s1 = inlined_call_operand.vmem [shape: bf16[128,768], index: 1, kind: input, shape index: {}]   ;;  %s1025_s2 = inlined_call_operand.vmem [shape: bf16[1,1,768], index: 2, kind: input, shape index: {}]   ;;  %s1026_s3 = inlined_call_operand.vmem [shape: bf16[1,2,768], index: 3, kind: output, shape index: {}]  }
   0x1   :  { %s916_s14 = smov 0   ;;  %s918_s15 = smov 0  }
   0x2   :  { %s920_s16 = smov 0  }
   0x3 LB: > { %s31_s17 = sadd.s32 1, %s882_s15  ;;  %p85_p1 = scmp.ne.s32.totalorder %s874_s13, %s870_s12  ;;  %s886_s16 = sphi %s920_s16, %s13_s16   ;;  %s882_s15 = sphi %s918_s15, %s1030_s15   ;;  %s878_s14 = sphi %s916_s14, %s1029_s14   ;;  %s874_s13 = sphi %s914_s13, %s1028_s13   ;;  %s870_s12 = sphi %s912_s12, %s1027_s12  }
   0x4   : > { %p33_p0 = scmp.ge.s32.totalorder %s31_s17, 3  ;;  %p86_p2 = scmp.eq.s32.totalorder %s886_s16, 0 }
   0x5   : > { %s78_s19 = sadd.s32 1, %s874_s13  ;;  %p746_p5 = scmp.ge.s32.totalorder %s886_s16, 3 }
   0x6   : > { %s1032_s17 = smov (%p33_p0, %s31_s17), 0  ;;  %p87_p3 = por %p86_p2, %p85_p1 }
   0x7   : > { %s74_s18 = ssub.s32 %s882_s15, %s1032_s17  ;;  %179 = sbr.rel (%p746_p5) target bundleno = 26 (0x1a), region = 20 }
   0x8   : > { %p76_p4 = scmp.eq.s32.totalorder %s74_s18, 0 }
   0xa   : > { %s947_s20 = scalar_select %p76_p4, %s874_s13, %s78_s19  }
   0xe   : > { %182 = sbr.rel (!%p87_p3) target bundleno = 26 (0x1a), region = 24  ;;  %s184_s21 = sand.u32 (%p87_p3), 1, %s874_s13  }
   0xf   : > { %s775_s22 = sshll.u32 (%p87_p3), %s882_s15, 3  ;;  %s747_s23 = sshll.u32 (%p87_p3), %s184_s21, 7 }
  0x10   : > { %s955_s26 = scalar_lea.vmem (%p87_p3), %s1024_s1, %s775_s22  ;;  %s186_s27 = scalar_lea.vmem (%p87_p3), [#allocation3], %s747_s23 }
  0x11   : > { %v250_v0 = vld [vmem:[%s955_s26] sm:$0xff] (%p87_p3)  ;;  %v252_v1 = vld [vmem:[%s955_s26 + $0x18] sm:$0xff] (%p87_p3)  ;;  %v254_v2 = vld [vmem:[%s955_s26 + $0x30] sm:$0xff] (%p87_p3) }
  0x12   : > { %251 = vst [vmem:[%s186_s27] sm:$0xff] (%p87_p3), %v250_v0  ;;  %253 = vst [vmem:[%s186_s27 + $0x8] sm:$0xff] (%p87_p3), %v252_v1  ;;  %v256_v3 = vld [vmem:[%s955_s26 + $0x48] sm:$0xff] (%p87_p3)  ;;  %v258_v4 = vld [vmem:[%s955_s26 + $0x60] sm:$0xff] (%p87_p3) }
  0x13   : > { %255 = vst [vmem:[%s186_s27 + $0x10] sm:$0xff] (%p87_p3), %v254_v2  ;;  %v260_v5 = vld [vmem:[%s955_s26 + $0x78] sm:$0xff] (%p87_p3)  ;;  %257 = vst [vmem:[%s186_s27 + $0x18] sm:$0xff] (%p87_p3), %v256_v3  ;;  %v262_v6 = vld [vmem:[%s955_s26 + $0x90] sm:$0xff] (%p87_p3) }
  0x14   : > { %259 = vst [vmem:[%s186_s27 + $0x20] sm:$0xff] (%p87_p3), %v258_v4  ;;  %261 = vst [vmem:[%s186_s27 + $0x28] sm:$0xff] (%p87_p3), %v260_v5  ;;  %v264_v7 = vld [vmem:[%s955_s26 + $0xa8] sm:$0xff] (%p87_p3)  ;;  %v266_v8 = vld [vmem:[%s955_s26 + $0xc0] sm:$0xff] (%p87_p3) }
  0x15   : > { %263 = vst [vmem:[%s186_s27 + $0x30] sm:$0xff] %v262_v6  ;;  %265 = vst [vmem:[%s186_s27 + $0x38] sm:$0xff] %v264_v7  ;;  %v268_v9 = vld [vmem:[%s955_s26 + $0xd8] sm:$0xff]  ;;  %v270_v10 = vld [vmem:[%s955_s26 + $0xf0] sm:$0xff] }
  0x16   : > { %267 = vst [vmem:[%s186_s27 + $0x40] sm:$0xff] %v266_v8  ;;  %v272_v11 = vld [vmem:[%s955_s26 + $0x108] sm:$0xff]  ;;  %269 = vst [vmem:[%s186_s27 + $0x48] sm:$0xff] %v268_v9  ;;  %v274_v12 = vld [vmem:[%s955_s26 + $0x120] sm:$0xff] }
  0x17   : > { %271 = vst [vmem:[%s186_s27 + $0x50] sm:$0xff] %v270_v10  ;;  %273 = vst [vmem:[%s186_s27 + $0x58] sm:$0xff] %v272_v11  ;;  %v276_v13 = vld [vmem:[%s955_s26 + $0x138] sm:$0xff]  ;;  %v278_v14 = vld [vmem:[%s955_s26 + $0x150] sm:$0xff] }
  0x18   : > { %275 = vst [vmem:[%s186_s27 + $0x60] sm:$0xff] %v274_v12  ;;  %277 = vst [vmem:[%s186_s27 + $0x68] sm:$0xff] %v276_v13  ;;  %v280_v15 = vld [vmem:[%s955_s26 + $0x168] sm:$0xff] }
  0x19   : > { %279 = vst [vmem:[%s186_s27 + $0x70] sm:$0xff] %v278_v14  ;;  %281 = vst [vmem:[%s186_s27 + $0x78] sm:$0xff] %v280_v15 }
  0x1a PF: > { %p750_p6 = scmp.ge.s32.totalorder %s886_s16, 1  ;;  %p294_p7 = scmp.lt.s32.totalorder %s886_s16, 4 }
  0x1c   : > { %p295_p8 = pnand %p750_p6, %p294_p7 }
  0x1d   : > { %s301_s28 = sand.u32 (!%p295_p8), 1, %s870_s12   ;;  %v379_v16 = vld [vmem:[%s1023_s0] sm:$0x1] (!%p295_p8)  ;;  %v888_v17 = vmov (!%p295_p8), 0   ;;  %v889_v41 = vmov (!%p295_p8), 0.0   ;;  %s752_s6 = sshll.u32 (!%p295_p8), %s878_s14, 1  ;;  %v533_v42 = vlaneseq (!%p295_p8) }
  0x1e   : > { %298 = sbr.rel (%p295_p8) target bundleno = 303 (0x12f), region = 66  ;;  %s751_s4 = sshll.u32 (!%p295_p8), %s301_s28, 7  ;;  %518 = vmatprep.mubr.bf16.mxu0 (!%p295_p8), %v888_v17  ;;  %v380_v18 = vunpack.c.l.bf16 (!%p295_p8), %v379_v16  ;;  %378 = vst [vmem:[#allocation2] sm:$0xf] (!%p295_p8), %v889_v41  ;;  %v890_v43 = vmov (!%p295_p8), 1983009808  }
  0x1f   : > { %s979_s5 = scalar_lea.vmem (!%p295_p8), [#allocation3], %s751_s4  ;;  %p356_p9 = scmp.lt.s32.totalorder (!%p295_p8), %s752_s6, 5  ;;  %v531_v44 = vunpack.c.l.s4 (!%p295_p8), %v890_v43  ;;  %v534_v46 = vshrl.u32 (!%p295_p8), %v533_v42, 7  ;;  %v891_v2 = vmov (!%p295_p8), 1966171168  }
  0x20   : > { %v820_v19 = vld [vmem:[%s979_s5 + $0x4] ss:$8 sps:$4 sm:$0xff] (!%p295_p8)   ;;  %v754_v20 = vmul.f32 (!%p295_p8), -1.442695, %v380_v18  ;;  %v822_v21 = vld [vmem:[%s979_s5] ss:$8 sps:$4 sm:$0xff] (!%p295_p8)   ;;  %v594_v3 = vunpack.c.l.s4 (!%p295_p8), %v891_v2 }
  0x21   : > { %486 = vmatprep.subr.bf16.mxu0 (!%p295_p8), %v820_v19  ;;  %v823_v22 = vld [vmem:[%s979_s5 + $0x14] ss:$8 sps:$4 sm:$0xff] (!%p295_p8)   ;;  %v825_v23 = vld [vmem:[%s979_s5 + $0x10] ss:$8 sps:$4 sm:$0xff] (!%p295_p8)   ;;  %v826_v24 = vld [vmem:[%s979_s5 + $0x24] ss:$8 sps:$4 sm:$0xff] (!%p295_p8)   ;;  %v532_v47 = vunpack.c.0.s8 (!%p295_p8), %v531_v44 }
  0x22   : > { %844 = vpow2.f32 (!%p295_p8), %v754_v20  ;;  %487 = vmatpush1.bf16.msra.mxu0 (!%p295_p8), %v822_v21  ;;  %v828_v25 = vld [vmem:[%s979_s5 + $0x20] ss:$8 sps:$4 sm:$0xff] (!%p295_p8)   ;;  %v829_v26 = vld [vmem:[%s979_s5 + $0x34] ss:$8 sps:$4 sm:$0xff] (!%p295_p8)   ;;  %v831_v27 = vld [vmem:[%s979_s5 + $0x30] ss:$8 sps:$4 sm:$0xff] (!%p295_p8)   ;;  %v595_v6 = vunpack.c.0.s8 (!%p295_p8), %v594_v3 }
  0x23   : > { %488 = vmatprep.subr.bf16.mxu0 (!%p295_p8), %v823_v22  ;;  %v832_v29 = vld [vmem:[%s979_s5 + $0x44] ss:$8 sps:$4 sm:$0xff] (!%p295_p8)   ;;  %v834_v31 = vld [vmem:[%s979_s5 + $0x40] ss:$8 sps:$4 sm:$0xff] (!%p295_p8)   ;;  %v835_v32 = vld [vmem:[%s979_s5 + $0x54] ss:$8 sps:$4 sm:$0xff] (!%p295_p8)   ;;  %v535_v52 = vsub.s32 (!%p295_p8), %v532_v47, %v534_v46 }
  0x24   : > { %v837_v33 = vld [vmem:[%s979_s5 + $0x50] ss:$8 sps:$4 sm:$0xff] (!%p295_p8)   ;;  %v838_v34 = vld [vmem:[%s979_s5 + $0x64] ss:$8 sps:$4 sm:$0xff] (!%p295_p8)   ;;  %v840_v35 = vld [vmem:[%s979_s5 + $0x60] ss:$8 sps:$4 sm:$0xff] (!%p295_p8)   ;;  %v598_v9 = vsub.s32 (!%p295_p8), %v595_v6, %v534_v46 }
  0x25   : > { %v841_v36 = vld [vmem:[%s979_s5 + $0x74] ss:$8 sps:$4 sm:$0xff]   ;;  %v843_v39 = vld [vmem:[%s979_s5 + $0x70] ss:$8 sps:$4 sm:$0xff]   ;;  %s1034_s6 = smov (!%p356_p9, %s752_s6), 5  ;;  %v549_v49 = vsub.s32 0, %v534_v46 }
  0x26   : > { %489 = vmatpush1.bf16.msra.mxu0 %v825_v23  ;;  %s358_s9 = scalar_lea.vmem %s1025_s2, %s1034_s6  ;;  %v553_v50 = vsub.s32 2, %v534_v46  ;;  %v389_v58 = vld [vmem:[#allocation2] sm:$0xf]  ;;  %s371_s12 = scalar_lea.vmem %s1026_s3, %s1034_s6 }
  0x27   : > { %490 = vmatprep.subr.bf16.mxu0 %v826_v24  ;;  %v544_v45 = vld [vmem:[%s358_s9] sm:$0x3] }
  0x28   : > { %v545_v48 = vunpack.c.l.bf16 %v544_v45 }
  0x2a   : > { %491 = vmatpush1.bf16.msra.mxu0 %v828_v25  ;;  %v550_v53 = vrot.slane %v545_v48, %v549_v49  ;;  %v554_v54 = vrot.slane %v545_v48, %v553_v50 }
  0x2b   : > { %492 = vmatprep.subr.bf16.mxu0 %v829_v26 }
  0x2c   : > { %v845_v28 = vpop.eup %844  ;;  %v560_v61 = vrot.slane %v550_v53, %v549_v49  ;;  %v564_v62 = vrot.slane %v554_v54, %v549_v49 }
  0x2d   : > { %v384_v30 = vadd.f32 1.0, %v845_v28 }
  0x2e   : > { %493 = vmatpush1.bf16.msra.mxu0 %v831_v27  ;;  %v567_v0 = vcombine.low %v560_v61, %v564_v62 }
  0x2f   : > { %846 = vrcp.f32 %v384_v30  ;;  %494 = vmatprep.subr.bf16.mxu0 %v832_v29 }
  0x30   : > { %v574_v1 = vrot.slane %v567_v0, %v535_v52 }
  0x32   : > { %495 = vmatpush1.bf16.msra.mxu0 %v834_v31 }
  0x33   : > { %496 = vmatprep.subr.bf16.mxu0 %v835_v32 }
  0x36   : > { %497 = vmatpush1.bf16.msra.mxu0 %v837_v33 }
  0x37   : > { %498 = vmatprep.subr.bf16.mxu0 %v838_v34 }
  0x39   : > { %v847_v37 = vpop.eup %846 }
  0x3a   : > { %v387_v38 = vmul.f32 %v847_v37, %v380_v18  ;;  %499 = vmatpush1.bf16.msra.mxu0 %v840_v35 }
  0x3b   : > { %500 = vmatprep.subr.bf16.mxu0 %v841_v36 }
  0x3c   : > { %v388_v40 = vpack.c.bf16 %v387_v38, %v387_v38 }
  0x3e   : > { %501 = vmatpush1.bf16.msra.mxu0 %v843_v39 }
  0x41   : > { %519 = vmatmul.mubr.bf16.vlgmr.msra.gmra.mrb[0].mxu0 %v388_v40 }
 0x114   : > { %v520_v51 = vpop.f32.mrb[0].mxu0 }
 0x115   : > { %v522_v55 = vpop.f32.mrb[1].mxu0 }
 0x116   : > { %v529_v56 = vcombine.low %v520_v51, %v522_v55  ;;  %v524_v57 = vpop.f32.mrb[2].mxu0 }
 0x117   : > { %v525_v59 = vpop.f32.mrb[3].mxu0 }
 0x118   : > { %v536_v60 = vrot.slane %v529_v56, %v535_v52 }
 0x11a   : > { %v538_v63 = vadd.f32 %v536_v60, %v389_v58 }
 0x11c   : > { %539 = vst [vmem:[#allocation2] sm:$0xf] %v538_v63 }
 0x123   : > { %v543_v4 = vld [vmem:[#allocation2] sm:$0xf] }
 0x124   : > { %v576_v5 = vadd.f32 %v574_v1, %v543_v4 }
 0x126   : > { %v584_v7 = vrot.slane %v576_v5, %v535_v52 }
 0x128   : > { %v585_v8 = vcombine.high %v584_v7, %v584_v7 }
 0x12a   : > { %v771_v10 = vpack.c.bf16 %v585_v8, %v584_v7 }
 0x12c   : > { %v599_v11 = vrot.slane %v771_v10, %v598_v9 }
 0x12e   : > { %772 = vst.sshfl [vmem:[%s371_s12] sm:$0x5 pattern:$0x73625140] %v599_v11 }
 0x12f PF: > { %s13_s16 = sadd.s32 1, %s886_s16   ;;  %s1027_s12 = smov %s874_s13 }
 0x130   : > { %p10_p10 = scmp.ge.s32.totalorder %s13_s16, 5   ;;  %s1028_s13 = smov %s947_s20 }
 0x131   : > { %s1029_s14 = smov %s882_s15  ;;  %s1030_s15 = smov %s1032_s17 }
 0x132   :  { %12 = sbr.rel (!%p10_p10) target bundleno = 3 (0x3), region = 119 }

// kernel: _lambda_.40
= control target key start
LH: loop header
LB: loop body
LE: loop exit
PB: predicated region body
PF: predicated region fallthrough
CT: control target
= control target key end

     0   :  { %v303_v6 = vmov 1966171168   ;;  %v66_v8 = vlaneseq  ;;  %v304_v26 = vmov 0.0   ;;  %s382_s1 = inlined_call_operand.vmem [shape: bf16[256,128], index: 1, kind: input, shape index: {}]   ;;  %s383_s0 = inlined_call_operand.vmem [shape: bf16[1,2,256], index: 0, kind: input, shape index: {}]   ;;  %s384_s2 = inlined_call_operand.vmem [shape: bf16[1,1,128], index: 2, kind: input, shape index: {}]   ;;  %s385_s3 = inlined_call_operand.vmem [shape: bf16[1,2,128], index: 3, kind: output, shape index: {}]  }
   0x1   :  { %v283_v0 = vld [vmem:[%s382_s1 + $0x40] sm:$0xff]   ;;  %v285_v2 = vld [vmem:[%s382_s1 + $0x48] sm:$0xff]   ;;  %v287_v4 = vld [vmem:[%s382_s1 + $0x50] sm:$0xff]   ;;  %v64_v7 = vunpack.c.l.s4 %v303_v6  ;;  %19 = vst [vmem:[#allocation2] sm:$0x3] %v304_v26 }
   0x2   :  { %v284_v1 = vld [vmem:[%s382_s1] sm:$0xff]   ;;  %259 = vmatprep.subr.bf16.mxu0 %v283_v0  ;;  %v286_v3 = vld [vmem:[%s382_s1 + $0x8] sm:$0xff]   ;;  %v288_v5 = vld [vmem:[%s382_s1 + $0x10] sm:$0xff]   ;;  %v67_v12 = vshrl.u32 %v66_v8, 7 }
   0x3   :  { %260 = vmatpush3.bf16.msra.mxu0 %v284_v1  ;;  %v289_v9 = vld [vmem:[%s382_s1 + $0x58] sm:$0xff]   ;;  %v65_v11 = vunpack.c.0.s8 %v64_v7  ;;  %v291_v13 = vld [vmem:[%s382_s1 + $0x60] sm:$0xff]   ;;  %v293_v16 = vld [vmem:[%s382_s1 + $0x68] sm:$0xff]  }
   0x4   :  { %261 = vmatprep.subr.bf16.mxu0 %v285_v2  ;;  %v290_v10 = vld [vmem:[%s382_s1 + $0x18] sm:$0xff]   ;;  %v292_v14 = vld [vmem:[%s382_s1 + $0x20] sm:$0xff]   ;;  %v294_v19 = vld [vmem:[%s382_s1 + $0x28] sm:$0xff]   ;;  %v225_v36 = vsub.s32 0, %v67_v12 }
   0x5   :  { %v68_v15 = vsub.s32 %v65_v11, %v67_v12  ;;  %v241_v17 = vld.sshfl [vmem:[%s383_s0] sm:$0x11 pattern:$0x75316420]  ;;  %v295_v21 = vld [vmem:[%s382_s1 + $0x70] sm:$0xff]   ;;  %v297_v23 = vld [vmem:[%s382_s1 + $0x78] sm:$0xff]  }
   0x6   :  { %v62_v18 = vcombine.high %v241_v17, %v241_v17  ;;  %v296_v22 = vld [vmem:[%s382_s1 + $0x30] sm:$0xff]   ;;  %v298_v24 = vld [vmem:[%s382_s1 + $0x38] sm:$0xff]   ;;  %v221_v32 = vld [vmem:[%s384_s2] sm:$0x1] }
   0x7   :  { %262 = vmatpush3.bf16.msra.mxu0 %v286_v3  ;;  %v69_v25 = vrot.slane %v241_v17, %v68_v15  ;;  %v222_v35 = vunpack.c.l.bf16 %v221_v32 }
   0x8   :  { %263 = vmatprep.subr.bf16.mxu0 %v287_v4  ;;  %v76_v20 = vrot.slane %v62_v18, %v68_v15  ;;  %v21_v28 = vld [vmem:[#allocation2] sm:$0x3] }
   0x9   :  { %v226_v37 = vrot.slane %v222_v35, %v225_v36 }
   0xa   :  { %207 = vmatprep.mubr.bf16.mxu0 %v76_v20 }
   0xb   :  { %264 = vmatpush3.bf16.msra.mxu0 %v288_v5 }
   0xc   :  { %265 = vmatprep.subr.bf16.mxu0 %v289_v9 }
   0xf   :  { %266 = vmatpush3.bf16.msra.mxu0 %v290_v10 }
  0x10   :  { %267 = vmatprep.subr.bf16.mxu0 %v291_v13 }
  0x13   :  { %268 = vmatpush3.bf16.msra.mxu0 %v292_v14 }
  0x14   :  { %269 = vmatprep.subr.bf16.mxu0 %v293_v16 }
  0x17   :  { %270 = vmatpush3.bf16.msra.mxu0 %v294_v19 }
  0x18   :  { %271 = vmatprep.subr.bf16.mxu0 %v295_v21 }
  0x1b   :  { %272 = vmatpush3.bf16.msra.mxu0 %v296_v22 }
  0x1c   :  { %273 = vmatprep.subr.bf16.mxu0 %v297_v23 }
  0x1f   :  { %274 = vmatpush3.bf16.msra.mxu0 %v298_v24 }
  0x22   :  { %208 = vmatmul.mubr.bf16.vlgmr.msra.gmra.mrb[0].mxu0 %v69_v25 }
  0xf5   :  { %v275_v27 = vpop.f32.mrb[0].mxu0 }
  0xf6   :  { %v276_v29 = vpop.f32.mrb[1].mxu0 }
  0xf7   :  { %v277_v30 = vadd.f32 %v276_v29, %v275_v27  ;;  %v278_v31 = vpop.f32.mrb[2].mxu0 }
  0xf8   :  { %v279_v33 = vpop.f32.mrb[3].mxu0 }
  0xf9   :  { %v215_v34 = vadd.f32 %v277_v30, %v21_v28 }
  0xfb   :  { %216 = vst [vmem:[#allocation2] sm:$0x3] %v215_v34 }
 0x102   :  { %v220_v38 = vld [vmem:[#allocation2] sm:$0x3] }
 0x103   :  { %v227_v39 = vadd.f32 %v226_v37, %v220_v38 }
 0x105   :  { %v258_v40 = vmul.f32 -1.442695, %v227_v39 }
 0x107   :  { %299 = vpow2.f32 %v258_v40 }
 0x111   :  { %v300_v41 = vpop.eup %299 }
 0x112   :  { %v231_v42 = vadd.f32 1.0, %v300_v41 }
 0x114   :  { %301 = vrcp.f32 %v231_v42 }
 0x11e   :  { %v302_v43 = vpop.eup %301 }
 0x11f   :  { %v234_v44 = vmul.f32 %v302_v43, %v227_v39 }
 0x121   :  { %v235_v45 = vpack.c.bf16 %v234_v44, %v234_v44 }
 0x123   :  { %236 = vst [vmem:[%s385_s3] sm:$0x1] %v235_v45 }

// kernel: _lambda_.38
= control target key start
LH: loop header
LB: loop body
LE: loop exit
PB: predicated region body
PF: predicated region fallthrough
CT: control target
= control target key end

     0   :  { %s583_s12 = smov 0   ;;  %s585_s13 = smov 0   ;;  %s625_s0 = inlined_call_operand.vmem [shape: bf16[2,8,32], index: 0, kind: input, shape index: {}]   ;;  %s626_s1 = inlined_call_operand.vmem [shape: bf16[32,128], index: 1, kind: input, shape index: {}]   ;;  %s627_s2 = inlined_call_operand.vmem [shape: bf16[1,1,128], index: 2, kind: input, shape index: {}]   ;;  %s628_s3 = inlined_call_operand.vmem [shape: bf16[2,8,128], index: 3, kind: output, shape index: {}]  }
   0x1   :  { %s587_s14 = smov 0  }
   0x2 LB: > { %s39_s15 = sadd.s32 1, %s555_s13  ;;  %p490_p0 = scmp.ge.s32.totalorder %s559_s14, 1  ;;  %s559_s14 = sphi %s587_s14, %s13_s14   ;;  %s555_s13 = sphi %s585_s13, %s630_s13   ;;  %s551_s12 = sphi %s583_s12, %s629_s12  }
   0x3   : > { %p41_p1 = scmp.ge.s32.totalorder %s39_s15, 2  ;;  %p200_p2 = scmp.lt.s32.totalorder %s559_s14, 3 }
   0x5   : > { %s632_s15 = smov (%p41_p1, %s39_s15), 0  ;;  %p201_p3 = pnand %p490_p0, %p200_p2 }
   0x6   : > { %v535_v0 = vld [vmem:[%s626_s1] sm:$0xff] (!%p201_p3)   ;;  %v561_v1 = vmov (!%p201_p3), 0.0   ;;  %v536_v2 = vld [vmem:[%s626_s1 + $0x8] sm:$0xff] (!%p201_p3)   ;;  %vm562_vm0 = vmmov (!%p201_p3), 0   ;;  %p245_p4 = scmp.lt.s32.totalorder (!%p201_p3), %s551_s12, 1  ;;  %vm301_vm1 = vcmask (!%p201_p3), 261120   ;;  %v353_v4 = vlaneseq (!%p201_p3) }
   0x7   : > { %204 = sbr.rel (%p201_p3) target bundleno = 235 (0xeb), region = 32  ;;  %501 = vmatprep.subr.bf16.mxu0 (!%p201_p3), %v561_v1  ;;  %505 = vmatprep.mubr.msk.bf16.mxu0 (!%p201_p3), %vm562_vm0, %v561_v1  ;;  %v351_v6 = vld [vmem:[%s627_s2] sm:$0x1] (!%p201_p3) }
   0x8   : > { %502 = vmatpush3.bf16.msra.mxu0 (!%p201_p3), %v535_v0  ;;  %v354_v5 = vshrl.u32 (!%p201_p3), %v353_v4, 7  ;;  %v352_v7 = vunpack.c.l.bf16 (!%p201_p3), %v351_v6 }
   0x9   : > { %503 = vmatprep.subr.bf16.mxu0 (!%p201_p3), %v561_v1 }
   0xa   : > { %v355_v8 = vsub.s32 (!%p201_p3), 0, %v354_v5 }
   0xc   : > { %504 = vmatpush3.bf16.msra.mxu0 (!%p201_p3), %v536_v2  ;;  %v356_v9 = vrot.slane (!%p201_p3), %v352_v7, %v355_v8 }
   0xe   : > { %s634_s12 = smov (!%p245_p4, %s551_s12), 1 }
   0xf   : > { %s491_s20 = sshll.u32 %s634_s12, 2 }
  0x10   : > { %s254_s23 = scalar_lea.vmem %s625_s0, %s491_s20  ;;  %s276_s28 = scalar_lea.vmem %s628_s3, %s491_s20 }
  0x11   : > { %v283_v3 = vld [vmem:[%s254_s23] sm:$0xf] }
  0x12   : > { %506 = vmatmul.mubr.msk.bf16.vlgmr.msra.gmra.mrb[0].mxu0 %vm301_vm1, %v283_v3 }
  0xe5   : > { %v339_v10 = vpop.f32.mrb[0].mxu0 }
  0xe6   : > { %v357_v11 = vadd.f32 %v356_v9, %v339_v10  ;;  %v507_v12 = vpop.f32.mrb[1].mxu0 }
  0xe7   : > { %v342_v13 = vpop.f32.mrb[2].mxu0 }
  0xe8   : > { %v358_v14 = vpack.c.bf16 %v357_v11, %v357_v11  ;;  %v508_v15 = vpop.f32.mrb[3].mxu0 }
  0xea   : > { %359 = vst [vmem:[%s276_s28] sm:$0xf] %v358_v14 }
  0xeb PF: > { %s13_s14 = sadd.s32 1, %s559_s14   ;;  %s629_s12 = smov %s555_s13 }
  0xec   : > { %p10_p5 = scmp.ge.s32.totalorder %s13_s14, 4   ;;  %s630_s13 = smov %s632_s15 }
  0xee   :  { %12 = sbr.rel (!%p10_p5) target bundleno = 2 (0x2), region = 76 }

// kernel: _lambda_.45
= control target key start
LH: loop header
LB: loop body
LE: loop exit
PB: predicated region body
PF: predicated region fallthrough
CT: control target
= control target key end

     0   :  { %s974_s18 = smov 0   ;;  %s976_s19 = smov 0   ;;  %s1098_s0 = inlined_call_operand.vmem [shape: bf16[2,8,128], index: 0, kind: input, shape index: {}]   ;;  %s1099_s1 = inlined_call_operand.vmem [shape: bf16[128,384], index: 1, kind: input, shape index: {}]   ;;  %s1100_s2 = inlined_call_operand.vmem [shape: bf16[1,1,384], index: 2, kind: input, shape index: {}]   ;;  %s1101_s3 = inlined_call_operand.vmem [shape: bf16[2,1,128], index: 3, kind: input, shape index: {}]   ;;  %s1102_s4 = inlined_call_operand.vmem [shape: bf16[2,1,128], index: 4, kind: input, shape index: {}]   ;;  %s1103_s5 = inlined_call_operand.vmem [shape: bf16[2,8,384], index: 5, kind: output, shape index: {}]  }
   0x1   :  { %s978_s20 = smov 0   ;;  %s980_s21 = smov 0  }
   0x2   :  { %s982_s22 = smov 0   ;;  %s984_s23 = smov 0  }
   0x3   :  { %s986_s24 = smov 0  }
   0x4 LB: > { %s33_s25 = sadd.s32 1, %s932_s22  ;;  %s41_s26 = sadd.s32 1, %s936_s23  ;;  %s940_s24 = sphi %s986_s24, %s15_s24   ;;  %s936_s23 = sphi %s984_s23, %s1109_s23   ;;  %s932_s22 = sphi %s982_s22, %s1108_s22   ;;  %s928_s21 = sphi %s980_s21, %s1107_s21   ;;  %s924_s20 = sphi %s978_s20, %s1106_s20   ;;  %s920_s19 = sphi %s976_s19, %s1105_s19   ;;  %s916_s18 = sphi %s974_s18, %s1104_s18  }
   0x5   : > { %p35_p0 = scmp.ge.s32.totalorder %s33_s25, 3  ;;  %s80_s27 = sadd.s32 1, %s920_s19 }
   0x6   : > { %p87_p1 = scmp.ne.s32.totalorder %s920_s19, %s916_s18  ;;  %p88_p2 = scmp.eq.s32.totalorder %s940_s24, 0 }
   0x7   : > { %s1111_s25 = smov (%p35_p0, %s33_s25), 0  ;;  %s1113_s26 = smov (!%p35_p0, %s41_s26), %s936_s23 }
   0x8   : > { %s76_s28 = ssub.s32 %s932_s22, %s1111_s25  ;;  %p89_p3 = por %p88_p2, %p87_p1 }
   0x9   : > { %p43_p4 = scmp.ge.s32.totalorder %s1113_s26, 2  ;;  %p78_p5 = scmp.eq.s32.totalorder %s76_s28, 0 }
   0xa   : > { %p771_p6 = scmp.ge.s32.totalorder %s940_s24, 6 }
   0xb   : > { %s1115_s26 = smov (%p43_p4, %s1113_s26), 0 }
   0xc   : > { %s1023_s29 = scalar_select %p78_p5, %s920_s19, %s80_s27  }
   0xd   : > { %221 = sbr.rel (%p771_p6) target bundleno = 34 (0x22), region = 16 }
  0x14   : > { %237 = sbr.rel (!%p89_p3) target bundleno = 34 (0x22), region = 24  ;;  %s239_s30 = sand.u32 (%p89_p3), 1, %s920_s19  }
  0x15   : > { %s773_s6 = sshll.u32 (%p89_p3), %s932_s22, 2  ;;  %s772_s7 = sshll.u32 (%p89_p3), %s239_s30, 6 }
  0x16   : > { %s1031_s10 = scalar_lea.vmem (%p89_p3), %s1099_s1, %s773_s6  ;;  %s241_s11 = scalar_lea.vmem (%p89_p3), [#allocation3], %s772_s7 }
  0x17   : > { %v262_v0 = vld [vmem:[%s1031_s10] sm:$0xf] (%p89_p3)  ;;  %v264_v1 = vld [vmem:[%s1031_s10 + $0xc] sm:$0xf] (%p89_p3)  ;;  %v266_v2 = vld [vmem:[%s1031_s10 + $0x18] sm:$0xf] (%p89_p3) }
  0x18   : > { %263 = vst [vmem:[%s241_s11] sm:$0xf] (%p89_p3), %v262_v0  ;;  %265 = vst [vmem:[%s241_s11 + $0x4] sm:$0xf] (%p89_p3), %v264_v1  ;;  %v268_v3 = vld [vmem:[%s1031_s10 + $0x24] sm:$0xf] (%p89_p3) }
  0x19   : > { %v270_v4 = vld [vmem:[%s1031_s10 + $0x30] sm:$0xf] (%p89_p3)  ;;  %267 = vst [vmem:[%s241_s11 + $0x8] sm:$0xf] (%p89_p3), %v266_v2  ;;  %269 = vst [vmem:[%s241_s11 + $0xc] sm:$0xf] (%p89_p3), %v268_v3 }
  0x1a   : > { %271 = vst [vmem:[%s241_s11 + $0x10] sm:$0xf] (%p89_p3), %v270_v4  ;;  %v272_v5 = vld [vmem:[%s1031_s10 + $0x3c] sm:$0xf] (%p89_p3)  ;;  %v274_v6 = vld [vmem:[%s1031_s10 + $0x48] sm:$0xf] (%p89_p3) }
  0x1b   : > { %v276_v7 = vld [vmem:[%s1031_s10 + $0x54] sm:$0xf]  ;;  %273 = vst [vmem:[%s241_s11 + $0x14] sm:$0xf] %v272_v5  ;;  %275 = vst [vmem:[%s241_s11 + $0x18] sm:$0xf] %v274_v6 }
  0x1c   : > { %277 = vst [vmem:[%s241_s11 + $0x1c] sm:$0xf] %v276_v7  ;;  %v278_v8 = vld [vmem:[%s1031_s10 + $0x60] sm:$0xf]  ;;  %v280_v9 = vld [vmem:[%s1031_s10 + $0x6c] sm:$0xf] }
  0x1d   : > { %v282_v10 = vld [vmem:[%s1031_s10 + $0x78] sm:$0xf]  ;;  %279 = vst [vmem:[%s241_s11 + $0x20] sm:$0xf] %v278_v8  ;;  %281 = vst [vmem:[%s241_s11 + $0x24] sm:$0xf] %v280_v9 }
  0x1e   : > { %283 = vst [vmem:[%s241_s11 + $0x28] sm:$0xf] %v282_v10  ;;  %v284_v11 = vld [vmem:[%s1031_s10 + $0x84] sm:$0xf]  ;;  %v286_v12 = vld [vmem:[%s1031_s10 + $0x90] sm:$0xf] }
  0x1f   : > { %v288_v13 = vld [vmem:[%s1031_s10 + $0x9c] sm:$0xf]  ;;  %285 = vst [vmem:[%s241_s11 + $0x2c] sm:$0xf] %v284_v11  ;;  %287 = vst [vmem:[%s241_s11 + $0x30] sm:$0xf] %v286_v12 }
  0x20   : > { %289 = vst [vmem:[%s241_s11 + $0x34] sm:$0xf] %v288_v13  ;;  %v290_v14 = vld [vmem:[%s1031_s10 + $0xa8] sm:$0xf]  ;;  %v292_v15 = vld [vmem:[%s1031_s10 + $0xb4] sm:$0xf] }
  0x21   : > { %291 = vst [vmem:[%s241_s11 + $0x38] sm:$0xf] %v290_v14  ;;  %293 = vst [vmem:[%s241_s11 + $0x3c] sm:$0xf] %v292_v15 }
  0x22 PF: > { %p774_p7 = scmp.ge.s32.totalorder %s940_s24, 1  ;;  %p365_p8 = scmp.lt.s32.totalorder %s940_s24, 7 }
  0x24   : > { %p366_p9 = pnand %p774_p7, %p365_p8 }
  0x25   : > { %p425_p10 = scmp.lt.s32.totalorder (!%p366_p9), %s928_s21, 1  ;;  %s372_s16 = sand.u32 (!%p366_p9), 1, %s916_s18   ;;  %v942_v18 = vmov (!%p366_p9), 0.0   ;;  %vm943_vm0 = vmmov (!%p366_p9), 0   ;;  %v482_v33 = vlaneseq (!%p366_p9) }
  0x26   : > { %369 = sbr.rel (%p366_p9) target bundleno = 581 (0x245), region = 77  ;;  %797 = vmatprep.subr.bf16.mxu0 (!%p366_p9), %v942_v18  ;;  %s775_s17 = sshll.u32 (!%p366_p9), %s372_s16, 6  ;;  %813 = vmatprep.mubr.msk.bf16.mxu0 (!%p366_p9), %vm943_vm0, %v942_v18 }
  0x27   : > { %s374_s27 = scalar_lea.vmem (!%p366_p9), [#allocation3], %s775_s17  ;;  %v483_v37 = vshrl.u32 (!%p366_p9), %v482_v33, 7  ;;  %p436_p11 = scmp.lt.s32.totalorder (!%p366_p9), %s924_s20, 2 }
  0x28   : > { %v876_v19 = vld [vmem:[%s374_s27] sm:$0xff] (!%p366_p9)   ;;  %v877_v20 = vld [vmem:[%s374_s27 + $0x8] sm:$0xff] (!%p366_p9)   ;;  %v878_v25 = vld [vmem:[%s374_s27 + $0x10] sm:$0xff] (!%p366_p9)  }
  0x29   : > { %798 = vmatpush3.bf16.msra.mxu0 (!%p366_p9), %v876_v19  ;;  %v879_v26 = vld [vmem:[%s374_s27 + $0x18] sm:$0xff] (!%p366_p9)   ;;  %v880_v27 = vld [vmem:[%s374_s27 + $0x20] sm:$0xff] (!%p366_p9)   ;;  %v881_v28 = vld [vmem:[%s374_s27 + $0x28] sm:$0xff] (!%p366_p9)   ;;  %v484_v40 = vsub.s32 (!%p366_p9), 0, %v483_v37 }
  0x2a   : > { %799 = vmatprep.subr.bf16.mxu0 (!%p366_p9), %v942_v18  ;;  %v882_v29 = vld [vmem:[%s374_s27 + $0x30] sm:$0xff] (!%p366_p9)   ;;  %v883_v30 = vld [vmem:[%s374_s27 + $0x38] sm:$0xff] (!%p366_p9)  }
  0x2d   : > { %s1117_s21 = smov (!%p425_p10, %s928_s21), 1  ;;  %800 = vmatpush3.bf16.msra.mxu0 %v877_v20  ;;  %s1119_s20 = smov (!%p436_p11, %s924_s20), 2 }
  0x2e   : > { %s776_s12 = sshll.u32 %s1117_s21, 2  ;;  %801 = vmatprep.subr.bf16.mxu0 %v942_v18  ;;  %s441_s30 = scalar_lea.vmem %s1101_s3, %s1117_s21 }
  0x2f   : > { %s434_s15 = scalar_lea.vmem %s1098_s0, %s776_s12  ;;  %v477_v35 = vld [vmem:[%s441_s30] sm:$0x1]  ;;  %s444_s8 = scalar_lea.vmem %s1102_s4, %s1117_s21 }
  0x30   : > { %v463_v16 = vld [vmem:[%s434_s15] sm:$0xf]  ;;  %v478_v36 = vunpack.c.l.bf16 %v477_v35  ;;  %s438_s11 = scalar_lea.vmem %s1100_s2, %s1119_s20  ;;  %s817_s12 = smul.u32 3, %s1117_s21 }
  0x31   : > { %v464_v17 = vunpack.c.l.bf16 %v463_v16  ;;  %802 = vmatpush3.bf16.msra.mxu0 %v878_v25  ;;  %v479_v38 = vld [vmem:[%s444_s8] sm:$0x1] }
  0x32   : > { %803 = vmatprep.subr.bf16.mxu0 %v942_v18  ;;  %v481_v39 = vadd.f32 1.0, %v478_v36  ;;  %v480_v41 = vunpack.c.l.bf16 %v479_v38  ;;  %v604_v49 = vld [vmem:[%s438_s11] sm:$0x1]  ;;  %s454_s13 = sadd.s32 %s817_s12, %s1119_s20 }
  0x33   : > { %465 = vadd.xlane.f32.xlu0 %v464_v17  ;;  %v605_v50 = vunpack.c.l.bf16 %v604_v49  ;;  %s777_s14 = sshll.u32 %s454_s13, 2 }
  0x34   : > { %v485_v42 = vrot.slane %v481_v39, %v484_v40  ;;  %v490_v45 = vrot.slane %v480_v41, %v484_v40  ;;  %s456_s17 = scalar_lea.vmem %s1103_s5, %s777_s14 }
  0x35   : > { %804 = vmatpush3.bf16.msra.mxu0 %v879_v26  ;;  %v609_v51 = vrot.slane %v605_v50, %v484_v40 }
  0x36   : > { %805 = vmatprep.subr.bf16.mxu0 %v942_v18 }
  0x39   : > { %806 = vmatpush3.bf16.msra.mxu0 %v880_v27 }
  0x3a   : > { %807 = vmatprep.subr.bf16.mxu0 %v942_v18 }
  0x3d   : > { %808 = vmatpush3.bf16.msra.mxu0 %v881_v28 }
  0x3e   : > { %809 = vmatprep.subr.bf16.mxu0 %v942_v18 }
  0x41   : > { %810 = vmatpush3.bf16.msra.mxu0 %v882_v29 }
  0x42   : > { %811 = vmatprep.subr.bf16.mxu0 %v942_v18 }
  0x45   : > { %812 = vmatpush3.bf16.msra.mxu0 %v883_v30 }
  0xc0   : > { %v466_v21 = vpop.xlane.xlu0 %465 }
  0xc1   : > { %v468_v22 = vmul.f32 0.0078125, %v466_v21 }
  0xc3   : > { %v469_v23 = vsub.f32 %v464_v17, %v468_v22 }
  0xc5   : > { %v470_v24 = vmul.f32 %v469_v23, %v469_v23 }
  0xc7   : > { %471 = vadd.xlane.f32.xlu0 %v470_v24 }
 0x154   : > { %v472_v31 = vpop.xlane.xlu0 %471 }
 0x155   : > { %v473_v32 = vmul.f32 0.0078125, %v472_v31 }
 0x157   : > { %v474_v34 = vadd.f32 1e-06, %v473_v32 }
 0x159   : > { %884 = vrsqrt.f32 %v474_v34 }
 0x163   : > { %v885_v43 = vpop.eup %884 }
 0x164   : > { %v476_v44 = vmul.f32 %v885_v43, %v469_v23 }
 0x166   : > { %v486_v46 = vmul.f32 %v485_v42, %v476_v44 }
 0x168   : > { %v491_v47 = vadd.f32 %v490_v45, %v486_v46 }
 0x16a   : > { %v492_v48 = vpack.c.bf16 %v491_v47, %v491_v47 }
 0x16c   : > { %814 = vmatmul.mubr.bf16.vlgmr.msra.gmra.mrb[0].mxu0 %v492_v48 }
 0x23f   : > { %v592_v52 = vpop.f32.mrb[0].mxu0 }
 0x240   : > { %v610_v53 = vadd.f32 %v609_v51, %v592_v52  ;;  %v815_v54 = vpop.f32.mrb[1].mxu0 }
 0x241   : > { %v595_v55 = vpop.f32.mrb[2].mxu0 }
 0x242   : > { %v611_v56 = vpack.c.bf16 %v610_v53, %v610_v53  ;;  %v816_v57 = vpop.f32.mrb[3].mxu0 }
 0x244   : > { %612 = vst [vmem:[%s456_s17] sm:$0xf] %v611_v56 }
 0x245 PF: > { %s15_s24 = sadd.s32 1, %s940_s24   ;;  %s1104_s18 = smov %s920_s19 }
 0x246   : > { %p12_p12 = scmp.ge.s32.totalorder %s15_s24, 8   ;;  %s1105_s19 = smov %s1023_s29 }
 0x247   : > { %s1106_s20 = smov %s932_s22  ;;  %s1107_s21 = smov %s936_s23 }
 0x248   : > { %s1108_s22 = smov %s1111_s25  ;;  %s1109_s23 = smov %s1115_s26 }
 0x249   :  { %14 = sbr.rel (!%p12_p12) target bundleno = 4 (0x4), region = 136 }

// kernel: _lambda_.39
= control target key start
LH: loop header
LB: loop body
LE: loop exit
PB: predicated region body
PF: predicated region fallthrough
CT: control target
= control target key end

     0   :  { %s570_s12 = smov 0   ;;  %s572_s13 = smov 0   ;;  %s609_s0 = inlined_call_operand.vmem [shape: bf16[2,8,16], index: 0, kind: input, shape index: {}]   ;;  %s610_s1 = inlined_call_operand.vmem [shape: bf16[16,128], index: 1, kind: input, shape index: {}]   ;;  %s611_s2 = inlined_call_operand.vmem [shape: bf16[1,1,128], index: 2, kind: input, shape index: {}]   ;;  %s612_s3 = inlined_call_operand.vmem [shape: bf16[2,8,128], index: 3, kind: output, shape index: {}]  }
   0x1   :  { %s574_s14 = smov 0  }
   0x2 LB: > { %s39_s15 = sadd.s32 1, %s542_s13  ;;  %p482_p0 = scmp.ge.s32.totalorder %s546_s14, 1  ;;  %s546_s14 = sphi %s574_s14, %s13_s14   ;;  %s542_s13 = sphi %s572_s13, %s614_s13   ;;  %s538_s12 = sphi %s570_s12, %s613_s12  }
   0x3   : > { %p41_p1 = scmp.ge.s32.totalorder %s39_s15, 2  ;;  %p200_p2 = scmp.lt.s32.totalorder %s546_s14, 3 }
   0x5   : > { %s616_s15 = smov (%p41_p1, %s39_s15), 0  ;;  %p201_p3 = pnand %p482_p0, %p200_p2 }
   0x6   : > { %v523_v0 = vld [vmem:[%s610_s1] sm:$0xff] (!%p201_p3)   ;;  %v548_v1 = vmov (!%p201_p3), 0.0   ;;  %p245_p4 = scmp.lt.s32.totalorder (!%p201_p3), %s538_s12, 1  ;;  %vm549_vm0 = vmmov (!%p201_p3), 0   ;;  %vm293_vm1 = vcmask (!%p201_p3), 130048   ;;  %v345_v3 = vlaneseq (!%p201_p3) }
   0x7   : > { %204 = sbr.rel (%p201_p3) target bundleno = 235 (0xeb), region = 32  ;;  %491 = vmatprep.subr.bf16.mxu0 (!%p201_p3), %v548_v1  ;;  %493 = vmatprep.mubr.msk.bf16.mxu0 (!%p201_p3), %vm549_vm0, %v548_v1  ;;  %v343_v5 = vld [vmem:[%s611_s2] sm:$0x1] (!%p201_p3) }
   0x8   : > { %492 = vmatpush3.bf16.msra.mxu0 (!%p201_p3), %v523_v0  ;;  %v346_v4 = vshrl.u32 (!%p201_p3), %v345_v3, 7  ;;  %v344_v6 = vunpack.c.l.bf16 (!%p201_p3), %v343_v5 }
   0xa   : > { %v347_v7 = vsub.s32 (!%p201_p3), 0, %v346_v4 }
   0xc   : > { %v348_v8 = vrot.slane (!%p201_p3), %v344_v6, %v347_v7 }
   0xe   : > { %s618_s12 = smov (!%p245_p4, %s538_s12), 1 }
   0xf   : > { %s483_s18 = sshll.u32 %s618_s12, 2 }
  0x10   : > { %s254_s21 = scalar_lea.vmem %s609_s0, %s483_s18  ;;  %s276_s26 = scalar_lea.vmem %s612_s3, %s483_s18 }
  0x11   : > { %v283_v2 = vld [vmem:[%s254_s21] sm:$0xf] }
  0x12   : > { %494 = vmatmul.mubr.msk.bf16.vlgmr.msra.gmra.mrb[0].mxu0 %vm293_vm1, %v283_v2 }
  0xe5   : > { %v331_v9 = vpop.f32.mrb[0].mxu0 }
  0xe6   : > { %v349_v10 = vadd.f32 %v348_v8, %v331_v9  ;;  %v495_v11 = vpop.f32.mrb[1].mxu0 }
  0xe7   : > { %v334_v12 = vpop.f32.mrb[2].mxu0 }
  0xe8   : > { %v350_v13 = vpack.c.bf16 %v349_v10, %v349_v10  ;;  %v496_v14 = vpop.f32.mrb[3].mxu0 }
  0xea   : > { %351 = vst [vmem:[%s276_s26] sm:$0xf] %v350_v13 }
  0xeb PF: > { %s13_s14 = sadd.s32 1, %s546_s14   ;;  %s613_s12 = smov %s542_s13 }
  0xec   : > { %p10_p5 = scmp.ge.s32.totalorder %s13_s14, 4   ;;  %s614_s13 = smov %s616_s15 }
  0xee   :  { %12 = sbr.rel (!%p10_p5) target bundleno = 2 (0x2), region = 76 }

// kernel: _lambda_.50
= control target key start
LH: loop header
LB: loop body
LE: loop exit
PB: predicated region body
PF: predicated region fallthrough
CT: control target
= control target key end

     0   :  { %s825_s18 = smov 0   ;;  %s827_s19 = smov 0   ;;  %s900_s0 = inlined_call_operand.vmem [shape: bf16[2,8,128], index: 0, kind: input, shape index: {}]   ;;  %s901_s1 = inlined_call_operand.vmem [shape: bf16[128,128], index: 1, kind: input, shape index: {}]   ;;  %s902_s2 = inlined_call_operand.vmem [shape: bf16[1,1,128], index: 2, kind: input, shape index: {}]   ;;  %s903_s3 = inlined_call_operand.vmem [shape: bf16[2,8,128], index: 3, kind: input, shape index: {}]   ;;  %s904_s4 = inlined_call_operand.vmem [shape: bf16[2,1,128], index: 4, kind: input, shape index: {}]   ;;  %s905_s5 = inlined_call_operand.vmem [shape: bf16[2,8,128], index: 5, kind: output, shape index: {}]  }
   0x1   :  { %s829_s20 = smov 0  }
   0x2 LB: > { %s41_s21 = sadd.s32 1, %s787_s19  ;;  %p692_p0 = scmp.ge.s32.totalorder %s791_s20, 1  ;;  %s791_s20 = sphi %s829_s20, %s15_s20   ;;  %s787_s19 = sphi %s827_s19, %s907_s19   ;;  %s783_s18 = sphi %s825_s18, %s906_s18  }
   0x3   : > { %p43_p1 = scmp.ge.s32.totalorder %s41_s21, 2  ;;  %p282_p2 = scmp.lt.s32.totalorder %s791_s20, 3 }
   0x5   : > { %s909_s21 = smov (%p43_p1, %s41_s21), 0  ;;  %p283_p3 = pnand %p692_p0, %p282_p2 }
   0x6   : > { %v761_v0 = vld [vmem:[%s901_s1] sm:$0xff] (!%p283_p3)   ;;  %v793_v1 = vmov (!%p283_p3), 0.0   ;;  %v762_v2 = vld [vmem:[%s901_s1 + $0x8] sm:$0xff] (!%p283_p3)   ;;  %vm794_vm0 = vmmov (!%p283_p3), 0   ;;  %v763_v3 = vld [vmem:[%s901_s1 + $0x10] sm:$0xff] (!%p283_p3)   ;;  %p347_p4 = scmp.lt.s32.totalorder (!%p283_p3), %s783_s18, 1  ;;  %v515_v10 = vlaneseq (!%p283_p3) }
   0x7   : > { %286 = sbr.rel (%p283_p3) target bundleno = 260 (0x104), region = 40  ;;  %715 = vmatprep.subr.bf16.mxu0 (!%p283_p3), %v793_v1  ;;  %731 = vmatprep.mubr.msk.bf16.mxu0 (!%p283_p3), %vm794_vm0, %v793_v1  ;;  %v764_v4 = vld [vmem:[%s901_s1 + $0x18] sm:$0xff] (!%p283_p3)   ;;  %v765_v5 = vld [vmem:[%s901_s1 + $0x20] sm:$0xff] (!%p283_p3)   ;;  %v766_v6 = vld [vmem:[%s901_s1 + $0x28] sm:$0xff] (!%p283_p3)  }
   0x8   : > { %716 = vmatpush3.bf16.msra.mxu0 (!%p283_p3), %v761_v0  ;;  %v767_v7 = vld [vmem:[%s901_s1 + $0x30] sm:$0xff] (!%p283_p3)   ;;  %v768_v8 = vld [vmem:[%s901_s1 + $0x38] sm:$0xff] (!%p283_p3)   ;;  %v516_v11 = vshrl.u32 (!%p283_p3), %v515_v10, 7  ;;  %v513_v12 = vld [vmem:[%s902_s2] sm:$0x1] (!%p283_p3) }
   0x9   : > { %717 = vmatprep.subr.bf16.mxu0 (!%p283_p3), %v793_v1  ;;  %v514_v14 = vunpack.c.l.bf16 (!%p283_p3), %v513_v12 }
   0xa   : > { %v517_v15 = vsub.s32 (!%p283_p3), 0, %v516_v11 }
   0xc   : > { %718 = vmatpush3.bf16.msra.mxu0 (!%p283_p3), %v762_v2  ;;  %v518_v17 = vrot.slane (!%p283_p3), %v514_v14, %v517_v15 }
   0xd   : > { %719 = vmatprep.subr.bf16.mxu0 (!%p283_p3), %v793_v1 }
   0xe   : > { %s911_s18 = smov (!%p347_p4, %s783_s18), 1 }
   0xf   : > { %s868_s11 = sshll.u32 %s911_s18, 2  ;;  %s384_s23 = scalar_lea.vmem %s904_s4, %s911_s18 }
  0x10   : > { %720 = vmatpush3.bf16.msra.mxu0 %v763_v3  ;;  %s356_s16 = scalar_lea.vmem %s900_s0, %s868_s11  ;;  %v522_v13 = vld [vmem:[%s384_s23] sm:$0x1]  ;;  %s378_s28 = scalar_lea.vmem %s903_s3, %s868_s11 }
  0x11   : > { %721 = vmatprep.subr.bf16.mxu0 %v793_v1  ;;  %v401_v9 = vld [vmem:[%s356_s16] sm:$0xf]  ;;  %v523_v16 = vunpack.c.l.bf16 %v522_v13  ;;  %s394_s30 = scalar_lea.vmem %s905_s5, %s868_s11 }
  0x12   : > { %v520_v18 = vld [vmem:[%s378_s28] sm:$0xf] }
  0x13   : > { %v527_v19 = vrot.slane %v523_v16, %v517_v15  ;;  %v521_v22 = vunpack.c.l.bf16 %v520_v18 }
  0x14   : > { %722 = vmatpush3.bf16.msra.mxu0 %v764_v4 }
  0x15   : > { %723 = vmatprep.subr.bf16.mxu0 %v793_v1 }
  0x18   : > { %724 = vmatpush3.bf16.msra.mxu0 %v765_v5 }
  0x19   : > { %725 = vmatprep.subr.bf16.mxu0 %v793_v1 }
  0x1c   : > { %726 = vmatpush3.bf16.msra.mxu0 %v766_v6 }
  0x1d   : > { %727 = vmatprep.subr.bf16.mxu0 %v793_v1 }
  0x20   : > { %728 = vmatpush3.bf16.msra.mxu0 %v767_v7 }
  0x21   : > { %729 = vmatprep.subr.bf16.mxu0 %v793_v1 }
  0x24   : > { %730 = vmatpush3.bf16.msra.mxu0 %v768_v8 }
  0x27   : > { %732 = vmatmul.mubr.bf16.vlgmr.msra.gmra.mrb[0].mxu0 %v401_v9 }
  0xfa   : > { %v501_v20 = vpop.f32.mrb[0].mxu0 }
  0xfb   : > { %v519_v21 = vadd.f32 %v518_v17, %v501_v20  ;;  %v733_v23 = vpop.f32.mrb[1].mxu0 }
  0xfc   : > { %v504_v24 = vpop.f32.mrb[2].mxu0 }
  0xfd   : > { %v528_v25 = vmul.f32 %v527_v19, %v519_v21  ;;  %v734_v26 = vpop.f32.mrb[3].mxu0 }
  0xff   : > { %v529_v27 = vadd.f32 %v528_v25, %v521_v22 }
 0x101   : > { %v530_v28 = vpack.c.bf16 %v529_v27, %v529_v27 }
 0x103   : > { %531 = vst [vmem:[%s394_s30] sm:$0xf] %v530_v28 }
 0x104 PF: > { %s15_s20 = sadd.s32 1, %s791_s20   ;;  %s906_s18 = smov %s787_s19 }
 0x105   : > { %p12_p5 = scmp.ge.s32.totalorder %s15_s20, 4   ;;  %s907_s19 = smov %s909_s21 }
 0x107   :  { %14 = sbr.rel (!%p12_p5) target bundleno = 2 (0x2), region = 90 }

// kernel: _lambda_.52
= control target key start
LH: loop header
LB: loop body
LE: loop exit
PB: predicated region body
PF: predicated region fallthrough
CT: control target
= control target key end

     0   :  { %s1158_s18 = smov 0   ;;  %s1160_s19 = smov 0   ;;  %s1305_s0 = inlined_call_operand.vmem [shape: bf16[2,8,512], index: 0, kind: input, shape index: {}]   ;;  %s1306_s1 = inlined_call_operand.vmem [shape: bf16[512,128], index: 1, kind: input, shape index: {}]   ;;  %s1307_s2 = inlined_call_operand.vmem [shape: bf16[1,1,128], index: 2, kind: input, shape index: {}]   ;;  %s1308_s3 = inlined_call_operand.vmem [shape: bf16[2,8,128], index: 3, kind: input, shape index: {}]   ;;  %s1309_s4 = inlined_call_operand.vmem [shape: bf16[2,1,128], index: 4, kind: input, shape index: {}]   ;;  %s1310_s5 = inlined_call_operand.vmem [shape: bf16[2,8,128], index: 5, kind: output, shape index: {}]  }
   0x1   :  { %s1162_s20 = smov 0  }
   0x2 LB: > { %s41_s21 = sadd.s32 1, %s1122_s19  ;;  %p956_p0 = scmp.ge.s32.totalorder %s1126_s20, 1  ;;  %s1126_s20 = sphi %s1162_s20, %s15_s20   ;;  %s1122_s19 = sphi %s1160_s19, %s1312_s19   ;;  %s1118_s18 = sphi %s1158_s18, %s1311_s18  }
   0x3   : > { %p43_p1 = scmp.ge.s32.totalorder %s41_s21, 2  ;;  %p286_p2 = scmp.lt.s32.totalorder %s1126_s20, 3 }
   0x5   : > { %s1314_s21 = smov (%p43_p1, %s41_s21), 0  ;;  %p287_p3 = pnand %p956_p0, %p286_p2 }
   0x6   : > { %v1068_v0 = vld [vmem:[%s1306_s1 + $0x40] sm:$0xff] (!%p287_p3)   ;;  %v1072_v4 = vld [vmem:[%s1306_s1 + $0x48] sm:$0xff] (!%p287_p3)   ;;  %v1076_v8 = vld [vmem:[%s1306_s1 + $0x50] sm:$0xff] (!%p287_p3)   ;;  %p355_p4 = scmp.lt.s32.totalorder (!%p287_p3), %s1118_s18, 1  ;;  %v773_v38 = vlaneseq (!%p287_p3) }
   0x7   : > { %290 = sbr.rel (%p287_p3) target bundleno = 267 (0x10b), region = 40  ;;  %v1069_v1 = vld [vmem:[%s1306_s1 + $0xc0] sm:$0xff] (!%p287_p3)   ;;  %1000 = vmatprep.subr.bf16.mxu0 (!%p287_p3), %v1068_v0  ;;  %v1073_v5 = vld [vmem:[%s1306_s1 + $0xc8] sm:$0xff] (!%p287_p3)   ;;  %v1077_v9 = vld [vmem:[%s1306_s1 + $0xd0] sm:$0xff] (!%p287_p3)  }
   0x8   : > { %v1070_v2 = vld [vmem:[%s1306_s1] sm:$0xff] (!%p287_p3)   ;;  %1022 = vmatprep.subr.bf16.mxu1 (!%p287_p3), %v1069_v1  ;;  %v1074_v6 = vld [vmem:[%s1306_s1 + $0x8] sm:$0xff] (!%p287_p3)   ;;  %v1078_v10 = vld [vmem:[%s1306_s1 + $0x10] sm:$0xff] (!%p287_p3)   ;;  %v774_v39 = vshrl.u32 (!%p287_p3), %v773_v38, 7 }
   0x9   : > { %v1071_v3 = vld [vmem:[%s1306_s1 + $0x80] sm:$0xff] (!%p287_p3)   ;;  %1001 = vmatpush3.bf16.msra.mxu0 (!%p287_p3), %v1070_v2  ;;  %v1075_v7 = vld [vmem:[%s1306_s1 + $0x88] sm:$0xff] (!%p287_p3)   ;;  %v1079_v11 = vld [vmem:[%s1306_s1 + $0x90] sm:$0xff] (!%p287_p3)  }
   0xa   : > { %1023 = vmatpush3.bf16.msra.mxu1 (!%p287_p3), %v1071_v3  ;;  %1002 = vmatprep.subr.bf16.mxu0 (!%p287_p3), %v1072_v4  ;;  %v1080_v12 = vld [vmem:[%s1306_s1 + $0x58] sm:$0xff] (!%p287_p3)   ;;  %v1084_v16 = vld [vmem:[%s1306_s1 + $0x60] sm:$0xff] (!%p287_p3)   ;;  %v1088_v20 = vld [vmem:[%s1306_s1 + $0x68] sm:$0xff] (!%p287_p3)   ;;  %v775_v43 = vsub.s32 (!%p287_p3), 0, %v774_v39 }
   0xb   : > { %1024 = vmatprep.subr.bf16.mxu1 (!%p287_p3), %v1073_v5  ;;  %v1081_v13 = vld [vmem:[%s1306_s1 + $0xd8] sm:$0xff] (!%p287_p3)   ;;  %v1085_v17 = vld [vmem:[%s1306_s1 + $0xe0] sm:$0xff] (!%p287_p3)   ;;  %v1089_v21 = vld [vmem:[%s1306_s1 + $0xe8] sm:$0xff] (!%p287_p3)  }
   0xc   : > { %v1082_v14 = vld [vmem:[%s1306_s1 + $0x18] sm:$0xff] (!%p287_p3)   ;;  %v1086_v18 = vld [vmem:[%s1306_s1 + $0x20] sm:$0xff] (!%p287_p3)   ;;  %v1090_v22 = vld [vmem:[%s1306_s1 + $0x28] sm:$0xff] (!%p287_p3)  }
   0xd   : > { %1003 = vmatpush3.bf16.msra.mxu0 (!%p287_p3), %v1074_v6  ;;  %v1083_v15 = vld [vmem:[%s1306_s1 + $0x98] sm:$0xff] (!%p287_p3)   ;;  %v1087_v19 = vld [vmem:[%s1306_s1 + $0xa0] sm:$0xff] (!%p287_p3)   ;;  %v1091_v23 = vld [vmem:[%s1306_s1 + $0xa8] sm:$0xff] (!%p287_p3)  }
   0xe   : > { %1025 = vmatpush3.bf16.msra.mxu1 %v1075_v7  ;;  %1004 = vmatprep.subr.bf16.mxu0 %v1076_v8  ;;  %s1316_s18 = smov (!%p355_p4, %s1118_s18), 1  ;;  %v1092_v24 = vld [vmem:[%s1306_s1 + $0x70] sm:$0xff]   ;;  %v1096_v28 = vld [vmem:[%s1306_s1 + $0x78] sm:$0xff]   ;;  %v771_v40 = vld [vmem:[%s1307_s2] sm:$0x1] }
   0xf   : > { %1026 = vmatprep.subr.bf16.mxu1 %v1077_v9  ;;  %v1093_v25 = vld [vmem:[%s1306_s1 + $0xf0] sm:$0xff]   ;;  %s999_s9 = sshll.u32 %s1316_s18, 4  ;;  %v1097_v29 = vld [vmem:[%s1306_s1 + $0xf8] sm:$0xff]   ;;  %s395_s29 = scalar_lea.vmem %s1309_s4, %s1316_s18  ;;  %v772_v42 = vunpack.c.l.bf16 %v771_v40 }
  0x10   : > { %v1094_v26 = vld [vmem:[%s1306_s1 + $0x30] sm:$0xff]   ;;  %s366_s22 = scalar_lea.vmem %s1305_s0, %s999_s9  ;;  %v1098_v30 = vld [vmem:[%s1306_s1 + $0x38] sm:$0xff]   ;;  %s959_s7 = sshll.u32 %s1316_s18, 2  ;;  %v780_v41 = vld [vmem:[%s395_s29] sm:$0x1] }
  0x11   : > { %1005 = vmatpush3.bf16.msra.mxu0 %v1078_v10  ;;  %v1095_v27 = vld [vmem:[%s1306_s1 + $0xb0] sm:$0xff]   ;;  %v1099_v31 = vld [vmem:[%s1306_s1 + $0xb8] sm:$0xff]   ;;  %v412_v32 = vld [vmem:[%s366_s22] sm:$0xff]  ;;  %s389_s10 = scalar_lea.vmem %s1308_s3, %s959_s7  ;;  %v781_v46 = vunpack.c.l.bf16 %v780_v41  ;;  %v776_v51 = vrot.slane %v772_v42, %v775_v43  ;;  %s405_s12 = scalar_lea.vmem %s1310_s5, %s959_s7 }
  0x12   : > { %1027 = vmatpush3.bf16.msra.mxu1 %v1079_v11  ;;  %1006 = vmatprep.subr.bf16.mxu0 %v1080_v12  ;;  %v413_v33 = vld [vmem:[%s366_s22 + $0x8] sm:$0xff]  ;;  %v961_v34 = vcombine.low %v412_v32, %v412_v32  ;;  %v962_v35 = vcombine.high %v412_v32, %v412_v32  ;;  %v778_v54 = vld [vmem:[%s389_s10] sm:$0xf] }
  0x13   : > { %1028 = vmatprep.subr.bf16.mxu1 %v1081_v13  ;;  %v963_v36 = vcombine.low %v413_v33, %v413_v33  ;;  %v964_v37 = vcombine.high %v413_v33, %v413_v33  ;;  %v785_v58 = vrot.slane %v781_v46, %v775_v43  ;;  %v779_v60 = vunpack.c.l.bf16 %v778_v54 }
  0x14   : > { %717 = vmatprep.mubr.bf16.mxu0 %v962_v35 }
  0x15   : > { %1007 = vmatpush3.bf16.msra.mxu0 %v1082_v14  ;;  %757 = vmatprep.mubr.bf16.mxu1 %v964_v37 }
  0x16   : > { %1029 = vmatpush3.bf16.msra.mxu1 %v1083_v15  ;;  %1008 = vmatprep.subr.bf16.mxu0 %v1084_v16 }
  0x17   : > { %1030 = vmatprep.subr.bf16.mxu1 %v1085_v17 }
  0x19   : > { %1009 = vmatpush3.bf16.msra.mxu0 %v1086_v18 }
  0x1a   : > { %1031 = vmatpush3.bf16.msra.mxu1 %v1087_v19  ;;  %1010 = vmatprep.subr.bf16.mxu0 %v1088_v20 }
  0x1b   : > { %1032 = vmatprep.subr.bf16.mxu1 %v1089_v21 }
  0x1d   : > { %1011 = vmatpush3.bf16.msra.mxu0 %v1090_v22 }
  0x1e   : > { %1033 = vmatpush3.bf16.msra.mxu1 %v1091_v23  ;;  %1012 = vmatprep.subr.bf16.mxu0 %v1092_v24 }
  0x1f   : > { %1034 = vmatprep.subr.bf16.mxu1 %v1093_v25 }
  0x21   : > { %1013 = vmatpush3.bf16.msra.mxu0 %v1094_v26 }
  0x22   : > { %1035 = vmatpush3.bf16.msra.mxu1 %v1095_v27  ;;  %1014 = vmatprep.subr.bf16.mxu0 %v1096_v28 }
  0x23   : > { %1036 = vmatprep.subr.bf16.mxu1 %v1097_v29 }
  0x25   : > { %1015 = vmatpush3.bf16.msra.mxu0 %v1098_v30 }
  0x26   : > { %1037 = vmatpush3.bf16.msra.mxu1 %v1099_v31 }
  0x28   : > { %718 = vmatmul.mubr.bf16.vlgmr.msra.gmra.mrb[0].mxu0 %v961_v34 }
  0x29   : > { %758 = vmatmul.mubr.bf16.vlgmr.msra.gmra.mrb[0].mxu1 %v963_v36 }
  0xfb   : > { %v1016_v44 = vpop.f32.mrb[0].mxu0 }
  0xfc   : > { %v1038_v45 = vpop.f32.mrb[0].mxu1  ;;  %v1017_v47 = vpop.f32.mrb[1].mxu0 }
  0xfd   : > { %v1039_v48 = vpop.f32.mrb[1].mxu1  ;;  %v1018_v49 = vadd.f32 %v1017_v47, %v1016_v44  ;;  %v1019_v52 = vpop.f32.mrb[2].mxu0 }
  0xfe   : > { %v1040_v50 = vadd.f32 %v1039_v48, %v1038_v45  ;;  %v1041_v53 = vpop.f32.mrb[2].mxu1  ;;  %v1020_v55 = vpop.f32.mrb[3].mxu0 }
  0xff   : > { %v1042_v56 = vpop.f32.mrb[3].mxu1 }
 0x100   : > { %v760_v57 = vadd.f32 %v1040_v50, %v1018_v49 }
 0x102   : > { %v777_v59 = vadd.f32 %v776_v51, %v760_v57 }
 0x104   : > { %v786_v61 = vmul.f32 %v785_v58, %v777_v59 }
 0x106   : > { %v787_v62 = vadd.f32 %v786_v61, %v779_v60 }
 0x108   : > { %v788_v63 = vpack.c.bf16 %v787_v62, %v787_v62 }
 0x10a   : > { %789 = vst [vmem:[%s405_s12] sm:$0xf] %v788_v63 }
 0x10b PF: > { %s15_s20 = sadd.s32 1, %s1126_s20   ;;  %s1311_s18 = smov %s1122_s19 }
 0x10c   : > { %p12_p5 = scmp.ge.s32.totalorder %s15_s20, 4   ;;  %s1312_s19 = smov %s1314_s21 }
 0x10e   :  { %14 = sbr.rel (!%p12_p5) target bundleno = 2 (0x2), region = 90 }

// kernel: _lambda_.51
= control target key start
LH: loop header
LB: loop body
LE: loop exit
PB: predicated region body
PF: predicated region fallthrough
CT: control target
= control target key end

     0   :  { %s1064_s18 = smov 0   ;;  %s1066_s19 = smov 0   ;;  %s1208_s0 = inlined_call_operand.vmem [shape: bf16[2,8,128], index: 0, kind: input, shape index: {}]   ;;  %s1209_s1 = inlined_call_operand.vmem [shape: bf16[128,512], index: 1, kind: input, shape index: {}]   ;;  %s1210_s2 = inlined_call_operand.vmem [shape: bf16[1,1,512], index: 2, kind: input, shape index: {}]   ;;  %s1211_s3 = inlined_call_operand.vmem [shape: bf16[2,1,128], index: 3, kind: input, shape index: {}]   ;;  %s1212_s4 = inlined_call_operand.vmem [shape: bf16[2,1,128], index: 4, kind: input, shape index: {}]   ;;  %s1213_s5 = inlined_call_operand.vmem [shape: bf16[2,8,512], index: 5, kind: output, shape index: {}]  }
   0x1   :  { %s1068_s20 = smov 0   ;;  %s1070_s21 = smov 0  }
   0x2   :  { %s1072_s22 = smov 0   ;;  %s1074_s23 = smov 0  }
   0x3   :  { %s1076_s24 = smov 0  }
   0x4 LB: > { %s33_s25 = sadd.s32 1, %s1023_s22  ;;  %s41_s26 = sadd.s32 1, %s1027_s23  ;;  %s1031_s24 = sphi %s1076_s24, %s15_s24   ;;  %s1027_s23 = sphi %s1074_s23, %s1219_s23   ;;  %s1023_s22 = sphi %s1072_s22, %s1218_s22   ;;  %s1019_s21 = sphi %s1070_s21, %s1217_s21   ;;  %s1015_s20 = sphi %s1068_s20, %s1216_s20   ;;  %s1011_s19 = sphi %s1066_s19, %s1215_s19   ;;  %s1007_s18 = sphi %s1064_s18, %s1214_s18  }
   0x5   : > { %p35_p0 = scmp.ge.s32.totalorder %s33_s25, 2  ;;  %s80_s27 = sadd.s32 1, %s1011_s19 }
   0x6   : > { %p87_p1 = scmp.ne.s32.totalorder %s1011_s19, %s1007_s18  ;;  %p88_p2 = scmp.eq.s32.totalorder %s1031_s24, 0 }
   0x7   : > { %s1221_s25 = smov (%p35_p0, %s33_s25), 0  ;;  %s1223_s26 = smov (!%p35_p0, %s41_s26), %s1027_s23 }
   0x8   : > { %s76_s28 = ssub.s32 %s1023_s22, %s1221_s25  ;;  %p89_p3 = por %p88_p2, %p87_p1 }
   0x9   : > { %p43_p4 = scmp.ge.s32.totalorder %s1223_s26, 2  ;;  %p78_p5 = scmp.eq.s32.totalorder %s76_s28, 0 }
   0xa   : > { %p858_p6 = scmp.ge.s32.totalorder %s1031_s24, 4 }
   0xb   : > { %s1225_s26 = smov (%p43_p4, %s1223_s26), 0 }
   0xc   : > { %s1113_s29 = scalar_select %p78_p5, %s1011_s19, %s80_s27  }
   0xd   : > { %221 = sbr.rel (%p858_p6) target bundleno = 32 (0x20), region = 16 }
  0x14   : > { %237 = sbr.rel (!%p89_p3) target bundleno = 32 (0x20), region = 24  ;;  %s239_s30 = sand.u32 (%p89_p3), 1, %s1011_s19  }
  0x15   : > { %s888_s6 = sshll.u32 (%p89_p3), %s1023_s22, 3  ;;  %s859_s7 = sshll.u32 (%p89_p3), %s239_s30, 7 }
  0x16   : > { %s1121_s10 = scalar_lea.vmem (%p89_p3), %s1209_s1, %s888_s6  ;;  %s241_s11 = scalar_lea.vmem (%p89_p3), [#allocation3], %s859_s7 }
  0x17   : > { %v305_v0 = vld [vmem:[%s1121_s10] sm:$0xff] (%p89_p3)  ;;  %v307_v1 = vld [vmem:[%s1121_s10 + $0x10] sm:$0xff] (%p89_p3) }
  0x18   : > { %v309_v2 = vld [vmem:[%s1121_s10 + $0x20] sm:$0xff] (%p89_p3)  ;;  %306 = vst [vmem:[%s241_s11] sm:$0xff] (%p89_p3), %v305_v0  ;;  %308 = vst [vmem:[%s241_s11 + $0x8] sm:$0xff] (%p89_p3), %v307_v1  ;;  %v311_v3 = vld [vmem:[%s1121_s10 + $0x30] sm:$0xff] (%p89_p3) }
  0x19   : > { %310 = vst [vmem:[%s241_s11 + $0x10] sm:$0xff] (%p89_p3), %v309_v2  ;;  %v313_v4 = vld [vmem:[%s1121_s10 + $0x40] sm:$0xff] (%p89_p3)  ;;  %v315_v5 = vld [vmem:[%s1121_s10 + $0x50] sm:$0xff] (%p89_p3)  ;;  %312 = vst [vmem:[%s241_s11 + $0x18] sm:$0xff] (%p89_p3), %v311_v3 }
  0x1a   : > { %314 = vst [vmem:[%s241_s11 + $0x20] sm:$0xff] (%p89_p3), %v313_v4  ;;  %316 = vst [vmem:[%s241_s11 + $0x28] sm:$0xff] (%p89_p3), %v315_v5  ;;  %v317_v6 = vld [vmem:[%s1121_s10 + $0x60] sm:$0xff] (%p89_p3)  ;;  %v319_v7 = vld [vmem:[%s1121_s10 + $0x70] sm:$0xff] (%p89_p3) }
  0x1b   : > { %v321_v8 = vld [vmem:[%s1121_s10 + $0x80] sm:$0xff]  ;;  %318 = vst [vmem:[%s241_s11 + $0x30] sm:$0xff] %v317_v6  ;;  %320 = vst [vmem:[%s241_s11 + $0x38] sm:$0xff] %v319_v7  ;;  %v323_v9 = vld [vmem:[%s1121_s10 + $0x90] sm:$0xff] }
  0x1c   : > { %322 = vst [vmem:[%s241_s11 + $0x40] sm:$0xff] %v321_v8  ;;  %v325_v10 = vld [vmem:[%s1121_s10 + $0xa0] sm:$0xff]  ;;  %v327_v11 = vld [vmem:[%s1121_s10 + $0xb0] sm:$0xff]  ;;  %324 = vst [vmem:[%s241_s11 + $0x48] sm:$0xff] %v323_v9 }
  0x1d   : > { %326 = vst [vmem:[%s241_s11 + $0x50] sm:$0xff] %v325_v10  ;;  %328 = vst [vmem:[%s241_s11 + $0x58] sm:$0xff] %v327_v11  ;;  %v329_v12 = vld [vmem:[%s1121_s10 + $0xc0] sm:$0xff]  ;;  %v331_v13 = vld [vmem:[%s1121_s10 + $0xd0] sm:$0xff] }
  0x1e   : > { %v333_v14 = vld [vmem:[%s1121_s10 + $0xe0] sm:$0xff]  ;;  %330 = vst [vmem:[%s241_s11 + $0x60] sm:$0xff] %v329_v12  ;;  %332 = vst [vmem:[%s241_s11 + $0x68] sm:$0xff] %v331_v13  ;;  %v335_v15 = vld [vmem:[%s1121_s10 + $0xf0] sm:$0xff] }
  0x1f   : > { %334 = vst [vmem:[%s241_s11 + $0x70] sm:$0xff] %v333_v14  ;;  %336 = vst [vmem:[%s241_s11 + $0x78] sm:$0xff] %v335_v15 }
  0x20 PF: > { %p862_p7 = scmp.ge.s32.totalorder %s1031_s24, 1  ;;  %p361_p8 = scmp.lt.s32.totalorder %s1031_s24, 5 }
  0x22   : > { %p362_p9 = pnand %p862_p7, %p361_p8 }
  0x23   : > { %p423_p10 = scmp.lt.s32.totalorder (!%p362_p9), %s1019_s21, 1  ;;  %s368_s16 = sand.u32 (!%p362_p9), 1, %s1007_s18   ;;  %v1033_v33 = vmov (!%p362_p9), 0   ;;  %v486_v41 = vlaneseq (!%p362_p9) }
  0x24   : > { %365 = sbr.rel (%p362_p9) target bundleno = 605 (0x25d), region = 74  ;;  %s863_s17 = sshll.u32 (!%p362_p9), %s368_s16, 7  ;;  %627 = vmatprep.mubr.bf16.mxu0 (!%p362_p9), %v1033_v33 }
  0x25   : > { %s1152_s27 = scalar_lea.vmem (!%p362_p9), [#allocation3], %s863_s17  ;;  %v487_v45 = vshrl.u32 (!%p362_p9), %v486_v41, 7  ;;  %s865_s9 = sshll.u32 (!%p362_p9), %s1015_s20, 1 }
  0x26   : > { %v947_v18 = vld [vmem:[%s1152_s27 + $0x4] ss:$8 sps:$4 sm:$0xff] (!%p362_p9)   ;;  %v949_v19 = vld [vmem:[%s1152_s27] ss:$8 sps:$4 sm:$0xff] (!%p362_p9)   ;;  %v950_v20 = vld [vmem:[%s1152_s27 + $0x14] ss:$8 sps:$4 sm:$0xff] (!%p362_p9)  }
  0x27   : > { %595 = vmatprep.subr.bf16.mxu0 (!%p362_p9), %v947_v18  ;;  %v952_v21 = vld [vmem:[%s1152_s27 + $0x10] ss:$8 sps:$4 sm:$0xff] (!%p362_p9)   ;;  %v953_v26 = vld [vmem:[%s1152_s27 + $0x24] ss:$8 sps:$4 sm:$0xff] (!%p362_p9)   ;;  %v955_v27 = vld [vmem:[%s1152_s27 + $0x20] ss:$8 sps:$4 sm:$0xff] (!%p362_p9)  }
  0x28   : > { %596 = vmatpush1.bf16.msra.mxu0 (!%p362_p9), %v949_v19  ;;  %v956_v28 = vld [vmem:[%s1152_s27 + $0x34] ss:$8 sps:$4 sm:$0xff] (!%p362_p9)   ;;  %v958_v29 = vld [vmem:[%s1152_s27 + $0x30] ss:$8 sps:$4 sm:$0xff] (!%p362_p9)   ;;  %v959_v30 = vld [vmem:[%s1152_s27 + $0x44] ss:$8 sps:$4 sm:$0xff] (!%p362_p9)  }
  0x29   : > { %597 = vmatprep.subr.bf16.mxu0 (!%p362_p9), %v950_v20  ;;  %v961_v31 = vld [vmem:[%s1152_s27 + $0x40] ss:$8 sps:$4 sm:$0xff] (!%p362_p9)   ;;  %v962_v32 = vld [vmem:[%s1152_s27 + $0x54] ss:$8 sps:$4 sm:$0xff] (!%p362_p9)   ;;  %v964_v34 = vld [vmem:[%s1152_s27 + $0x50] ss:$8 sps:$4 sm:$0xff] (!%p362_p9)  }
  0x2a   : > { %v965_v35 = vld [vmem:[%s1152_s27 + $0x64] ss:$8 sps:$4 sm:$0xff] (!%p362_p9)   ;;  %v967_v36 = vld [vmem:[%s1152_s27 + $0x60] ss:$8 sps:$4 sm:$0xff] (!%p362_p9)   ;;  %v968_v37 = vld [vmem:[%s1152_s27 + $0x74] ss:$8 sps:$4 sm:$0xff] (!%p362_p9)  }
  0x2b   : > { %s1227_s21 = smov (!%p423_p10, %s1019_s21), 1  ;;  %v970_v38 = vld [vmem:[%s1152_s27 + $0x70] ss:$8 sps:$4 sm:$0xff]   ;;  %v488_v48 = vsub.s32 0, %v487_v45  ;;  %p436_p11 = scmp.lt.s32.totalorder %s865_s9, 3  ;;  %v654_v59 = vsub.s32 2, %v487_v45 }
  0x2c   : > { %s864_s12 = sshll.u32 %s1227_s21, 2  ;;  %598 = vmatpush1.bf16.msra.mxu0 %v952_v21  ;;  %s442_s30 = scalar_lea.vmem %s1211_s3, %s1227_s21 }
  0x2d   : > { %s432_s15 = scalar_lea.vmem %s1208_s0, %s864_s12  ;;  %599 = vmatprep.subr.bf16.mxu0 %v953_v26  ;;  %v481_v43 = vld [vmem:[%s442_s30] sm:$0x1]  ;;  %s445_s8 = scalar_lea.vmem %s1212_s4, %s1227_s21 }
  0x2e   : > { %v467_v16 = vld [vmem:[%s432_s15] sm:$0xf]  ;;  %v482_v44 = vunpack.c.l.bf16 %v481_v43  ;;  %s1229_s9 = smov (!%p436_p11, %s865_s9), 3 }
  0x2f   : > { %v468_v17 = vunpack.c.l.bf16 %v467_v16  ;;  %v483_v46 = vld [vmem:[%s445_s8] sm:$0x1]  ;;  %s438_s13 = scalar_lea.vmem %s1210_s2, %s1229_s9  ;;  %s456_s20 = sadd.s32 %s864_s12, %s1229_s9 }
  0x30   : > { %600 = vmatpush1.bf16.msra.mxu0 %v955_v27  ;;  %v485_v47 = vadd.f32 1.0, %v482_v44  ;;  %v484_v49 = vunpack.c.l.bf16 %v483_v46  ;;  %v645_v57 = vld [vmem:[%s438_s13] sm:$0x3]  ;;  %s868_s14 = sshll.u32 %s456_s20, 2 }
  0x31   : > { %469 = vadd.xlane.f32.xlu0 %v468_v17  ;;  %601 = vmatprep.subr.bf16.mxu0 %v956_v28  ;;  %v646_v58 = vunpack.c.l.bf16 %v645_v57  ;;  %s458_s17 = scalar_lea.vmem %s1213_s5, %s868_s14 }
  0x32   : > { %v489_v50 = vrot.slane %v485_v47, %v488_v48  ;;  %v494_v53 = vrot.slane %v484_v49, %v488_v48 }
  0x33   : > { %v651_v60 = vrot.slane %v646_v58, %v488_v48  ;;  %v655_v61 = vrot.slane %v646_v58, %v654_v59 }
  0x34   : > { %602 = vmatpush1.bf16.msra.mxu0 %v958_v29 }
  0x35   : > { %603 = vmatprep.subr.bf16.mxu0 %v959_v30  ;;  %v661_v62 = vrot.slane %v651_v60, %v488_v48  ;;  %v665_v63 = vrot.slane %v655_v61, %v488_v48 }
  0x38   : > { %604 = vmatpush1.bf16.msra.mxu0 %v961_v31 }
  0x39   : > { %605 = vmatprep.subr.bf16.mxu0 %v962_v32 }
  0x3c   : > { %606 = vmatpush1.bf16.msra.mxu0 %v964_v34 }
  0x3d   : > { %607 = vmatprep.subr.bf16.mxu0 %v965_v35 }
  0x40   : > { %608 = vmatpush1.bf16.msra.mxu0 %v967_v36 }
  0x41   : > { %609 = vmatprep.subr.bf16.mxu0 %v968_v37 }
  0x44   : > { %610 = vmatpush1.bf16.msra.mxu0 %v970_v38 }
  0xbe   : > { %v470_v22 = vpop.xlane.xlu0 %469 }
  0xbf   : > { %v472_v23 = vmul.f32 0.0078125, %v470_v22 }
  0xc1   : > { %v473_v24 = vsub.f32 %v468_v17, %v472_v23 }
  0xc3   : > { %v474_v25 = vmul.f32 %v473_v24, %v473_v24 }
  0xc5   : > { %475 = vadd.xlane.f32.xlu0 %v474_v25 }
 0x152   : > { %v476_v39 = vpop.xlane.xlu0 %475 }
 0x153   : > { %v477_v40 = vmul.f32 0.0078125, %v476_v39 }
 0x155   : > { %v478_v42 = vadd.f32 1e-06, %v477_v40 }
 0x157   : > { %971 = vrsqrt.f32 %v478_v42 }
 0x161   : > { %v972_v51 = vpop.eup %971 }
 0x162   : > { %v480_v52 = vmul.f32 %v972_v51, %v473_v24 }
 0x164   : > { %v490_v54 = vmul.f32 %v489_v50, %v480_v52 }
 0x166   : > { %v495_v55 = vadd.f32 %v494_v53, %v490_v54 }
 0x168   : > { %v496_v56 = vpack.c.bf16 %v495_v55, %v495_v55 }
 0x16a   : > { %628 = vmatmul.mubr.bf16.vlgmr.msra.gmra.mrb[0].mxu0 %v496_v56 }
 0x23d   : > { %v629_v0 = vpop.f32.mrb[0].mxu0 }
 0x23e   : > { %v666_v1 = vadd.f32 %v661_v62, %v629_v0  ;;  %v631_v2 = vpop.f32.mrb[1].mxu0 }
 0x23f   : > { %v667_v3 = vadd.f32 %v665_v63, %v631_v2  ;;  %v633_v4 = vpop.f32.mrb[2].mxu0 }
 0x240   : > { %v670_v5 = vmul.f32 0.044715, %v666_v1  ;;  %v634_v6 = vpop.f32.mrb[3].mxu0  ;;  %v668_v18 = vmul.f32 0.5, %v666_v1 }
 0x241   : > { %v671_v7 = vmul.f32 0.044715, %v667_v3  ;;  %v669_v20 = vmul.f32 0.5, %v667_v3 }
 0x242   : > { %v672_v8 = vmul.f32 %v670_v5, %v666_v1 }
 0x243   : > { %v673_v9 = vmul.f32 %v671_v7, %v667_v3 }
 0x244   : > { %v674_v10 = vmul.f32 %v672_v8, %v666_v1 }
 0x245   : > { %v675_v11 = vmul.f32 %v673_v9, %v667_v3 }
 0x246   : > { %v676_v12 = vadd.f32 %v674_v10, %v666_v1 }
 0x247   : > { %v677_v13 = vadd.f32 %v675_v11, %v667_v3 }
 0x248   : > { %v678_v14 = vmul.f32 0.7978846, %v676_v12 }
 0x249   : > { %v679_v15 = vmul.f32 0.7978846, %v677_v13 }
 0x24a   : > { %973 = vtanh.f32 %v678_v14 }
 0x24b   : > { %975 = vtanh.f32 %v679_v15 }
 0x254   : > { %v974_v16 = vpop.eup %973 }
 0x255   : > { %v976_v17 = vpop.eup %975  ;;  %v682_v19 = vadd.f32 1.0, %v974_v16 }
 0x256   : > { %v683_v21 = vadd.f32 1.0, %v976_v17 }
 0x257   : > { %v684_v22 = vmul.f32 %v682_v19, %v668_v18 }
 0x258   : > { %v685_v23 = vmul.f32 %v683_v21, %v669_v20 }
 0x25a   : > { %v889_v24 = vpack.c.bf16 %v685_v23, %v684_v22 }
 0x25c   : > { %694 = vst [vmem:[%s458_s17] sm:$0xff] %v889_v24 }
 0x25d PF: > { %s15_s24 = sadd.s32 1, %s1031_s24   ;;  %s1214_s18 = smov %s1011_s19 }
 0x25e   : > { %p12_p12 = scmp.ge.s32.totalorder %s15_s24, 6   ;;  %s1215_s19 = smov %s1113_s29 }
 0x25f   : > { %s1216_s20 = smov %s1023_s22  ;;  %s1217_s21 = smov %s1027_s23 }
 0x260   : > { %s1218_s22 = smov %s1221_s25  ;;  %s1219_s23 = smov %s1225_s26 }
 0x261   :  { %14 = sbr.rel (!%p12_p12) target bundleno = 4 (0x4), region = 133 }

// kernel: _lambda_.64
= control target key start
LH: loop header
LB: loop body
LE: loop exit
PB: predicated region body
PF: predicated region fallthrough
CT: control target
= control target key end

     0   :  { %s800_s12 = smov 0   ;;  %s802_s13 = smov 0   ;;  %s890_s0 = inlined_call_operand.vmem [shape: bf16[1,2,128], index: 0, kind: input, shape index: {}]   ;;  %s891_s1 = inlined_call_operand.vmem [shape: bf16[128,384], index: 1, kind: input, shape index: {}]   ;;  %s892_s2 = inlined_call_operand.vmem [shape: bf16[1,1,384], index: 2, kind: input, shape index: {}]   ;;  %s893_s3 = inlined_call_operand.vmem [shape: bf16[1,2,384], index: 3, kind: output, shape index: {}]  }
   0x1   :  { %s804_s14 = smov 0   ;;  %s806_s15 = smov 0  }
   0x2   :  { %s808_s16 = smov 0  }
   0x3 LB: > { %s31_s17 = sadd.s32 1, %s772_s15  ;;  %p85_p1 = scmp.ne.s32.totalorder %s764_s13, %s760_s12  ;;  %s776_s16 = sphi %s808_s16, %s13_s16   ;;  %s772_s15 = sphi %s806_s15, %s897_s15   ;;  %s768_s14 = sphi %s804_s14, %s896_s14   ;;  %s764_s13 = sphi %s802_s13, %s895_s13   ;;  %s760_s12 = sphi %s800_s12, %s894_s12  }
   0x4   : > { %p33_p0 = scmp.ge.s32.totalorder %s31_s17, 3  ;;  %p86_p2 = scmp.eq.s32.totalorder %s776_s16, 0 }
   0x5   : > { %s78_s19 = sadd.s32 1, %s764_s13  ;;  %p639_p5 = scmp.ge.s32.totalorder %s776_s16, 3 }
   0x6   : > { %s899_s17 = smov (%p33_p0, %s31_s17), 0  ;;  %p87_p3 = por %p86_p2, %p85_p1 }
   0x7   : > { %s74_s18 = ssub.s32 %s772_s15, %s899_s17  ;;  %179 = sbr.rel (%p639_p5) target bundleno = 28 (0x1c), region = 20 }
   0x8   : > { %p76_p4 = scmp.eq.s32.totalorder %s74_s18, 0 }
   0xa   : > { %s835_s20 = scalar_select %p76_p4, %s764_s13, %s78_s19  }
   0xe   : > { %182 = sbr.rel (!%p87_p3) target bundleno = 28 (0x1c), region = 24  ;;  %s184_s21 = sand.u32 (%p87_p3), 1, %s764_s13  }
   0xf   : > { %s641_s22 = sshll.u32 (%p87_p3), %s772_s15, 2  ;;  %s640_s23 = sshll.u32 (%p87_p3), %s184_s21, 6 }
  0x10   : > { %s843_s26 = scalar_lea.vmem (%p87_p3), %s891_s1, %s641_s22  ;;  %s186_s27 = scalar_lea.vmem (%p87_p3), [#allocation3], %s640_s23 }
  0x11   : > { %v207_v0 = vld [vmem:[%s843_s26] sm:$0xf] (%p87_p3)  ;;  %v209_v1 = vld [vmem:[%s843_s26 + $0xc] sm:$0xf] (%p87_p3)  ;;  %v211_v2 = vld [vmem:[%s843_s26 + $0x18] sm:$0xf] (%p87_p3) }
  0x12   : > { %208 = vst [vmem:[%s186_s27] sm:$0xf] (%p87_p3), %v207_v0  ;;  %210 = vst [vmem:[%s186_s27 + $0x4] sm:$0xf] (%p87_p3), %v209_v1  ;;  %v213_v3 = vld [vmem:[%s843_s26 + $0x24] sm:$0xf] (%p87_p3) }
  0x13   : > { %v215_v4 = vld [vmem:[%s843_s26 + $0x30] sm:$0xf] (%p87_p3)  ;;  %212 = vst [vmem:[%s186_s27 + $0x8] sm:$0xf] (%p87_p3), %v211_v2  ;;  %214 = vst [vmem:[%s186_s27 + $0xc] sm:$0xf] (%p87_p3), %v213_v3 }
  0x14   : > { %216 = vst [vmem:[%s186_s27 + $0x10] sm:$0xf] (%p87_p3), %v215_v4  ;;  %v217_v5 = vld [vmem:[%s843_s26 + $0x3c] sm:$0xf] (%p87_p3)  ;;  %v219_v6 = vld [vmem:[%s843_s26 + $0x48] sm:$0xf] (%p87_p3) }
  0x15   : > { %v221_v7 = vld [vmem:[%s843_s26 + $0x54] sm:$0xf]  ;;  %218 = vst [vmem:[%s186_s27 + $0x14] sm:$0xf] %v217_v5  ;;  %220 = vst [vmem:[%s186_s27 + $0x18] sm:$0xf] %v219_v6 }
  0x16   : > { %222 = vst [vmem:[%s186_s27 + $0x1c] sm:$0xf] %v221_v7  ;;  %v223_v8 = vld [vmem:[%s843_s26 + $0x60] sm:$0xf]  ;;  %v225_v9 = vld [vmem:[%s843_s26 + $0x6c] sm:$0xf] }
  0x17   : > { %v227_v10 = vld [vmem:[%s843_s26 + $0x78] sm:$0xf]  ;;  %224 = vst [vmem:[%s186_s27 + $0x20] sm:$0xf] %v223_v8  ;;  %226 = vst [vmem:[%s186_s27 + $0x24] sm:$0xf] %v225_v9 }
  0x18   : > { %228 = vst [vmem:[%s186_s27 + $0x28] sm:$0xf] %v227_v10  ;;  %v229_v11 = vld [vmem:[%s843_s26 + $0x84] sm:$0xf]  ;;  %v231_v12 = vld [vmem:[%s843_s26 + $0x90] sm:$0xf] }
  0x19   : > { %v233_v13 = vld [vmem:[%s843_s26 + $0x9c] sm:$0xf]  ;;  %230 = vst [vmem:[%s186_s27 + $0x2c] sm:$0xf] %v229_v11  ;;  %232 = vst [vmem:[%s186_s27 + $0x30] sm:$0xf] %v231_v12 }
  0x1a   : > { %234 = vst [vmem:[%s186_s27 + $0x34] sm:$0xf] %v233_v13  ;;  %v235_v14 = vld [vmem:[%s843_s26 + $0xa8] sm:$0xf]  ;;  %v237_v15 = vld [vmem:[%s843_s26 + $0xb4] sm:$0xf] }
  0x1b   : > { %236 = vst [vmem:[%s186_s27 + $0x38] sm:$0xf] %v235_v14  ;;  %238 = vst [vmem:[%s186_s27 + $0x3c] sm:$0xf] %v237_v15 }
  0x1c PF: > { %p642_p6 = scmp.ge.s32.totalorder %s776_s16, 1  ;;  %p298_p7 = scmp.lt.s32.totalorder %s776_s16, 4 }
  0x1e   : > { %p299_p8 = pnand %p642_p6, %p298_p7 }
  0x1f   : > { %s305_s28 = sand.u32 (!%p299_p8), 1, %s760_s12   ;;  %v778_v16 = vmov (!%p299_p8), 0.0   ;;  %vm779_vm0 = vmmov (!%p299_p8), 0   ;;  %v376_v18 = vld [vmem:[%s890_s0] sm:$0x1] (!%p299_p8)  ;;  %p356_p9 = scmp.lt.s32.totalorder (!%p299_p8), %s768_s14, 2  ;;  %v499_v33 = vlaneseq (!%p299_p8) }
  0x20   : > { %302 = sbr.rel (%p299_p8) target bundleno = 293 (0x125), region = 69  ;;  %664 = vmatprep.subr.bf16.mxu0 (!%p299_p8), %v778_v16  ;;  %375 = vst [vmem:[#allocation2] sm:$0x3] (!%p299_p8), %v778_v16  ;;  %s643_s29 = sshll.u32 (!%p299_p8), %s305_s28, 6  ;;  %680 = vmatprep.mubr.msk.bf16.mxu0 (!%p299_p8), %vm779_vm0, %v778_v16  ;;  %v377_v20 = vunpack.c.l.bf16 (!%p299_p8), %v376_v18 }
  0x21   : > { %s307_s30 = scalar_lea.vmem (!%p299_p8), [#allocation3], %s643_s29  ;;  %v500_v35 = vshrl.u32 (!%p299_p8), %v499_v33, 7 }
  0x22   : > { %v726_v17 = vld [vmem:[%s307_s30] sm:$0xff] (!%p299_p8)   ;;  %v727_v19 = vld [vmem:[%s307_s30 + $0x8] sm:$0xff] (!%p299_p8)   ;;  %v728_v21 = vld [vmem:[%s307_s30 + $0x10] sm:$0xff] (!%p299_p8)   ;;  %v644_v22 = vmul.f32 (!%p299_p8), -1.442695, %v377_v20 }
  0x23   : > { %665 = vmatpush3.bf16.msra.mxu0 (!%p299_p8), %v726_v17  ;;  %v729_v23 = vld [vmem:[%s307_s30 + $0x18] sm:$0xff] (!%p299_p8)   ;;  %v730_v24 = vld [vmem:[%s307_s30 + $0x20] sm:$0xff] (!%p299_p8)   ;;  %v731_v25 = vld [vmem:[%s307_s30 + $0x28] sm:$0xff] (!%p299_p8)   ;;  %v501_v42 = vsub.s32 (!%p299_p8), 0, %v500_v35 }
  0x24   : > { %666 = vmatprep.subr.bf16.mxu0 (!%p299_p8), %v778_v16  ;;  %734 = vpow2.f32 (!%p299_p8), %v644_v22  ;;  %v732_v28 = vld [vmem:[%s307_s30 + $0x30] sm:$0xff] (!%p299_p8)   ;;  %v733_v29 = vld [vmem:[%s307_s30 + $0x38] sm:$0xff] (!%p299_p8)  }
  0x27   : > { %667 = vmatpush3.bf16.msra.mxu0 %v727_v19  ;;  %s901_s14 = smov (!%p356_p9, %s768_s14), 2  ;;  %v386_v34 = vld [vmem:[#allocation2] sm:$0x3] }
  0x28   : > { %668 = vmatprep.subr.bf16.mxu0 %v778_v16  ;;  %s358_s8 = scalar_lea.vmem %s892_s2, %s901_s14  ;;  %s369_s11 = scalar_lea.vmem %s893_s3, %s901_s14 }
  0x29   : > { %v497_v37 = vld [vmem:[%s358_s8] sm:$0x1] }
  0x2a   : > { %v498_v41 = vunpack.c.l.bf16 %v497_v37 }
  0x2b   : > { %669 = vmatpush3.bf16.msra.mxu0 %v728_v21 }
  0x2c   : > { %670 = vmatprep.subr.bf16.mxu0 %v778_v16  ;;  %v502_v44 = vrot.slane %v498_v41, %v501_v42 }
  0x2e   : > { %v735_v26 = vpop.eup %734 }
  0x2f   : > { %671 = vmatpush3.bf16.msra.mxu0 %v729_v23  ;;  %v381_v27 = vadd.f32 1.0, %v735_v26 }
  0x30   : > { %672 = vmatprep.subr.bf16.mxu0 %v778_v16 }
  0x31   : > { %736 = vrcp.f32 %v381_v27 }
  0x33   : > { %673 = vmatpush3.bf16.msra.mxu0 %v730_v24 }
  0x34   : > { %674 = vmatprep.subr.bf16.mxu0 %v778_v16 }
  0x37   : > { %675 = vmatpush3.bf16.msra.mxu0 %v731_v25 }
  0x38   : > { %676 = vmatprep.subr.bf16.mxu0 %v778_v16 }
  0x3b   : > { %677 = vmatpush3.bf16.msra.mxu0 %v732_v28  ;;  %v737_v30 = vpop.eup %736 }
  0x3c   : > { %678 = vmatprep.subr.bf16.mxu0 %v778_v16  ;;  %v384_v31 = vmul.f32 %v737_v30, %v377_v20 }
  0x3e   : > { %v385_v32 = vpack.c.bf16 %v384_v31, %v384_v31 }
  0x3f   : > { %679 = vmatpush3.bf16.msra.mxu0 %v733_v29 }
  0x42   : > { %681 = vmatmul.mubr.bf16.vlgmr.msra.gmra.mrb[0].mxu0 %v385_v32 }
 0x115   : > { %v485_v36 = vpop.f32.mrb[0].mxu0 }
 0x116   : > { %v491_v38 = vadd.f32 %v485_v36, %v386_v34  ;;  %v682_v39 = vpop.f32.mrb[1].mxu0 }
 0x117   : > { %v488_v40 = vpop.f32.mrb[2].mxu0 }
 0x118   : > { %492 = vst [vmem:[#allocation2] sm:$0x3] %v491_v38  ;;  %v683_v43 = vpop.f32.mrb[3].mxu0 }
 0x11f   : > { %v496_v45 = vld [vmem:[#allocation2] sm:$0x3] }
 0x120   : > { %v503_v46 = vadd.f32 %v502_v44, %v496_v45 }
 0x122   : > { %v504_v47 = vpack.c.bf16 %v503_v46, %v503_v46 }
 0x124   : > { %505 = vst [vmem:[%s369_s11] sm:$0x1] %v504_v47 }
 0x125 PF: > { %s13_s16 = sadd.s32 1, %s776_s16   ;;  %s894_s12 = smov %s764_s13 }
 0x126   : > { %p10_p10 = scmp.ge.s32.totalorder %s13_s16, 5   ;;  %s895_s13 = smov %s835_s20 }
 0x127   : > { %s896_s14 = smov %s772_s15  ;;  %s897_s15 = smov %s899_s17 }
 0x128   :  { %12 = sbr.rel (!%p10_p10) target bundleno = 3 (0x3), region = 122 }

// kernel: _lambda_.46
= control target key start
LH: loop header
LB: loop body
LE: loop exit
PB: predicated region body
PF: predicated region fallthrough
CT: control target
= control target key end

     0   :  { %s2078_s18 = smov 0   ;;  %s2080_s19 = smov 0   ;;  %s2547_s0 = inlined_call_operand.vmem [shape: bf16[2,16,384], index: 0, kind: input, shape index: {}, may-alias: {0,1,2}]   ;;  %s2548_s1 = inlined_call_operand.vmem [shape: bf16[2,16,384], index: 1, kind: input, shape index: {}, may-alias: {0,1,2}]   ;;  %s2549_s2 = inlined_call_operand.vmem [shape: bf16[2,16,384], index: 2, kind: input, shape index: {}, may-alias: {0,1,2}]   ;;  %s2550_s3 = inlined_call_operand.vmem [shape: f32[16,32], index: 3, kind: input, shape index: {}]   ;;  %s2551_s4 = inlined_call_operand.vmem [shape: f32[16,32], index: 4, kind: input, shape index: {}]   ;;  %s2552_s5 = inlined_call_operand.vmem [shape: bf16[2,16,128], index: 5, kind: output, shape index: {}]  }
   0x1   :  { %s2082_s20 = smov 0   ;;  %s2084_s21 = smov 0  }
   0x2   :  { %s2086_s22 = smov 0  }
   0x3 LB: > { %s34_s23 = sadd.s32 1, %s2035_s21  ;;  %p50_p1 = scmp.ne.s32.totalorder %s2027_s19, %s2023_s18  ;;  %s2039_s22 = sphi %s2086_s22, %s15_s22   ;;  %s2035_s21 = sphi %s2084_s21, %s2557_s21   ;;  %s2031_s20 = sphi %s2082_s20, %s2556_s20   ;;  %s2027_s19 = sphi %s2080_s19, %s2555_s19   ;;  %s2023_s18 = sphi %s2078_s18, %s2554_s18  }
   0x4   : > { %p36_p0 = scmp.ge.s32.totalorder %s34_s23, 2  ;;  %p51_p2 = scmp.eq.s32.totalorder %s2039_s22, 0 }
   0x5   : > { %s43_s26 = sadd.s32 1, %s2027_s19  ;;  %p1745_p5 = scmp.ge.s32.totalorder %s2039_s22, 2 }
   0x6   : > { %s2559_s23 = smov (%p36_p0, %s34_s23), 0  ;;  %p2109_p3 = por %p51_p2, %p50_p1 }
   0x7   : > { %s38_s25 = ssub.s32 %s2035_s21, %s2559_s23  ;;  %230 = sbr.rel (%p1745_p5) target bundleno = 35 (0x23), region = 24 }
   0x8   : > { %p41_p4 = scmp.eq.s32.totalorder %s38_s25, 0 }
   0xa   : > { %s2117_s27 = scalar_select %p41_p4, %s2027_s19, %s43_s26  }
   0xe   : > { %233 = sbr.rel (!%p2109_p3) target bundleno = 21 (0x15), region = 28  ;;  %s235_s28 = sand.u32 (%p2109_p3), 1, %s2027_s19  }
   0xf   : > { %s1855_s29 = smul.u32 (%p2109_p3), 24, %s2035_s21  ;;  %s1746_s30 = sshll.u32 (%p2109_p3), %s235_s28, 3 }
  0x10   : > { %s237_s9 = scalar_lea.vmem (%p2109_p3), [#allocation5], %s1746_s30 }
  0x11   : > { %s243_s8 = scalar_lea.vmem (%p2109_p3), %s2547_s0, %s1855_s29 }
  0x12   : > { %v259_v0 = vld [vmem:[%s243_s8] sm:$0xf] (%p2109_p3)  ;;  %v261_v1 = vld [vmem:[%s243_s8 + $0xc] sm:$0xf] (%p2109_p3) }
  0x13   : > { %260 = vst [vmem:[%s237_s9] sm:$0xf] (%p2109_p3), %v259_v0  ;;  %262 = vst [vmem:[%s237_s9 + $0x4] sm:$0xf] (%p2109_p3), %v261_v1 }
  0x15 PF: > { %289 = sbr.rel (!%p2109_p3) target bundleno = 28 (0x1c), region = 69  ;;  %s291_s10 = sand.u32 (%p2109_p3), 1, %s2027_s19  }
  0x16   : > { %s1749_s11 = smul.u32 (%p2109_p3), 24, %s2035_s21  ;;  %s1748_s12 = sshll.u32 (%p2109_p3), %s291_s10, 3 }
  0x17   : > { %s293_s16 = scalar_lea.vmem (%p2109_p3), [#allocation6], %s1748_s12 }
  0x18   : > { %s1620_s15 = scalar_lea.vmem (%p2109_p3), %s2548_s1, %s1749_s11 }
  0x19   : > { %v1750_v2 = vld [vmem:[%s1620_s15 + $0x4] sm:$0xf] (%p2109_p3)  ;;  %v1751_v3 = vld [vmem:[%s1620_s15 + $0x10] sm:$0xf] (%p2109_p3) }
  0x1a   : > { %317 = vst [vmem:[%s293_s16] sm:$0xf] (%p2109_p3), %v1750_v2  ;;  %319 = vst [vmem:[%s293_s16 + $0x4] sm:$0xf] (%p2109_p3), %v1751_v3 }
  0x1c PF: > { %346 = sbr.rel (!%p2109_p3) target bundleno = 35 (0x23), region = 110  ;;  %s348_s17 = sand.u32 (%p2109_p3), 1, %s2027_s19  }
  0x1d   : > { %s1753_s25 = smul.u32 (%p2109_p3), 24, %s2035_s21  ;;  %s1752_s26 = sshll.u32 (%p2109_p3), %s348_s17, 3 }
  0x1e   : > { %s350_s6 = scalar_lea.vmem (%p2109_p3), [#allocation7], %s1752_s26 }
  0x1f   : > { %s1628_s30 = scalar_lea.vmem (%p2109_p3), %s2549_s2, %s1753_s25 }
  0x20   : > { %v1754_v4 = vld [vmem:[%s1628_s30 + $0x8] sm:$0xf] (%p2109_p3)  ;;  %v1755_v5 = vld [vmem:[%s1628_s30 + $0x14] sm:$0xf] (%p2109_p3) }
  0x21   : > { %374 = vst [vmem:[%s350_s6] sm:$0xf] (%p2109_p3), %v1754_v4  ;;  %376 = vst [vmem:[%s350_s6 + $0x4] sm:$0xf] (%p2109_p3), %v1755_v5 }
  0x23 PF: > { %p1756_p6 = scmp.ge.s32.totalorder %s2039_s22, 1  ;;  %p402_p7 = scmp.lt.s32.totalorder %s2039_s22, 3 }
  0x25   : > { %p403_p8 = pnand %p1756_p6, %p402_p7 }
  0x26   : > { %s409_s24 = sand.u32 (!%p403_p8), 1, %s2023_s18   ;;  %vm519_vm0 = vcmask (!%p403_p8), 261120   ;;  %v2041_v20 = vmov (!%p403_p8), 0.0   ;;  %vm2042_vm1 = vmmov (!%p403_p8), 0   ;;  %s2043_s18 = smov (!%p403_p8), 96   ;;  %v2206_v37 = vld [vmem:[%s2551_s4] sm:$0xff] (!%p403_p8) }
  0x27   : > { %406 = sbr.rel (%p403_p8) target bundleno = 1671 (0x687), region = 151  ;;  %s2144_s7 = sshll.u32 (!%p403_p8), %s409_s24, 3  ;;  %1807 = vmatprep.subr.bf16.mxu0 (!%p403_p8), %v2041_v20  ;;  %520 = vst.msk [vmem:[#allocation4] sm:$0xff] (!%p403_p8), %vm519_vm0, %v2041_v20  ;;  %521 = vst.msk [vmem:[#allocation4 + $0x8] sm:$0xff] (!%p403_p8), %vm519_vm0, %v2041_v20  ;;  %1813 = vmatprep.subr.bf16.mxu1 (!%p403_p8), %v2041_v20  ;;  %v2211_v38 = vld [vmem:[%s2551_s4 + $0x8] sm:$0xff] (!%p403_p8)  ;;  %v2218_v42 = vld [vmem:[%s2550_s3] sm:$0xff] (!%p403_p8) }
  0x28   : > { %s418_s8 = scalar_lea.vmem (!%p403_p8), [#allocation6], %s2144_s7  ;;  %s411_s9 = scalar_lea.vmem (!%p403_p8), [#allocation5], %s2144_s7  ;;  %522 = vst.msk [vmem:[#allocation4 + $0x10] sm:$0xff] (!%p403_p8), %vm519_vm0, %v2041_v20  ;;  %523 = vst.msk [vmem:[#allocation4 + $0x18] sm:$0xff] (!%p403_p8), %vm519_vm0, %v2041_v20  ;;  %1809 = vmatprep.mubr.msk.bf16.mxu0 (!%p403_p8), %vm2042_vm1, %v2041_v20  ;;  %1815 = vmatprep.mubr.msk.bf16.mxu1 (!%p403_p8), %vm2042_vm1, %v2041_v20  ;;  %v2223_v43 = vld [vmem:[%s2550_s3 + $0x8] sm:$0xff] (!%p403_p8)  ;;  %vm502_vm2 = vcmask (!%p403_p8), 7168  }
  0x29   : > { %v1783_v6 = vld [vmem:[%s418_s8] sm:$0xff] (!%p403_p8)   ;;  %v1779_v7 = vld [vmem:[%s411_s9] sm:$0xff] (!%p403_p8)   ;;  %524 = vst.msk [vmem:[#allocation4 + $0x20] sm:$0xff] (!%p403_p8), %vm519_vm0, %v2041_v20  ;;  %525 = vst.msk [vmem:[#allocation4 + $0x28] sm:$0xff] (!%p403_p8), %vm519_vm0, %v2041_v20  ;;  %s2044_s10 = smov (!%p403_p8), 64   ;;  %s2045_s11 = smov (!%p403_p8), 32  }
  0x2a   : > { %v2148_v8 = vunpack.c.l.bf16 (!%p403_p8), %v1783_v6  ;;  %v2150_v9 = vunpack.c.l.bf16 (!%p403_p8), %v1779_v7  ;;  %v2152_v10 = vunpack.c.h.bf16 (!%p403_p8), %v1783_v6  ;;  %v2154_v11 = vunpack.c.h.bf16 (!%p403_p8), %v1779_v7  ;;  %526 = vst.msk [vmem:[#allocation4 + $0x30] sm:$0xff] (!%p403_p8), %vm519_vm0, %v2041_v20  ;;  %527 = vst.msk [vmem:[#allocation4 + $0x38] sm:$0xff] (!%p403_p8), %vm519_vm0, %v2041_v20  ;;  %s425_s28 = scalar_lea.vmem (!%p403_p8), [#allocation7], %s2144_s7  ;;  %p488_p9 = scmp.lt.s32.totalorder (!%p403_p8), %s2031_s20, 1 }
  0x2b   : > { %511 = vst.msk [vmem:[#allocation3] sm:$0xff] (!%p403_p8), %vm502_vm2, %v2041_v20  ;;  %512 = vst.msk [vmem:[#allocation3 + $0x8] sm:$0xff] (!%p403_p8), %vm502_vm2, %v2041_v20  ;;  %vm633_vm3 = vcmask (!%p403_p8), 130048   ;;  %vm1557_vm4 = vcmask (!%p403_p8), 523264   ;;  %vm1560_vm5 = vcmask (!%p403_p8), 785408  }
  0x2c   : > { %v565_v12 = vmul.f32 (!%p403_p8), %v2148_v8, %v2148_v8  ;;  %v542_v13 = vmul.f32 (!%p403_p8), %v2150_v9, %v2150_v9  ;;  %v566_v14 = vmul.f32 (!%p403_p8), %v2152_v10, %v2152_v10  ;;  %v543_v15 = vmul.f32 (!%p403_p8), %v2154_v11, %v2154_v11  ;;  %513 = vst.msk [vmem:[#allocation3 + $0x10] sm:$0xff] (!%p403_p8), %vm502_vm2, %v2041_v20 }
  0x2d   : > { %514 = vst.msk [vmem:[#allocation3 + $0x18] sm:$0xff] (!%p403_p8), %vm502_vm2, %v2041_v20  ;;  %515 = vst.msk [vmem:[#allocation3 + $0x20] sm:$0xff] (!%p403_p8), %vm502_vm2, %v2041_v20 }
  0x2e   : > { %v567_v16 = vsel %vm519_vm0, %v565_v12, 0.0  ;;  %v545_v17 = vsel %vm519_vm0, %v542_v13, 0.0  ;;  %v570_v18 = vsel %vm519_vm0, %v566_v14, 0.0  ;;  %v548_v19 = vsel %vm519_vm0, %v543_v15, 0.0  ;;  %516 = vst.msk [vmem:[#allocation3 + $0x28] sm:$0xff] %vm502_vm2, %v2041_v20  ;;  %517 = vst.msk [vmem:[#allocation3 + $0x30] sm:$0xff] %vm502_vm2, %v2041_v20 }
  0x2f   : > { %568 = vadd.xlane.f32.xlu0 %v567_v16  ;;  %546 = vadd.xlane.f32.xlu1 %v545_v17  ;;  %518 = vst.msk [vmem:[#allocation3 + $0x38] sm:$0xff] %vm502_vm2, %v2041_v20  ;;  %s2561_s20 = smov (!%p488_p9, %s2031_s20), 1 }
  0x30   : > { %s1775_s29 = sshll.u32 %s2561_s20, 3 }
  0x31   : > { %s495_s24 = scalar_lea.vmem %s2552_s5, %s1775_s29 }
  0x33   : > { %571 = vadd.xlane.f32.xlu0 %v570_v18  ;;  %549 = vadd.xlane.f32.xlu1 %v548_v19 }
  0x44   : > { %789 = vrot.lane.b32.xlu1 %v566_v14, %s2043_s18 }
  0x48   : > { %752 = vrot.lane.b32.xlu1 %v542_v13, %s2043_s18 }
  0x49   : > { %787 = vrot.lane.b32.xlu0 %v565_v12, %s2043_s18 }
  0x4c   : > { %754 = vrot.lane.b32.xlu1 %v543_v15, %s2043_s18 }
  0x4d   : > { %1019 = vrot.lane.b32.xlu0 %v565_v12, %s2044_s10 }
  0x50   : > { %1021 = vrot.lane.b32.xlu1 %v566_v14, %s2044_s10 }
  0x51   : > { %988 = vrot.lane.b32.xlu0 %v542_v13, %s2044_s10 }
  0x54   : > { %990 = vrot.lane.b32.xlu1 %v543_v15, %s2044_s10 }
  0x55   : > { %1249 = vrot.lane.b32.xlu0 %v565_v12, %s2045_s11 }
  0x58   : > { %1251 = vrot.lane.b32.xlu1 %v566_v14, %s2045_s11  ;;  %v2046_v14 = vmov -1e+30  }
  0x59   : > { %1218 = vrot.lane.b32.xlu0 %v542_v13, %s2045_s11  ;;  %503 = vst.msk [vmem:[#allocation2] sm:$0xff] %vm502_vm2, %v2046_v14  ;;  %504 = vst.msk [vmem:[#allocation2 + $0x8] sm:$0xff] %vm502_vm2, %v2046_v14 }
  0x5a   : > { %505 = vst.msk [vmem:[#allocation2 + $0x10] sm:$0xff] %vm502_vm2, %v2046_v14  ;;  %506 = vst.msk [vmem:[#allocation2 + $0x18] sm:$0xff] %vm502_vm2, %v2046_v14 }
  0x5b   : > { %507 = vst.msk [vmem:[#allocation2 + $0x20] sm:$0xff] %vm502_vm2, %v2046_v14  ;;  %508 = vst.msk [vmem:[#allocation2 + $0x28] sm:$0xff] %vm502_vm2, %v2046_v14 }
  0x5c   : > { %1220 = vrot.lane.b32.xlu1 %v543_v15, %s2045_s11  ;;  %509 = vst.msk [vmem:[#allocation2 + $0x30] sm:$0xff] %vm502_vm2, %v2046_v14  ;;  %510 = vst.msk [vmem:[#allocation2 + $0x38] sm:$0xff] %vm502_vm2, %v2046_v14 }
  0xbc   : > { %v569_v21 = vpop.xlane.xlu0 %568  ;;  %v547_v22 = vpop.xlane.xlu1 %546 }
  0xbd   : > { %v573_v23 = vmul.f32 0.03125, %v569_v21  ;;  %v552_v24 = vmul.f32 0.03125, %v547_v22 }
  0xbf   : > { %v575_v25 = vadd.f32 1e-06, %v573_v23  ;;  %v554_v26 = vadd.f32 1e-06, %v552_v24 }
  0xc0   : > { %v572_v27 = vpop.xlane.xlu0 %571  ;;  %v550_v28 = vpop.xlane.xlu1 %549 }
  0xc1   : > { %1921 = vrsqrt.f32 %v575_v25  ;;  %v574_v29 = vmul.f32 0.03125, %v572_v27  ;;  %v553_v30 = vmul.f32 0.03125, %v550_v28 }
  0xc2   : > { %1923 = vrsqrt.f32 %v554_v26  ;;  %v2047_v26 = vmov 0  }
  0xc3   : > { %v576_v31 = vadd.f32 1e-06, %v574_v29  ;;  %v555_v32 = vadd.f32 1e-06, %v553_v30  ;;  %1903 = vset.pattern.permute.xlu0 %v2047_v26  ;;  %1904 = vset.pattern.permute.xlu1 %v2047_v26 }
  0xc4   : > { %v790_v45 = vpop.permute.xlu1 %789  ;;  %v788_v46 = vpop.permute.xlu0 %787 }
  0xc5   : > { %1925 = vrsqrt.f32 %v576_v31  ;;  %v793_v49 = vsel %vm519_vm0, %v788_v46, 0.0  ;;  %v796_v53 = vsel %vm519_vm0, %v790_v45, 0.0 }
  0xc6   : > { %1927 = vrsqrt.f32 %v555_v32  ;;  %794 = vadd.xlane.f32.xlu0 %v793_v49 }
  0xc8   : > { %v753_v54 = vpop.permute.xlu1 %752  ;;  %v1020_v56 = vpop.permute.xlu0 %1019 }
  0xc9   : > { %v758_v59 = vsel %vm519_vm0, %v753_v54, 0.0  ;;  %v1025_v63 = vsel %vm519_vm0, %v1020_v56, 0.0 }
  0xca   : > { %797 = vadd.xlane.f32.xlu0 %v796_v53 }
  0xcb   : > { %v1922_v33 = vpop.eup %1921 }
  0xcc   : > { %v1924_v34 = vpop.eup %1923  ;;  %v579_v35 = vmul.f32 %v1922_v33, %v2148_v8  ;;  %v755_v60 = vpop.permute.xlu1 %754 }
  0xcd   : > { %v558_v41 = vmul.f32 %v1924_v34, %v2150_v9  ;;  %v761_v61 = vsel %vm519_vm0, %v755_v60, 0.0  ;;  %v989_v1 = vpop.permute.xlu0 %988 }
  0xce   : > { %v581_v47 = vmul.f32 %v579_v35, %v2206_v37  ;;  %762 = vadd.xlane.f32.xlu1 %v761_v61  ;;  %759 = vadd.xlane.f32.xlu0 %v758_v59  ;;  %v994_v3 = vsel %vm519_vm0, %v989_v1, 0.0 }
  0xcf   : > { %v1926_v36 = vpop.eup %1925  ;;  %v560_v51 = vmul.f32 %v558_v41, %v2218_v42 }
  0xd0   : > { %v1928_v39 = vpop.eup %1927  ;;  %v580_v40 = vmul.f32 %v1926_v36, %v2152_v10  ;;  %v1022_v0 = vpop.permute.xlu1 %1021 }
  0xd1   : > { %v559_v44 = vmul.f32 %v1928_v39, %v2154_v11  ;;  %v562_v57 = vmul.f32 0.17677669, %v560_v51  ;;  %v1028_v2 = vsel %vm519_vm0, %v1022_v0, 0.0  ;;  %v1250_v15 = vpop.permute.xlu0 %1249 }
  0xd2   : > { %v582_v48 = vmul.f32 %v580_v40, %v2211_v38  ;;  %1029 = vadd.xlane.f32.xlu1 %v1028_v2  ;;  %1026 = vadd.xlane.f32.xlu0 %v1025_v63  ;;  %v1255_v23 = vsel %vm519_vm0, %v1250_v15, 0.0 }
  0xd3   : > { %v561_v52 = vmul.f32 %v559_v44, %v2223_v43 }
  0xd4   : > { %v583_v50 = vpack.c.bf16 %v582_v48, %v581_v47  ;;  %v991_v4 = vpop.permute.xlu1 %990 }
  0xd5   : > { %v563_v58 = vmul.f32 0.17677669, %v561_v52  ;;  %v997_v5 = vsel %vm519_vm0, %v991_v4, 0.0  ;;  %v1219_v24 = vpop.permute.xlu0 %1218  ;;  %v2303_v52 = vld [vmem:[#allocation2] sm:$0xff] }
  0xd6   : > { %v588_v55 = vsel %vm519_vm0, %v583_v50, 0  ;;  %998 = vadd.xlane.f32.xlu1 %v997_v5  ;;  %995 = vadd.xlane.f32.xlu0 %v994_v3  ;;  %v1224_v25 = vsel %vm519_vm0, %v1219_v24, 0.0 }
  0xd7   : > { %1808 = vmatpush3.bf16.xpose.msra.mxu0 %v588_v55  ;;  %v564_v62 = vpack.c.bf16 %v563_v58, %v562_v57  ;;  %v2305_v55 = vld [vmem:[#allocation2 + $0x8] sm:$0xff] }
  0xd8   : > { %1825 = vmatprep.subr.bf16.mxu0 %v2041_v20  ;;  %v1252_v6 = vpop.permute.xlu1 %1251 }
  0xd9   : > { %v1258_v7 = vsel %vm519_vm0, %v1252_v6, 0.0 }
  0xda   : > { %1259 = vadd.xlane.f32.xlu1 %v1258_v7 }
  0xdc   : > { %v1221_v12 = vpop.permute.xlu1 %1220 }
  0xdd   : > { %v1227_v13 = vsel %vm519_vm0, %v1221_v12, 0.0 }
  0xde   : > { %1810 = vmatmul.mubr.msk.bf16.vlgmr.msra.gmra.mrb[0].mxu0 %vm519_vm0, %v564_v62  ;;  %1228 = vadd.xlane.f32.xlu1 %v1227_v13 }
  0xdf   : > { %1827 = vmatprep.mubr.msk.bf16.mxu0 %vm2042_vm1, %v2041_v20 }
  0xef   : > { %811 = vrot.lane.b32.xlu1 %v2211_v38, %s2045_s11 }
 0x153   : > { %v795_v28 = vpop.xlane.xlu0 %794 }
 0x154   : > { %v799_v39 = vmul.f32 0.03125, %v795_v28 }
 0x156   : > { %v801_v45 = vadd.f32 1e-06, %v799_v39 }
 0x157   : > { %v798_v30 = vpop.xlane.xlu0 %797 }
 0x158   : > { %v800_v35 = vmul.f32 0.03125, %v798_v30 }
 0x15a   : > { %v802_v41 = vadd.f32 1e-06, %v800_v35 }
 0x15b   : > { %v763_v27 = vpop.xlane.xlu1 %762  ;;  %v760_v32 = vpop.xlane.xlu0 %759 }
 0x15c   : > { %v764_v33 = vmul.f32 0.03125, %v760_v32  ;;  %v765_v36 = vmul.f32 0.03125, %v763_v27 }
 0x15e   : > { %v766_v40 = vadd.f32 1e-06, %v764_v33 }
 0x15f   : > { %v1030_v29 = vpop.xlane.xlu1 %1029 }
 0x160   : > { %1929 = vrsqrt.f32 %v766_v40 }
 0x161   : > { %1931 = vrsqrt.f32 %v802_v41 }
 0x163   : > { %v999_v31 = vpop.xlane.xlu1 %998 }
 0x164   : > { %v1001_v47 = vmul.f32 0.03125, %v999_v31  ;;  %v2328_v31 = vld [vmem:[%s425_s28] sm:$0xff]  }
 0x165   : > { %1814 = vmatpush3.bf16.msra.mxu1 %v2328_v31 }
 0x166   : > { %v1003_v53 = vadd.f32 1e-06, %v1001_v47  ;;  %1819 = vmatprep.subr.bf16.mxu1 %v2041_v20 }
 0x167   : > { %v1260_v34 = vpop.xlane.xlu1 %1259 }
 0x168   : > { %v1262_v56 = vmul.f32 0.03125, %v1260_v34 }
 0x16a   : > { %v1930_v63 = vpop.eup %1929  ;;  %v1264_v2 = vadd.f32 1e-06, %v1262_v56 }
 0x16b   : > { %v1229_v44 = vpop.xlane.xlu1 %1228  ;;  %v1932_v1 = vpop.eup %1931  ;;  %v770_v13 = vmul.f32 %v1930_v63, %v2150_v9 }
 0x16c   : > { %v1231_v60 = vmul.f32 0.03125, %v1229_v44  ;;  %v806_v15 = vmul.f32 %v1932_v1, %v2152_v10 }
 0x16e   : > { %v1233_v7 = vadd.f32 1e-06, %v1231_v60 }
 0x16f   : > { %v812_v49 = vpop.permute.xlu1 %811 }
 0x1b1   : > { %v2271_v16 = vpop.f32.mrb[0].mxu0 }
 0x1b2   : > { %v1811_v17 = vpop.f32.mrb[1].mxu0  ;;  %v634_v18 = vsel %vm633_vm3, %v2271_v16, -inf }
 0x1b3   : > { %v2275_v19 = vpop.f32.mrb[2].mxu0  ;;  %635 = vmax.xlane.f32.xlu0 %v634_v18 }
 0x1b4   : > { %v1812_v21 = vpop.f32.mrb[3].mxu0  ;;  %v637_v22 = vsel %vm633_vm3, %v2275_v19, -inf }
 0x1b5   : > { %638 = vmax.xlane.f32.xlu1 %v637_v22 }
 0x1b7   : > { %1256 = vadd.xlane.f32.xlu0 %v1255_v23 }
 0x1bb   : > { %1225 = vadd.xlane.f32.xlu0 %v1224_v25 }
 0x1c6   : > { %774 = vrot.lane.b32.xlu1 %v2218_v42, %s2045_s11 }
 0x1ca   : > { %776 = vrot.lane.b32.xlu1 %v2223_v43, %s2045_s11 }
 0x1ce   : > { %1041 = vrot.lane.b32.xlu1 %v2211_v38, %s2044_s10 }
 0x1d1   : > { %809 = vrot.lane.b32.xlu0 %v2206_v37, %s2045_s11 }
 0x1d2   : > { %1010 = vrot.lane.b32.xlu1 %v2223_v43, %s2044_s10 }
 0x1d5   : > { %1039 = vrot.lane.b32.xlu0 %v2206_v37, %s2044_s10 }
 0x1d6   : > { %1271 = vrot.lane.b32.xlu1 %v2211_v38, %s2043_s18  ;;  %v1027_v38 = vpop.xlane.xlu0 %1026 }
 0x1d9   : > { %1008 = vrot.lane.b32.xlu0 %v2218_v42, %s2044_s10 }
 0x1da   : > { %1240 = vrot.lane.b32.xlu1 %v2223_v43, %s2043_s18  ;;  %v767_v43 = vadd.f32 1e-06, %v765_v36  ;;  %v996_v46 = vpop.xlane.xlu0 %995 }
 0x1db   : > { %v1000_v51 = vmul.f32 0.03125, %v996_v46 }
 0x1dc   : > { %1933 = vrsqrt.f32 %v767_v43 }
 0x1dd   : > { %1269 = vrot.lane.b32.xlu0 %v2206_v37, %s2043_s18  ;;  %v1032_v37 = vmul.f32 0.03125, %v1030_v29  ;;  %1935 = vrsqrt.f32 %v801_v45  ;;  %v1002_v58 = vadd.f32 1e-06, %v1000_v51  ;;  %v816_v29 = vmul.f32 %v812_v49, %v806_v15 }
 0x1df   : > { %v1034_v48 = vadd.f32 1e-06, %v1032_v37 }
 0x1e1   : > { %1238 = vrot.lane.b32.xlu0 %v2218_v42, %s2043_s18  ;;  %v1031_v42 = vmul.f32 0.03125, %v1027_v38  ;;  %1937 = vrsqrt.f32 %v1034_v48 }
 0x1e3   : > { %v1033_v50 = vadd.f32 1e-06, %v1031_v42 }
 0x1e5   : > { %1939 = vrsqrt.f32 %v1033_v50 }
 0x1e6   : > { %1941 = vrsqrt.f32 %v1003_v53  ;;  %v1934_v5 = vpop.eup %1933 }
 0x1e7   : > { %1943 = vrsqrt.f32 %v1002_v58  ;;  %v1936_v14 = vpop.eup %1935  ;;  %v771_v22 = vmul.f32 %v1934_v5, %v2154_v11 }
 0x1e8   : > { %1945 = vrsqrt.f32 %v1264_v2  ;;  %v805_v27 = vmul.f32 %v1936_v14, %v2148_v8 }
 0x1eb   : > { %v1938_v24 = vpop.eup %1937 }
 0x1ec   : > { %v1038_v40 = vmul.f32 %v1938_v24, %v2152_v10 }
 0x1ef   : > { %v1940_v28 = vpop.eup %1939 }
 0x1f0   : > { %v1942_v35 = vpop.eup %1941  ;;  %v1037_v41 = vmul.f32 %v1940_v28, %v2148_v8 }
 0x1f1   : > { %v1944_v43 = vpop.eup %1943  ;;  %v1007_v42 = vmul.f32 %v1942_v35, %v2154_v11 }
 0x1f2   : > { %v1946_v47 = vpop.eup %1945  ;;  %v1006_v50 = vmul.f32 %v1944_v43, %v2150_v9 }
 0x1f3   : > { %v1268_v1 = vmul.f32 %v1946_v47, %v2152_v10 }
 0x240   : > { %v636_v54 = vpop.xlane.xlu0 %635 }
 0x241   : > { %v2308_v57 = vmax.f32 %v2303_v52, %v636_v54 }
 0x242   : > { %v639_v59 = vpop.xlane.xlu1 %638 }
 0x243   : > { %v642_v61 = vsub.f32 %v2303_v52, %v2308_v57  ;;  %748 = vst.msk [vmem:[#allocation2] sm:$0xff] %vm502_vm2, %v2308_v57  ;;  %v2315_v62 = vmax.f32 %v2305_v55, %v639_v59  ;;  %650 = vperm.xlu0 %1903, %v2308_v57  }
 0x244   : > { %v1257_v0 = vpop.xlane.xlu0 %1256 }
 0x245   : > { %v643_v3 = vsub.f32 %v2305_v55, %v2315_v62  ;;  %749 = vst.msk [vmem:[#allocation2 + $0x8] sm:$0xff] %vm502_vm2, %v2315_v62  ;;  %v1261_v4 = vmul.f32 0.03125, %v1257_v0  ;;  %655 = vperm.xlu1 %1904, %v2315_v62  }
 0x246   : > { %v775_v6 = vpop.permute.xlu1 %774 }
 0x247   : > { %v1263_v12 = vadd.f32 1e-06, %v1261_v4  ;;  %v780_v18 = vmul.f32 %v775_v6, %v770_v13 }
 0x248   : > { %v1226_v17 = vpop.xlane.xlu0 %1225 }
 0x249   : > { %v1230_v21 = vmul.f32 0.03125, %v1226_v17  ;;  %1947 = vrsqrt.f32 %v1263_v12  ;;  %v782_v32 = vmul.f32 0.17677669, %v780_v18 }
 0x24a   : > { %v777_v23 = vpop.permute.xlu1 %776  ;;  %1949 = vrsqrt.f32 %v1233_v7 }
 0x24b   : > { %v1232_v25 = vadd.f32 1e-06, %v1230_v21  ;;  %v781_v26 = vmul.f32 %v777_v23, %v771_v22 }
 0x24c   : > { %v810_v30 = vpop.permute.xlu0 %809 }
 0x24d   : > { %1951 = vrsqrt.f32 %v1232_v25  ;;  %v783_v33 = vmul.f32 0.17677669, %v781_v26  ;;  %v815_v34 = vmul.f32 %v810_v30, %v805_v27 }
 0x24e   : > { %v1042_v36 = vpop.permute.xlu1 %1041 }
 0x24f   : > { %v784_v38 = vpack.c.bf16 %v783_v33, %v782_v32  ;;  %v817_v39 = vpack.c.bf16 %v816_v29, %v815_v34  ;;  %v1046_v37 = vmul.f32 %v1042_v36, %v1038_v40  ;;  %v644_v40 = vmul.f32 1.442695, %v642_v61 }
 0x250   : > { %v1040_v44 = vpop.permute.xlu0 %1039 }
 0x251   : > { %v1045_v45 = vmul.f32 %v1040_v44, %v1037_v41  ;;  %822 = vrot.lane.b32.xlu1 %v817_v39, %s2043_s18  ;;  %819 = vrot.lane.b32.xlu0 %v784_v38, %s2043_s18  ;;  %v646_v41 = vmul.f32 1.442695, %v643_v3  ;;  %v664_v44 = vld [vmem:[#allocation3] sm:$0xff] }
 0x252   : > { %v1011_v46 = vpop.permute.xlu1 %1010 }
 0x253   : > { %v1047_v48 = vpack.c.bf16 %v1046_v37, %v1045_v45  ;;  %v1015_v49 = vmul.f32 %v1011_v46, %v1007_v42  ;;  %v1948_v51 = vpop.eup %1947  ;;  %v665_v45 = vld [vmem:[#allocation3 + $0x8] sm:$0xff] }
 0x254   : > { %v1009_v53 = vpop.permute.xlu0 %1008  ;;  %v1950_v54 = vpop.eup %1949  ;;  %v1267_v58 = vmul.f32 %v1948_v51, %v2148_v8 }
 0x255   : > { %v1014_v56 = vmul.f32 %v1009_v53, %v1006_v50  ;;  %1052 = vrot.lane.b32.xlu1 %v1047_v48, %s2044_s10  ;;  %v1017_v63 = vmul.f32 0.17677669, %v1015_v49  ;;  %v1237_v4 = vmul.f32 %v1950_v54, %v2154_v11 }
 0x256   : > { %v1272_v59 = vpop.permute.xlu1 %1271 }
 0x257   : > { %v1952_v60 = vpop.eup %1951  ;;  %v1016_v0 = vmul.f32 0.17677669, %v1014_v56  ;;  %v1276_v6 = vmul.f32 %v1272_v59, %v1268_v1 }
 0x258   : > { %v1270_v2 = vpop.permute.xlu0 %1269  ;;  %v1236_v12 = vmul.f32 %v1952_v60, %v2150_v9 }
 0x259   : > { %v1018_v5 = vpack.c.bf16 %v1017_v63, %v1016_v0  ;;  %v1275_v7 = vmul.f32 %v1270_v2, %v1267_v58 }
 0x25a   : > { %v1241_v13 = vpop.permute.xlu1 %1240 }
 0x25b   : > { %v1277_v14 = vpack.c.bf16 %v1276_v6, %v1275_v7  ;;  %v1245_v15 = vmul.f32 %v1241_v13, %v1237_v4  ;;  %1049 = vrot.lane.b32.xlu0 %v1018_v5, %s2044_s10  ;;  %v2401_v13 = vld [vmem:[#allocation2 + $0x10] sm:$0xff] }
 0x25c   : > { %v1239_v8 = vpop.permute.xlu0 %1238 }
 0x25d   : > { %v1244_v17 = vmul.f32 %v1239_v8, %v1236_v12  ;;  %1282 = vrot.lane.b32.xlu1 %v1277_v14, %s2045_s11  ;;  %v1247_v18 = vmul.f32 0.17677669, %v1245_v15  ;;  %v2406_v8 = vld [vmem:[#allocation2 + $0x18] sm:$0xff] }
 0x25f   : > { %v1246_v21 = vmul.f32 0.17677669, %v1244_v17 }
 0x261   : > { %v1248_v10 = vpack.c.bf16 %v1247_v18, %v1246_v21 }
 0x263   : > { %1279 = vrot.lane.b32.xlu0 %v1248_v10, %s2045_s11  ;;  %v2416_v10 = vld [vmem:[#allocation2 + $0x20] sm:$0xff] }
 0x2c2   : > { %v651_v11 = vpop.permute.xlu0 %650 }
 0x2c3   : > { %v658_v22 = vsub.f32 %v2271_v16, %v651_v11 }
 0x2c4   : > { %v656_v23 = vpop.permute.xlu1 %655 }
 0x2c5   : > { %v660_v24 = vmul.f32 1.442695, %v658_v22  ;;  %v659_v9 = vsub.f32 %v2275_v19, %v656_v23 }
 0x2c6   : > { %v820_v19 = vpop.permute.xlu0 %819 }
 0x2c7   : > { %1953 = vpow2.f32 %v660_v24  ;;  %v662_v25 = vmul.f32 1.442695, %v659_v9  ;;  %v2426_v24 = vld [vmem:[#allocation2 + $0x28] sm:$0xff] }
 0x2c8   : > { %v823_v29 = vpop.permute.xlu1 %822 }
 0x2c9   : > { %1955 = vpow2.f32 %v662_v25  ;;  %v828_v33 = vsel %vm519_vm0, %v823_v29, 0 }
 0x2ca   : > { %1957 = vpow2.f32 %v644_v40  ;;  %v679_v40 = vld [vmem:[#allocation4] sm:$0xff] }
 0x2cb   : > { %1959 = vpow2.f32 %v646_v41 }
 0x2cc   : > { %v1053_v16 = vpop.permute.xlu1 %1052 }
 0x2cd   : > { %v1058_v34 = vsel %vm519_vm0, %v1053_v16, 0  ;;  %v1050_v36 = vpop.permute.xlu0 %1049  ;;  %v680_v16 = vld [vmem:[#allocation4 + $0x8] sm:$0xff] }
 0x2d0   : > { %v1283_v35 = vpop.permute.xlu1 %1282 }
 0x2d1   : > { %v1954_v26 = vpop.eup %1953  ;;  %v1288_v38 = vsel %vm519_vm0, %v1283_v35, 0 }
 0x2d2   : > { %v668_v27 = vsel %vm633_vm3, %v1954_v26, 0.0 }
 0x2d3   : > { %v1956_v28 = vpop.eup %1955  ;;  %669 = vadd.xlane.f32.xlu1 %v668_v27  ;;  %v2438_v27 = vld [vmem:[#allocation2 + $0x30] sm:$0xff] }
 0x2d4   : > { %v671_v30 = vsel %vm633_vm3, %v1956_v28, 0.0  ;;  %v693_v32 = vpack.c.bf16 %v1956_v28, %v1954_v26  ;;  %v1958_v43 = vpop.eup %1957 }
 0x2d5   : > { %672 = vadd.xlane.f32.xlu0 %v671_v30  ;;  %v1280_v39 = vpop.permute.xlu0 %1279  ;;  %v1960_v37 = vpop.eup %1959  ;;  %v666_v42 = vmul.f32 %v1958_v43, %v664_v44  ;;  %v2445_v30 = vld [vmem:[#allocation2 + $0x38] sm:$0xff] }
 0x2d6   : > { %1816 = vmatmul.mubr.msk.bf16.vlgmr.msra.gmra.mrb[0].mxu1 %vm633_vm3, %v693_v32  ;;  %v667_v48 = vmul.f32 %v1960_v37, %v665_v45 }
 0x2d7   : > { %1820 = vmatpush3.bf16.xpose.msra.mxu1 %v828_v33  ;;  %1821 = vmatprep.mubr.msk.bf16.mxu1 %vm2042_vm1, %v2041_v20 }
 0x2d8   : > { %1831 = vmatprep.subr.bf16.mxu1 %v2041_v20 }
 0x2de   : > { %1822 = vmatmul.mubr.msk.bf16.vlgmr.msra.gmra.mrb[4].mxu1 %vm519_vm0, %v820_v19 }
 0x2df   : > { %1832 = vmatpush3.bf16.xpose.msra.mxu1 %v1058_v34  ;;  %1833 = vmatprep.mubr.msk.bf16.mxu1 %vm2042_vm1, %v2041_v20 }
 0x2e0   : > { %1843 = vmatprep.subr.bf16.mxu1 %v2041_v20 }
 0x2e6   : > { %1834 = vmatmul.mubr.msk.bf16.vlgmr.msra.gmra.mrb[8].mxu1 %vm519_vm0, %v1050_v36 }
 0x2e7   : > { %1844 = vmatpush3.bf16.xpose.msra.mxu1 %v1288_v38  ;;  %1845 = vmatprep.mubr.msk.bf16.mxu1 %vm2042_vm1, %v2041_v20 }
 0x2ee   : > { %1846 = vmatmul.mubr.msk.bf16.vlgmr.msra.gmra.mrb[12].mxu1 %vm519_vm0, %v1280_v39 }
 0x360   : > { %v670_v46 = vpop.xlane.xlu1 %669 }
 0x361   : > { %v674_v47 = vadd.f32 %v670_v46, %v666_v42 }
 0x362   : > { %v673_v49 = vpop.xlane.xlu0 %672 }
 0x363   : > { %677 = vst.msk [vmem:[#allocation3] sm:$0xff] %vm502_vm2, %v674_v47  ;;  %v675_v50 = vadd.f32 %v673_v49, %v667_v48 }
 0x365   : > { %678 = vst.msk [vmem:[#allocation3 + $0x8] sm:$0xff] %vm502_vm2, %v675_v50 }
 0x3a9   : > { %v2373_v52 = vpop.f32.mrb[0].mxu1 }
 0x3aa   : > { %v1817_v55 = vpop.f32.mrb[1].mxu1 }
 0x3ab   : > { %v2375_v57 = vpop.f32.mrb[2].mxu1 }
 0x3ac   : > { %v1818_v61 = vpop.f32.mrb[3].mxu1 }
 0x3b1   : > { %v2377_v62 = vpop.f32.mrb[4].mxu1 }
 0x3b2   : > { %v1823_v3 = vpop.f32.mrb[5].mxu1  ;;  %v874_v51 = vsel %vm633_vm3, %v2377_v62, -inf }
 0x3b3   : > { %875 = vmax.xlane.f32.xlu1 %v874_v51  ;;  %v2381_v53 = vpop.f32.mrb[6].mxu1 }
 0x3b4   : > { %v1824_v54 = vpop.f32.mrb[7].mxu1  ;;  %v877_v56 = vsel %vm633_vm3, %v2381_v53, -inf }
 0x3b7   : > { %878 = vmax.xlane.f32.xlu1 %v877_v56 }
 0x3b9   : > { %v2385_v58 = vpop.f32.mrb[8].mxu1 }
 0x3ba   : > { %v1835_v59 = vpop.f32.mrb[9].mxu1  ;;  %v1104_v60 = vsel %vm633_vm3, %v2385_v58, -inf }
 0x3bb   : > { %1105 = vmax.xlane.f32.xlu1 %v1104_v60  ;;  %v2389_v63 = vpop.f32.mrb[10].mxu1 }
 0x3bc   : > { %v1836_v0 = vpop.f32.mrb[11].mxu1  ;;  %v1107_v1 = vsel %vm633_vm3, %v2389_v63, -inf }
 0x3bf   : > { %1108 = vmax.xlane.f32.xlu1 %v1107_v1 }
 0x3c1   : > { %v2393_v2 = vpop.f32.mrb[12].mxu1 }
 0x3c2   : > { %v1847_v4 = vpop.f32.mrb[13].mxu1  ;;  %v1334_v5 = vsel %vm633_vm3, %v2393_v2, -inf }
 0x3c3   : > { %1335 = vmax.xlane.f32.xlu1 %v1334_v5  ;;  %v2397_v6 = vpop.f32.mrb[14].mxu1 }
 0x3c4   : > { %v1848_v7 = vpop.f32.mrb[15].mxu1  ;;  %v1337_v12 = vsel %vm633_vm3, %v2397_v6, -inf }
 0x3c5   : > { %1338 = vmax.xlane.f32.xlu0 %v1337_v12 }
 0x3d4   : > { %688 = vperm.xlu1 %1904, %v1960_v37  }
 0x3db   : > { %683 = vperm.xlu0 %1903, %v1958_v43  }
 0x440   : > { %v876_v14 = vpop.xlane.xlu1 %875 }
 0x441   : > { %v2404_v15 = vmax.f32 %v2401_v13, %v876_v14 }
 0x443   : > { %v882_v17 = vsub.f32 %v2401_v13, %v2404_v15  ;;  %986 = vst.msk [vmem:[#allocation2 + $0x10] sm:$0xff] %vm502_vm2, %v2404_v15  ;;  %890 = vperm.xlu1 %1904, %v2404_v15   ;;  %v1451_v15 = vld [vmem:[#allocation3] sm:$0xff] }
 0x444   : > { %v879_v18 = vpop.xlane.xlu1 %878 }
 0x445   : > { %v2414_v21 = vmax.f32 %v2406_v8, %v879_v18 }
 0x447   : > { %v883_v11 = vsub.f32 %v2406_v8, %v2414_v21  ;;  %987 = vst.msk [vmem:[#allocation2 + $0x18] sm:$0xff] %vm502_vm2, %v2414_v21  ;;  %895 = vperm.xlu1 %1904, %v2414_v21   ;;  %v1452_v21 = vld [vmem:[#allocation3 + $0x8] sm:$0xff] }
 0x448   : > { %v1106_v22 = vpop.xlane.xlu1 %1105 }
 0x449   : > { %v2424_v23 = vmax.f32 %v2416_v10, %v1106_v22 }
 0x44b   : > { %v1112_v9 = vsub.f32 %v2416_v10, %v2424_v23  ;;  %1216 = vst.msk [vmem:[#allocation2 + $0x20] sm:$0xff] %vm502_vm2, %v2424_v23  ;;  %1120 = vperm.xlu0 %1903, %v2424_v23   ;;  %935 = vrot.lane.b32.xlu1 %v2328_v31, %s2043_s18 }
 0x44c   : > { %v1109_v25 = vpop.xlane.xlu1 %1108 }
 0x44d   : > { %v2436_v26 = vmax.f32 %v2426_v24, %v1109_v25 }
 0x44f   : > { %v1113_v28 = vsub.f32 %v2426_v24, %v2436_v26  ;;  %1217 = vst.msk [vmem:[#allocation2 + $0x28] sm:$0xff] %vm502_vm2, %v2436_v26  ;;  %1125 = vperm.xlu0 %1903, %v2436_v26  }
 0x450   : > { %v1336_v29 = vpop.xlane.xlu1 %1335 }
 0x451   : > { %v2448_v32 = vmax.f32 %v2438_v27, %v1336_v29  ;;  %v1116_v13 = vmul.f32 1.442695, %v1113_v28  ;;  %v905_v28 = vld [vmem:[#allocation3 + $0x10] sm:$0xff] }
 0x452   : > { %v1339_v33 = vpop.xlane.xlu0 %1338 }
 0x453   : > { %v1342_v19 = vsub.f32 %v2438_v27, %v2448_v32  ;;  %1446 = vst.msk [vmem:[#allocation2 + $0x30] sm:$0xff] %vm502_vm2, %v2448_v32  ;;  %v2455_v34 = vmax.f32 %v2445_v30, %v1339_v33  ;;  %1350 = vperm.xlu0 %1903, %v2448_v32   ;;  %v884_v33 = vmul.f32 1.442695, %v882_v17 }
 0x454   : > { %v689_v35 = vpop.permute.xlu1 %688 }
 0x455   : > { %v1343_v36 = vsub.f32 %v2445_v30, %v2455_v34  ;;  %1447 = vst.msk [vmem:[#allocation2 + $0x38] sm:$0xff] %vm502_vm2, %v2455_v34  ;;  %v692_v38 = vmul.f32 %v689_v35, %v680_v16  ;;  %v1114_v16 = vmul.f32 1.442695, %v1112_v9  ;;  %v1344_v35 = vmul.f32 1.442695, %v1342_v19  ;;  %v906_v19 = vld [vmem:[#allocation3 + $0x18] sm:$0xff] }
 0x457   : > { %v745_v39 = vadd.f32 %v2375_v57, %v692_v38  ;;  %1355 = vperm.xlu0 %1903, %v2455_v34   ;;  %v1346_v17 = vmul.f32 1.442695, %v1343_v36 }
 0x459   : > { %747 = vst.msk [vmem:[#allocation4 + $0x8] sm:$0xff] %vm519_vm0, %v745_v39  ;;  %v1135_v39 = vld [vmem:[#allocation3 + $0x20] sm:$0xff] }
 0x45a   : > { %v684_v41 = vpop.permute.xlu0 %683 }
 0x45b   : > { %v691_v43 = vmul.f32 %v684_v41, %v679_v40  ;;  %1165 = vrot.lane.b32.xlu0 %v2328_v31, %s2044_s10 }
 0x45d   : > { %v744_v44 = vadd.f32 %v2373_v52, %v691_v43 }
 0x45f   : > { %746 = vst.msk [vmem:[#allocation4] sm:$0xff] %vm519_vm0, %v744_v44  ;;  %1395 = vrot.lane.b32.xlu0 %v2328_v31, %s2045_s11  ;;  %v1136_v44 = vld [vmem:[#allocation3 + $0x28] sm:$0xff] }
 0x4c2   : > { %v891_v37 = vpop.permute.xlu1 %890 }
 0x4c3   : > { %v898_v45 = vsub.f32 %v2377_v62, %v891_v37 }
 0x4c5   : > { %v900_v42 = vmul.f32 1.442695, %v898_v45 }
 0x4c6   : > { %v896_v46 = vpop.permute.xlu1 %895 }
 0x4c7   : > { %1961 = vpow2.f32 %v900_v42  ;;  %v899_v47 = vsub.f32 %v2381_v53, %v896_v46 }
 0x4c9   : > { %v902_v48 = vmul.f32 1.442695, %v899_v47  ;;  %v1365_v47 = vld [vmem:[#allocation3 + $0x30] sm:$0xff] }
 0x4ca   : > { %v1121_v49 = vpop.permute.xlu0 %1120  ;;  %v936_v50 = vpop.permute.xlu1 %935 }
 0x4cb   : > { %1963 = vpow2.f32 %v902_v48  ;;  %v1128_v55 = vsub.f32 %v2385_v58, %v1121_v49  ;;  %1826 = vmatpush3.bf16.msra.mxu0 %v936_v50 }
 0x4cc   : > { %1837 = vmatprep.subr.bf16.mxu0 %v2041_v20 }
 0x4cd   : > { %v1130_v52 = vmul.f32 1.442695, %v1128_v55 }
 0x4ce   : > { %v1126_v57 = vpop.permute.xlu0 %1125 }
 0x4cf   : > { %1965 = vpow2.f32 %v1130_v52  ;;  %v1129_v31 = vsub.f32 %v2389_v63, %v1126_v57  ;;  %v1366_v52 = vld [vmem:[#allocation3 + $0x38] sm:$0xff] }
 0x4d1   : > { %v1962_v61 = vpop.eup %1961  ;;  %v1132_v62 = vmul.f32 1.442695, %v1129_v31 }
 0x4d2   : > { %v1351_v3 = vpop.permute.xlu0 %1350  ;;  %v909_v51 = vsel %vm633_vm3, %v1962_v61, 0.0 }
 0x4d3   : > { %1967 = vpow2.f32 %v1132_v62  ;;  %v1358_v53 = vsub.f32 %v2393_v2, %v1351_v3  ;;  %910 = vadd.xlane.f32.xlu1 %v909_v51 }
 0x4d5   : > { %v1964_v54 = vpop.eup %1963  ;;  %v1360_v56 = vmul.f32 1.442695, %v1358_v53 }
 0x4d6   : > { %v1356_v58 = vpop.permute.xlu0 %1355  ;;  %v912_v59 = vsel %vm633_vm3, %v1964_v54, 0.0  ;;  %v934_v60 = vpack.c.bf16 %v1964_v54, %v1962_v61 }
 0x4d7   : > { %1969 = vpow2.f32 %v1360_v56  ;;  %v1359_v0 = vsub.f32 %v2397_v6, %v1356_v58  ;;  %913 = vadd.xlane.f32.xlu0 %v912_v59 }
 0x4d8   : > { %1828 = vmatmul.mubr.msk.bf16.vlgmr.msra.gmra.mrb[4].mxu0 %vm633_vm3, %v934_v60 }
 0x4d9   : > { %v1966_v63 = vpop.eup %1965  ;;  %v1362_v1 = vmul.f32 1.442695, %v1359_v0  ;;  %1839 = vmatprep.mubr.msk.bf16.mxu0 %vm2042_vm1, %v2041_v20 }
 0x4da   : > { %v1139_v2 = vsel %vm633_vm3, %v1966_v63, 0.0  ;;  %v1166_v4 = vpop.permute.xlu0 %1165 }
 0x4db   : > { %1971 = vpow2.f32 %v1362_v1  ;;  %1140 = vadd.xlane.f32.xlu1 %v1139_v2  ;;  %1838 = vmatpush3.bf16.msra.mxu0 %v1166_v4  ;;  %v920_v2 = vld [vmem:[#allocation4 + $0x10] sm:$0xff]  ;;  %v921_v4 = vld [vmem:[#allocation4 + $0x18] sm:$0xff] }
 0x4dc   : > { %1849 = vmatprep.subr.bf16.mxu0 %v2041_v20  ;;  %1973 = vpow2.f32 %v884_v33  ;;  %v1150_v33 = vld [vmem:[#allocation4 + $0x20] sm:$0xff] }
 0x4dd   : > { %v1968_v5 = vpop.eup %1967  ;;  %1975 = vpow2.f32 %v1114_v16 }
 0x4de   : > { %v1142_v7 = vsel %vm633_vm3, %v1968_v5, 0.0  ;;  %v1164_v6 = vpack.c.bf16 %v1968_v5, %v1966_v63  ;;  %v1396_v12 = vpop.permute.xlu0 %1395 }
 0x4df   : > { %1143 = vadd.xlane.f32.xlu0 %v1142_v7 }
 0x4e0   : > { %1840 = vmatmul.mubr.msk.bf16.vlgmr.msra.gmra.mrb[8].mxu0 %vm633_vm3, %v1164_v6 }
 0x4e1   : > { %v1970_v14 = vpop.eup %1969  ;;  %1850 = vmatpush3.bf16.msra.mxu0 %v1396_v12  ;;  %1851 = vmatprep.mubr.msk.bf16.mxu0 %vm2042_vm1, %v2041_v20  ;;  %v886_v20 = vmul.f32 1.442695, %v883_v11 }
 0x4e2   : > { %v1369_v18 = vsel %vm633_vm3, %v1970_v14, 0.0 }
 0x4e3   : > { %1370 = vadd.xlane.f32.xlu0 %v1369_v18  ;;  %1977 = vpow2.f32 %v886_v20  ;;  %v1151_v20 = vld [vmem:[#allocation4 + $0x28] sm:$0xff] }
 0x4e4   : > { %1979 = vpow2.f32 %v1344_v35 }
 0x4e5   : > { %v1972_v22 = vpop.eup %1971  ;;  %1981 = vpow2.f32 %v1116_v13 }
 0x4e6   : > { %v1372_v25 = vsel %vm633_vm3, %v1972_v22, 0.0  ;;  %v1394_v29 = vpack.c.bf16 %v1972_v22, %v1970_v14  ;;  %1983 = vrcp.f32 %v1451_v15  ;;  %v1974_v8 = vpop.eup %1973 }
 0x4e7   : > { %1373 = vadd.xlane.f32.xlu1 %v1372_v25  ;;  %v1976_v10 = vpop.eup %1975  ;;  %1985 = vpow2.f32 %v1346_v17  ;;  %v907_v30 = vmul.f32 %v1974_v8, %v905_v28 }
 0x4e8   : > { %1852 = vmatmul.mubr.msk.bf16.vlgmr.msra.gmra.mrb[12].mxu0 %vm633_vm3, %v1394_v29  ;;  %1987 = vrcp.f32 %v1452_v21  ;;  %v1137_v41 = vmul.f32 %v1976_v10, %v1135_v39 }
 0x4ed   : > { %v1978_v11 = vpop.eup %1977 }
 0x4ee   : > { %v1980_v23 = vpop.eup %1979  ;;  %v908_v36 = vmul.f32 %v1978_v11, %v906_v19 }
 0x4ef   : > { %v1982_v24 = vpop.eup %1981  ;;  %v1367_v50 = vmul.f32 %v1980_v23, %v1365_v47 }
 0x4f0   : > { %v1984_v9 = vpop.eup %1983  ;;  %v1138_v42 = vmul.f32 %v1982_v24, %v1136_v44 }
 0x4f1   : > { %v1986_v26 = vpop.eup %1985 }
 0x4f2   : > { %v1988_v27 = vpop.eup %1987  ;;  %v1368_v61 = vmul.f32 %v1986_v26, %v1366_v52 }
 0x4f8   : > { %924 = vperm.xlu1 %1904, %v1974_v8  }
 0x4f9   : > { %1154 = vperm.xlu0 %1903, %v1976_v10  }
 0x4fc   : > { %929 = vperm.xlu1 %1904, %v1978_v11  }
 0x4fd   : > { %1384 = vperm.xlu0 %1903, %v1980_v23  }
 0x500   : > { %1159 = vperm.xlu1 %1904, %v1982_v24   ;;  %v1380_v24 = vld [vmem:[#allocation4 + $0x30] sm:$0xff] }
 0x501   : > { %1461 = vperm.xlu0 %1903, %v1984_v9  }
 0x504   : > { %1389 = vperm.xlu1 %1904, %v1986_v26   ;;  %v1381_v26 = vld [vmem:[#allocation4 + $0x38] sm:$0xff] }
 0x505   : > { %1466 = vperm.xlu0 %1903, %v1988_v27  }
 0x560   : > { %v911_v32 = vpop.xlane.xlu1 %910 }
 0x561   : > { %v915_v34 = vadd.f32 %v911_v32, %v907_v30 }
 0x563   : > { %917 = vst.msk [vmem:[#allocation3 + $0x10] sm:$0xff] %vm502_vm2, %v915_v34 }
 0x564   : > { %v914_v38 = vpop.xlane.xlu0 %913 }
 0x565   : > { %v916_v40 = vadd.f32 %v914_v38, %v908_v36 }
 0x567   : > { %918 = vst.msk [vmem:[#allocation3 + $0x18] sm:$0xff] %vm502_vm2, %v916_v40 }
 0x568   : > { %v1141_v43 = vpop.xlane.xlu1 %1140 }
 0x569   : > { %v1145_v37 = vadd.f32 %v1141_v43, %v1137_v41 }
 0x56a   : > { %v1471_v45 = vld [vmem:[#allocation3 + $0x10] sm:$0xff] }
 0x56b   : > { %1147 = vst.msk [vmem:[#allocation3 + $0x20] sm:$0xff] %vm502_vm2, %v1145_v37  ;;  %1989 = vrcp.f32 %v1471_v45 }
 0x56c   : > { %v1144_v46 = vpop.xlane.xlu0 %1143 }
 0x56d   : > { %v1146_v48 = vadd.f32 %v1144_v46, %v1138_v42 }
 0x56e   : > { %v1472_v49 = vld [vmem:[#allocation3 + $0x18] sm:$0xff] }
 0x56f   : > { %1148 = vst.msk [vmem:[#allocation3 + $0x28] sm:$0xff] %vm502_vm2, %v1146_v48  ;;  %1991 = vrcp.f32 %v1472_v49 }
 0x570   : > { %v1371_v55 = vpop.xlane.xlu0 %1370 }
 0x571   : > { %v1375_v57 = vadd.f32 %v1371_v55, %v1367_v50 }
 0x572   : > { %v1491_v31 = vld [vmem:[#allocation3 + $0x20] sm:$0xff] }
 0x573   : > { %1377 = vst.msk [vmem:[#allocation3 + $0x30] sm:$0xff] %vm502_vm2, %v1375_v57  ;;  %1993 = vrcp.f32 %v1491_v31 }
 0x574   : > { %v1374_v62 = vpop.xlane.xlu1 %1373 }
 0x575   : > { %v1990_v3 = vpop.eup %1989  ;;  %v1376_v51 = vadd.f32 %v1374_v62, %v1368_v61 }
 0x576   : > { %1481 = vperm.xlu0 %1903, %v1990_v3   ;;  %v1492_v53 = vld [vmem:[#allocation3 + $0x28] sm:$0xff] }
 0x577   : > { %1378 = vst.msk [vmem:[#allocation3 + $0x38] sm:$0xff] %vm502_vm2, %v1376_v51  ;;  %1995 = vrcp.f32 %v1492_v53 }
 0x578   : > { %v925_v1 = vpop.permute.xlu1 %924  ;;  %v1155_v16 = vpop.permute.xlu0 %1154 }
 0x579   : > { %v1992_v54 = vpop.eup %1991  ;;  %v932_v7 = vmul.f32 %v925_v1, %v920_v2  ;;  %v1162_v13 = vmul.f32 %v1155_v16, %v1150_v33  ;;  %v1458_v1 = vld [vmem:[#allocation4 + $0x8] sm:$0xff] }
 0x57a   : > { %1486 = vperm.xlu1 %1904, %v1992_v54   ;;  %v1511_v56 = vld [vmem:[#allocation3 + $0x30] sm:$0xff] }
 0x57b   : > { %1997 = vrcp.f32 %v1511_v56 }
 0x57c   : > { %v930_v5 = vpop.permute.xlu1 %929  ;;  %v1385_v9 = vpop.permute.xlu0 %1384 }
 0x57d   : > { %v1994_v58 = vpop.eup %1993  ;;  %v933_v12 = vmul.f32 %v930_v5, %v921_v4  ;;  %v1392_v28 = vmul.f32 %v1385_v9, %v1380_v24 }
 0x57e   : > { %1501 = vperm.xlu0 %1903, %v1994_v58   ;;  %v1512_v59 = vld [vmem:[#allocation3 + $0x38] sm:$0xff] }
 0x57f   : > { %1999 = vrcp.f32 %v1512_v59 }
 0x580   : > { %v1160_v35 = vpop.permute.xlu1 %1159  ;;  %v1462_v40 = vpop.permute.xlu0 %1461 }
 0x581   : > { %v1996_v60 = vpop.eup %1995  ;;  %v1163_v17 = vmul.f32 %v1160_v35, %v1151_v20 }
 0x582   : > { %1506 = vperm.xlu1 %1904, %v1996_v60  }
 0x584   : > { %v1390_v27 = vpop.permute.xlu1 %1389  ;;  %v1467_v41 = vpop.permute.xlu0 %1466 }
 0x585   : > { %v1998_v0 = vpop.eup %1997  ;;  %v1393_v32 = vmul.f32 %v1390_v27, %v1381_v26 }
 0x586   : > { %1521 = vperm.xlu0 %1903, %v1998_v0  }
 0x589   : > { %v2000_v63 = vpop.eup %1999 }
 0x58a   : > { %1526 = vperm.xlu1 %1904, %v2000_v63   ;;  %v1457_v63 = vld [vmem:[#allocation4] sm:$0xff] }
 0x58b   : > { %v1469_v5 = vmul.f32 %v1462_v40, %v1457_v63 }
 0x5ab   : > { %v975_v6 = vpop.f32.mrb[4].mxu0 }
 0x5ac   : > { %v982_v14 = vadd.f32 %v975_v6, %v932_v7  ;;  %v1829_v18 = vpop.f32.mrb[5].mxu0  ;;  %v1470_v7 = vmul.f32 %v1467_v41, %v1458_v1 }
 0x5ad   : > { %v978_v22 = vpop.f32.mrb[6].mxu0 }
 0x5ae   : > { %984 = vst.msk [vmem:[#allocation4 + $0x10] sm:$0xff] %vm519_vm0, %v982_v14  ;;  %v983_v25 = vadd.f32 %v978_v22, %v933_v12  ;;  %v1830_v29 = vpop.f32.mrb[7].mxu0 }
 0x5b0   : > { %985 = vst.msk [vmem:[#allocation4 + $0x18] sm:$0xff] %vm519_vm0, %v983_v25 }
 0x5b3   : > { %v1205_v15 = vpop.f32.mrb[8].mxu0 }
 0x5b4   : > { %v1212_v8 = vadd.f32 %v1205_v15, %v1162_v13  ;;  %v1841_v21 = vpop.f32.mrb[9].mxu0 }
 0x5b5   : > { %v1208_v10 = vpop.f32.mrb[10].mxu0  ;;  %v1477_v44 = vld [vmem:[#allocation4 + $0x10] sm:$0xff] }
 0x5b6   : > { %1214 = vst.msk [vmem:[#allocation4 + $0x20] sm:$0xff] %vm519_vm0, %v1212_v8  ;;  %v1213_v11 = vadd.f32 %v1208_v10, %v1163_v17  ;;  %v1842_v23 = vpop.f32.mrb[11].mxu0 }
 0x5b7   : > { %v1478_v37 = vld [vmem:[#allocation4 + $0x18] sm:$0xff] }
 0x5b8   : > { %1215 = vst.msk [vmem:[#allocation4 + $0x28] sm:$0xff] %vm519_vm0, %v1213_v11 }
 0x5bb   : > { %v1435_v30 = vpop.f32.mrb[12].mxu0 }
 0x5bc   : > { %v1442_v19 = vadd.f32 %v1435_v30, %v1392_v28  ;;  %v1853_v34 = vpop.f32.mrb[13].mxu0 }
 0x5bd   : > { %v1438_v36 = vpop.f32.mrb[14].mxu0  ;;  %v1497_v49 = vld [vmem:[#allocation4 + $0x20] sm:$0xff] }
 0x5be   : > { %1444 = vst.msk [vmem:[#allocation4 + $0x30] sm:$0xff] %vm519_vm0, %v1442_v19  ;;  %v1443_v38 = vadd.f32 %v1438_v36, %v1393_v32  ;;  %v1854_v39 = vpop.f32.mrb[15].mxu0 }
 0x5bf   : > { %v1498_v50 = vld [vmem:[#allocation4 + $0x28] sm:$0xff] }
 0x5c0   : > { %1445 = vst.msk [vmem:[#allocation4 + $0x38] sm:$0xff] %vm519_vm0, %v1443_v38 }
 0x5c5   : > { %v1517_v62 = vld [vmem:[#allocation4 + $0x30] sm:$0xff] }
 0x5c7   : > { %v1518_v3 = vld [vmem:[#allocation4 + $0x38] sm:$0xff] }
 0x5f5   : > { %v1482_v43 = vpop.permute.xlu0 %1481 }
 0x5f6   : > { %v1489_v42 = vmul.f32 %v1482_v43, %v1477_v44 }
 0x5f9   : > { %v1487_v45 = vpop.permute.xlu1 %1486 }
 0x5fa   : > { %v1490_v46 = vmul.f32 %v1487_v45, %v1478_v37 }
 0x5fc   : > { %v1905_v47 = vpack.i.bf16 %v1490_v46, %v1489_v42 }
 0x5fd   : > { %v1502_v48 = vpop.permute.xlu0 %1501 }
 0x5fe   : > { %1906 = vrot.lane.b32.xlu0 %v1905_v47, %s2045_s11  ;;  %v1509_v52 = vmul.f32 %v1502_v48, %v1497_v49 }
 0x601   : > { %v1507_v55 = vpop.permute.xlu1 %1506 }
 0x602   : > { %v1510_v57 = vmul.f32 %v1507_v55, %v1498_v50 }
 0x604   : > { %v1910_v31 = vpack.i.bf16 %v1510_v57, %v1509_v52 }
 0x605   : > { %v1522_v61 = vpop.permute.xlu0 %1521 }
 0x606   : > { %1911 = vrot.lane.b32.xlu1 %v1910_v31, %s2044_s10  ;;  %v1529_v53 = vmul.f32 %v1522_v61, %v1517_v62 }
 0x609   : > { %v1527_v51 = vpop.permute.xlu1 %1526 }
 0x60a   : > { %v1530_v54 = vmul.f32 %v1527_v51, %v1518_v3 }
 0x60c   : > { %v1915_v56 = vpack.i.bf16 %v1530_v54, %v1529_v53 }
 0x60e   : > { %1916 = vrot.lane.b32.xlu0 %v1915_v56, %s2043_s18 }
 0x670   : > { %v1907_v58 = vpop.permute.xlu0 %1906 }
 0x671   : > { %v1909_v60 = vunpack.i.h.bf16 %v1907_v58  ;;  %v1908_v0 = vunpack.i.l.bf16 %v1907_v58 }
 0x673   : > { %v1556_v12 = vsel %vm519_vm0, %v1470_v7, %v1909_v60  ;;  %v1555_v14 = vsel %vm519_vm0, %v1469_v5, %v1908_v0 }
 0x678   : > { %v1912_v59 = vpop.permute.xlu1 %1911 }
 0x679   : > { %v1914_v2 = vunpack.i.h.bf16 %v1912_v59  ;;  %v1913_v4 = vunpack.i.l.bf16 %v1912_v59 }
 0x67b   : > { %v1559_v25 = vsel %vm1557_vm4, %v1556_v12, %v1914_v2  ;;  %v1558_v29 = vsel %vm1557_vm4, %v1555_v14, %v1913_v4 }
 0x680   : > { %v1917_v6 = vpop.permute.xlu0 %1916 }
 0x681   : > { %v1919_v18 = vunpack.i.h.bf16 %v1917_v6  ;;  %v1918_v22 = vunpack.i.l.bf16 %v1917_v6 }
 0x683   : > { %v1561_v33 = vsel %vm1560_vm5, %v1558_v29, %v1918_v22  ;;  %v1562_v16 = vsel %vm1560_vm5, %v1559_v25, %v1919_v18 }
 0x684   : > { %v1789_v20 = vpack.c.bf16 %v1562_v16, %v1561_v33 }
 0x686   : > { %1790 = vst [vmem:[%s495_s24] sm:$0xff] %v1789_v20  }
 0x687 PF: > { %s15_s22 = sadd.s32 1, %s2039_s22   ;;  %s2554_s18 = smov %s2027_s19 }
 0x688   : > { %p12_p10 = scmp.ge.s32.totalorder %s15_s22, 4   ;;  %s2555_s19 = smov %s2117_s27 }
 0x689   : > { %s2556_s20 = smov %s2035_s21  ;;  %s2557_s21 = smov %s2559_s23 }
 0x68a   :  { %14 = sbr.rel (!%p12_p10) target bundleno = 3 (0x3), region = 237 }

// kernel: _lambda_.65
= control target key start
LH: loop header
LB: loop body
LE: loop exit
PB: predicated region body
PF: predicated region fallthrough
CT: control target
= control target key end

     0   :  { %s1125_s18 = smov 0   ;;  %s1127_s19 = smov 0   ;;  %s1303_s0 = inlined_call_operand.vmem [shape: bf16[2,16,128], index: 0, kind: input, shape index: {}]   ;;  %s1304_s1 = inlined_call_operand.vmem [shape: bf16[128,896], index: 1, kind: input, shape index: {}]   ;;  %s1305_s2 = inlined_call_operand.vmem [shape: bf16[1,1,896], index: 2, kind: input, shape index: {}]   ;;  %s1306_s3 = inlined_call_operand.vmem [shape: bf16[2,1,128], index: 3, kind: input, shape index: {}]   ;;  %s1307_s4 = inlined_call_operand.vmem [shape: bf16[2,1,128], index: 4, kind: input, shape index: {}]   ;;  %s1308_s5 = inlined_call_operand.vmem [shape: bf16[2,16,896], index: 5, kind: output, shape index: {}]  }
   0x1   :  { %s1129_s20 = smov 0   ;;  %s1131_s21 = smov 0  }
   0x2   :  { %s1133_s22 = smov 0   ;;  %s1135_s23 = smov 0  }
   0x3   :  { %s1137_s24 = smov 0   ;;  %s1139_s25 = smov 0  }
   0x4   :  { %s1141_s26 = smov 0  }
   0x5 LB: > { %s853_s27 = sadd.s32 4294967295, %s1091_s26   ;;  %s33_s28 = sadd.s32 1, %s1083_s24  ;;  %s1091_s26 = sphi %s1141_s26, %s15_s26   ;;  %s1087_s25 = sphi %s1139_s25, %s1317_s25   ;;  %s1083_s24 = sphi %s1137_s24, %s1316_s24   ;;  %s1079_s23 = sphi %s1135_s23, %s1315_s23   ;;  %s1075_s22 = sphi %s1133_s22, %s1314_s22   ;;  %s1071_s21 = sphi %s1131_s21, %s1313_s21   ;;  %s1067_s20 = sphi %s1129_s20, %s1312_s20   ;;  %s1063_s19 = sphi %s1127_s19, %s1311_s19   ;;  %s1059_s18 = sphi %s1125_s18, %s1310_s18  }
   0x6   : > { %p35_p0 = scmp.ge.s32.totalorder %s33_s28, 7  ;;  %s41_s29 = sadd.s32 1, %s1087_s25 }
   0x7   : > { %s80_s30 = sadd.s32 1, %s1071_s21  ;;  %p87_p1 = scmp.ne.s32.totalorder %s1071_s21, %s1067_s20 }
   0x8   : > { %s1319_s28 = smov (%p35_p0, %s33_s28), 0  ;;  %s1321_s29 = smov (!%p35_p0, %s41_s29), %s1087_s25 }
   0x9   : > { %s76_s6 = ssub.s32 %s1083_s24, %s1319_s28  ;;  %p88_p2 = scmp.eq.s32.totalorder %s1091_s26, 0 }
   0xa   : > { %p43_p3 = scmp.ge.s32.totalorder %s1321_s29, 2  ;;  %p78_p4 = scmp.eq.s32.totalorder %s76_s6, 0 }
   0xb   : > { %p89_p5 = por %p88_p2, %p87_p1  ;;  %s188_s7 = sadd.s32 1, %s1063_s19 }
   0xc   : > { %s1323_s29 = smov (%p43_p3, %s1321_s29), 0  ;;  %p198_p6 = scmp.ne.s32.totalorder %s1063_s19, %s1059_s18 }
   0xd   : > { %s1186_s8 = scalar_select %p78_p4, %s1071_s21, %s80_s30  }
   0xe   : > { %s181_s9 = ssub.s32 %s1087_s25, %s1323_s29  ;;  %p199_p7 = scmp.eq.s32.totalorder %s853_s27, 13 }
   0xf   : > { %s185_s10 = sor.u32 %s181_s9, %s76_s6  ;;  %p856_p10 = scmp.ge.s32.totalorder %s1091_s26, 14 }
  0x10   : > { %p186_p8 = scmp.eq.s32.totalorder %s185_s10, 0  ;;  %p1192_p9 = por %p199_p7, %p198_p6 }
  0x11   : > { %221 = sbr.rel (%p856_p10) target bundleno = 38 (0x26), region = 16 }
  0x12   : > { %s1197_s12 = scalar_select %p186_p8, %s1063_s19, %s188_s7  }
  0x18   : > { %240 = sbr.rel (!%p89_p5) target bundleno = 38 (0x26), region = 24  ;;  %s242_s13 = sand.u32 (%p89_p5), 1, %s1071_s21  }
  0x19   : > { %s858_s14 = sshll.u32 (%p89_p5), %s1083_s24, 2  ;;  %s857_s15 = sshll.u32 (%p89_p5), %s242_s13, 6 }
  0x1a   : > { %s1205_s27 = scalar_lea.vmem (%p89_p5), %s1304_s1, %s858_s14  ;;  %s244_s30 = scalar_lea.vmem (%p89_p5), [#allocation3], %s857_s15 }
  0x1b   : > { %v265_v0 = vld [vmem:[%s1205_s27] sm:$0xf] (%p89_p5)  ;;  %v267_v1 = vld [vmem:[%s1205_s27 + $0x1c] sm:$0xf] (%p89_p5)  ;;  %v269_v2 = vld [vmem:[%s1205_s27 + $0x38] sm:$0xf] (%p89_p5) }
  0x1c   : > { %266 = vst [vmem:[%s244_s30] sm:$0xf] (%p89_p5), %v265_v0  ;;  %268 = vst [vmem:[%s244_s30 + $0x4] sm:$0xf] (%p89_p5), %v267_v1  ;;  %v271_v3 = vld [vmem:[%s1205_s27 + $0x54] sm:$0xf] (%p89_p5) }
  0x1d   : > { %v273_v4 = vld [vmem:[%s1205_s27 + $0x70] sm:$0xf] (%p89_p5)  ;;  %270 = vst [vmem:[%s244_s30 + $0x8] sm:$0xf] (%p89_p5), %v269_v2  ;;  %272 = vst [vmem:[%s244_s30 + $0xc] sm:$0xf] (%p89_p5), %v271_v3 }
  0x1e   : > { %274 = vst [vmem:[%s244_s30 + $0x10] sm:$0xf] (%p89_p5), %v273_v4  ;;  %v275_v5 = vld [vmem:[%s1205_s27 + $0x8c] sm:$0xf] (%p89_p5)  ;;  %v277_v6 = vld [vmem:[%s1205_s27 + $0xa8] sm:$0xf] (%p89_p5) }
  0x1f   : > { %v279_v7 = vld [vmem:[%s1205_s27 + $0xc4] sm:$0xf]  ;;  %276 = vst [vmem:[%s244_s30 + $0x14] sm:$0xf] %v275_v5  ;;  %278 = vst [vmem:[%s244_s30 + $0x18] sm:$0xf] %v277_v6 }
  0x20   : > { %280 = vst [vmem:[%s244_s30 + $0x1c] sm:$0xf] %v279_v7  ;;  %v281_v8 = vld [vmem:[%s1205_s27 + $0xe0] sm:$0xf]  ;;  %v283_v9 = vld [vmem:[%s1205_s27 + $0xfc] sm:$0xf] }
  0x21   : > { %v285_v10 = vld [vmem:[%s1205_s27 + $0x118] sm:$0xf]  ;;  %282 = vst [vmem:[%s244_s30 + $0x20] sm:$0xf] %v281_v8  ;;  %284 = vst [vmem:[%s244_s30 + $0x24] sm:$0xf] %v283_v9 }
  0x22   : > { %286 = vst [vmem:[%s244_s30 + $0x28] sm:$0xf] %v285_v10  ;;  %v287_v11 = vld [vmem:[%s1205_s27 + $0x134] sm:$0xf]  ;;  %v289_v12 = vld [vmem:[%s1205_s27 + $0x150] sm:$0xf] }
  0x23   : > { %v291_v13 = vld [vmem:[%s1205_s27 + $0x16c] sm:$0xf]  ;;  %288 = vst [vmem:[%s244_s30 + $0x2c] sm:$0xf] %v287_v11  ;;  %290 = vst [vmem:[%s244_s30 + $0x30] sm:$0xf] %v289_v12 }
  0x24   : > { %292 = vst [vmem:[%s244_s30 + $0x34] sm:$0xf] %v291_v13  ;;  %v293_v14 = vld [vmem:[%s1205_s27 + $0x188] sm:$0xf]  ;;  %v295_v15 = vld [vmem:[%s1205_s27 + $0x1a4] sm:$0xf] }
  0x25   : > { %294 = vst [vmem:[%s244_s30 + $0x38] sm:$0xf] %v293_v14  ;;  %296 = vst [vmem:[%s244_s30 + $0x3c] sm:$0xf] %v295_v15 }
  0x26 PF: > { %p859_p11 = scmp.ge.s32.totalorder %s1091_s26, 1  ;;  %p368_p12 = scmp.lt.s32.totalorder %s1091_s26, 15 }
  0x28   : > { %p369_p13 = pnand %p859_p11, %p368_p12 }
  0x29   : > { %p423_p0 = scmp.lt.s32.totalorder (!%p369_p13), %s1079_s23, 1  ;;  %s419_s14 = sand.u32 (!%p369_p13), 1, %s1059_s18   ;;  %v1093_v19 = vmov (!%p369_p13), 0.0   ;;  %vm1094_vm0 = vmmov (!%p369_p13), 0   ;;  %v485_v40 = vlaneseq (!%p369_p13) }
  0x2a   : > { %372 = sbr.rel (%p369_p13) target bundleno = 633 (0x279), region = 77  ;;  %s375_s15 = sand.u32 (!%p369_p13), 1, %s1067_s20   ;;  %910 = vmatprep.subr.bf16.mxu0 (!%p369_p13), %v1093_v19  ;;  %926 = vmatprep.mubr.msk.bf16.mxu0 (!%p369_p13), %vm1094_vm0, %v1093_v19 }
  0x2b   : > { %s1235_s16 = sshll.u32 (!%p369_p13), %s419_s14, 3  ;;  %s860_s17 = sshll.u32 (!%p369_p13), %s375_s15, 6  ;;  %v486_v45 = vshrl.u32 (!%p369_p13), %v485_v40, 7 }
  0x2c   : > { %s1237_s27 = scalar_lea.vmem (!%p369_p13), [#allocation3], %s860_s17  ;;  %p436_p1 = scmp.lt.s32.totalorder (!%p369_p13), %s1075_s22, 6 }
  0x2d   : > { %v1005_v20 = vld [vmem:[%s1237_s27] sm:$0xff] (!%p369_p13)   ;;  %v1006_v29 = vld [vmem:[%s1237_s27 + $0x8] sm:$0xff] (!%p369_p13)   ;;  %v1007_v30 = vld [vmem:[%s1237_s27 + $0x10] sm:$0xff] (!%p369_p13)   ;;  %v487_v47 = vsub.s32 (!%p369_p13), 0, %v486_v45  ;;  %s1261_s17 = scalar_lea.vmem (!%p369_p13), [#allocation4], %s1235_s16  ;;  %p872_p2 = scmp.lt.s32.totalorder (!%p369_p13), %s1075_s22, 3 }
  0x2e   : > { %911 = vmatpush3.bf16.msra.mxu0 (!%p369_p13), %v1005_v20  ;;  %v1008_v31 = vld [vmem:[%s1237_s27 + $0x18] sm:$0xff] (!%p369_p13)   ;;  %v1009_v32 = vld [vmem:[%s1237_s27 + $0x20] sm:$0xff] (!%p369_p13)   ;;  %v1010_v33 = vld [vmem:[%s1237_s27 + $0x28] sm:$0xff] (!%p369_p13)  }
  0x2f   : > { %912 = vmatprep.subr.bf16.mxu0 (!%p369_p13), %v1093_v19  ;;  %v1011_v34 = vld [vmem:[%s1237_s27 + $0x30] sm:$0xff] (!%p369_p13)   ;;  %v1012_v35 = vld [vmem:[%s1237_s27 + $0x38] sm:$0xff] (!%p369_p13)  }
  0x31   : > { %s1227_s6 = scalar_select %p423_p0, %s1079_s23, 1 }
  0x32   : > { %913 = vmatpush3.bf16.msra.mxu0 %v1006_v29 }
  0x33   : > { %s882_s7 = sshll.u32 %s1227_s6, 3  ;;  %914 = vmatprep.subr.bf16.mxu0 %v1093_v19  ;;  %s441_s30 = scalar_lea.vmem %s1306_s3, %s1227_s6 }
  0x34   : > { %s433_s13 = scalar_lea.vmem %s1303_s0, %s882_s7  ;;  %v480_v41 = vld [vmem:[%s441_s30] sm:$0x1]  ;;  %s444_s10 = scalar_lea.vmem %s1307_s4, %s1227_s6 }
  0x35   : > { %v888_v16 = vld [vmem:[%s433_s13] sm:$0xff]   ;;  %v481_v44 = vunpack.c.l.bf16 %v480_v41  ;;  %s437_s6 = scalar_select %p436_p1, %s1075_s22, 6 }
  0x36   : > { %v889_v17 = vunpack.c.l.bf16 %v888_v16  ;;  %v890_v18 = vunpack.c.h.bf16 %v888_v16  ;;  %915 = vmatpush3.bf16.msra.mxu0 %v1007_v30  ;;  %v482_v48 = vld [vmem:[%s444_s10] sm:$0x1] }
  0x37   : > { %916 = vmatprep.subr.bf16.mxu0 %v1093_v19  ;;  %v484_v46 = vadd.f32 1.0, %v481_v44  ;;  %v483_v51 = vunpack.c.l.bf16 %v482_v48  ;;  %s438_s15 = scalar_lea.vmem %s1305_s2, %s437_s6 }
  0x38   : > { %457 = vadd.xlane.f32.xlu0 %v889_v17  ;;  %v614_v61 = vld [vmem:[%s438_s15] sm:$0x1] }
  0x39   : > { %v488_v52 = vrot.slane %v484_v46, %v487_v47  ;;  %v494_v56 = vrot.slane %v483_v51, %v487_v47  ;;  %v615_v62 = vunpack.c.l.bf16 %v614_v61 }
  0x3a   : > { %917 = vmatpush3.bf16.msra.mxu0 %v1008_v31 }
  0x3b   : > { %918 = vmatprep.subr.bf16.mxu0 %v1093_v19  ;;  %v619_v63 = vrot.slane %v615_v62, %v487_v47 }
  0x3c   : > { %459 = vadd.xlane.f32.xlu0 %v890_v18 }
  0x3e   : > { %919 = vmatpush3.bf16.msra.mxu0 %v1009_v32 }
  0x3f   : > { %920 = vmatprep.subr.bf16.mxu0 %v1093_v19 }
  0x42   : > { %921 = vmatpush3.bf16.msra.mxu0 %v1010_v33 }
  0x43   : > { %922 = vmatprep.subr.bf16.mxu0 %v1093_v19 }
  0x46   : > { %923 = vmatpush3.bf16.msra.mxu0 %v1011_v34 }
  0x47   : > { %924 = vmatprep.subr.bf16.mxu0 %v1093_v19 }
  0x4a   : > { %925 = vmatpush3.bf16.msra.mxu0 %v1012_v35 }
  0xc5   : > { %v458_v21 = vpop.xlane.xlu0 %457 }
  0xc6   : > { %v462_v22 = vmul.f32 0.0078125, %v458_v21 }
  0xc8   : > { %v464_v23 = vsub.f32 %v889_v17, %v462_v22 }
  0xc9   : > { %v460_v24 = vpop.xlane.xlu0 %459 }
  0xca   : > { %v463_v25 = vmul.f32 0.0078125, %v460_v24  ;;  %v466_v26 = vmul.f32 %v464_v23, %v464_v23 }
  0xcc   : > { %v465_v27 = vsub.f32 %v890_v18, %v463_v25  ;;  %468 = vadd.xlane.f32.xlu1 %v466_v26 }
  0xce   : > { %v467_v28 = vmul.f32 %v465_v27, %v465_v27 }
  0xd0   : > { %470 = vadd.xlane.f32.xlu1 %v467_v28 }
 0x159   : > { %v469_v36 = vpop.xlane.xlu1 %468 }
 0x15a   : > { %v472_v37 = vmul.f32 0.0078125, %v469_v36 }
 0x15c   : > { %v474_v38 = vadd.f32 1e-06, %v472_v37 }
 0x15d   : > { %v471_v39 = vpop.xlane.xlu1 %470 }
 0x15e   : > { %1013 = vrsqrt.f32 %v474_v38  ;;  %v473_v42 = vmul.f32 0.0078125, %v471_v39 }
 0x160   : > { %v475_v43 = vadd.f32 1e-06, %v473_v42 }
 0x162   : > { %1015 = vrsqrt.f32 %v475_v43 }
 0x168   : > { %v1014_v49 = vpop.eup %1013 }
 0x169   : > { %v478_v50 = vmul.f32 %v1014_v49, %v464_v23 }
 0x16b   : > { %v489_v55 = vmul.f32 %v488_v52, %v478_v50 }
 0x16c   : > { %v1016_v53 = vpop.eup %1015 }
 0x16d   : > { %v479_v54 = vmul.f32 %v1016_v53, %v465_v27  ;;  %v495_v58 = vadd.f32 %v494_v56, %v489_v55 }
 0x16f   : > { %v490_v57 = vmul.f32 %v488_v52, %v479_v54 }
 0x171   : > { %v496_v59 = vadd.f32 %v494_v56, %v490_v57 }
 0x173   : > { %v497_v60 = vpack.c.bf16 %v496_v59, %v495_v58 }
 0x175   : > { %927 = vmatmul.mubr.bf16.vlgmr.msra.gmra.mrb[0].mxu0 %v497_v60 }
 0x245   : > { %625 = sbr.rel (%p872_p2) target bundleno = 617 (0x269), region = 93 }
 0x248   : > { %v598_v0 = vpop.f32.mrb[0].mxu0 }
 0x249   : > { %v620_v1 = vadd.f32 %v619_v63, %v598_v0  ;;  %v928_v2 = vpop.f32.mrb[1].mxu0 }
 0x24a   : > { %v601_v3 = vpop.f32.mrb[2].mxu0 }
 0x24b   : > { %v621_v4 = vadd.f32 %v619_v63, %v601_v3  ;;  %v929_v5 = vpop.f32.mrb[3].mxu0  ;;  %v628_v6 = vmul.f32 (!%p872_p2), 0.044715, %v620_v1  ;;  %v626_v16 = vmul.f32 (!%p872_p2), 0.5, %v620_v1 }
 0x24d   : > { %v629_v7 = vmul.f32 0.044715, %v621_v4  ;;  %v630_v8 = vmul.f32 %v628_v6, %v620_v1  ;;  %v627_v18 = vmul.f32 0.5, %v621_v4 }
 0x24f   : > { %v631_v9 = vmul.f32 %v629_v7, %v621_v4  ;;  %v632_v10 = vmul.f32 %v630_v8, %v620_v1 }
 0x251   : > { %v633_v11 = vmul.f32 %v631_v9, %v621_v4  ;;  %v634_v12 = vadd.f32 %v632_v10, %v620_v1 }
 0x253   : > { %v635_v13 = vadd.f32 %v633_v11, %v621_v4  ;;  %v636_v14 = vmul.f32 0.7978846, %v634_v12 }
 0x255   : > { %v637_v15 = vmul.f32 0.7978846, %v635_v13  ;;  %1017 = vtanh.f32 %v636_v14 }
 0x257   : > { %1019 = vtanh.f32 %v637_v15 }
 0x25f   : > { %v1018_v17 = vpop.eup %1017 }
 0x260   : > { %v640_v20 = vadd.f32 1.0, %v1018_v17 }
 0x261   : > { %v1020_v19 = vpop.eup %1019 }
 0x262   : > { %v641_v21 = vadd.f32 1.0, %v1020_v19  ;;  %v642_v22 = vmul.f32 %v640_v20, %v626_v16 }
 0x264   : > { %v643_v23 = vmul.f32 %v641_v21, %v627_v18 }
 0x266   : > { %v894_v24 = vpack.c.bf16 %v643_v23, %v642_v22 }
 0x268   : > { %895 = vst [vmem:[%s1261_s17] sm:$0xff] %v894_v24  }
 0x269 PF: > { %p875_p3 = scmp.ge.s32.totalorder %s1075_s22, 3 }
 0x26a   : > { %v899_v25 = vpack.c.bf16 (!%p875_p3), %v621_v4, %v620_v1 }
 0x26b   : > { %657 = sbr.rel (%p875_p3) target bundleno = 626 (0x272), region = 97 }
 0x26c   : > { %900 = vst [vmem:[%s1261_s17] sm:$0xff] (!%p875_p3), %v899_v25  }
 0x272 PF: > { %674 = sbr.rel (!%p1192_p9) target bundleno = 633 (0x279), region = 101 }
 0x273   : > { %s930_s16 = smul.u32 (%p1192_p9), 14, %s1079_s23  ;;  %v697_v26 = vld [vmem:[%s1261_s17] sm:$0xf] (%p1192_p9)  ;;  %v699_v27 = vld [vmem:[%s1261_s17 + $0x4] sm:$0xf] (%p1192_p9) }
 0x275   : > { %s679_s27 = sadd.s32 (%p1192_p9), %s1075_s22, %s930_s16 }
 0x276   : > { %s879_s18 = sshll.u32 (%p1192_p9), %s679_s27, 2 }
 0x277   : > { %s681_s7 = scalar_lea.vmem (%p1192_p9), %s1308_s5, %s879_s18 }
 0x278   : > { %698 = vst [vmem:[%s681_s7] sm:$0xf] (%p1192_p9), %v697_v26  ;;  %700 = vst [vmem:[%s681_s7 + $0x1c] sm:$0xf] (%p1192_p9), %v699_v27 }
 0x279 PF: > { %s15_s26 = sadd.s32 1, %s1091_s26   ;;  %s1310_s18 = smov %s1063_s19 }
 0x27a   : > { %p12_p4 = scmp.ge.s32.totalorder %s15_s26, 16   ;;  %s1311_s19 = smov %s1197_s12 }
 0x27b   : > { %s1312_s20 = smov %s1071_s21  ;;  %s1313_s21 = smov %s1186_s8 }
 0x27c   : > { %s1314_s22 = smov %s1083_s24  ;;  %s1315_s23 = smov %s1087_s25 }
 0x27d   : > { %s1316_s24 = smov %s1319_s28  ;;  %s1317_s25 = smov %s1323_s29 }
 0x27e   :  { %14 = sbr.rel (!%p12_p4) target bundleno = 5 (0x5), region = 185 }

// kernel: _lambda_.67
= control target key start
LH: loop header
LB: loop body
LE: loop exit
PB: predicated region body
PF: predicated region fallthrough
CT: control target
= control target key end

     0   :  { %s908_s18 = smov 0   ;;  %s910_s19 = smov 0   ;;  %s979_s0 = inlined_call_operand.vmem [shape: bf16[2,16,128], index: 0, kind: input, shape index: {}]   ;;  %s980_s1 = inlined_call_operand.vmem [shape: bf16[128,128], index: 1, kind: input, shape index: {}]   ;;  %s981_s2 = inlined_call_operand.vmem [shape: bf16[1,1,128], index: 2, kind: input, shape index: {}]   ;;  %s982_s3 = inlined_call_operand.vmem [shape: bf16[2,16,128], index: 3, kind: input, shape index: {}]   ;;  %s983_s4 = inlined_call_operand.vmem [shape: bf16[2,1,128], index: 4, kind: input, shape index: {}]   ;;  %s984_s5 = inlined_call_operand.vmem [shape: bf16[2,16,128], index: 5, kind: output, shape index: {}]  }
   0x1   :  { %s912_s20 = smov 0  }
   0x2 LB: > { %s41_s21 = sadd.s32 1, %s870_s19  ;;  %p754_p0 = scmp.ge.s32.totalorder %s874_s20, 1  ;;  %s874_s20 = sphi %s912_s20, %s15_s20   ;;  %s870_s19 = sphi %s910_s19, %s986_s19   ;;  %s866_s18 = sphi %s908_s18, %s985_s18  }
   0x3   : > { %p43_p1 = scmp.ge.s32.totalorder %s41_s21, 2  ;;  %p288_p2 = scmp.lt.s32.totalorder %s874_s20, 3 }
   0x5   : > { %s988_s21 = smov (%p43_p1, %s41_s21), 0  ;;  %p289_p3 = pnand %p754_p0, %p288_p2 }
   0x6   : > { %v843_v0 = vld [vmem:[%s980_s1] sm:$0xff] (!%p289_p3)   ;;  %v876_v1 = vmov (!%p289_p3), 0.0   ;;  %v844_v2 = vld [vmem:[%s980_s1 + $0x8] sm:$0xff] (!%p289_p3)   ;;  %vm877_vm0 = vmmov (!%p289_p3), 0   ;;  %p360_p4 = scmp.lt.s32.totalorder (!%p289_p3), %s866_s18, 1  ;;  %v845_v3 = vld [vmem:[%s980_s1 + $0x10] sm:$0xff] (!%p289_p3)   ;;  %v549_v10 = vlaneseq (!%p289_p3) }
   0x7   : > { %292 = sbr.rel (%p289_p3) target bundleno = 262 (0x106), region = 40  ;;  %797 = vmatprep.subr.bf16.mxu0 (!%p289_p3), %v876_v1  ;;  %813 = vmatprep.mubr.msk.bf16.mxu0 (!%p289_p3), %vm877_vm0, %v876_v1  ;;  %v846_v4 = vld [vmem:[%s980_s1 + $0x18] sm:$0xff] (!%p289_p3)   ;;  %v847_v5 = vld [vmem:[%s980_s1 + $0x20] sm:$0xff] (!%p289_p3)   ;;  %v848_v6 = vld [vmem:[%s980_s1 + $0x28] sm:$0xff] (!%p289_p3)  }
   0x8   : > { %798 = vmatpush3.bf16.msra.mxu0 (!%p289_p3), %v843_v0  ;;  %v849_v7 = vld [vmem:[%s980_s1 + $0x30] sm:$0xff] (!%p289_p3)   ;;  %v850_v8 = vld [vmem:[%s980_s1 + $0x38] sm:$0xff] (!%p289_p3)   ;;  %v550_v11 = vshrl.u32 (!%p289_p3), %v549_v10, 7  ;;  %v547_v12 = vld [vmem:[%s981_s2] sm:$0x1] (!%p289_p3) }
   0x9   : > { %799 = vmatprep.subr.bf16.mxu0 (!%p289_p3), %v876_v1  ;;  %v548_v14 = vunpack.c.l.bf16 (!%p289_p3), %v547_v12 }
   0xa   : > { %v551_v15 = vsub.s32 (!%p289_p3), 0, %v550_v11 }
   0xc   : > { %800 = vmatpush3.bf16.msra.mxu0 (!%p289_p3), %v844_v2  ;;  %v552_v17 = vrot.slane (!%p289_p3), %v548_v14, %v551_v15 }
   0xd   : > { %801 = vmatprep.subr.bf16.mxu0 (!%p289_p3), %v876_v1 }
   0xe   : > { %s990_s18 = smov (!%p360_p4, %s866_s18), 1 }
   0xf   : > { %s935_s28 = sshll.u32 %s990_s18, 3  ;;  %s402_s23 = scalar_lea.vmem %s983_s4, %s990_s18 }
  0x10   : > { %s370_s6 = scalar_lea.vmem %s979_s0, %s935_s28  ;;  %802 = vmatpush3.bf16.msra.mxu0 %v845_v3  ;;  %v559_v13 = vld [vmem:[%s402_s23] sm:$0x1]  ;;  %s395_s29 = scalar_lea.vmem %s982_s3, %s935_s28 }
  0x11   : > { %803 = vmatprep.subr.bf16.mxu0 %v876_v1  ;;  %v851_v9 = vld [vmem:[%s370_s6] sm:$0xff]   ;;  %v560_v16 = vunpack.c.l.bf16 %v559_v13  ;;  %s414_s6 = scalar_lea.vmem %s984_s5, %s935_s28 }
  0x12   : > { %v780_v20 = vld [vmem:[%s395_s29] sm:$0xff]  }
  0x13   : > { %v564_v18 = vrot.slane %v560_v16, %v551_v15  ;;  %v781_v24 = vunpack.c.l.bf16 %v780_v20  ;;  %v782_v27 = vunpack.c.h.bf16 %v780_v20 }
  0x14   : > { %804 = vmatpush3.bf16.msra.mxu0 %v846_v4 }
  0x15   : > { %805 = vmatprep.subr.bf16.mxu0 %v876_v1 }
  0x18   : > { %806 = vmatpush3.bf16.msra.mxu0 %v847_v5 }
  0x19   : > { %807 = vmatprep.subr.bf16.mxu0 %v876_v1 }
  0x1c   : > { %808 = vmatpush3.bf16.msra.mxu0 %v848_v6 }
  0x1d   : > { %809 = vmatprep.subr.bf16.mxu0 %v876_v1 }
  0x20   : > { %810 = vmatpush3.bf16.msra.mxu0 %v849_v7 }
  0x21   : > { %811 = vmatprep.subr.bf16.mxu0 %v876_v1 }
  0x24   : > { %812 = vmatpush3.bf16.msra.mxu0 %v850_v8 }
  0x27   : > { %814 = vmatmul.mubr.bf16.vlgmr.msra.gmra.mrb[0].mxu0 %v851_v9 }
  0xfa   : > { %v531_v19 = vpop.f32.mrb[0].mxu0 }
  0xfb   : > { %v553_v21 = vadd.f32 %v552_v17, %v531_v19  ;;  %v815_v22 = vpop.f32.mrb[1].mxu0 }
  0xfc   : > { %v534_v23 = vpop.f32.mrb[2].mxu0 }
  0xfd   : > { %v565_v25 = vmul.f32 %v564_v18, %v553_v21  ;;  %v554_v26 = vadd.f32 %v552_v17, %v534_v23  ;;  %v816_v28 = vpop.f32.mrb[3].mxu0 }
  0xff   : > { %v566_v29 = vmul.f32 %v564_v18, %v554_v26  ;;  %v567_v30 = vadd.f32 %v781_v24, %v565_v25 }
 0x101   : > { %v568_v31 = vadd.f32 %v782_v27, %v566_v29 }
 0x103   : > { %v786_v32 = vpack.c.bf16 %v568_v31, %v567_v30 }
 0x105   : > { %787 = vst [vmem:[%s414_s6] sm:$0xff] %v786_v32  }
 0x106 PF: > { %s15_s20 = sadd.s32 1, %s874_s20   ;;  %s985_s18 = smov %s870_s19 }
 0x107   : > { %p12_p5 = scmp.ge.s32.totalorder %s15_s20, 4   ;;  %s986_s19 = smov %s988_s21 }
 0x109   :  { %14 = sbr.rel (!%p12_p5) target bundleno = 2 (0x2), region = 90 }

// kernel: _lambda_.66
= control target key start
LH: loop header
LB: loop body
LE: loop exit
PB: predicated region body
PF: predicated region fallthrough
CT: control target
= control target key end

     0   :  { %s2078_s18 = smov 0   ;;  %s2080_s19 = smov 0   ;;  %s2547_s0 = inlined_call_operand.vmem [shape: bf16[2,16,896], index: 0, kind: input, shape index: {}, may-alias: {0,1,2}]   ;;  %s2548_s1 = inlined_call_operand.vmem [shape: bf16[2,16,896], index: 1, kind: input, shape index: {}, may-alias: {0,1,2}]   ;;  %s2549_s2 = inlined_call_operand.vmem [shape: bf16[2,16,896], index: 2, kind: input, shape index: {}, may-alias: {0,1,2}]   ;;  %s2550_s3 = inlined_call_operand.vmem [shape: f32[16,32], index: 3, kind: input, shape index: {}]   ;;  %s2551_s4 = inlined_call_operand.vmem [shape: f32[16,32], index: 4, kind: input, shape index: {}]   ;;  %s2552_s5 = inlined_call_operand.vmem [shape: bf16[2,16,128], index: 5, kind: output, shape index: {}]  }
   0x1   :  { %s2082_s20 = smov 0   ;;  %s2084_s21 = smov 0  }
   0x2   :  { %s2086_s22 = smov 0  }
   0x3 LB: > { %s34_s23 = sadd.s32 1, %s2035_s21  ;;  %p50_p1 = scmp.ne.s32.totalorder %s2027_s19, %s2023_s18  ;;  %s2039_s22 = sphi %s2086_s22, %s15_s22   ;;  %s2035_s21 = sphi %s2084_s21, %s2557_s21   ;;  %s2031_s20 = sphi %s2082_s20, %s2556_s20   ;;  %s2027_s19 = sphi %s2080_s19, %s2555_s19   ;;  %s2023_s18 = sphi %s2078_s18, %s2554_s18  }
   0x4   : > { %p36_p0 = scmp.ge.s32.totalorder %s34_s23, 2  ;;  %p51_p2 = scmp.eq.s32.totalorder %s2039_s22, 0 }
   0x5   : > { %s43_s26 = sadd.s32 1, %s2027_s19  ;;  %p1745_p5 = scmp.ge.s32.totalorder %s2039_s22, 2 }
   0x6   : > { %s2559_s23 = smov (%p36_p0, %s34_s23), 0  ;;  %p2109_p3 = por %p51_p2, %p50_p1 }
   0x7   : > { %s38_s25 = ssub.s32 %s2035_s21, %s2559_s23  ;;  %230 = sbr.rel (%p1745_p5) target bundleno = 35 (0x23), region = 24 }
   0x8   : > { %p41_p4 = scmp.eq.s32.totalorder %s38_s25, 0 }
   0xa   : > { %s2117_s27 = scalar_select %p41_p4, %s2027_s19, %s43_s26  }
   0xe   : > { %233 = sbr.rel (!%p2109_p3) target bundleno = 21 (0x15), region = 28  ;;  %s235_s28 = sand.u32 (%p2109_p3), 1, %s2027_s19  }
   0xf   : > { %s1855_s29 = smul.u32 (%p2109_p3), 56, %s2035_s21  ;;  %s1746_s30 = sshll.u32 (%p2109_p3), %s235_s28, 3 }
  0x10   : > { %s237_s9 = scalar_lea.vmem (%p2109_p3), [#allocation5], %s1746_s30 }
  0x11   : > { %s243_s8 = scalar_lea.vmem (%p2109_p3), %s2547_s0, %s1855_s29 }
  0x12   : > { %v259_v0 = vld [vmem:[%s243_s8] sm:$0xf] (%p2109_p3)  ;;  %v261_v1 = vld [vmem:[%s243_s8 + $0x1c] sm:$0xf] (%p2109_p3) }
  0x13   : > { %260 = vst [vmem:[%s237_s9] sm:$0xf] (%p2109_p3), %v259_v0  ;;  %262 = vst [vmem:[%s237_s9 + $0x4] sm:$0xf] (%p2109_p3), %v261_v1 }
  0x15 PF: > { %289 = sbr.rel (!%p2109_p3) target bundleno = 28 (0x1c), region = 69  ;;  %s291_s10 = sand.u32 (%p2109_p3), 1, %s2027_s19  }
  0x16   : > { %s1749_s11 = smul.u32 (%p2109_p3), 56, %s2035_s21  ;;  %s1748_s12 = sshll.u32 (%p2109_p3), %s291_s10, 3 }
  0x17   : > { %s293_s16 = scalar_lea.vmem (%p2109_p3), [#allocation6], %s1748_s12 }
  0x18   : > { %s1620_s15 = scalar_lea.vmem (%p2109_p3), %s2548_s1, %s1749_s11 }
  0x19   : > { %v1750_v2 = vld [vmem:[%s1620_s15 + $0x4] sm:$0xf] (%p2109_p3)  ;;  %v1751_v3 = vld [vmem:[%s1620_s15 + $0x20] sm:$0xf] (%p2109_p3) }
  0x1a   : > { %317 = vst [vmem:[%s293_s16] sm:$0xf] (%p2109_p3), %v1750_v2  ;;  %319 = vst [vmem:[%s293_s16 + $0x4] sm:$0xf] (%p2109_p3), %v1751_v3 }
  0x1c PF: > { %346 = sbr.rel (!%p2109_p3) target bundleno = 35 (0x23), region = 110  ;;  %s348_s17 = sand.u32 (%p2109_p3), 1, %s2027_s19  }
  0x1d   : > { %s1753_s25 = smul.u32 (%p2109_p3), 56, %s2035_s21  ;;  %s1752_s26 = sshll.u32 (%p2109_p3), %s348_s17, 3 }
  0x1e   : > { %s350_s6 = scalar_lea.vmem (%p2109_p3), [#allocation7], %s1752_s26 }
  0x1f   : > { %s1628_s30 = scalar_lea.vmem (%p2109_p3), %s2549_s2, %s1753_s25 }
  0x20   : > { %v1754_v4 = vld [vmem:[%s1628_s30 + $0x8] sm:$0xf] (%p2109_p3)  ;;  %v1755_v5 = vld [vmem:[%s1628_s30 + $0x24] sm:$0xf] (%p2109_p3) }
  0x21   : > { %374 = vst [vmem:[%s350_s6] sm:$0xf] (%p2109_p3), %v1754_v4  ;;  %376 = vst [vmem:[%s350_s6 + $0x4] sm:$0xf] (%p2109_p3), %v1755_v5 }
  0x23 PF: > { %p1756_p6 = scmp.ge.s32.totalorder %s2039_s22, 1  ;;  %p402_p7 = scmp.lt.s32.totalorder %s2039_s22, 3 }
  0x25   : > { %p403_p8 = pnand %p1756_p6, %p402_p7 }
  0x26   : > { %s409_s24 = sand.u32 (!%p403_p8), 1, %s2023_s18   ;;  %vm519_vm0 = vcmask (!%p403_p8), 261120   ;;  %v2041_v20 = vmov (!%p403_p8), 0.0   ;;  %vm2042_vm1 = vmmov (!%p403_p8), 0   ;;  %s2043_s18 = smov (!%p403_p8), 96   ;;  %v2206_v37 = vld [vmem:[%s2551_s4] sm:$0xff] (!%p403_p8) }
  0x27   : > { %406 = sbr.rel (%p403_p8) target bundleno = 1671 (0x687), region = 151  ;;  %s2144_s7 = sshll.u32 (!%p403_p8), %s409_s24, 3  ;;  %1807 = vmatprep.subr.bf16.mxu0 (!%p403_p8), %v2041_v20  ;;  %520 = vst.msk [vmem:[#allocation4] sm:$0xff] (!%p403_p8), %vm519_vm0, %v2041_v20  ;;  %521 = vst.msk [vmem:[#allocation4 + $0x8] sm:$0xff] (!%p403_p8), %vm519_vm0, %v2041_v20  ;;  %1813 = vmatprep.subr.bf16.mxu1 (!%p403_p8), %v2041_v20  ;;  %v2211_v38 = vld [vmem:[%s2551_s4 + $0x8] sm:$0xff] (!%p403_p8)  ;;  %v2218_v42 = vld [vmem:[%s2550_s3] sm:$0xff] (!%p403_p8) }
  0x28   : > { %s418_s8 = scalar_lea.vmem (!%p403_p8), [#allocation6], %s2144_s7  ;;  %s411_s9 = scalar_lea.vmem (!%p403_p8), [#allocation5], %s2144_s7  ;;  %522 = vst.msk [vmem:[#allocation4 + $0x10] sm:$0xff] (!%p403_p8), %vm519_vm0, %v2041_v20  ;;  %523 = vst.msk [vmem:[#allocation4 + $0x18] sm:$0xff] (!%p403_p8), %vm519_vm0, %v2041_v20  ;;  %1809 = vmatprep.mubr.msk.bf16.mxu0 (!%p403_p8), %vm2042_vm1, %v2041_v20  ;;  %1815 = vmatprep.mubr.msk.bf16.mxu1 (!%p403_p8), %vm2042_vm1, %v2041_v20  ;;  %v2223_v43 = vld [vmem:[%s2550_s3 + $0x8] sm:$0xff] (!%p403_p8)  ;;  %vm502_vm2 = vcmask (!%p403_p8), 7168  }
  0x29   : > { %v1783_v6 = vld [vmem:[%s418_s8] sm:$0xff] (!%p403_p8)   ;;  %v1779_v7 = vld [vmem:[%s411_s9] sm:$0xff] (!%p403_p8)   ;;  %524 = vst.msk [vmem:[#allocation4 + $0x20] sm:$0xff] (!%p403_p8), %vm519_vm0, %v2041_v20  ;;  %525 = vst.msk [vmem:[#allocation4 + $0x28] sm:$0xff] (!%p403_p8), %vm519_vm0, %v2041_v20  ;;  %s2044_s10 = smov (!%p403_p8), 64   ;;  %s2045_s11 = smov (!%p403_p8), 32  }
  0x2a   : > { %v2148_v8 = vunpack.c.l.bf16 (!%p403_p8), %v1783_v6  ;;  %v2150_v9 = vunpack.c.l.bf16 (!%p403_p8), %v1779_v7  ;;  %v2152_v10 = vunpack.c.h.bf16 (!%p403_p8), %v1783_v6  ;;  %v2154_v11 = vunpack.c.h.bf16 (!%p403_p8), %v1779_v7  ;;  %526 = vst.msk [vmem:[#allocation4 + $0x30] sm:$0xff] (!%p403_p8), %vm519_vm0, %v2041_v20  ;;  %527 = vst.msk [vmem:[#allocation4 + $0x38] sm:$0xff] (!%p403_p8), %vm519_vm0, %v2041_v20  ;;  %s425_s28 = scalar_lea.vmem (!%p403_p8), [#allocation7], %s2144_s7  ;;  %p488_p9 = scmp.lt.s32.totalorder (!%p403_p8), %s2031_s20, 1 }
  0x2b   : > { %511 = vst.msk [vmem:[#allocation3] sm:$0xff] (!%p403_p8), %vm502_vm2, %v2041_v20  ;;  %512 = vst.msk [vmem:[#allocation3 + $0x8] sm:$0xff] (!%p403_p8), %vm502_vm2, %v2041_v20  ;;  %vm633_vm3 = vcmask (!%p403_p8), 130048   ;;  %vm1557_vm4 = vcmask (!%p403_p8), 523264   ;;  %vm1560_vm5 = vcmask (!%p403_p8), 785408  }
  0x2c   : > { %v565_v12 = vmul.f32 (!%p403_p8), %v2148_v8, %v2148_v8  ;;  %v542_v13 = vmul.f32 (!%p403_p8), %v2150_v9, %v2150_v9  ;;  %v566_v14 = vmul.f32 (!%p403_p8), %v2152_v10, %v2152_v10  ;;  %v543_v15 = vmul.f32 (!%p403_p8), %v2154_v11, %v2154_v11  ;;  %513 = vst.msk [vmem:[#allocation3 + $0x10] sm:$0xff] (!%p403_p8), %vm502_vm2, %v2041_v20 }
  0x2d   : > { %514 = vst.msk [vmem:[#allocation3 + $0x18] sm:$0xff] (!%p403_p8), %vm502_vm2, %v2041_v20  ;;  %515 = vst.msk [vmem:[#allocation3 + $0x20] sm:$0xff] (!%p403_p8), %vm502_vm2, %v2041_v20 }
  0x2e   : > { %v567_v16 = vsel %vm519_vm0, %v565_v12, 0.0  ;;  %v545_v17 = vsel %vm519_vm0, %v542_v13, 0.0  ;;  %v570_v18 = vsel %vm519_vm0, %v566_v14, 0.0  ;;  %v548_v19 = vsel %vm519_vm0, %v543_v15, 0.0  ;;  %516 = vst.msk [vmem:[#allocation3 + $0x28] sm:$0xff] %vm502_vm2, %v2041_v20  ;;  %517 = vst.msk [vmem:[#allocation3 + $0x30] sm:$0xff] %vm502_vm2, %v2041_v20 }
  0x2f   : > { %568 = vadd.xlane.f32.xlu0 %v567_v16  ;;  %546 = vadd.xlane.f32.xlu1 %v545_v17  ;;  %518 = vst.msk [vmem:[#allocation3 + $0x38] sm:$0xff] %vm502_vm2, %v2041_v20  ;;  %s2561_s20 = smov (!%p488_p9, %s2031_s20), 1 }
  0x30   : > { %s1775_s29 = sshll.u32 %s2561_s20, 3 }
  0x31   : > { %s495_s24 = scalar_lea.vmem %s2552_s5, %s1775_s29 }
  0x33   : > { %571 = vadd.xlane.f32.xlu0 %v570_v18  ;;  %549 = vadd.xlane.f32.xlu1 %v548_v19 }
  0x44   : > { %789 = vrot.lane.b32.xlu1 %v566_v14, %s2043_s18 }
  0x48   : > { %752 = vrot.lane.b32.xlu1 %v542_v13, %s2043_s18 }
  0x49   : > { %787 = vrot.lane.b32.xlu0 %v565_v12, %s2043_s18 }
  0x4c   : > { %754 = vrot.lane.b32.xlu1 %v543_v15, %s2043_s18 }
  0x4d   : > { %1019 = vrot.lane.b32.xlu0 %v565_v12, %s2044_s10 }
  0x50   : > { %1021 = vrot.lane.b32.xlu1 %v566_v14, %s2044_s10 }
  0x51   : > { %988 = vrot.lane.b32.xlu0 %v542_v13, %s2044_s10 }
  0x54   : > { %990 = vrot.lane.b32.xlu1 %v543_v15, %s2044_s10 }
  0x55   : > { %1249 = vrot.lane.b32.xlu0 %v565_v12, %s2045_s11 }
  0x58   : > { %1251 = vrot.lane.b32.xlu1 %v566_v14, %s2045_s11  ;;  %v2046_v14 = vmov -1e+30  }
  0x59   : > { %1218 = vrot.lane.b32.xlu0 %v542_v13, %s2045_s11  ;;  %503 = vst.msk [vmem:[#allocation2] sm:$0xff] %vm502_vm2, %v2046_v14  ;;  %504 = vst.msk [vmem:[#allocation2 + $0x8] sm:$0xff] %vm502_vm2, %v2046_v14 }
  0x5a   : > { %505 = vst.msk [vmem:[#allocation2 + $0x10] sm:$0xff] %vm502_vm2, %v2046_v14  ;;  %506 = vst.msk [vmem:[#allocation2 + $0x18] sm:$0xff] %vm502_vm2, %v2046_v14 }
  0x5b   : > { %507 = vst.msk [vmem:[#allocation2 + $0x20] sm:$0xff] %vm502_vm2, %v2046_v14  ;;  %508 = vst.msk [vmem:[#allocation2 + $0x28] sm:$0xff] %vm502_vm2, %v2046_v14 }
  0x5c   : > { %1220 = vrot.lane.b32.xlu1 %v543_v15, %s2045_s11  ;;  %509 = vst.msk [vmem:[#allocation2 + $0x30] sm:$0xff] %vm502_vm2, %v2046_v14  ;;  %510 = vst.msk [vmem:[#allocation2 + $0x38] sm:$0xff] %vm502_vm2, %v2046_v14 }
  0xbc   : > { %v569_v21 = vpop.xlane.xlu0 %568  ;;  %v547_v22 = vpop.xlane.xlu1 %546 }
  0xbd   : > { %v573_v23 = vmul.f32 0.03125, %v569_v21  ;;  %v552_v24 = vmul.f32 0.03125, %v547_v22 }
  0xbf   : > { %v575_v25 = vadd.f32 1e-06, %v573_v23  ;;  %v554_v26 = vadd.f32 1e-06, %v552_v24 }
  0xc0   : > { %v572_v27 = vpop.xlane.xlu0 %571  ;;  %v550_v28 = vpop.xlane.xlu1 %549 }
  0xc1   : > { %1921 = vrsqrt.f32 %v575_v25  ;;  %v574_v29 = vmul.f32 0.03125, %v572_v27  ;;  %v553_v30 = vmul.f32 0.03125, %v550_v28 }
  0xc2   : > { %1923 = vrsqrt.f32 %v554_v26  ;;  %v2047_v26 = vmov 0  }
  0xc3   : > { %v576_v31 = vadd.f32 1e-06, %v574_v29  ;;  %v555_v32 = vadd.f32 1e-06, %v553_v30  ;;  %1903 = vset.pattern.permute.xlu0 %v2047_v26  ;;  %1904 = vset.pattern.permute.xlu1 %v2047_v26 }
  0xc4   : > { %v790_v45 = vpop.permute.xlu1 %789  ;;  %v788_v46 = vpop.permute.xlu0 %787 }
  0xc5   : > { %1925 = vrsqrt.f32 %v576_v31  ;;  %v793_v49 = vsel %vm519_vm0, %v788_v46, 0.0  ;;  %v796_v53 = vsel %vm519_vm0, %v790_v45, 0.0 }
  0xc6   : > { %1927 = vrsqrt.f32 %v555_v32  ;;  %794 = vadd.xlane.f32.xlu0 %v793_v49 }
  0xc8   : > { %v753_v54 = vpop.permute.xlu1 %752  ;;  %v1020_v56 = vpop.permute.xlu0 %1019 }
  0xc9   : > { %v758_v59 = vsel %vm519_vm0, %v753_v54, 0.0  ;;  %v1025_v63 = vsel %vm519_vm0, %v1020_v56, 0.0 }
  0xca   : > { %797 = vadd.xlane.f32.xlu0 %v796_v53 }
  0xcb   : > { %v1922_v33 = vpop.eup %1921 }
  0xcc   : > { %v1924_v34 = vpop.eup %1923  ;;  %v579_v35 = vmul.f32 %v1922_v33, %v2148_v8  ;;  %v755_v60 = vpop.permute.xlu1 %754 }
  0xcd   : > { %v558_v41 = vmul.f32 %v1924_v34, %v2150_v9  ;;  %v761_v61 = vsel %vm519_vm0, %v755_v60, 0.0  ;;  %v989_v1 = vpop.permute.xlu0 %988 }
  0xce   : > { %v581_v47 = vmul.f32 %v579_v35, %v2206_v37  ;;  %762 = vadd.xlane.f32.xlu1 %v761_v61  ;;  %759 = vadd.xlane.f32.xlu0 %v758_v59  ;;  %v994_v3 = vsel %vm519_vm0, %v989_v1, 0.0 }
  0xcf   : > { %v1926_v36 = vpop.eup %1925  ;;  %v560_v51 = vmul.f32 %v558_v41, %v2218_v42 }
  0xd0   : > { %v1928_v39 = vpop.eup %1927  ;;  %v580_v40 = vmul.f32 %v1926_v36, %v2152_v10  ;;  %v1022_v0 = vpop.permute.xlu1 %1021 }
  0xd1   : > { %v559_v44 = vmul.f32 %v1928_v39, %v2154_v11  ;;  %v562_v57 = vmul.f32 0.17677669, %v560_v51  ;;  %v1028_v2 = vsel %vm519_vm0, %v1022_v0, 0.0  ;;  %v1250_v15 = vpop.permute.xlu0 %1249 }
  0xd2   : > { %v582_v48 = vmul.f32 %v580_v40, %v2211_v38  ;;  %1029 = vadd.xlane.f32.xlu1 %v1028_v2  ;;  %1026 = vadd.xlane.f32.xlu0 %v1025_v63  ;;  %v1255_v23 = vsel %vm519_vm0, %v1250_v15, 0.0 }
  0xd3   : > { %v561_v52 = vmul.f32 %v559_v44, %v2223_v43 }
  0xd4   : > { %v583_v50 = vpack.c.bf16 %v582_v48, %v581_v47  ;;  %v991_v4 = vpop.permute.xlu1 %990 }
  0xd5   : > { %v563_v58 = vmul.f32 0.17677669, %v561_v52  ;;  %v997_v5 = vsel %vm519_vm0, %v991_v4, 0.0  ;;  %v1219_v24 = vpop.permute.xlu0 %1218  ;;  %v2303_v52 = vld [vmem:[#allocation2] sm:$0xff] }
  0xd6   : > { %v588_v55 = vsel %vm519_vm0, %v583_v50, 0  ;;  %998 = vadd.xlane.f32.xlu1 %v997_v5  ;;  %995 = vadd.xlane.f32.xlu0 %v994_v3  ;;  %v1224_v25 = vsel %vm519_vm0, %v1219_v24, 0.0 }
  0xd7   : > { %1808 = vmatpush3.bf16.xpose.msra.mxu0 %v588_v55  ;;  %v564_v62 = vpack.c.bf16 %v563_v58, %v562_v57  ;;  %v2305_v55 = vld [vmem:[#allocation2 + $0x8] sm:$0xff] }
  0xd8   : > { %1825 = vmatprep.subr.bf16.mxu0 %v2041_v20  ;;  %v1252_v6 = vpop.permute.xlu1 %1251 }
  0xd9   : > { %v1258_v7 = vsel %vm519_vm0, %v1252_v6, 0.0 }
  0xda   : > { %1259 = vadd.xlane.f32.xlu1 %v1258_v7 }
  0xdc   : > { %v1221_v12 = vpop.permute.xlu1 %1220 }
  0xdd   : > { %v1227_v13 = vsel %vm519_vm0, %v1221_v12, 0.0 }
  0xde   : > { %1810 = vmatmul.mubr.msk.bf16.vlgmr.msra.gmra.mrb[0].mxu0 %vm519_vm0, %v564_v62  ;;  %1228 = vadd.xlane.f32.xlu1 %v1227_v13 }
  0xdf   : > { %1827 = vmatprep.mubr.msk.bf16.mxu0 %vm2042_vm1, %v2041_v20 }
  0xef   : > { %811 = vrot.lane.b32.xlu1 %v2211_v38, %s2045_s11 }
 0x153   : > { %v795_v28 = vpop.xlane.xlu0 %794 }
 0x154   : > { %v799_v39 = vmul.f32 0.03125, %v795_v28 }
 0x156   : > { %v801_v45 = vadd.f32 1e-06, %v799_v39 }
 0x157   : > { %v798_v30 = vpop.xlane.xlu0 %797 }
 0x158   : > { %v800_v35 = vmul.f32 0.03125, %v798_v30 }
 0x15a   : > { %v802_v41 = vadd.f32 1e-06, %v800_v35 }
 0x15b   : > { %v763_v27 = vpop.xlane.xlu1 %762  ;;  %v760_v32 = vpop.xlane.xlu0 %759 }
 0x15c   : > { %v764_v33 = vmul.f32 0.03125, %v760_v32  ;;  %v765_v36 = vmul.f32 0.03125, %v763_v27 }
 0x15e   : > { %v766_v40 = vadd.f32 1e-06, %v764_v33 }
 0x15f   : > { %v1030_v29 = vpop.xlane.xlu1 %1029 }
 0x160   : > { %1929 = vrsqrt.f32 %v766_v40 }
 0x161   : > { %1931 = vrsqrt.f32 %v802_v41 }
 0x163   : > { %v999_v31 = vpop.xlane.xlu1 %998 }
 0x164   : > { %v1001_v47 = vmul.f32 0.03125, %v999_v31  ;;  %v2328_v31 = vld [vmem:[%s425_s28] sm:$0xff]  }
 0x165   : > { %1814 = vmatpush3.bf16.msra.mxu1 %v2328_v31 }
 0x166   : > { %v1003_v53 = vadd.f32 1e-06, %v1001_v47  ;;  %1819 = vmatprep.subr.bf16.mxu1 %v2041_v20 }
 0x167   : > { %v1260_v34 = vpop.xlane.xlu1 %1259 }
 0x168   : > { %v1262_v56 = vmul.f32 0.03125, %v1260_v34 }
 0x16a   : > { %v1930_v63 = vpop.eup %1929  ;;  %v1264_v2 = vadd.f32 1e-06, %v1262_v56 }
 0x16b   : > { %v1229_v44 = vpop.xlane.xlu1 %1228  ;;  %v1932_v1 = vpop.eup %1931  ;;  %v770_v13 = vmul.f32 %v1930_v63, %v2150_v9 }
 0x16c   : > { %v1231_v60 = vmul.f32 0.03125, %v1229_v44  ;;  %v806_v15 = vmul.f32 %v1932_v1, %v2152_v10 }
 0x16e   : > { %v1233_v7 = vadd.f32 1e-06, %v1231_v60 }
 0x16f   : > { %v812_v49 = vpop.permute.xlu1 %811 }
 0x1b1   : > { %v2271_v16 = vpop.f32.mrb[0].mxu0 }
 0x1b2   : > { %v1811_v17 = vpop.f32.mrb[1].mxu0  ;;  %v634_v18 = vsel %vm633_vm3, %v2271_v16, -inf }
 0x1b3   : > { %v2275_v19 = vpop.f32.mrb[2].mxu0  ;;  %635 = vmax.xlane.f32.xlu0 %v634_v18 }
 0x1b4   : > { %v1812_v21 = vpop.f32.mrb[3].mxu0  ;;  %v637_v22 = vsel %vm633_vm3, %v2275_v19, -inf }
 0x1b5   : > { %638 = vmax.xlane.f32.xlu1 %v637_v22 }
 0x1b7   : > { %1256 = vadd.xlane.f32.xlu0 %v1255_v23 }
 0x1bb   : > { %1225 = vadd.xlane.f32.xlu0 %v1224_v25 }
 0x1c6   : > { %774 = vrot.lane.b32.xlu1 %v2218_v42, %s2045_s11 }
 0x1ca   : > { %776 = vrot.lane.b32.xlu1 %v2223_v43, %s2045_s11 }
 0x1ce   : > { %1041 = vrot.lane.b32.xlu1 %v2211_v38, %s2044_s10 }
 0x1d1   : > { %809 = vrot.lane.b32.xlu0 %v2206_v37, %s2045_s11 }
 0x1d2   : > { %1010 = vrot.lane.b32.xlu1 %v2223_v43, %s2044_s10 }
 0x1d5   : > { %1039 = vrot.lane.b32.xlu0 %v2206_v37, %s2044_s10 }
 0x1d6   : > { %1271 = vrot.lane.b32.xlu1 %v2211_v38, %s2043_s18  ;;  %v1027_v38 = vpop.xlane.xlu0 %1026 }
 0x1d9   : > { %1008 = vrot.lane.b32.xlu0 %v2218_v42, %s2044_s10 }
 0x1da   : > { %1240 = vrot.lane.b32.xlu1 %v2223_v43, %s2043_s18  ;;  %v767_v43 = vadd.f32 1e-06, %v765_v36  ;;  %v996_v46 = vpop.xlane.xlu0 %995 }
 0x1db   : > { %v1000_v51 = vmul.f32 0.03125, %v996_v46 }
 0x1dc   : > { %1933 = vrsqrt.f32 %v767_v43 }
 0x1dd   : > { %1269 = vrot.lane.b32.xlu0 %v2206_v37, %s2043_s18  ;;  %v1032_v37 = vmul.f32 0.03125, %v1030_v29  ;;  %1935 = vrsqrt.f32 %v801_v45  ;;  %v1002_v58 = vadd.f32 1e-06, %v1000_v51  ;;  %v816_v29 = vmul.f32 %v812_v49, %v806_v15 }
 0x1df   : > { %v1034_v48 = vadd.f32 1e-06, %v1032_v37 }
 0x1e1   : > { %1238 = vrot.lane.b32.xlu0 %v2218_v42, %s2043_s18  ;;  %v1031_v42 = vmul.f32 0.03125, %v1027_v38  ;;  %1937 = vrsqrt.f32 %v1034_v48 }
 0x1e3   : > { %v1033_v50 = vadd.f32 1e-06, %v1031_v42 }
 0x1e5   : > { %1939 = vrsqrt.f32 %v1033_v50 }
 0x1e6   : > { %1941 = vrsqrt.f32 %v1003_v53  ;;  %v1934_v5 = vpop.eup %1933 }
 0x1e7   : > { %1943 = vrsqrt.f32 %v1002_v58  ;;  %v1936_v14 = vpop.eup %1935  ;;  %v771_v22 = vmul.f32 %v1934_v5, %v2154_v11 }
 0x1e8   : > { %1945 = vrsqrt.f32 %v1264_v2  ;;  %v805_v27 = vmul.f32 %v1936_v14, %v2148_v8 }
 0x1eb   : > { %v1938_v24 = vpop.eup %1937 }
 0x1ec   : > { %v1038_v40 = vmul.f32 %v1938_v24, %v2152_v10 }
 0x1ef   : > { %v1940_v28 = vpop.eup %1939 }
 0x1f0   : > { %v1942_v35 = vpop.eup %1941  ;;  %v1037_v41 = vmul.f32 %v1940_v28, %v2148_v8 }
 0x1f1   : > { %v1944_v43 = vpop.eup %1943  ;;  %v1007_v42 = vmul.f32 %v1942_v35, %v2154_v11 }
 0x1f2   : > { %v1946_v47 = vpop.eup %1945  ;;  %v1006_v50 = vmul.f32 %v1944_v43, %v2150_v9 }
 0x1f3   : > { %v1268_v1 = vmul.f32 %v1946_v47, %v2152_v10 }
 0x240   : > { %v636_v54 = vpop.xlane.xlu0 %635 }
 0x241   : > { %v2308_v57 = vmax.f32 %v2303_v52, %v636_v54 }
 0x242   : > { %v639_v59 = vpop.xlane.xlu1 %638 }
 0x243   : > { %v642_v61 = vsub.f32 %v2303_v52, %v2308_v57  ;;  %748 = vst.msk [vmem:[#allocation2] sm:$0xff] %vm502_vm2, %v2308_v57  ;;  %v2315_v62 = vmax.f32 %v2305_v55, %v639_v59  ;;  %650 = vperm.xlu0 %1903, %v2308_v57  }
 0x244   : > { %v1257_v0 = vpop.xlane.xlu0 %1256 }
 0x245   : > { %v643_v3 = vsub.f32 %v2305_v55, %v2315_v62  ;;  %749 = vst.msk [vmem:[#allocation2 + $0x8] sm:$0xff] %vm502_vm2, %v2315_v62  ;;  %v1261_v4 = vmul.f32 0.03125, %v1257_v0  ;;  %655 = vperm.xlu1 %1904, %v2315_v62  }
 0x246   : > { %v775_v6 = vpop.permute.xlu1 %774 }
 0x247   : > { %v1263_v12 = vadd.f32 1e-06, %v1261_v4  ;;  %v780_v18 = vmul.f32 %v775_v6, %v770_v13 }
 0x248   : > { %v1226_v17 = vpop.xlane.xlu0 %1225 }
 0x249   : > { %v1230_v21 = vmul.f32 0.03125, %v1226_v17  ;;  %1947 = vrsqrt.f32 %v1263_v12  ;;  %v782_v32 = vmul.f32 0.17677669, %v780_v18 }
 0x24a   : > { %v777_v23 = vpop.permute.xlu1 %776  ;;  %1949 = vrsqrt.f32 %v1233_v7 }
 0x24b   : > { %v1232_v25 = vadd.f32 1e-06, %v1230_v21  ;;  %v781_v26 = vmul.f32 %v777_v23, %v771_v22 }
 0x24c   : > { %v810_v30 = vpop.permute.xlu0 %809 }
 0x24d   : > { %1951 = vrsqrt.f32 %v1232_v25  ;;  %v783_v33 = vmul.f32 0.17677669, %v781_v26  ;;  %v815_v34 = vmul.f32 %v810_v30, %v805_v27 }
 0x24e   : > { %v1042_v36 = vpop.permute.xlu1 %1041 }
 0x24f   : > { %v784_v38 = vpack.c.bf16 %v783_v33, %v782_v32  ;;  %v817_v39 = vpack.c.bf16 %v816_v29, %v815_v34  ;;  %v1046_v37 = vmul.f32 %v1042_v36, %v1038_v40  ;;  %v644_v40 = vmul.f32 1.442695, %v642_v61 }
 0x250   : > { %v1040_v44 = vpop.permute.xlu0 %1039 }
 0x251   : > { %v1045_v45 = vmul.f32 %v1040_v44, %v1037_v41  ;;  %822 = vrot.lane.b32.xlu1 %v817_v39, %s2043_s18  ;;  %819 = vrot.lane.b32.xlu0 %v784_v38, %s2043_s18  ;;  %v646_v41 = vmul.f32 1.442695, %v643_v3  ;;  %v664_v44 = vld [vmem:[#allocation3] sm:$0xff] }
 0x252   : > { %v1011_v46 = vpop.permute.xlu1 %1010 }
 0x253   : > { %v1047_v48 = vpack.c.bf16 %v1046_v37, %v1045_v45  ;;  %v1015_v49 = vmul.f32 %v1011_v46, %v1007_v42  ;;  %v1948_v51 = vpop.eup %1947  ;;  %v665_v45 = vld [vmem:[#allocation3 + $0x8] sm:$0xff] }
 0x254   : > { %v1009_v53 = vpop.permute.xlu0 %1008  ;;  %v1950_v54 = vpop.eup %1949  ;;  %v1267_v58 = vmul.f32 %v1948_v51, %v2148_v8 }
 0x255   : > { %v1014_v56 = vmul.f32 %v1009_v53, %v1006_v50  ;;  %1052 = vrot.lane.b32.xlu1 %v1047_v48, %s2044_s10  ;;  %v1017_v63 = vmul.f32 0.17677669, %v1015_v49  ;;  %v1237_v4 = vmul.f32 %v1950_v54, %v2154_v11 }
 0x256   : > { %v1272_v59 = vpop.permute.xlu1 %1271 }
 0x257   : > { %v1952_v60 = vpop.eup %1951  ;;  %v1016_v0 = vmul.f32 0.17677669, %v1014_v56  ;;  %v1276_v6 = vmul.f32 %v1272_v59, %v1268_v1 }
 0x258   : > { %v1270_v2 = vpop.permute.xlu0 %1269  ;;  %v1236_v12 = vmul.f32 %v1952_v60, %v2150_v9 }
 0x259   : > { %v1018_v5 = vpack.c.bf16 %v1017_v63, %v1016_v0  ;;  %v1275_v7 = vmul.f32 %v1270_v2, %v1267_v58 }
 0x25a   : > { %v1241_v13 = vpop.permute.xlu1 %1240 }
 0x25b   : > { %v1277_v14 = vpack.c.bf16 %v1276_v6, %v1275_v7  ;;  %v1245_v15 = vmul.f32 %v1241_v13, %v1237_v4  ;;  %1049 = vrot.lane.b32.xlu0 %v1018_v5, %s2044_s10  ;;  %v2401_v13 = vld [vmem:[#allocation2 + $0x10] sm:$0xff] }
 0x25c   : > { %v1239_v8 = vpop.permute.xlu0 %1238 }
 0x25d   : > { %v1244_v17 = vmul.f32 %v1239_v8, %v1236_v12  ;;  %1282 = vrot.lane.b32.xlu1 %v1277_v14, %s2045_s11  ;;  %v1247_v18 = vmul.f32 0.17677669, %v1245_v15  ;;  %v2406_v8 = vld [vmem:[#allocation2 + $0x18] sm:$0xff] }
 0x25f   : > { %v1246_v21 = vmul.f32 0.17677669, %v1244_v17 }
 0x261   : > { %v1248_v10 = vpack.c.bf16 %v1247_v18, %v1246_v21 }
 0x263   : > { %1279 = vrot.lane.b32.xlu0 %v1248_v10, %s2045_s11  ;;  %v2416_v10 = vld [vmem:[#allocation2 + $0x20] sm:$0xff] }
 0x2c2   : > { %v651_v11 = vpop.permute.xlu0 %650 }
 0x2c3   : > { %v658_v22 = vsub.f32 %v2271_v16, %v651_v11 }
 0x2c4   : > { %v656_v23 = vpop.permute.xlu1 %655 }
 0x2c5   : > { %v660_v24 = vmul.f32 1.442695, %v658_v22  ;;  %v659_v9 = vsub.f32 %v2275_v19, %v656_v23 }
 0x2c6   : > { %v820_v19 = vpop.permute.xlu0 %819 }
 0x2c7   : > { %1953 = vpow2.f32 %v660_v24  ;;  %v662_v25 = vmul.f32 1.442695, %v659_v9  ;;  %v2426_v24 = vld [vmem:[#allocation2 + $0x28] sm:$0xff] }
 0x2c8   : > { %v823_v29 = vpop.permute.xlu1 %822 }
 0x2c9   : > { %1955 = vpow2.f32 %v662_v25  ;;  %v828_v33 = vsel %vm519_vm0, %v823_v29, 0 }
 0x2ca   : > { %1957 = vpow2.f32 %v644_v40  ;;  %v679_v40 = vld [vmem:[#allocation4] sm:$0xff] }
 0x2cb   : > { %1959 = vpow2.f32 %v646_v41 }
 0x2cc   : > { %v1053_v16 = vpop.permute.xlu1 %1052 }
 0x2cd   : > { %v1058_v34 = vsel %vm519_vm0, %v1053_v16, 0  ;;  %v1050_v36 = vpop.permute.xlu0 %1049  ;;  %v680_v16 = vld [vmem:[#allocation4 + $0x8] sm:$0xff] }
 0x2d0   : > { %v1283_v35 = vpop.permute.xlu1 %1282 }
 0x2d1   : > { %v1954_v26 = vpop.eup %1953  ;;  %v1288_v38 = vsel %vm519_vm0, %v1283_v35, 0 }
 0x2d2   : > { %v668_v27 = vsel %vm633_vm3, %v1954_v26, 0.0 }
 0x2d3   : > { %v1956_v28 = vpop.eup %1955  ;;  %669 = vadd.xlane.f32.xlu1 %v668_v27  ;;  %v2438_v27 = vld [vmem:[#allocation2 + $0x30] sm:$0xff] }
 0x2d4   : > { %v671_v30 = vsel %vm633_vm3, %v1956_v28, 0.0  ;;  %v693_v32 = vpack.c.bf16 %v1956_v28, %v1954_v26  ;;  %v1958_v43 = vpop.eup %1957 }
 0x2d5   : > { %672 = vadd.xlane.f32.xlu0 %v671_v30  ;;  %v1280_v39 = vpop.permute.xlu0 %1279  ;;  %v1960_v37 = vpop.eup %1959  ;;  %v666_v42 = vmul.f32 %v1958_v43, %v664_v44  ;;  %v2445_v30 = vld [vmem:[#allocation2 + $0x38] sm:$0xff] }
 0x2d6   : > { %1816 = vmatmul.mubr.msk.bf16.vlgmr.msra.gmra.mrb[0].mxu1 %vm633_vm3, %v693_v32  ;;  %v667_v48 = vmul.f32 %v1960_v37, %v665_v45 }
 0x2d7   : > { %1820 = vmatpush3.bf16.xpose.msra.mxu1 %v828_v33  ;;  %1821 = vmatprep.mubr.msk.bf16.mxu1 %vm2042_vm1, %v2041_v20 }
 0x2d8   : > { %1831 = vmatprep.subr.bf16.mxu1 %v2041_v20 }
 0x2de   : > { %1822 = vmatmul.mubr.msk.bf16.vlgmr.msra.gmra.mrb[4].mxu1 %vm519_vm0, %v820_v19 }
 0x2df   : > { %1832 = vmatpush3.bf16.xpose.msra.mxu1 %v1058_v34  ;;  %1833 = vmatprep.mubr.msk.bf16.mxu1 %vm2042_vm1, %v2041_v20 }
 0x2e0   : > { %1843 = vmatprep.subr.bf16.mxu1 %v2041_v20 }
 0x2e6   : > { %1834 = vmatmul.mubr.msk.bf16.vlgmr.msra.gmra.mrb[8].mxu1 %vm519_vm0, %v1050_v36 }
 0x2e7   : > { %1844 = vmatpush3.bf16.xpose.msra.mxu1 %v1288_v38  ;;  %1845 = vmatprep.mubr.msk.bf16.mxu1 %vm2042_vm1, %v2041_v20 }
 0x2ee   : > { %1846 = vmatmul.mubr.msk.bf16.vlgmr.msra.gmra.mrb[12].mxu1 %vm519_vm0, %v1280_v39 }
 0x360   : > { %v670_v46 = vpop.xlane.xlu1 %669 }
 0x361   : > { %v674_v47 = vadd.f32 %v670_v46, %v666_v42 }
 0x362   : > { %v673_v49 = vpop.xlane.xlu0 %672 }
 0x363   : > { %677 = vst.msk [vmem:[#allocation3] sm:$0xff] %vm502_vm2, %v674_v47  ;;  %v675_v50 = vadd.f32 %v673_v49, %v667_v48 }
 0x365   : > { %678 = vst.msk [vmem:[#allocation3 + $0x8] sm:$0xff] %vm502_vm2, %v675_v50 }
 0x3a9   : > { %v2373_v52 = vpop.f32.mrb[0].mxu1 }
 0x3aa   : > { %v1817_v55 = vpop.f32.mrb[1].mxu1 }
 0x3ab   : > { %v2375_v57 = vpop.f32.mrb[2].mxu1 }
 0x3ac   : > { %v1818_v61 = vpop.f32.mrb[3].mxu1 }
 0x3b1   : > { %v2377_v62 = vpop.f32.mrb[4].mxu1 }
 0x3b2   : > { %v1823_v3 = vpop.f32.mrb[5].mxu1  ;;  %v874_v51 = vsel %vm633_vm3, %v2377_v62, -inf }
 0x3b3   : > { %875 = vmax.xlane.f32.xlu1 %v874_v51  ;;  %v2381_v53 = vpop.f32.mrb[6].mxu1 }
 0x3b4   : > { %v1824_v54 = vpop.f32.mrb[7].mxu1  ;;  %v877_v56 = vsel %vm633_vm3, %v2381_v53, -inf }
 0x3b7   : > { %878 = vmax.xlane.f32.xlu1 %v877_v56 }
 0x3b9   : > { %v2385_v58 = vpop.f32.mrb[8].mxu1 }
 0x3ba   : > { %v1835_v59 = vpop.f32.mrb[9].mxu1  ;;  %v1104_v60 = vsel %vm633_vm3, %v2385_v58, -inf }
 0x3bb   : > { %1105 = vmax.xlane.f32.xlu1 %v1104_v60  ;;  %v2389_v63 = vpop.f32.mrb[10].mxu1 }
 0x3bc   : > { %v1836_v0 = vpop.f32.mrb[11].mxu1  ;;  %v1107_v1 = vsel %vm633_vm3, %v2389_v63, -inf }
 0x3bf   : > { %1108 = vmax.xlane.f32.xlu1 %v1107_v1 }
 0x3c1   : > { %v2393_v2 = vpop.f32.mrb[12].mxu1 }
 0x3c2   : > { %v1847_v4 = vpop.f32.mrb[13].mxu1  ;;  %v1334_v5 = vsel %vm633_vm3, %v2393_v2, -inf }
 0x3c3   : > { %1335 = vmax.xlane.f32.xlu1 %v1334_v5  ;;  %v2397_v6 = vpop.f32.mrb[14].mxu1 }
 0x3c4   : > { %v1848_v7 = vpop.f32.mrb[15].mxu1  ;;  %v1337_v12 = vsel %vm633_vm3, %v2397_v6, -inf }
 0x3c5   : > { %1338 = vmax.xlane.f32.xlu0 %v1337_v12 }
 0x3d4   : > { %688 = vperm.xlu1 %1904, %v1960_v37  }
 0x3db   : > { %683 = vperm.xlu0 %1903, %v1958_v43  }
 0x440   : > { %v876_v14 = vpop.xlane.xlu1 %875 }
 0x441   : > { %v2404_v15 = vmax.f32 %v2401_v13, %v876_v14 }
 0x443   : > { %v882_v17 = vsub.f32 %v2401_v13, %v2404_v15  ;;  %986 = vst.msk [vmem:[#allocation2 + $0x10] sm:$0xff] %vm502_vm2, %v2404_v15  ;;  %890 = vperm.xlu1 %1904, %v2404_v15   ;;  %v1451_v15 = vld [vmem:[#allocation3] sm:$0xff] }
 0x444   : > { %v879_v18 = vpop.xlane.xlu1 %878 }
 0x445   : > { %v2414_v21 = vmax.f32 %v2406_v8, %v879_v18 }
 0x447   : > { %v883_v11 = vsub.f32 %v2406_v8, %v2414_v21  ;;  %987 = vst.msk [vmem:[#allocation2 + $0x18] sm:$0xff] %vm502_vm2, %v2414_v21  ;;  %895 = vperm.xlu1 %1904, %v2414_v21   ;;  %v1452_v21 = vld [vmem:[#allocation3 + $0x8] sm:$0xff] }
 0x448   : > { %v1106_v22 = vpop.xlane.xlu1 %1105 }
 0x449   : > { %v2424_v23 = vmax.f32 %v2416_v10, %v1106_v22 }
 0x44b   : > { %v1112_v9 = vsub.f32 %v2416_v10, %v2424_v23  ;;  %1216 = vst.msk [vmem:[#allocation2 + $0x20] sm:$0xff] %vm502_vm2, %v2424_v23  ;;  %1120 = vperm.xlu0 %1903, %v2424_v23   ;;  %935 = vrot.lane.b32.xlu1 %v2328_v31, %s2043_s18 }
 0x44c   : > { %v1109_v25 = vpop.xlane.xlu1 %1108 }
 0x44d   : > { %v2436_v26 = vmax.f32 %v2426_v24, %v1109_v25 }
 0x44f   : > { %v1113_v28 = vsub.f32 %v2426_v24, %v2436_v26  ;;  %1217 = vst.msk [vmem:[#allocation2 + $0x28] sm:$0xff] %vm502_vm2, %v2436_v26  ;;  %1125 = vperm.xlu0 %1903, %v2436_v26  }
 0x450   : > { %v1336_v29 = vpop.xlane.xlu1 %1335 }
 0x451   : > { %v2448_v32 = vmax.f32 %v2438_v27, %v1336_v29  ;;  %v1116_v13 = vmul.f32 1.442695, %v1113_v28  ;;  %v905_v28 = vld [vmem:[#allocation3 + $0x10] sm:$0xff] }
 0x452   : > { %v1339_v33 = vpop.xlane.xlu0 %1338 }
 0x453   : > { %v1342_v19 = vsub.f32 %v2438_v27, %v2448_v32  ;;  %1446 = vst.msk [vmem:[#allocation2 + $0x30] sm:$0xff] %vm502_vm2, %v2448_v32  ;;  %v2455_v34 = vmax.f32 %v2445_v30, %v1339_v33  ;;  %1350 = vperm.xlu0 %1903, %v2448_v32   ;;  %v884_v33 = vmul.f32 1.442695, %v882_v17 }
 0x454   : > { %v689_v35 = vpop.permute.xlu1 %688 }
 0x455   : > { %v1343_v36 = vsub.f32 %v2445_v30, %v2455_v34  ;;  %1447 = vst.msk [vmem:[#allocation2 + $0x38] sm:$0xff] %vm502_vm2, %v2455_v34  ;;  %v692_v38 = vmul.f32 %v689_v35, %v680_v16  ;;  %v1114_v16 = vmul.f32 1.442695, %v1112_v9  ;;  %v1344_v35 = vmul.f32 1.442695, %v1342_v19  ;;  %v906_v19 = vld [vmem:[#allocation3 + $0x18] sm:$0xff] }
 0x457   : > { %v745_v39 = vadd.f32 %v2375_v57, %v692_v38  ;;  %1355 = vperm.xlu0 %1903, %v2455_v34   ;;  %v1346_v17 = vmul.f32 1.442695, %v1343_v36 }
 0x459   : > { %747 = vst.msk [vmem:[#allocation4 + $0x8] sm:$0xff] %vm519_vm0, %v745_v39  ;;  %v1135_v39 = vld [vmem:[#allocation3 + $0x20] sm:$0xff] }
 0x45a   : > { %v684_v41 = vpop.permute.xlu0 %683 }
 0x45b   : > { %v691_v43 = vmul.f32 %v684_v41, %v679_v40  ;;  %1165 = vrot.lane.b32.xlu0 %v2328_v31, %s2044_s10 }
 0x45d   : > { %v744_v44 = vadd.f32 %v2373_v52, %v691_v43 }
 0x45f   : > { %746 = vst.msk [vmem:[#allocation4] sm:$0xff] %vm519_vm0, %v744_v44  ;;  %1395 = vrot.lane.b32.xlu0 %v2328_v31, %s2045_s11  ;;  %v1136_v44 = vld [vmem:[#allocation3 + $0x28] sm:$0xff] }
 0x4c2   : > { %v891_v37 = vpop.permute.xlu1 %890 }
 0x4c3   : > { %v898_v45 = vsub.f32 %v2377_v62, %v891_v37 }
 0x4c5   : > { %v900_v42 = vmul.f32 1.442695, %v898_v45 }
 0x4c6   : > { %v896_v46 = vpop.permute.xlu1 %895 }
 0x4c7   : > { %1961 = vpow2.f32 %v900_v42  ;;  %v899_v47 = vsub.f32 %v2381_v53, %v896_v46 }
 0x4c9   : > { %v902_v48 = vmul.f32 1.442695, %v899_v47  ;;  %v1365_v47 = vld [vmem:[#allocation3 + $0x30] sm:$0xff] }
 0x4ca   : > { %v1121_v49 = vpop.permute.xlu0 %1120  ;;  %v936_v50 = vpop.permute.xlu1 %935 }
 0x4cb   : > { %1963 = vpow2.f32 %v902_v48  ;;  %v1128_v55 = vsub.f32 %v2385_v58, %v1121_v49  ;;  %1826 = vmatpush3.bf16.msra.mxu0 %v936_v50 }
 0x4cc   : > { %1837 = vmatprep.subr.bf16.mxu0 %v2041_v20 }
 0x4cd   : > { %v1130_v52 = vmul.f32 1.442695, %v1128_v55 }
 0x4ce   : > { %v1126_v57 = vpop.permute.xlu0 %1125 }
 0x4cf   : > { %1965 = vpow2.f32 %v1130_v52  ;;  %v1129_v31 = vsub.f32 %v2389_v63, %v1126_v57  ;;  %v1366_v52 = vld [vmem:[#allocation3 + $0x38] sm:$0xff] }
 0x4d1   : > { %v1962_v61 = vpop.eup %1961  ;;  %v1132_v62 = vmul.f32 1.442695, %v1129_v31 }
 0x4d2   : > { %v1351_v3 = vpop.permute.xlu0 %1350  ;;  %v909_v51 = vsel %vm633_vm3, %v1962_v61, 0.0 }
 0x4d3   : > { %1967 = vpow2.f32 %v1132_v62  ;;  %v1358_v53 = vsub.f32 %v2393_v2, %v1351_v3  ;;  %910 = vadd.xlane.f32.xlu1 %v909_v51 }
 0x4d5   : > { %v1964_v54 = vpop.eup %1963  ;;  %v1360_v56 = vmul.f32 1.442695, %v1358_v53 }
 0x4d6   : > { %v1356_v58 = vpop.permute.xlu0 %1355  ;;  %v912_v59 = vsel %vm633_vm3, %v1964_v54, 0.0  ;;  %v934_v60 = vpack.c.bf16 %v1964_v54, %v1962_v61 }
 0x4d7   : > { %1969 = vpow2.f32 %v1360_v56  ;;  %v1359_v0 = vsub.f32 %v2397_v6, %v1356_v58  ;;  %913 = vadd.xlane.f32.xlu0 %v912_v59 }
 0x4d8   : > { %1828 = vmatmul.mubr.msk.bf16.vlgmr.msra.gmra.mrb[4].mxu0 %vm633_vm3, %v934_v60 }
 0x4d9   : > { %v1966_v63 = vpop.eup %1965  ;;  %v1362_v1 = vmul.f32 1.442695, %v1359_v0  ;;  %1839 = vmatprep.mubr.msk.bf16.mxu0 %vm2042_vm1, %v2041_v20 }
 0x4da   : > { %v1139_v2 = vsel %vm633_vm3, %v1966_v63, 0.0  ;;  %v1166_v4 = vpop.permute.xlu0 %1165 }
 0x4db   : > { %1971 = vpow2.f32 %v1362_v1  ;;  %1140 = vadd.xlane.f32.xlu1 %v1139_v2  ;;  %1838 = vmatpush3.bf16.msra.mxu0 %v1166_v4  ;;  %v920_v2 = vld [vmem:[#allocation4 + $0x10] sm:$0xff]  ;;  %v921_v4 = vld [vmem:[#allocation4 + $0x18] sm:$0xff] }
 0x4dc   : > { %1849 = vmatprep.subr.bf16.mxu0 %v2041_v20  ;;  %1973 = vpow2.f32 %v884_v33  ;;  %v1150_v33 = vld [vmem:[#allocation4 + $0x20] sm:$0xff] }
 0x4dd   : > { %v1968_v5 = vpop.eup %1967  ;;  %1975 = vpow2.f32 %v1114_v16 }
 0x4de   : > { %v1142_v7 = vsel %vm633_vm3, %v1968_v5, 0.0  ;;  %v1164_v6 = vpack.c.bf16 %v1968_v5, %v1966_v63  ;;  %v1396_v12 = vpop.permute.xlu0 %1395 }
 0x4df   : > { %1143 = vadd.xlane.f32.xlu0 %v1142_v7 }
 0x4e0   : > { %1840 = vmatmul.mubr.msk.bf16.vlgmr.msra.gmra.mrb[8].mxu0 %vm633_vm3, %v1164_v6 }
 0x4e1   : > { %v1970_v14 = vpop.eup %1969  ;;  %1850 = vmatpush3.bf16.msra.mxu0 %v1396_v12  ;;  %1851 = vmatprep.mubr.msk.bf16.mxu0 %vm2042_vm1, %v2041_v20  ;;  %v886_v20 = vmul.f32 1.442695, %v883_v11 }
 0x4e2   : > { %v1369_v18 = vsel %vm633_vm3, %v1970_v14, 0.0 }
 0x4e3   : > { %1370 = vadd.xlane.f32.xlu0 %v1369_v18  ;;  %1977 = vpow2.f32 %v886_v20  ;;  %v1151_v20 = vld [vmem:[#allocation4 + $0x28] sm:$0xff] }
 0x4e4   : > { %1979 = vpow2.f32 %v1344_v35 }
 0x4e5   : > { %v1972_v22 = vpop.eup %1971  ;;  %1981 = vpow2.f32 %v1116_v13 }
 0x4e6   : > { %v1372_v25 = vsel %vm633_vm3, %v1972_v22, 0.0  ;;  %v1394_v29 = vpack.c.bf16 %v1972_v22, %v1970_v14  ;;  %1983 = vrcp.f32 %v1451_v15  ;;  %v1974_v8 = vpop.eup %1973 }
 0x4e7   : > { %1373 = vadd.xlane.f32.xlu1 %v1372_v25  ;;  %v1976_v10 = vpop.eup %1975  ;;  %1985 = vpow2.f32 %v1346_v17  ;;  %v907_v30 = vmul.f32 %v1974_v8, %v905_v28 }
 0x4e8   : > { %1852 = vmatmul.mubr.msk.bf16.vlgmr.msra.gmra.mrb[12].mxu0 %vm633_vm3, %v1394_v29  ;;  %1987 = vrcp.f32 %v1452_v21  ;;  %v1137_v41 = vmul.f32 %v1976_v10, %v1135_v39 }
 0x4ed   : > { %v1978_v11 = vpop.eup %1977 }
 0x4ee   : > { %v1980_v23 = vpop.eup %1979  ;;  %v908_v36 = vmul.f32 %v1978_v11, %v906_v19 }
 0x4ef   : > { %v1982_v24 = vpop.eup %1981  ;;  %v1367_v50 = vmul.f32 %v1980_v23, %v1365_v47 }
 0x4f0   : > { %v1984_v9 = vpop.eup %1983  ;;  %v1138_v42 = vmul.f32 %v1982_v24, %v1136_v44 }
 0x4f1   : > { %v1986_v26 = vpop.eup %1985 }
 0x4f2   : > { %v1988_v27 = vpop.eup %1987  ;;  %v1368_v61 = vmul.f32 %v1986_v26, %v1366_v52 }
 0x4f8   : > { %924 = vperm.xlu1 %1904, %v1974_v8  }
 0x4f9   : > { %1154 = vperm.xlu0 %1903, %v1976_v10  }
 0x4fc   : > { %929 = vperm.xlu1 %1904, %v1978_v11  }
 0x4fd   : > { %1384 = vperm.xlu0 %1903, %v1980_v23  }
 0x500   : > { %1159 = vperm.xlu1 %1904, %v1982_v24   ;;  %v1380_v24 = vld [vmem:[#allocation4 + $0x30] sm:$0xff] }
 0x501   : > { %1461 = vperm.xlu0 %1903, %v1984_v9  }
 0x504   : > { %1389 = vperm.xlu1 %1904, %v1986_v26   ;;  %v1381_v26 = vld [vmem:[#allocation4 + $0x38] sm:$0xff] }
 0x505   : > { %1466 = vperm.xlu0 %1903, %v1988_v27  }
 0x560   : > { %v911_v32 = vpop.xlane.xlu1 %910 }
 0x561   : > { %v915_v34 = vadd.f32 %v911_v32, %v907_v30 }
 0x563   : > { %917 = vst.msk [vmem:[#allocation3 + $0x10] sm:$0xff] %vm502_vm2, %v915_v34 }
 0x564   : > { %v914_v38 = vpop.xlane.xlu0 %913 }
 0x565   : > { %v916_v40 = vadd.f32 %v914_v38, %v908_v36 }
 0x567   : > { %918 = vst.msk [vmem:[#allocation3 + $0x18] sm:$0xff] %vm502_vm2, %v916_v40 }
 0x568   : > { %v1141_v43 = vpop.xlane.xlu1 %1140 }
 0x569   : > { %v1145_v37 = vadd.f32 %v1141_v43, %v1137_v41 }
 0x56a   : > { %v1471_v45 = vld [vmem:[#allocation3 + $0x10] sm:$0xff] }
 0x56b   : > { %1147 = vst.msk [vmem:[#allocation3 + $0x20] sm:$0xff] %vm502_vm2, %v1145_v37  ;;  %1989 = vrcp.f32 %v1471_v45 }
 0x56c   : > { %v1144_v46 = vpop.xlane.xlu0 %1143 }
 0x56d   : > { %v1146_v48 = vadd.f32 %v1144_v46, %v1138_v42 }
 0x56e   : > { %v1472_v49 = vld [vmem:[#allocation3 + $0x18] sm:$0xff] }
 0x56f   : > { %1148 = vst.msk [vmem:[#allocation3 + $0x28] sm:$0xff] %vm502_vm2, %v1146_v48  ;;  %1991 = vrcp.f32 %v1472_v49 }
 0x570   : > { %v1371_v55 = vpop.xlane.xlu0 %1370 }
 0x571   : > { %v1375_v57 = vadd.f32 %v1371_v55, %v1367_v50 }
 0x572   : > { %v1491_v31 = vld [vmem:[#allocation3 + $0x20] sm:$0xff] }
 0x573   : > { %1377 = vst.msk [vmem:[#allocation3 + $0x30] sm:$0xff] %vm502_vm2, %v1375_v57  ;;  %1993 = vrcp.f32 %v1491_v31 }
 0x574   : > { %v1374_v62 = vpop.xlane.xlu1 %1373 }
 0x575   : > { %v1990_v3 = vpop.eup %1989  ;;  %v1376_v51 = vadd.f32 %v1374_v62, %v1368_v61 }
 0x576   : > { %1481 = vperm.xlu0 %1903, %v1990_v3   ;;  %v1492_v53 = vld [vmem:[#allocation3 + $0x28] sm:$0xff] }
 0x577   : > { %1378 = vst.msk [vmem:[#allocation3 + $0x38] sm:$0xff] %vm502_vm2, %v1376_v51  ;;  %1995 = vrcp.f32 %v1492_v53 }
 0x578   : > { %v925_v1 = vpop.permute.xlu1 %924  ;;  %v1155_v16 = vpop.permute.xlu0 %1154 }
 0x579   : > { %v1992_v54 = vpop.eup %1991  ;;  %v932_v7 = vmul.f32 %v925_v1, %v920_v2  ;;  %v1162_v13 = vmul.f32 %v1155_v16, %v1150_v33  ;;  %v1458_v1 = vld [vmem:[#allocation4 + $0x8] sm:$0xff] }
 0x57a   : > { %1486 = vperm.xlu1 %1904, %v1992_v54   ;;  %v1511_v56 = vld [vmem:[#allocation3 + $0x30] sm:$0xff] }
 0x57b   : > { %1997 = vrcp.f32 %v1511_v56 }
 0x57c   : > { %v930_v5 = vpop.permute.xlu1 %929  ;;  %v1385_v9 = vpop.permute.xlu0 %1384 }
 0x57d   : > { %v1994_v58 = vpop.eup %1993  ;;  %v933_v12 = vmul.f32 %v930_v5, %v921_v4  ;;  %v1392_v28 = vmul.f32 %v1385_v9, %v1380_v24 }
 0x57e   : > { %1501 = vperm.xlu0 %1903, %v1994_v58   ;;  %v1512_v59 = vld [vmem:[#allocation3 + $0x38] sm:$0xff] }
 0x57f   : > { %1999 = vrcp.f32 %v1512_v59 }
 0x580   : > { %v1160_v35 = vpop.permute.xlu1 %1159  ;;  %v1462_v40 = vpop.permute.xlu0 %1461 }
 0x581   : > { %v1996_v60 = vpop.eup %1995  ;;  %v1163_v17 = vmul.f32 %v1160_v35, %v1151_v20 }
 0x582   : > { %1506 = vperm.xlu1 %1904, %v1996_v60  }
 0x584   : > { %v1390_v27 = vpop.permute.xlu1 %1389  ;;  %v1467_v41 = vpop.permute.xlu0 %1466 }
 0x585   : > { %v1998_v0 = vpop.eup %1997  ;;  %v1393_v32 = vmul.f32 %v1390_v27, %v1381_v26 }
 0x586   : > { %1521 = vperm.xlu0 %1903, %v1998_v0  }
 0x589   : > { %v2000_v63 = vpop.eup %1999 }
 0x58a   : > { %1526 = vperm.xlu1 %1904, %v2000_v63   ;;  %v1457_v63 = vld [vmem:[#allocation4] sm:$0xff] }
 0x58b   : > { %v1469_v5 = vmul.f32 %v1462_v40, %v1457_v63 }
 0x5ab   : > { %v975_v6 = vpop.f32.mrb[4].mxu0 }
 0x5ac   : > { %v982_v14 = vadd.f32 %v975_v6, %v932_v7  ;;  %v1829_v18 = vpop.f32.mrb[5].mxu0  ;;  %v1470_v7 = vmul.f32 %v1467_v41, %v1458_v1 }
 0x5ad   : > { %v978_v22 = vpop.f32.mrb[6].mxu0 }
 0x5ae   : > { %984 = vst.msk [vmem:[#allocation4 + $0x10] sm:$0xff] %vm519_vm0, %v982_v14  ;;  %v983_v25 = vadd.f32 %v978_v22, %v933_v12  ;;  %v1830_v29 = vpop.f32.mrb[7].mxu0 }
 0x5b0   : > { %985 = vst.msk [vmem:[#allocation4 + $0x18] sm:$0xff] %vm519_vm0, %v983_v25 }
 0x5b3   : > { %v1205_v15 = vpop.f32.mrb[8].mxu0 }
 0x5b4   : > { %v1212_v8 = vadd.f32 %v1205_v15, %v1162_v13  ;;  %v1841_v21 = vpop.f32.mrb[9].mxu0 }
 0x5b5   : > { %v1208_v10 = vpop.f32.mrb[10].mxu0  ;;  %v1477_v44 = vld [vmem:[#allocation4 + $0x10] sm:$0xff] }
 0x5b6   : > { %1214 = vst.msk [vmem:[#allocation4 + $0x20] sm:$0xff] %vm519_vm0, %v1212_v8  ;;  %v1213_v11 = vadd.f32 %v1208_v10, %v1163_v17  ;;  %v1842_v23 = vpop.f32.mrb[11].mxu0 }
 0x5b7   : > { %v1478_v37 = vld [vmem:[#allocation4 + $0x18] sm:$0xff] }
 0x5b8   : > { %1215 = vst.msk [vmem:[#allocation4 + $0x28] sm:$0xff] %vm519_vm0, %v1213_v11 }
 0x5bb   : > { %v1435_v30 = vpop.f32.mrb[12].mxu0 }
 0x5bc   : > { %v1442_v19 = vadd.f32 %v1435_v30, %v1392_v28  ;;  %v1853_v34 = vpop.f32.mrb[13].mxu0 }
 0x5bd   : > { %v1438_v36 = vpop.f32.mrb[14].mxu0  ;;  %v1497_v49 = vld [vmem:[#allocation4 + $0x20] sm:$0xff] }
 0x5be   : > { %1444 = vst.msk [vmem:[#allocation4 + $0x30] sm:$0xff] %vm519_vm0, %v1442_v19  ;;  %v1443_v38 = vadd.f32 %v1438_v36, %v1393_v32  ;;  %v1854_v39 = vpop.f32.mrb[15].mxu0 }
 0x5bf   : > { %v1498_v50 = vld [vmem:[#allocation4 + $0x28] sm:$0xff] }
 0x5c0   : > { %1445 = vst.msk [vmem:[#allocation4 + $0x38] sm:$0xff] %vm519_vm0, %v1443_v38 }
 0x5c5   : > { %v1517_v62 = vld [vmem:[#allocation4 + $0x30] sm:$0xff] }
 0x5c7   : > { %v1518_v3 = vld [vmem:[#allocation4 + $0x38] sm:$0xff] }
 0x5f5   : > { %v1482_v43 = vpop.permute.xlu0 %1481 }
 0x5f6   : > { %v1489_v42 = vmul.f32 %v1482_v43, %v1477_v44 }
 0x5f9   : > { %v1487_v45 = vpop.permute.xlu1 %1486 }
 0x5fa   : > { %v1490_v46 = vmul.f32 %v1487_v45, %v1478_v37 }
 0x5fc   : > { %v1905_v47 = vpack.i.bf16 %v1490_v46, %v1489_v42 }
 0x5fd   : > { %v1502_v48 = vpop.permute.xlu0 %1501 }
 0x5fe   : > { %1906 = vrot.lane.b32.xlu0 %v1905_v47, %s2045_s11  ;;  %v1509_v52 = vmul.f32 %v1502_v48, %v1497_v49 }
 0x601   : > { %v1507_v55 = vpop.permute.xlu1 %1506 }
 0x602   : > { %v1510_v57 = vmul.f32 %v1507_v55, %v1498_v50 }
 0x604   : > { %v1910_v31 = vpack.i.bf16 %v1510_v57, %v1509_v52 }
 0x605   : > { %v1522_v61 = vpop.permute.xlu0 %1521 }
 0x606   : > { %1911 = vrot.lane.b32.xlu1 %v1910_v31, %s2044_s10  ;;  %v1529_v53 = vmul.f32 %v1522_v61, %v1517_v62 }
 0x609   : > { %v1527_v51 = vpop.permute.xlu1 %1526 }
 0x60a   : > { %v1530_v54 = vmul.f32 %v1527_v51, %v1518_v3 }
 0x60c   : > { %v1915_v56 = vpack.i.bf16 %v1530_v54, %v1529_v53 }
 0x60e   : > { %1916 = vrot.lane.b32.xlu0 %v1915_v56, %s2043_s18 }
 0x670   : > { %v1907_v58 = vpop.permute.xlu0 %1906 }
 0x671   : > { %v1909_v60 = vunpack.i.h.bf16 %v1907_v58  ;;  %v1908_v0 = vunpack.i.l.bf16 %v1907_v58 }
 0x673   : > { %v1556_v12 = vsel %vm519_vm0, %v1470_v7, %v1909_v60  ;;  %v1555_v14 = vsel %vm519_vm0, %v1469_v5, %v1908_v0 }
 0x678   : > { %v1912_v59 = vpop.permute.xlu1 %1911 }
 0x679   : > { %v1914_v2 = vunpack.i.h.bf16 %v1912_v59  ;;  %v1913_v4 = vunpack.i.l.bf16 %v1912_v59 }
 0x67b   : > { %v1559_v25 = vsel %vm1557_vm4, %v1556_v12, %v1914_v2  ;;  %v1558_v29 = vsel %vm1557_vm4, %v1555_v14, %v1913_v4 }
 0x680   : > { %v1917_v6 = vpop.permute.xlu0 %1916 }
 0x681   : > { %v1919_v18 = vunpack.i.h.bf16 %v1917_v6  ;;  %v1918_v22 = vunpack.i.l.bf16 %v1917_v6 }
 0x683   : > { %v1561_v33 = vsel %vm1560_vm5, %v1558_v29, %v1918_v22  ;;  %v1562_v16 = vsel %vm1560_vm5, %v1559_v25, %v1919_v18 }
 0x684   : > { %v1789_v20 = vpack.c.bf16 %v1562_v16, %v1561_v33 }
 0x686   : > { %1790 = vst [vmem:[%s495_s24] sm:$0xff] %v1789_v20  }
 0x687 PF: > { %s15_s22 = sadd.s32 1, %s2039_s22   ;;  %s2554_s18 = smov %s2027_s19 }
 0x688   : > { %p12_p10 = scmp.ge.s32.totalorder %s15_s22, 4   ;;  %s2555_s19 = smov %s2117_s27 }
 0x689   : > { %s2556_s20 = smov %s2035_s21  ;;  %s2557_s21 = smov %s2559_s23 }
 0x68a   :  { %14 = sbr.rel (!%p12_p10) target bundleno = 3 (0x3), region = 237 }

// kernel: _lambda_.68
= control target key start
LH: loop header
LB: loop body
LE: loop exit
PB: predicated region body
PF: predicated region fallthrough
CT: control target
= control target key end

     0   :  { %s1014_s18 = smov 0   ;;  %s1016_s19 = smov 0   ;;  %s1148_s0 = inlined_call_operand.vmem [shape: bf16[2,16,896], index: 0, kind: input, shape index: {}]   ;;  %s1149_s1 = inlined_call_operand.vmem [shape: bf16[512,128], index: 1, kind: input, shape index: {}]   ;;  %s1150_s2 = inlined_call_operand.vmem [shape: bf16[1,1,128], index: 2, kind: input, shape index: {}]   ;;  %s1151_s3 = inlined_call_operand.vmem [shape: bf16[2,16,128], index: 3, kind: input, shape index: {}]   ;;  %s1152_s4 = inlined_call_operand.vmem [shape: bf16[2,1,128], index: 4, kind: input, shape index: {}]   ;;  %s1153_s5 = inlined_call_operand.vmem [shape: bf16[2,16,128], index: 5, kind: output, shape index: {}]  }
   0x1   :  { %s1018_s20 = smov 0   ;;  %s1020_s21 = smov 0  }
   0x2   :  { %s1022_s22 = smov 0   ;;  %s1024_s23 = smov 0  }
   0x3   :  { %s1026_s24 = smov 0  }
   0x4 LB: > { %s30_s25 = sadd.s32 1, %s971_s22  ;;  %s41_s26 = sadd.s32 1, %s975_s23  ;;  %s979_s24 = sphi %s1026_s24, %s15_s24   ;;  %s975_s23 = sphi %s1024_s23, %s1159_s23   ;;  %s971_s22 = sphi %s1022_s22, %s1158_s22   ;;  %s967_s21 = sphi %s1020_s21, %s1157_s21   ;;  %s963_s20 = sphi %s1018_s20, %s1156_s20   ;;  %s959_s19 = sphi %s1016_s19, %s1155_s19   ;;  %s955_s18 = sphi %s1014_s18, %s1154_s18  }
   0x5   : > { %p31_p0 = scmp.ge.s32.totalorder %s30_s25, 4  ;;  %s45_s27 = sadd.s32 3, %s971_s22 }
   0x6   : > { %p61_p1 = scmp.ne.s32.totalorder %s959_s19, %s955_s18  ;;  %p62_p2 = scmp.eq.s32.totalorder %s979_s24, 0 }
   0x7   : > { %s1161_s25 = smov (%p31_p0, %s30_s25), 0  ;;  %s1163_s26 = smov (!%p31_p0, %s41_s26), %s975_s23 }
   0x8   : > { %s46_s28 = sadd.s32 3, %s1161_s25  ;;  %p43_p3 = scmp.ge.s32.totalorder %s1163_s26, 2 }
   0x9   : > { %s50_s29 = ssub.s32 %s45_s27, %s46_s28  ;;  %p63_p4 = por %p62_p2, %p61_p1 }
   0xa   : > { %s1165_s26 = smov (%p43_p3, %s1163_s26), 0  ;;  %s54_s7 = sadd.s32 1, %s959_s19 }
   0xb   : > { %s47_s30 = ssub.s32 %s975_s23, %s1165_s26  ;;  %p787_p6 = scmp.ge.s32.totalorder %s979_s24, 8 }
   0xc   : > { %s51_s6 = sor.u32 %s50_s29, %s47_s30 }
   0xd   : > { %p52_p5 = scmp.eq.s32.totalorder %s51_s6, 0  ;;  %235 = sbr.rel (%p787_p6) target bundleno = 28 (0x1c), region = 20 }
   0xf   : > { %s1065_s8 = scalar_select %p52_p5, %s959_s19, %s54_s7  }
  0x14   : > { %238 = sbr.rel (!%p63_p4) target bundleno = 28 (0x1c), region = 24  ;;  %s240_s9 = sand.u32 (%p63_p4), 1, %s959_s19  }
  0x15   : > { %s653_s10 = smul.u32 (%p63_p4), 14, %s975_s23  ;;  %s788_s11 = sshll.u32 (%p63_p4), %s240_s9, 3 }
  0x16   : > { %s242_s17 = scalar_lea.vmem (%p63_p4), [#allocation3], %s788_s11 }
  0x17   : > { %s654_s12 = sadd.s32 (%p63_p4), %s971_s22, %s653_s10 }
  0x18   : > { %s789_s13 = sshll.u32 (%p63_p4), %s654_s12, 2 }
  0x19   : > { %s656_s16 = scalar_lea.vmem (%p63_p4), %s1148_s0, %s789_s13 }
  0x1a   : > { %v790_v0 = vld [vmem:[%s656_s16 + $0xc] sm:$0xf] (%p63_p4)  ;;  %v791_v1 = vld [vmem:[%s656_s16 + $0x28] sm:$0xf] (%p63_p4) }
  0x1b   : > { %267 = vst [vmem:[%s242_s17] sm:$0xf] %v790_v0  ;;  %269 = vst [vmem:[%s242_s17 + $0x4] sm:$0xf] %v791_v1 }
  0x1c PF: > { %p792_p7 = scmp.ge.s32.totalorder %s979_s24, 1  ;;  %p332_p8 = scmp.lt.s32.totalorder %s979_s24, 9 }
  0x1e   : > { %p333_p9 = pnand %p792_p7, %p332_p8 }
  0x1f   : > { %s339_s27 = sand.u32 (!%p333_p9), 1, %s955_s18   ;;  %s794_s28 = sshll.u32 (!%p333_p9), %s963_s20, 4 }
  0x20   : > { %336 = sbr.rel (%p333_p9) target bundleno = 316 (0x13c), region = 77  ;;  %s1078_s29 = sshll.u32 (!%p333_p9), %s339_s27, 3 }
  0x21   : > { %p405_p10 = scmp.lt.s32.totalorder (!%p333_p9), %s794_s28, 63  ;;  %p417_p11 = scmp.lt.s32.totalorder (!%p333_p9), %s967_s21, 1 }
  0x22   : > { %p800_p12 = scmp.ne.s32.totalorder (!%p333_p9), %s963_s20, 0 }
  0x27   : > { %s1167_s28 = smov (!%p405_p10, %s794_s28), 63  ;;  %s1169_s21 = smov (!%p417_p11, %s967_s21), 1 }
  0x28   : > { %s795_s30 = sshll.u32 %s1167_s28, 2  ;;  %s815_s10 = sshll.u32 %s1169_s21, 3  ;;  %v981_v2 = vmov (!%p800_p12), 0.0  }
  0x29   : > { %s1087_s9 = scalar_lea.vmem %s1149_s1, %s795_s30  ;;  %s1093_s12 = scalar_lea.vmem %s1151_s3, %s815_s10  ;;  %453 = vst [vmem:[#allocation2] sm:$0xff] (!%p800_p12), %v981_v2  ;;  %454 = vst [vmem:[#allocation2 + $0x8] sm:$0xff] (!%p800_p12), %v981_v2 }
  0x2a   : > { %s434_s15 = scalar_lea.vmem %s1152_s4, %s1169_s21  ;;  %s1102_s27 = scalar_lea.vmem %s1153_s5, %s815_s10 }
  0x2b   : > { %s341_s28 = scalar_lea.vmem [#allocation3], %s1078_s29  ;;  %452 = sbr.rel (%p800_p12) target bundleno = 50 (0x32), region = 85 }
  0x32 PF: > { %v916_v3 = vld [vmem:[%s1087_s9] sm:$0xff]   ;;  %v982_v4 = vmov 0.0   ;;  %v917_v5 = vld [vmem:[%s1087_s9 + $0x8] sm:$0xff]   ;;  %vm983_vm0 = vmmov 0   ;;  %v918_v6 = vld [vmem:[%s1087_s9 + $0x10] sm:$0xff]   ;;  %p810_p13 = scmp.ne.s32.totalorder %s963_s20, 3 }
  0x33   : > { %837 = vmatprep.subr.bf16.mxu0 %v982_v4  ;;  %853 = vmatprep.mubr.msk.bf16.mxu0 %vm983_vm0, %v982_v4  ;;  %v919_v7 = vld [vmem:[%s1087_s9 + $0x18] sm:$0xff]   ;;  %v920_v8 = vld [vmem:[%s1087_s9 + $0x20] sm:$0xff]   ;;  %v921_v9 = vld [vmem:[%s1087_s9 + $0x28] sm:$0xff]   ;;  %v582_v22 = vlaneseq (!%p810_p13) }
  0x34   : > { %838 = vmatpush3.bf16.msra.mxu0 %v916_v3  ;;  %v922_v10 = vld [vmem:[%s1087_s9 + $0x30] sm:$0xff]   ;;  %v923_v11 = vld [vmem:[%s1087_s9 + $0x38] sm:$0xff]   ;;  %v457_v13 = vld [vmem:[#allocation2] sm:$0xff] }
  0x35   : > { %839 = vmatprep.subr.bf16.mxu0 %v982_v4  ;;  %v924_v12 = vld [vmem:[%s341_s28] sm:$0xff]   ;;  %v458_v15 = vld [vmem:[#allocation2 + $0x8] sm:$0xff]  ;;  %v580_v21 = vld [vmem:[%s1150_s2] sm:$0x1] (!%p810_p13)  ;;  %v583_v25 = vshrl.u32 (!%p810_p13), %v582_v22, 7 }
  0x36   : > { %v592_v23 = vld [vmem:[%s434_s15] sm:$0x1] (!%p810_p13)  ;;  %v581_v24 = vunpack.c.l.bf16 (!%p810_p13), %v580_v21 }
  0x37   : > { %v593_v26 = vunpack.c.l.bf16 (!%p810_p13), %v592_v23  ;;  %v584_v27 = vsub.s32 (!%p810_p13), 0, %v583_v25  ;;  %v820_v30 = vld [vmem:[%s1093_s12] sm:$0xff] (!%p810_p13)  }
  0x38   : > { %840 = vmatpush3.bf16.msra.mxu0 %v917_v5  ;;  %v821_v35 = vunpack.c.l.bf16 (!%p810_p13), %v820_v30  ;;  %v822_v36 = vunpack.c.h.bf16 (!%p810_p13), %v820_v30 }
  0x39   : > { %841 = vmatprep.subr.bf16.mxu0 %v982_v4  ;;  %v585_v31 = vrot.slane (!%p810_p13), %v581_v24, %v584_v27  ;;  %v597_v32 = vrot.slane (!%p810_p13), %v593_v26, %v584_v27 }
  0x3c   : > { %842 = vmatpush3.bf16.msra.mxu0 %v918_v6 }
  0x3d   : > { %843 = vmatprep.subr.bf16.mxu0 %v982_v4 }
  0x40   : > { %844 = vmatpush3.bf16.msra.mxu0 %v919_v7 }
  0x41   : > { %845 = vmatprep.subr.bf16.mxu0 %v982_v4 }
  0x44   : > { %846 = vmatpush3.bf16.msra.mxu0 %v920_v8 }
  0x45   : > { %847 = vmatprep.subr.bf16.mxu0 %v982_v4 }
  0x48   : > { %848 = vmatpush3.bf16.msra.mxu0 %v921_v9 }
  0x49   : > { %849 = vmatprep.subr.bf16.mxu0 %v982_v4 }
  0x4c   : > { %850 = vmatpush3.bf16.msra.mxu0 %v922_v10 }
  0x4d   : > { %851 = vmatprep.subr.bf16.mxu0 %v982_v4 }
  0x50   : > { %852 = vmatpush3.bf16.msra.mxu0 %v923_v11 }
  0x53   : > { %854 = vmatmul.mubr.bf16.vlgmr.msra.gmra.mrb[0].mxu0 %v924_v12 }
 0x125   : > { %577 = sbr.rel (%p810_p13) target bundleno = 316 (0x13c), region = 89 }
 0x126   : > { %v563_v14 = vpop.f32.mrb[0].mxu0 }
 0x127   : > { %v570_v16 = vadd.f32 %v563_v14, %v457_v13  ;;  %v855_v17 = vpop.f32.mrb[1].mxu0 }
 0x128   : > { %v566_v18 = vpop.f32.mrb[2].mxu0 }
 0x129   : > { %572 = vst [vmem:[#allocation2] sm:$0xff] %v570_v16  ;;  %v571_v19 = vadd.f32 %v566_v18, %v458_v15  ;;  %v856_v20 = vpop.f32.mrb[3].mxu0 }
 0x12b   : > { %573 = vst [vmem:[#allocation2 + $0x8] sm:$0xff] %v571_v19 }
 0x130   : > { %v578_v28 = vld [vmem:[#allocation2] sm:$0xff] }
 0x131   : > { %v586_v33 = vadd.f32 %v585_v31, %v578_v28 }
 0x132   : > { %v579_v29 = vld [vmem:[#allocation2 + $0x8] sm:$0xff] }
 0x133   : > { %v587_v34 = vadd.f32 %v585_v31, %v579_v29  ;;  %v598_v37 = vmul.f32 %v597_v32, %v586_v33 }
 0x135   : > { %v599_v38 = vmul.f32 %v597_v32, %v587_v34  ;;  %v600_v39 = vadd.f32 %v821_v35, %v598_v37 }
 0x137   : > { %v601_v40 = vadd.f32 %v822_v36, %v599_v38 }
 0x139   : > { %v826_v41 = vpack.c.bf16 %v601_v40, %v600_v39 }
 0x13b   : > { %827 = vst [vmem:[%s1102_s27] sm:$0xff] %v826_v41  }
 0x13c PF: > { %s15_s24 = sadd.s32 1, %s979_s24   ;;  %s1154_s18 = smov %s959_s19 }
 0x13d   : > { %p12_p0 = scmp.ge.s32.totalorder %s15_s24, 10   ;;  %s1155_s19 = smov %s1065_s8 }
 0x13e   : > { %s1156_s20 = smov %s971_s22  ;;  %s1157_s21 = smov %s975_s23 }
 0x13f   : > { %s1158_s22 = smov %s1161_s25  ;;  %s1159_s23 = smov %s1165_s26 }
 0x140   :  { %14 = sbr.rel (!%p12_p0) target bundleno = 4 (0x4), region = 136 }

// kernel: _lambda_.74
= control target key start
LH: loop header
LB: loop body
LE: loop exit
PB: predicated region body
PF: predicated region fallthrough
CT: control target
= control target key end

     0   :  { %v305_v1 = vmov 0   ;;  %v306_v25 = vmov 0.0   ;;  %v174_v26 = vlaneseq  ;;  %v307_v27 = vmov 1983009808   ;;  %s386_s1 = inlined_call_operand.vmem [shape: bf16[128,256], index: 1, kind: input, shape index: {}]   ;;  %s387_s0 = inlined_call_operand.vmem [shape: bf16[1,2,128], index: 0, kind: input, shape index: {}]   ;;  %s388_s2 = inlined_call_operand.vmem [shape: bf16[1,1,256], index: 2, kind: input, shape index: {}]   ;;  %s389_s3 = inlined_call_operand.vmem [shape: bf16[1,2,256], index: 3, kind: output, shape index: {}]  }
   0x1   :  { %v277_v0 = vld [vmem:[%s386_s1 + $0x4] ss:$8 sps:$4 sm:$0xff]   ;;  %159 = vmatprep.mubr.bf16.mxu0 %v305_v1  ;;  %v279_v2 = vld [vmem:[%s386_s1] ss:$8 sps:$4 sm:$0xff]   ;;  %v280_v3 = vld [vmem:[%s386_s1 + $0x14] ss:$8 sps:$4 sm:$0xff]   ;;  %v172_v28 = vunpack.c.l.s4 %v307_v27 }
   0x2   :  { %127 = vmatprep.subr.bf16.mxu0 %v277_v0  ;;  %v282_v4 = vld [vmem:[%s386_s1 + $0x10] ss:$8 sps:$4 sm:$0xff]   ;;  %v283_v5 = vld [vmem:[%s386_s1 + $0x24] ss:$8 sps:$4 sm:$0xff]   ;;  %v285_v6 = vld [vmem:[%s386_s1 + $0x20] ss:$8 sps:$4 sm:$0xff]  }
   0x3   :  { %128 = vmatpush1.bf16.msra.mxu0 %v279_v2  ;;  %v286_v7 = vld [vmem:[%s386_s1 + $0x34] ss:$8 sps:$4 sm:$0xff]   ;;  %v20_v8 = vld [vmem:[%s387_s0] sm:$0x1]  ;;  %v288_v9 = vld [vmem:[%s386_s1 + $0x30] ss:$8 sps:$4 sm:$0xff]   ;;  %v173_v31 = vunpack.c.0.s8 %v172_v28 }
   0x4   :  { %129 = vmatprep.subr.bf16.mxu0 %v280_v3  ;;  %v21_v10 = vunpack.c.l.bf16 %v20_v8  ;;  %v289_v11 = vld [vmem:[%s386_s1 + $0x44] ss:$8 sps:$4 sm:$0xff]   ;;  %v291_v13 = vld [vmem:[%s386_s1 + $0x40] ss:$8 sps:$4 sm:$0xff]   ;;  %v292_v14 = vld [vmem:[%s386_s1 + $0x54] ss:$8 sps:$4 sm:$0xff]  }
   0x5   :  { %v294_v15 = vld [vmem:[%s386_s1 + $0x50] ss:$8 sps:$4 sm:$0xff]   ;;  %v295_v16 = vld [vmem:[%s386_s1 + $0x64] ss:$8 sps:$4 sm:$0xff]   ;;  %v297_v17 = vld [vmem:[%s386_s1 + $0x60] ss:$8 sps:$4 sm:$0xff]  }
   0x6   :  { %v254_v12 = vmul.f32 -1.442695, %v21_v10  ;;  %v298_v18 = vld [vmem:[%s386_s1 + $0x74] ss:$8 sps:$4 sm:$0xff]   ;;  %v300_v21 = vld [vmem:[%s386_s1 + $0x70] ss:$8 sps:$4 sm:$0xff]  }
   0x7   :  { %130 = vmatpush1.bf16.msra.mxu0 %v282_v4  ;;  %19 = vst [vmem:[#allocation2] sm:$0xf] %v306_v25  ;;  %v185_v29 = vld [vmem:[%s388_s2] sm:$0x3]  ;;  %v175_v30 = vshrl.u32 %v174_v26, 7 }
   0x8   :  { %131 = vmatprep.subr.bf16.mxu0 %v283_v5  ;;  %301 = vpow2.f32 %v254_v12  ;;  %v186_v32 = vunpack.c.l.bf16 %v185_v29  ;;  %v308_v50 = vmov 1966171168  }
   0x9   :  { %v190_v33 = vsub.s32 0, %v175_v30  ;;  %v194_v34 = vsub.s32 2, %v175_v30  ;;  %v176_v36 = vsub.s32 %v173_v31, %v175_v30  ;;  %v235_v51 = vunpack.c.l.s4 %v308_v50 }
   0xb   :  { %132 = vmatpush1.bf16.msra.mxu0 %v285_v6  ;;  %v191_v37 = vrot.slane %v186_v32, %v190_v33  ;;  %v195_v38 = vrot.slane %v186_v32, %v194_v34  ;;  %v236_v54 = vunpack.c.0.s8 %v235_v51 }
   0xc   :  { %133 = vmatprep.subr.bf16.mxu0 %v286_v7 }
   0xd   :  { %v201_v45 = vrot.slane %v191_v37, %v190_v33  ;;  %v205_v46 = vrot.slane %v195_v38, %v190_v33  ;;  %v239_v57 = vsub.s32 %v236_v54, %v175_v30 }
   0xe   :  { %v30_v42 = vld [vmem:[#allocation2] sm:$0xf] }
   0xf   :  { %134 = vmatpush1.bf16.msra.mxu0 %v288_v9  ;;  %v208_v48 = vcombine.low %v201_v45, %v205_v46 }
  0x10   :  { %135 = vmatprep.subr.bf16.mxu0 %v289_v11 }
  0x11   :  { %v215_v49 = vrot.slane %v208_v48, %v176_v36 }
  0x12   :  { %v302_v19 = vpop.eup %301 }
  0x13   :  { %136 = vmatpush1.bf16.msra.mxu0 %v291_v13  ;;  %v25_v20 = vadd.f32 1.0, %v302_v19 }
  0x14   :  { %137 = vmatprep.subr.bf16.mxu0 %v292_v14 }
  0x15   :  { %303 = vrcp.f32 %v25_v20 }
  0x17   :  { %138 = vmatpush1.bf16.msra.mxu0 %v294_v15 }
  0x18   :  { %139 = vmatprep.subr.bf16.mxu0 %v295_v16 }
  0x1b   :  { %140 = vmatpush1.bf16.msra.mxu0 %v297_v17 }
  0x1c   :  { %141 = vmatprep.subr.bf16.mxu0 %v298_v18 }
  0x1f   :  { %142 = vmatpush1.bf16.msra.mxu0 %v300_v21  ;;  %v304_v22 = vpop.eup %303 }
  0x20   :  { %v28_v23 = vmul.f32 %v304_v22, %v21_v10 }
  0x22   :  { %v29_v24 = vpack.c.bf16 %v28_v23, %v28_v23 }
  0x24   :  { %160 = vmatmul.mubr.bf16.vlgmr.msra.gmra.mrb[0].mxu0 %v29_v24 }
  0xf7   :  { %v161_v35 = vpop.f32.mrb[0].mxu0 }
  0xf8   :  { %v163_v39 = vpop.f32.mrb[1].mxu0 }
  0xf9   :  { %v170_v40 = vcombine.low %v161_v35, %v163_v39  ;;  %v165_v41 = vpop.f32.mrb[2].mxu0 }
  0xfa   :  { %v166_v43 = vpop.f32.mrb[3].mxu0 }
  0xfb   :  { %v177_v44 = vrot.slane %v170_v40, %v176_v36 }
  0xfd   :  { %v179_v47 = vadd.f32 %v177_v44, %v30_v42 }
  0xff   :  { %180 = vst [vmem:[#allocation2] sm:$0xf] %v179_v47 }
 0x106   :  { %v184_v52 = vld [vmem:[#allocation2] sm:$0xf] }
 0x107   :  { %v217_v53 = vadd.f32 %v215_v49, %v184_v52 }
 0x109   :  { %v225_v55 = vrot.slane %v217_v53, %v176_v36 }
 0x10b   :  { %v226_v56 = vcombine.high %v225_v55, %v225_v55 }
 0x10d   :  { %v271_v58 = vpack.c.bf16 %v226_v56, %v225_v55 }
 0x10f   :  { %v240_v59 = vrot.slane %v271_v58, %v239_v57 }
 0x111   :  { %272 = vst.sshfl [vmem:[%s389_s3] sm:$0x5 pattern:$0x73625140] %v240_v59 }

// kernel: _lambda_.75
= control target key start
LH: loop header
LB: loop body
LE: loop exit
PB: predicated region body
PF: predicated region fallthrough
CT: control target
= control target key end

     0   :  { %10 = vsyncpa [#allocation4], 0  ;;  %s1033_s0 = inlined_call_operand.vmem [shape: bf16[2,8,128], index: 0, kind: input, shape index: {}]   ;;  %s1034_s1 = inlined_call_operand.vmem [shape: bf16[128,16], index: 1, kind: input, shape index: {}]   ;;  %s1035_s2 = inlined_call_operand.vmem [shape: bf16[1,1,16], index: 2, kind: input, shape index: {}]   ;;  %s1036_s3 = inlined_call_operand.vmem [shape: bf16[2,1,128], index: 3, kind: input, shape index: {}]   ;;  %s1037_s4 = inlined_call_operand.vmem [shape: bf16[2,1,128], index: 4, kind: input, shape index: {}]   ;;  %s1038_s5 = inlined_call_operand.hbm [shape: bf16[2,8,16], index: 5, kind: output, shape index: {}]  }
   0x1   :  { %12 = vsyncpa [#allocation4 + $0x1], 0  ;;  %s881_s18 = smov 0   ;;  %s883_s19 = smov 0  }
   0x2   :  { %s885_s20 = smov 0   ;;  %s887_s21 = smov 0  }
   0x3   :  { %s889_s22 = smov 0   ;;  %s891_s23 = smov 0  }
   0x4 LB: > { %s651_s24 = sadd.s32 4294967295, %s846_s23   ;;  %s652_s25 = sadd.s32 4294967294, %s846_s23   ;;  %s846_s23 = sphi %s891_s23, %s18_s23   ;;  %s842_s22 = sphi %s889_s22, %s1045_s22   ;;  %s838_s21 = sphi %s887_s21, %s1044_s21   ;;  %s834_s20 = sphi %s885_s20, %s1043_s20   ;;  %s830_s19 = sphi %s883_s19, %s1042_s19   ;;  %s826_s18 = sphi %s881_s18, %s1041_s18  }
   0x5   : > { %s44_s26 = sadd.s32 1, %s842_s22  ;;  %s191_s27 = sadd.s32 1, %s834_s20 }
   0x6   : > { %p46_p0 = scmp.ge.s32.totalorder %s44_s26, 2  ;;  %p201_p1 = scmp.ne.s32.totalorder %s834_s20, %s830_s19 }
   0x7   : > { %p202_p2 = scmp.eq.s32.totalorder %s651_s24, 1  ;;  %p207_p3 = scmp.ne.s32.totalorder %s830_s19, %s826_s18 }
   0x8   : > { %s1047_s26 = smov (%p46_p0, %s44_s26), 0  ;;  %p208_p5 = scmp.eq.s32.totalorder %s652_s25, 1 }
   0x9   : > { %p921_p4 = por %p202_p2, %p201_p1  ;;  %s184_s29 = ssub.s32 %s842_s22, %s1047_s26 }
   0xa   : > { %p657_p6 = scmp.ge.s32.totalorder %s846_s23, 1  ;;  %p189_p7 = scmp.eq.s32.totalorder %s184_s29, 0 }
   0xb   : > { %p928_p8 = por %p208_p5, %p207_p3  ;;  %p269_p9 = scmp.lt.s32.totalorder %s846_s23, 3 }
   0xc   : > { %s934_s6 = scalar_select %p189_p7, %s834_s20, %s191_s27  }
   0xd   : > { %p270_p10 = pnand %p657_p6, %p269_p9 }
   0xe   : > { %p319_p11 = scmp.lt.s32.totalorder (!%p270_p10), %s838_s21, 1  ;;  %v758_v2 = vld [vmem:[%s1034_s1] sm:$0xff] (!%p270_p10)   ;;  %v848_v3 = vmov (!%p270_p10), 0.0   ;;  %v759_v4 = vld [vmem:[%s1034_s1 + $0x8] sm:$0xff] (!%p270_p10)   ;;  %v760_v9 = vld [vmem:[%s1034_s1 + $0x10] sm:$0xff] (!%p270_p10)   ;;  %vm849_vm0 = vmmov (!%p270_p10), 0   ;;  %v373_v17 = vlaneseq (!%p270_p10) }
   0xf   : > { %273 = sbr.rel (%p270_p10) target bundleno = 582 (0x246), region = 40  ;;  %681 = vmatprep.subr.bf16.mxu0 (!%p270_p10), %v848_v3  ;;  %v761_v10 = vld [vmem:[%s1034_s1 + $0x18] sm:$0xff] (!%p270_p10)   ;;  %v762_v11 = vld [vmem:[%s1034_s1 + $0x20] sm:$0xff] (!%p270_p10)   ;;  %697 = vmatprep.mubr.msk.bf16.mxu0 (!%p270_p10), %vm849_vm0, %v848_v3  ;;  %v763_v12 = vld [vmem:[%s1034_s1 + $0x28] sm:$0xff] (!%p270_p10)   ;;  %vm352_vm1 = vcmask (!%p270_p10), 130048   ;;  %s316_s29 = sand.u32 (!%p270_p10), 1, %s830_s19  }
  0x10   : > { %682 = vmatpush3.bf16.msra.mxu0 (!%p270_p10), %v758_v2  ;;  %v764_v13 = vld [vmem:[%s1034_s1 + $0x30] sm:$0xff] (!%p270_p10)   ;;  %v765_v14 = vld [vmem:[%s1034_s1 + $0x38] sm:$0xff] (!%p270_p10)   ;;  %353 = vst.msk [vmem:[#allocation2] sm:$0xff] (!%p270_p10), %vm352_vm1, %v848_v3  ;;  %v374_v21 = vshrl.u32 (!%p270_p10), %v373_v17, 7  ;;  %v496_v35 = vld [vmem:[%s1035_s2] sm:$0x1] (!%p270_p10) }
  0x11   : > { %683 = vmatprep.subr.bf16.mxu0 (!%p270_p10), %v848_v3  ;;  %v497_v40 = vunpack.c.l.bf16 (!%p270_p10), %v496_v35  ;;  %s669_s9 = sshll.u32 (!%p270_p10), %s838_s21, 6  ;;  %vm504_vm2 = vcmask (!%p270_p10), 125952   ;;  %s507_s15 = scalar_lea.sflag (!%p270_p10), [#allocation4], %s316_s29 }
  0x12   : > { %v375_v24 = vsub.s32 (!%p270_p10), 0, %v374_v21  ;;  %s986_s14 = scalar_lea.hbm (!%p270_p10), %s1038_s5, %s669_s9 }
  0x14   : > { %684 = vmatpush3.bf16.msra.mxu0 (!%p270_p10), %v759_v4  ;;  %v501_v41 = vrot.slane (!%p270_p10), %v497_v40, %v375_v24 }
  0x15   : > { %685 = vmatprep.subr.bf16.mxu0 (!%p270_p10), %v848_v3 }
  0x16   : > { %s938_s7 = scalar_select %p319_p11, %s838_s21, 1 }
  0x17   : > { %v384_v33 = vld [vmem:[#allocation2] sm:$0xff]  ;;  %s850_s21 = smov [#allocation3]  }
  0x18   : > { %s659_s8 = sshll.u32 %s938_s7, 2  ;;  %686 = vmatpush3.bf16.msra.mxu0 %v760_v9  ;;  %s343_s16 = scalar_lea.vmem %s1036_s3, %s938_s7 }
  0x19   : > { %s328_s11 = scalar_lea.vmem %s1033_s0, %s659_s8  ;;  %687 = vmatprep.subr.bf16.mxu0 %v848_v3  ;;  %v368_v19 = vld [vmem:[%s343_s16] sm:$0x1]  ;;  %s346_s25 = scalar_lea.vmem %s1037_s4, %s938_s7 }
  0x1a   : > { %v354_v0 = vld [vmem:[%s328_s11] sm:$0xf]  ;;  %v369_v20 = vunpack.c.l.bf16 %v368_v19  ;;  %s658_s8 = sshll.u32 %s316_s29, 2  ;;  %s772_s17 = sshll.u32 %s850_s21, 4  ;;  %s773_s17 = int_to_ptr.vmem [resolvable:$false] %s772_s17 }
  0x1b   : > { %v355_v1 = vunpack.c.l.bf16 %v354_v0  ;;  %v370_v22 = vld [vmem:[%s346_s25] sm:$0x1]  ;;  %s318_s10 = scalar_lea.vmem [#allocation3], %s658_s8  ;;  %s774_s24 = scalar_lea.vmem %s773_s17, 128 }
  0x1c   : > { %688 = vmatpush3.bf16.msra.mxu0 %v761_v10  ;;  %v372_v23 = vadd.f32 1.0, %v369_v20  ;;  %v371_v25 = vunpack.c.l.bf16 %v370_v22  ;;  %s522_s11 = sshll.u32 %s318_s10, 4  ;;  %s988_s11 = int_to_ptr.vmem [resolvable:$true] %s522_s11 }
  0x1d   : > { %356 = vadd.xlane.f32.xlu0 %v355_v1  ;;  %689 = vmatprep.subr.bf16.mxu0 %v848_v3  ;;  %s768_s16 = scalar_lea.vmem %s988_s11, 64  ;;  %p775_p1 = scmp.lt.s32.totalorder %s988_s11, %s773_s17 }
  0x1e   : > { %v376_v26 = vrot.slane %v372_v23, %v375_v24  ;;  %v381_v29 = vrot.slane %v371_v25, %v375_v24  ;;  %p769_p12 = scmp.ne.s32.totalorder %s988_s11, %s768_s16  ;;  %p776_p2 = scmp.lt.s32.totalorder %s774_s24, %s768_s16 }
  0x20   : > { %690 = vmatpush3.bf16.msra.mxu0 %v762_v11  ;;  %p770_p13 = pnand %p769_p12, %p921_p4  ;;  %p777_p3 = por %p776_p2, %p775_p1 }
  0x21   : > { %691 = vmatprep.subr.bf16.mxu0 %v848_v3 }
  0x22   : > { %p771_p0 = pneg %p770_p13 }
  0x24   : > { %692 = vmatpush3.bf16.msra.mxu0 %v763_v12  ;;  %p778_p5 = pnand %p777_p3, %p771_p0 }
  0x25   : > { %693 = vmatprep.subr.bf16.mxu0 %v848_v3 }
  0x28   : > { %694 = vmatpush3.bf16.msra.mxu0 %v764_v13 }
  0x29   : > { %695 = vmatprep.subr.bf16.mxu0 %v848_v3 }
  0x2c   : > { %696 = vmatpush3.bf16.msra.mxu0 %v765_v14 }
  0xaa   : > { %v357_v5 = vpop.xlane.xlu0 %356 }
  0xab   : > { %v359_v6 = vmul.f32 0.0078125, %v357_v5 }
  0xad   : > { %v360_v7 = vsub.f32 %v355_v1, %v359_v6 }
  0xaf   : > { %v361_v8 = vmul.f32 %v360_v7, %v360_v7 }
  0xb1   : > { %362 = vadd.xlane.f32.xlu0 %v361_v8 }
 0x13e   : > { %v363_v15 = vpop.xlane.xlu0 %362 }
 0x13f   : > { %v364_v16 = vmul.f32 0.0078125, %v363_v15 }
 0x141   : > { %v365_v18 = vadd.f32 1e-06, %v364_v16 }
 0x143   : > { %766 = vrsqrt.f32 %v365_v18 }
 0x14d   : > { %v767_v27 = vpop.eup %766 }
 0x14e   : > { %v367_v28 = vmul.f32 %v767_v27, %v360_v7 }
 0x150   : > { %v377_v30 = vmul.f32 %v376_v26, %v367_v28 }
 0x152   : > { %v382_v31 = vadd.f32 %v381_v29, %v377_v30 }
 0x154   : > { %v383_v32 = vpack.c.bf16 %v382_v31, %v382_v31 }
 0x156   : > { %698 = vmatmul.mubr.bf16.vlgmr.msra.gmra.mrb[0].mxu0 %v383_v32 }
 0x229   : > { %v483_v34 = vpop.f32.mrb[0].mxu0 }
 0x22a   : > { %v489_v36 = vadd.f32 %v483_v34, %v384_v33  ;;  %v699_v37 = vpop.f32.mrb[1].mxu0 }
 0x22b   : > { %v486_v38 = vpop.f32.mrb[2].mxu0 }
 0x22c   : > { %491 = vst.msk [vmem:[#allocation2] sm:$0xff] %vm352_vm1, %v489_v36  ;;  %v700_v39 = vpop.f32.mrb[3].mxu0 }
 0x233   : > { %v495_v42 = vld [vmem:[#allocation2] sm:$0xff] }
 0x234   : > { %v502_v43 = vadd.f32 %v501_v41, %v495_v42 }
 0x236   : > { %v503_v44 = vpack.c.bf16 %v502_v43, %v502_v43 }
 0x238   : > { %505 = vst.msk [vmem:[%s318_s10] sm:$0xf] %vm504_vm2, %v503_v44 }
 0x239   : > { %781 = shalt.err (!%p778_p5)
}
 0x23a   : > { %s782_s25 = scalar_lea.hbm %s986_s14, 64  ;;  %s786_s29 = scalar_lea.hbm %s1038_s5, 128 }
 0x23b   : > { %p783_p6 = scmp.ne.s32.totalorder %s986_s14, %s782_s25  ;;  %p787_p10 = scmp.lt.u32.totalorder %s986_s14, %s1038_s5 }
 0x23c   : > { %p788_p11 = scmp.lt.u32.totalorder %s786_s29, %s782_s25  ;;  %p790_p13 = scmp.lt.u32.totalorder %s782_s25, %s986_s14 }
 0x23d   : > { %p784_p7 = pnand %p783_p6, %p921_p4 }
 0x23e   : > { %p789_p12 = por %p788_p11, %p787_p10 }
 0x23f   : > { %p785_p9 = pneg %p784_p7 }
 0x240   : > { %p791_p0 = por %p790_p13, %p789_p12 }
 0x242   : > { %p792_p1 = pnand %p791_p0, %p785_p9 }
 0x244   : > { %795 = shalt.err (!%p792_p1)
}
 0x245   : > { %701 = dma.vmem_to_hbm [thread:$0]  (%p921_p4), %s988_s11, 64, %s986_s14, %s507_s15  }
 0x246 PF: > { %p707_p2 = scmp.ge.s32.totalorder %s846_s23, 2  ;;  %s534_s10 = sand.u32 1, %s826_s18  }
 0x247   : > { %s535_s12 = scalar_lea.sflag [#allocation4], %s534_s10 }
 0x248   : > { %p704_p3 = pnand %p707_p2, %p928_p8 }
 0x24a   : > { %821 = dma.done.wait (!%p704_p3), %s535_s12, 64  }
 0x24b   : > { %823 = vsyncadd (!%p704_p3), %s535_s12, 4294967232  ;;  %s18_s23 = sadd.s32 1, %s846_s23   ;;  %s1041_s18 = smov %s830_s19 }
 0x24c   : > { %p15_p5 = scmp.ge.s32.totalorder %s18_s23, 4   ;;  %s1042_s19 = smov %s834_s20 }
 0x24d   : > { %s1043_s20 = smov %s934_s6  ;;  %s1044_s21 = smov %s842_s22 }
 0x24e   : > { %s1045_s22 = smov %s1047_s26  ;;  %17 = sbr.rel (!%p15_p5) target bundleno = 4 (0x4), region = 95 }
 0x255   :  { %540 = vsyncpa [#allocation4], 1 }
 0x256   :  { %542 = vsyncpa [#allocation4 + $0x1], 1 }

</bundles_post_ra>
